<compile_context>
chip_gen: v7x
topology: tpu7x:2x2x1
jax: 0.10.0
libtpu: 0.0.40
codegen_flags: <defaults>
</compile_context>

<pallas_src>
import math

import jax
import jax.numpy as jnp
from jax.experimental import pallas as pl
from jax.experimental.pallas import tpu as pltpu


def _round_up(x, m):
    return ((x + m - 1) // m) * m


def _row_tiles(m):
    """Largest convenient row tile (big tiles amortize the ~0.35us/grid-step cost)."""
    for t in (512, 256, 128, 64, 32, 16, 8):
        if m % t == 0:
            return t, m
    return 8, _round_up(m, 8)


# ----------------------------------------------------------------------------
# Kernel 1: fused 1x1 Conv + BN + SiLU  (row-tiled bf16 matmul, f32 epilogue)
# ----------------------------------------------------------------------------
def _pw_kernel(a_ref, w_ref, b_ref, o_ref):
    y = jnp.dot(a_ref[...], w_ref[...], preferred_element_type=jnp.float32)
    y = y + b_ref[...]                                      # BN scale folded into W
    y = y * pl.reciprocal(1.0 + jnp.exp(-y), approx=True)   # SiLU (exp + rcp on EUP)
    o_ref[...] = y.astype(o_ref.dtype)


def pointwise_conv_bn_silu(a2d, w, bias):
    """a2d:(M, >=K) bf16 (only the first K lanes are read), w:(K,N) bf16,
    bias:(1,N) f32 -> (M,N) bf16."""
    m = a2d.shape[0]
    k_in, n_out = w.shape
    tm, mp = _row_tiles(m)
    if mp != m:                             # only if B*H*W is not even 8-aligned
        a2d = jnp.pad(a2d, ((0, mp - m), (0, 0)))
    cost = pl.CostEstimate(
        flops=2 * mp * k_in * n_out,
        transcendentals=mp * n_out,
        bytes_accessed=mp * k_in * 2 + k_in * n_out * 2 + n_out * 4 + mp * n_out * 2,
    )
    out = pl.pallas_call(
        _pw_kernel,
        out_shape=jax.ShapeDtypeStruct((mp, n_out), jnp.bfloat16),
        grid=(mp // tm,),
        in_specs=[
            pl.BlockSpec((tm, k_in), lambda i: (i, 0)),
            pl.BlockSpec((k_in, n_out), lambda i: (0, 0)),
            pl.BlockSpec((1, n_out), lambda i: (0, 0)),
        ],
        out_specs=pl.BlockSpec((tm, n_out), lambda i: (i, 0)),
        compiler_params=pltpu.CompilerParams(dimension_semantics=("parallel",)),
        cost_estimate=cost,
    )(a2d, w, bias)
    return out if mp == m else out[:m]


# ----------------------------------------------------------------------------
# Kernel 2: 3x3 Conv + BN + SiLU (+ residual, + optional concat-layout output)
#           shift-and-accumulate inside the kernel: no im2col materialization
# ----------------------------------------------------------------------------
def _make_conv3_kernel(h, w, cout, has_res, has_tail):
    taps = tuple((dy, dx) for dy in range(3) for dx in range(3))

    def body(x_ref, w_ref, b_ref, r_ref, t_ref, o_ref):
        xw = x_ref[0]                                  # (h+2, w+2, cin) bf16
        cin = xw.shape[-1]
        acc = None
        for t, (dy, dx) in enumerate(taps):            # 9 shifted (cin x cout) matmuls
            a = xw[dy:dy + h, dx:dx + w, :].reshape(h * w, cin)
            d = jnp.dot(a, w_ref[t], preferred_element_type=jnp.float32)
            acc = d if acc is None else acc + d
        y = acc + b_ref[...]
        y = y * pl.reciprocal(1.0 + jnp.exp(-y), approx=True)    # SiLU
        if r_ref is not None:                          # Bottleneck shortcut (post-SiLU)
            y = y + r_ref[0].reshape(h * w, cout).astype(jnp.float32)
        o_ref[0, :, :, 0:cout] = y.astype(o_ref.dtype).reshape(h, w, cout)
        if t_ref is not None:                          # write x2 next to x1 (concat layout)
            o_ref[0, :, :, cout:2 * cout] = t_ref[0]

    if has_res and has_tail:
        return lambda x, wgt, b, r, t, o: body(x, wgt, b, r, t, o)
    if has_res:
        return lambda x, wgt, b, r, o: body(x, wgt, b, r, None, o)
    if has_tail:
        return lambda x, wgt, b, t, o: body(x, wgt, b, None, t, o)
    return lambda x, wgt, b, o: body(x, wgt, b, None, None, o)


def conv3x3_bn_silu(xpad, w, bias, residual=None, tail=None):
    """xpad:(B,H+2,W+2,Cin) bf16 (spatial zero halo), w:(9,Cin,Cout) bf16,
    bias:(1,Cout) f32.  `residual`/`tail` may be wider arrays; only lanes
    [0:Cout] / [Cout:2*Cout] are read.  With `tail`, output = [result | tail]."""
    b_, hp2, wp2, cin = xpad.shape
    h, w_sp = hp2 - 2, wp2 - 2
    cout = w.shape[-1]
    out_c = cout * (2 if tail is not None else 1)

    in_specs = [
        pl.BlockSpec((1, hp2, wp2, cin), lambda b: (b, 0, 0, 0)),
        pl.BlockSpec((9, cin, cout), lambda b: (0, 0, 0)),
        pl.BlockSpec((1, cout), lambda b: (0, 0)),
    ]
    args = [xpad, w, bias]
    if residual is not None:
        in_specs.append(pl.BlockSpec((1, h, w_sp, cout), lambda b: (b, 0, 0, 0)))
        args.append(residual)
    if tail is not None:
        in_specs.append(pl.BlockSpec((1, h, w_sp, cout), lambda b: (b, 0, 0, 1)))
        args.append(tail)

    kernel = _make_conv3_kernel(h, w_sp, cout, residual is not None, tail is not None)
    cost = pl.CostEstimate(
        flops=2 * b_ * h * w_sp * 9 * cin * cout,
        transcendentals=b_ * h * w_sp * cout,
        bytes_accessed=int(xpad.size) * 2 + int(w.size) * 2 + int(bias.size) * 4
        + b_ * h * w_sp * out_c * 2
        + (b_ * h * w_sp * cout * 2 if residual is not None else 0)
        + (b_ * h * w_sp * cout * 2 if tail is not None else 0),
    )
    return pl.pallas_call(
        kernel,
        out_shape=jax.ShapeDtypeStruct((b_, h, w_sp, out_c), jnp.bfloat16),
        grid=(b_,),
        in_specs=in_specs,
        out_specs=pl.BlockSpec((1, h, w_sp, out_c), lambda b: (b, 0, 0, 0)),
        compiler_params=pltpu.CompilerParams(dimension_semantics=("parallel",)),
        cost_estimate=cost,
    )(*args)


# ----------------------------------------------------------------------------
# Deterministic synthetic parameters (Conv + BN folded, 128-lane padded, bf16)
# ----------------------------------------------------------------------------
class _KeyGen:
    def __init__(self, key):
        self._key = key
        self._i = 0

    def __call__(self):
        self._i += 1
        return jax.random.fold_in(self._key, self._i)


def _init_conv(kg, cin, cout, k):
    """Conv2d(k, s=1, pad=k//2) + BatchNorm2d(eps=1e-3) + SiLU, BN affine folded
    into (weight, bias); zero-padded to 128 lanes; weight stored bf16."""
    cinp, coutp = _round_up(cin, 128), _round_up(cout, 128)
    w = jax.random.normal(kg(), (k, k, cin, cout), jnp.float32) / math.sqrt(k * k * cin)
    gamma = jax.random.uniform(kg(), (cout,), jnp.float32, 0.5, 1.5)
    beta = jax.random.normal(kg(), (cout,), jnp.float32) * 0.1
    mean = jax.random.normal(kg(), (cout,), jnp.float32) * 0.1
    var = jax.random.uniform(kg(), (cout,), jnp.float32, 0.5, 1.5)
    scale = gamma / jnp.sqrt(var + 1e-3)          # BatchNorm2d(eps=0.001)
    bias = beta - mean * scale
    wf = w * scale                                # fold BN scale into weight columns
    if k == 1:
        wp = jnp.zeros((cinp, coutp), jnp.float32).at[:cin, :cout].set(
            wf.reshape(cin, cout))
    else:
        wp = jnp.zeros((k * k, cinp, coutp), jnp.float32).at[:, :cin, :cout].set(
            wf.reshape(k * k, cin, cout))
    bp = jnp.zeros((1, coutp), jnp.float32).at[0, :cout].set(bias)
    return {"w": wp.astype(jnp.bfloat16), "b": bp}


def init_c3(key, c1, c2, n=1, shortcut=True, e=0.5):
    kg = _KeyGen(key)
    c_ = int(c2 * e)
    cv1 = _init_conv(kg, c1, c_, 1)
    cv2 = _init_conv(kg, c1, c_, 1)
    # cv1 / cv2 read the same input -> fuse along N into one matmul whose output is
    # already laid out as [x1 | x2] along lanes.
    w12 = jnp.concatenate([cv1["w"], cv2["w"]], axis=1)
    b12 = jnp.concatenate([cv1["b"], cv2["b"]], axis=1)
    # NOTE: reference C3.forward never applies cv3, so cv3 is not created.
    m = [{"cv1": _init_conv(kg, c_, c_, 1),
          "cv2": _init_conv(kg, c_, c_, 3),
          "add": bool(shortcut)}                  # Bottleneck(c_, c_, e=1.0): c1 == c2
         for _ in range(n)]
    return {"w12": w12, "b12": b12, "m": m, "c_": c_}


# ----------------------------------------------------------------------------
# C3 forward
# ----------------------------------------------------------------------------
def c3_forward(params, x_nchw):
    c_ = params["c_"]
    cp = _round_up(c_, 128)
    x = jnp.transpose(x_nchw, (0, 2, 3, 1))       # NCHW -> NHWC
    b, h, w, c1 = x.shape
    c1p = _round_up(c1, 128)
    # pad channels to 128 lanes ONCE; carried 128-aligned bf16 end-to-end
    x = jnp.pad(x, ((0, 0), (0, 0), (0, 0), (0, c1p - c1))).astype(jnp.bfloat16)
    m = b * h * w

    # fused cv1|cv2: lanes [0:cp] = cv1(x) (= x1), lanes [cp:2cp] = cv2(x) (= x2)
    slab = pointwise_conv_bn_silu(x.reshape(m, c1p), params["w12"], params["b12"])
    slab = slab.reshape(b, h, w, 2 * cp)

    n = len(params["m"])
    cur = slab                                    # x1 lives in lanes [0:cp] of `cur`
    for i, bp in enumerate(params["m"]):
        last = i == n - 1
        t = pointwise_conv_bn_silu(cur.reshape(m, cur.shape[-1]),
                                   bp["cv1"]["w"], bp["cv1"]["b"]).reshape(b, h, w, cp)
        tpad = jnp.pad(t, ((0, 0), (1, 1), (1, 1), (0, 0)))   # 3x3 zero halo (cheap)
        cur = conv3x3_bn_silu(tpad, bp["cv2"]["w"], bp["cv2"]["b"],
                              residual=cur if bp["add"] else None,
                              tail=slab if last else None)
    out = cur                                     # (b,h,w,2cp) in [x1 | x2] lane layout

    # strip the 128-lane padding and return cat(x1, x2) in NCHW, f32
    y = jnp.concatenate([out[..., :c_], out[..., cp:cp + c_]], axis=-1)
    return jnp.transpose(y, (0, 3, 1, 2)).astype(jnp.float32)


if __name__ == "__main__":
    key = jax.random.PRNGKey(0)
    pkey, xkey = jax.random.split(key)

    B, C1, H, W = 2, 32, 16, 16
    C2, N = 32, 2
    params = init_c3(pkey, C1, C2, n=N, shortcut=True)

    x = jax.random.normal(xkey, (B, C1, H, W), jnp.float32)   # NCHW like PyTorch

    fwd = jax.jit(lambda inp: c3_forward(params, inp))
    out = fwd(x)
    jax.block_until_ready(out)

    c_ = int(C2 * 0.5)
    assert out.shape == (B, 2 * c_, H, W), out.shape
    assert out.dtype == jnp.float32
    assert bool(jnp.isfinite(out).all())
    print("KERNEL_OK")
</pallas_src>

<mosaic_0001>
module attributes {stable_mosaic.version = 11 : i64} {
  func.func @_pw_kernel(%arg0: i32, %arg1: memref<512x128xbf16, #tpu.memory_space<vmem>>, %arg2: memref<128x256xbf16, #tpu.memory_space<vmem>>, %arg3: memref<1x256xf32, #tpu.memory_space<vmem>>, %arg4: memref<512x256xbf16, #tpu.memory_space<vmem>>) attributes {dimension_semantics = [#tpu.dimension_semantics<parallel>], iteration_bounds = array<i64: 1>, scalar_prefetch = 0 : i64, scratch_operands = 0 : i64, tpu.core_type = #tpu.core_type<tc>, window_params = [{transform_indices = @transform_0, window_bounds = array<i64: 512, 128>}, {pipeline_mode = #tpu.pipeline_mode<synchronous>, transform_indices = @transform_1, window_bounds = array<i64: 128, 256>}, {pipeline_mode = #tpu.pipeline_mode<synchronous>, transform_indices = @transform_2, window_bounds = array<i64: 1, 256>}, {transform_indices = @transform_3, window_bounds = array<i64: 512, 256>}]} {
    %c0 = arith.constant 0 : index
    %c0_0 = arith.constant 0 : index
    %0 = vector.load %arg1[%c0, %c0_0] : memref<512x128xbf16, #tpu.memory_space<vmem>>, vector<512x128xbf16>
    %c0_1 = arith.constant 0 : index
    %c0_2 = arith.constant 0 : index
    %1 = vector.load %arg2[%c0_1, %c0_2] : memref<128x256xbf16, #tpu.memory_space<vmem>>, vector<128x256xbf16>
    %cst = arith.constant dense<0.000000e+00> : vector<512x256xf32>
    %2 = tpu.matmul %0, %1, %cst {dimension_numbers = #tpu.dot_dimension_numbers<[1], [0], [0], [1], [0, 0, 1, 1], [], []>} : vector<512x128xbf16>, vector<128x256xbf16>, vector<512x256xf32> -> vector<512x256xf32>
    %c0_3 = arith.constant 0 : index
    %c0_4 = arith.constant 0 : index
    %3 = vector.load %arg3[%c0_3, %c0_4] : memref<1x256xf32, #tpu.memory_space<vmem>>, vector<1x256xf32>
    %4 = vector.broadcast %3 : vector<1x256xf32> to vector<512x256xf32>
    %5 = arith.addf %2, %4 : vector<512x256xf32>
    %cst_5 = arith.constant 0.000000e+00 : f32
    %6 = vector.broadcast %cst_5 : f32 to vector<512x256xf32>
    %7 = arith.subf %6, %5 : vector<512x256xf32>
    %8 = math.exp %7 : vector<512x256xf32>
    %cst_6 = arith.constant 1.000000e+00 : f32
    %9 = vector.broadcast %cst_6 : f32 to vector<512x256xf32>
    %10 = arith.addf %9, %8 : vector<512x256xf32>
    %11 = tpu.reciprocal %10 {approx = true} : vector<512x256xf32> -> vector<512x256xf32>
    %12 = arith.mulf %5, %11 : vector<512x256xf32>
    %13 = arith.truncf %12 : vector<512x256xf32> to vector<512x256xbf16>
    %c0_7 = arith.constant 0 : index
    %c0_8 = arith.constant 0 : index
    %14 = vector.load %arg4[%c0_7, %c0_8] : memref<512x256xbf16, #tpu.memory_space<vmem>>, vector<512x256xbf16>
    tpu.vector_store %arg4[%c0_7, %c0_8], %13 {strides = array<i32>} : memref<512x256xbf16, #tpu.memory_space<vmem>>, vector<512x256xbf16>,
    return
  }
  func.func @transform_0(%arg0: i32) -> (i32, i32) {
    %c0_i32 = arith.constant 0 : i32
    %c0_i32_0 = arith.constant 0 : i32
    return %arg0, %c0_i32 : i32, i32
  }
  func.func @transform_1(%arg0: i32) -> (i32, i32) {
    %c0_i32 = arith.constant 0 : i32
    %c0_i32_0 = arith.constant 0 : i32
    %c0_i32_1 = arith.constant 0 : i32
    return %c0_i32, %c0_i32_0 : i32, i32
  }
  func.func @transform_2(%arg0: i32) -> (i32, i32) {
    %c0_i32 = arith.constant 0 : i32
    %c0_i32_0 = arith.constant 0 : i32
    %c0_i32_1 = arith.constant 0 : i32
    return %c0_i32, %c0_i32_0 : i32, i32
  }
  func.func @transform_3(%arg0: i32) -> (i32, i32) {
    %c0_i32 = arith.constant 0 : i32
    %c0_i32_0 = arith.constant 0 : i32
    return %arg0, %c0_i32 : i32, i32
  }
}

module attributes {stable_mosaic.version = 11 : i64} {
  func.func @_pw_kernel(%arg0: i32, %arg1: memref<512x128xbf16, #tpu.memory_space<vmem>>, %arg2: memref<128x128xbf16, #tpu.memory_space<vmem>>, %arg3: memref<1x128xf32, #tpu.memory_space<vmem>>, %arg4: memref<512x128xbf16, #tpu.memory_space<vmem>>) attributes {dimension_semantics = [#tpu.dimension_semantics<parallel>], iteration_bounds = array<i64: 1>, scalar_prefetch = 0 : i64, scratch_operands = 0 : i64, tpu.core_type = #tpu.core_type<tc>, window_params = [{transform_indices = @transform_0, window_bounds = array<i64: 512, 128>}, {pipeline_mode = #tpu.pipeline_mode<synchronous>, transform_indices = @transform_1, window_bounds = array<i64: 128, 128>}, {pipeline_mode = #tpu.pipeline_mode<synchronous>, transform_indices = @transform_2, window_bounds = array<i64: 1, 128>}, {transform_indices = @transform_3, window_bounds = array<i64: 512, 128>}]} {
    %c0 = arith.constant 0 : index
    %c0_0 = arith.constant 0 : index
    %0 = vector.load %arg1[%c0, %c0_0] : memref<512x128xbf16, #tpu.memory_space<vmem>>, vector<512x128xbf16>
    %c0_1 = arith.constant 0 : index
    %c0_2 = arith.constant 0 : index
    %1 = vector.load %arg2[%c0_1, %c0_2] : memref<128x128xbf16, #tpu.memory_space<vmem>>, vector<128x128xbf16>
    %cst = arith.constant dense<0.000000e+00> : vector<512x128xf32>
    %2 = tpu.matmul %0, %1, %cst {dimension_numbers = #tpu.dot_dimension_numbers<[1], [0], [0], [1], [0, 0, 1, 1], [], []>} : vector<512x128xbf16>, vector<128x128xbf16>, vector<512x128xf32> -> vector<512x128xf32>
    %c0_3 = arith.constant 0 : index
    %c0_4 = arith.constant 0 : index
    %3 = vector.load %arg3[%c0_3, %c0_4] : memref<1x128xf32, #tpu.memory_space<vmem>>, vector<1x128xf32>
    %4 = vector.broadcast %3 : vector<1x128xf32> to vector<512x128xf32>
    %5 = arith.addf %2, %4 : vector<512x128xf32>
    %cst_5 = arith.constant 0.000000e+00 : f32
    %6 = vector.broadcast %cst_5 : f32 to vector<512x128xf32>
    %7 = arith.subf %6, %5 : vector<512x128xf32>
    %8 = math.exp %7 : vector<512x128xf32>
    %cst_6 = arith.constant 1.000000e+00 : f32
    %9 = vector.broadcast %cst_6 : f32 to vector<512x128xf32>
    %10 = arith.addf %9, %8 : vector<512x128xf32>
    %11 = tpu.reciprocal %10 {approx = true} : vector<512x128xf32> -> vector<512x128xf32>
    %12 = arith.mulf %5, %11 : vector<512x128xf32>
    %13 = arith.truncf %12 : vector<512x128xf32> to vector<512x128xbf16>
    %c0_7 = arith.constant 0 : index
    %c0_8 = arith.constant 0 : index
    %14 = vector.load %arg4[%c0_7, %c0_8] : memref<512x128xbf16, #tpu.memory_space<vmem>>, vector<512x128xbf16>
    tpu.vector_store %arg4[%c0_7, %c0_8], %13 {strides = array<i32>} : memref<512x128xbf16, #tpu.memory_space<vmem>>, vector<512x128xbf16>,
    return
  }
  func.func @transform_0(%arg0: i32) -> (i32, i32) {
    %c0_i32 = arith.constant 0 : i32
    %c0_i32_0 = arith.constant 0 : i32
    return %arg0, %c0_i32 : i32, i32
  }
  func.func @transform_1(%arg0: i32) -> (i32, i32) {
    %c0_i32 = arith.constant 0 : i32
    %c0_i32_0 = arith.constant 0 : i32
    %c0_i32_1 = arith.constant 0 : i32
    return %c0_i32, %c0_i32_0 : i32, i32
  }
  func.func @transform_2(%arg0: i32) -> (i32, i32) {
    %c0_i32 = arith.constant 0 : i32
    %c0_i32_0 = arith.constant 0 : i32
    %c0_i32_1 = arith.constant 0 : i32
    return %c0_i32, %c0_i32_0 : i32, i32
  }
  func.func @transform_3(%arg0: i32) -> (i32, i32) {
    %c0_i32 = arith.constant 0 : i32
    %c0_i32_0 = arith.constant 0 : i32
    return %arg0, %c0_i32 : i32, i32
  }
}

module attributes {stable_mosaic.version = 11 : i64} {
  func.func @_lambda_(%arg0: i32, %arg1: memref<1x18x18x128xbf16, #tpu.memory_space<vmem>>, %arg2: memref<9x128x128xbf16, #tpu.memory_space<vmem>>, %arg3: memref<1x128xf32, #tpu.memory_space<vmem>>, %arg4: memref<1x16x16x128xbf16, #tpu.memory_space<vmem>>, %arg5: memref<1x16x16x128xbf16, #tpu.memory_space<vmem>>) attributes {dimension_semantics = [#tpu.dimension_semantics<parallel>], iteration_bounds = array<i64: 2>, scalar_prefetch = 0 : i64, scratch_operands = 0 : i64, tpu.core_type = #tpu.core_type<tc>, window_params = [{transform_indices = @transform_0, window_bounds = array<i64: 1, 18, 18, 128>}, {pipeline_mode = #tpu.pipeline_mode<synchronous>, transform_indices = @transform_1, window_bounds = array<i64: 9, 128, 128>}, {pipeline_mode = #tpu.pipeline_mode<synchronous>, transform_indices = @transform_2, window_bounds = array<i64: 1, 128>}, {transform_indices = @transform_3, window_bounds = array<i64: 1, 16, 16, 128>}, {transform_indices = @transform_4, window_bounds = array<i64: 1, 16, 16, 128>}]} {
    %c0 = arith.constant 0 : index
    %c0_0 = arith.constant 0 : index
    %c0_1 = arith.constant 0 : index
    %c0_2 = arith.constant 0 : index
    %0 = vector.load %arg1[%c0, %c0_0, %c0_1, %c0_2] : memref<1x18x18x128xbf16, #tpu.memory_space<vmem>>, vector<1x18x18x128xbf16>
    %1 = vector.shape_cast %0 : vector<1x18x18x128xbf16> to vector<18x18x128xbf16>
    %2 = vector.extract_strided_slice %1 {offsets = [0, 0, 0], sizes = [16, 16, 128], strides = [1, 1, 1]} : vector<18x18x128xbf16> to vector<16x16x128xbf16>
    %3 = vector.shape_cast %2 : vector<16x16x128xbf16> to vector<256x128xbf16>
    %c0_3 = arith.constant 0 : index
    %c0_4 = arith.constant 0 : index
    %c0_5 = arith.constant 0 : index
    %4 = vector.load %arg2[%c0_3, %c0_4, %c0_5] : memref<9x128x128xbf16, #tpu.memory_space<vmem>>, vector<1x128x128xbf16>
    %5 = vector.shape_cast %4 : vector<1x128x128xbf16> to vector<128x128xbf16>
    %cst = arith.constant dense<0.000000e+00> : vector<256x128xf32>
    %6 = tpu.matmul %3, %5, %cst {dimension_numbers = #tpu.dot_dimension_numbers<[1], [0], [0], [1], [0, 0, 1, 1], [], []>} : vector<256x128xbf16>, vector<128x128xbf16>, vector<256x128xf32> -> vector<256x128xf32>
    %7 = vector.extract_strided_slice %1 {offsets = [0, 1, 0], sizes = [16, 16, 128], strides = [1, 1, 1]} : vector<18x18x128xbf16> to vector<16x16x128xbf16>
    %8 = vector.shape_cast %7 : vector<16x16x128xbf16> to vector<256x128xbf16>
    %c1 = arith.constant 1 : index
    %c0_6 = arith.constant 0 : index
    %c0_7 = arith.constant 0 : index
    %9 = vector.load %arg2[%c1, %c0_6, %c0_7] : memref<9x128x128xbf16, #tpu.memory_space<vmem>>, vector<1x128x128xbf16>
    %10 = vector.shape_cast %9 : vector<1x128x128xbf16> to vector<128x128xbf16>
    %cst_8 = arith.constant dense<0.000000e+00> : vector<256x128xf32>
    %11 = tpu.matmul %8, %10, %cst_8 {dimension_numbers = #tpu.dot_dimension_numbers<[1], [0], [0], [1], [0, 0, 1, 1], [], []>} : vector<256x128xbf16>, vector<128x128xbf16>, vector<256x128xf32> -> vector<256x128xf32>
    %12 = arith.addf %6, %11 : vector<256x128xf32>
    %13 = vector.extract_strided_slice %1 {offsets = [0, 2, 0], sizes = [16, 16, 128], strides = [1, 1, 1]} : vector<18x18x128xbf16> to vector<16x16x128xbf16>
    %14 = vector.shape_cast %13 : vector<16x16x128xbf16> to vector<256x128xbf16>
    %c2 = arith.constant 2 : index
    %c0_9 = arith.constant 0 : index
    %c0_10 = arith.constant 0 : index
    %15 = vector.load %arg2[%c2, %c0_9, %c0_10] : memref<9x128x128xbf16, #tpu.memory_space<vmem>>, vector<1x128x128xbf16>
    %16 = vector.shape_cast %15 : vector<1x128x128xbf16> to vector<128x128xbf16>
    %cst_11 = arith.constant dense<0.000000e+00> : vector<256x128xf32>
    %17 = tpu.matmul %14, %16, %cst_11 {dimension_numbers = #tpu.dot_dimension_numbers<[1], [0], [0], [1], [0, 0, 1, 1], [], []>} : vector<256x128xbf16>, vector<128x128xbf16>, vector<256x128xf32> -> vector<256x128xf32>
    %18 = arith.addf %12, %17 : vector<256x128xf32>
    %19 = vector.extract_strided_slice %1 {offsets = [1, 0, 0], sizes = [16, 16, 128], strides = [1, 1, 1]} : vector<18x18x128xbf16> to vector<16x16x128xbf16>
    %20 = vector.shape_cast %19 : vector<16x16x128xbf16> to vector<256x128xbf16>
    %c3 = arith.constant 3 : index
    %c0_12 = arith.constant 0 : index
    %c0_13 = arith.constant 0 : index
    %21 = vector.load %arg2[%c3, %c0_12, %c0_13] : memref<9x128x128xbf16, #tpu.memory_space<vmem>>, vector<1x128x128xbf16>
    %22 = vector.shape_cast %21 : vector<1x128x128xbf16> to vector<128x128xbf16>
    %cst_14 = arith.constant dense<0.000000e+00> : vector<256x128xf32>
    %23 = tpu.matmul %20, %22, %cst_14 {dimension_numbers = #tpu.dot_dimension_numbers<[1], [0], [0], [1], [0, 0, 1, 1], [], []>} : vector<256x128xbf16>, vector<128x128xbf16>, vector<256x128xf32> -> vector<256x128xf32>
    %24 = arith.addf %18, %23 : vector<256x128xf32>
    %25 = vector.extract_strided_slice %1 {offsets = [1, 1, 0], sizes = [16, 16, 128], strides = [1, 1, 1]} : vector<18x18x128xbf16> to vector<16x16x128xbf16>
    %26 = vector.shape_cast %25 : vector<16x16x128xbf16> to vector<256x128xbf16>
    %c4 = arith.constant 4 : index
    %c0_15 = arith.constant 0 : index
    %c0_16 = arith.constant 0 : index
    %27 = vector.load %arg2[%c4, %c0_15, %c0_16] : memref<9x128x128xbf16, #tpu.memory_space<vmem>>, vector<1x128x128xbf16>
    %28 = vector.shape_cast %27 : vector<1x128x128xbf16> to vector<128x128xbf16>
    %cst_17 = arith.constant dense<0.000000e+00> : vector<256x128xf32>
    %29 = tpu.matmul %26, %28, %cst_17 {dimension_numbers = #tpu.dot_dimension_numbers<[1], [0], [0], [1], [0, 0, 1, 1], [], []>} : vector<256x128xbf16>, vector<128x128xbf16>, vector<256x128xf32> -> vector<256x128xf32>
    %30 = arith.addf %24, %29 : vector<256x128xf32>
    %31 = vector.extract_strided_slice %1 {offsets = [1, 2, 0], sizes = [16, 16, 128], strides = [1, 1, 1]} : vector<18x18x128xbf16> to vector<16x16x128xbf16>
    %32 = vector.shape_cast %31 : vector<16x16x128xbf16> to vector<256x128xbf16>
    %c5 = arith.constant 5 : index
    %c0_18 = arith.constant 0 : index
    %c0_19 = arith.constant 0 : index
    %33 = vector.load %arg2[%c5, %c0_18, %c0_19] : memref<9x128x128xbf16, #tpu.memory_space<vmem>>, vector<1x128x128xbf16>
    %34 = vector.shape_cast %33 : vector<1x128x128xbf16> to vector<128x128xbf16>
    %cst_20 = arith.constant dense<0.000000e+00> : vector<256x128xf32>
    %35 = tpu.matmul %32, %34, %cst_20 {dimension_numbers = #tpu.dot_dimension_numbers<[1], [0], [0], [1], [0, 0, 1, 1], [], []>} : vector<256x128xbf16>, vector<128x128xbf16>, vector<256x128xf32> -> vector<256x128xf32>
    %36 = arith.addf %30, %35 : vector<256x128xf32>
    %37 = vector.extract_strided_slice %1 {offsets = [2, 0, 0], sizes = [16, 16, 128], strides = [1, 1, 1]} : vector<18x18x128xbf16> to vector<16x16x128xbf16>
    %38 = vector.shape_cast %37 : vector<16x16x128xbf16> to vector<256x128xbf16>
    %c6 = arith.constant 6 : index
    %c0_21 = arith.constant 0 : index
    %c0_22 = arith.constant 0 : index
    %39 = vector.load %arg2[%c6, %c0_21, %c0_22] : memref<9x128x128xbf16, #tpu.memory_space<vmem>>, vector<1x128x128xbf16>
    %40 = vector.shape_cast %39 : vector<1x128x128xbf16> to vector<128x128xbf16>
    %cst_23 = arith.constant dense<0.000000e+00> : vector<256x128xf32>
    %41 = tpu.matmul %38, %40, %cst_23 {dimension_numbers = #tpu.dot_dimension_numbers<[1], [0], [0], [1], [0, 0, 1, 1], [], []>} : vector<256x128xbf16>, vector<128x128xbf16>, vector<256x128xf32> -> vector<256x128xf32>
    %42 = arith.addf %36, %41 : vector<256x128xf32>
    %43 = vector.extract_strided_slice %1 {offsets = [2, 1, 0], sizes = [16, 16, 128], strides = [1, 1, 1]} : vector<18x18x128xbf16> to vector<16x16x128xbf16>
    %44 = vector.shape_cast %43 : vector<16x16x128xbf16> to vector<256x128xbf16>
    %c7 = arith.constant 7 : index
    %c0_24 = arith.constant 0 : index
    %c0_25 = arith.constant 0 : index
    %45 = vector.load %arg2[%c7, %c0_24, %c0_25] : memref<9x128x128xbf16, #tpu.memory_space<vmem>>, vector<1x128x128xbf16>
    %46 = vector.shape_cast %45 : vector<1x128x128xbf16> to vector<128x128xbf16>
    %cst_26 = arith.constant dense<0.000000e+00> : vector<256x128xf32>
    %47 = tpu.matmul %44, %46, %cst_26 {dimension_numbers = #tpu.dot_dimension_numbers<[1], [0], [0], [1], [0, 0, 1, 1], [], []>} : vector<256x128xbf16>, vector<128x128xbf16>, vector<256x128xf32> -> vector<256x128xf32>
    %48 = arith.addf %42, %47 : vector<256x128xf32>
    %49 = vector.extract_strided_slice %1 {offsets = [2, 2, 0], sizes = [16, 16, 128], strides = [1, 1, 1]} : vector<18x18x128xbf16> to vector<16x16x128xbf16>
    %50 = vector.shape_cast %49 : vector<16x16x128xbf16> to vector<256x128xbf16>
    %c8 = arith.constant 8 : index
    %c0_27 = arith.constant 0 : index
    %c0_28 = arith.constant 0 : index
    %51 = vector.load %arg2[%c8, %c0_27, %c0_28] : memref<9x128x128xbf16, #tpu.memory_space<vmem>>, vector<1x128x128xbf16>
    %52 = vector.shape_cast %51 : vector<1x128x128xbf16> to vector<128x128xbf16>
    %cst_29 = arith.constant dense<0.000000e+00> : vector<256x128xf32>
    %53 = tpu.matmul %50, %52, %cst_29 {dimension_numbers = #tpu.dot_dimension_numbers<[1], [0], [0], [1], [0, 0, 1, 1], [], []>} : vector<256x128xbf16>, vector<128x128xbf16>, vector<256x128xf32> -> vector<256x128xf32>
    %54 = arith.addf %48, %53 : vector<256x128xf32>
    %c0_30 = arith.constant 0 : index
    %c0_31 = arith.constant 0 : index
    %55 = vector.load %arg3[%c0_30, %c0_31] : memref<1x128xf32, #tpu.memory_space<vmem>>, vector<1x128xf32>
    %56 = vector.broadcast %55 : vector<1x128xf32> to vector<256x128xf32>
    %57 = arith.addf %54, %56 : vector<256x128xf32>
    %cst_32 = arith.constant 0.000000e+00 : f32
    %58 = vector.broadcast %cst_32 : f32 to vector<256x128xf32>
    %59 = arith.subf %58, %57 : vector<256x128xf32>
    %60 = math.exp %59 : vector<256x128xf32>
    %cst_33 = arith.constant 1.000000e+00 : f32
    %61 = vector.broadcast %cst_33 : f32 to vector<256x128xf32>
    %62 = arith.addf %61, %60 : vector<256x128xf32>
    %63 = tpu.reciprocal %62 {approx = true} : vector<256x128xf32> -> vector<256x128xf32>
    %64 = arith.mulf %57, %63 : vector<256x128xf32>
    %c0_34 = arith.constant 0 : index
    %c0_35 = arith.constant 0 : index
    %c0_36 = arith.constant 0 : index
    %c0_37 = arith.constant 0 : index
    %65 = vector.load %arg4[%c0_34, %c0_35, %c0_36, %c0_37] : memref<1x16x16x128xbf16, #tpu.memory_space<vmem>>, vector<1x16x16x128xbf16>
    %66 = vector.shape_cast %65 : vector<1x16x16x128xbf16> to vector<16x16x128xbf16>
    %67 = vector.shape_cast %66 : vector<16x16x128xbf16> to vector<256x128xbf16>
    %68 = arith.extf %67 : vector<256x128xbf16> to vector<256x128xf32>
    %69 = arith.addf %64, %68 : vector<256x128xf32>
    %70 = arith.truncf %69 : vector<256x128xf32> to vector<256x128xbf16>
    %71 = vector.shape_cast %70 : vector<256x128xbf16> to vector<16x16x128xbf16>
    %c0_38 = arith.constant 0 : index
    %c0_39 = arith.constant 0 : index
    %c0_40 = arith.constant 0 : index
    %c0_41 = arith.constant 0 : index
    %72 = vector.load %arg5[%c0_38, %c0_39, %c0_40, %c0_41] : memref<1x16x16x128xbf16, #tpu.memory_space<vmem>>, vector<1x16x16x128xbf16>
    %73 = vector.shape_cast %72 : vector<1x16x16x128xbf16> to vector<16x16x128xbf16>
    %74 = vector.shape_cast %71 : vector<16x16x128xbf16> to vector<1x16x16x128xbf16>
    tpu.vector_store %arg5[%c0_38, %c0_39, %c0_40, %c0_41], %74 {strides = array<i32>} : memref<1x16x16x128xbf16, #tpu.memory_space<vmem>>, vector<1x16x16x128xbf16>,
    return
  }
  func.func @transform_0(%arg0: i32) -> (i32, i32, i32, i32) {
    %c0_i32 = arith.constant 0 : i32
    %c0_i32_0 = arith.constant 0 : i32
    %c0_i32_1 = arith.constant 0 : i32
    %c0_i32_2 = arith.constant 0 : i32
    return %arg0, %c0_i32, %c0_i32_0, %c0_i32_1 : i32, i32, i32, i32
  }
  func.func @transform_1(%arg0: i32) -> (i32, i32, i32) {
    %c0_i32 = arith.constant 0 : i32
    %c0_i32_0 = arith.constant 0 : i32
    %c0_i32_1 = arith.constant 0 : i32
    %c0_i32_2 = arith.constant 0 : i32
    return %c0_i32, %c0_i32_0, %c0_i32_1 : i32, i32, i32
  }
  func.func @transform_2(%arg0: i32) -> (i32, i32) {
    %c0_i32 = arith.constant 0 : i32
    %c0_i32_0 = arith.constant 0 : i32
    %c0_i32_1 = arith.constant 0 : i32
    return %c0_i32, %c0_i32_0 : i32, i32
  }
  func.func @transform_3(%arg0: i32) -> (i32, i32, i32, i32) {
    %c0_i32 = arith.constant 0 : i32
    %c0_i32_0 = arith.constant 0 : i32
    %c0_i32_1 = arith.constant 0 : i32
    %c0_i32_2 = arith.constant 0 : i32
    return %arg0, %c0_i32, %c0_i32_0, %c0_i32_1 : i32, i32, i32, i32
  }
  func.func @transform_4(%arg0: i32) -> (i32, i32, i32, i32) {
    %c0_i32 = arith.constant 0 : i32
    %c0_i32_0 = arith.constant 0 : i32
    %c0_i32_1 = arith.constant 0 : i32
    %c0_i32_2 = arith.constant 0 : i32
    return %arg0, %c0_i32, %c0_i32_0, %c0_i32_1 : i32, i32, i32, i32
  }
}

module attributes {stable_mosaic.version = 11 : i64} {
  func.func @_pw_kernel(%arg0: i32, %arg1: memref<512x128xbf16, #tpu.memory_space<vmem>>, %arg2: memref<128x128xbf16, #tpu.memory_space<vmem>>, %arg3: memref<1x128xf32, #tpu.memory_space<vmem>>, %arg4: memref<512x128xbf16, #tpu.memory_space<vmem>>) attributes {dimension_semantics = [#tpu.dimension_semantics<parallel>], iteration_bounds = array<i64: 1>, scalar_prefetch = 0 : i64, scratch_operands = 0 : i64, tpu.core_type = #tpu.core_type<tc>, window_params = [{transform_indices = @transform_0, window_bounds = array<i64: 512, 128>}, {pipeline_mode = #tpu.pipeline_mode<synchronous>, transform_indices = @transform_1, window_bounds = array<i64: 128, 128>}, {pipeline_mode = #tpu.pipeline_mode<synchronous>, transform_indices = @transform_2, window_bounds = array<i64: 1, 128>}, {transform_indices = @transform_3, window_bounds = array<i64: 512, 128>}]} {
    %c0 = arith.constant 0 : index
    %c0_0 = arith.constant 0 : index
    %0 = vector.load %arg1[%c0, %c0_0] : memref<512x128xbf16, #tpu.memory_space<vmem>>, vector<512x128xbf16>
    %c0_1 = arith.constant 0 : index
    %c0_2 = arith.constant 0 : index
    %1 = vector.load %arg2[%c0_1, %c0_2] : memref<128x128xbf16, #tpu.memory_space<vmem>>, vector<128x128xbf16>
    %cst = arith.constant dense<0.000000e+00> : vector<512x128xf32>
    %2 = tpu.matmul %0, %1, %cst {dimension_numbers = #tpu.dot_dimension_numbers<[1], [0], [0], [1], [0, 0, 1, 1], [], []>} : vector<512x128xbf16>, vector<128x128xbf16>, vector<512x128xf32> -> vector<512x128xf32>
    %c0_3 = arith.constant 0 : index
    %c0_4 = arith.constant 0 : index
    %3 = vector.load %arg3[%c0_3, %c0_4] : memref<1x128xf32, #tpu.memory_space<vmem>>, vector<1x128xf32>
    %4 = vector.broadcast %3 : vector<1x128xf32> to vector<512x128xf32>
    %5 = arith.addf %2, %4 : vector<512x128xf32>
    %cst_5 = arith.constant 0.000000e+00 : f32
    %6 = vector.broadcast %cst_5 : f32 to vector<512x128xf32>
    %7 = arith.subf %6, %5 : vector<512x128xf32>
    %8 = math.exp %7 : vector<512x128xf32>
    %cst_6 = arith.constant 1.000000e+00 : f32
    %9 = vector.broadcast %cst_6 : f32 to vector<512x128xf32>
    %10 = arith.addf %9, %8 : vector<512x128xf32>
    %11 = tpu.reciprocal %10 {approx = true} : vector<512x128xf32> -> vector<512x128xf32>
    %12 = arith.mulf %5, %11 : vector<512x128xf32>
    %13 = arith.truncf %12 : vector<512x128xf32> to vector<512x128xbf16>
    %c0_7 = arith.constant 0 : index
    %c0_8 = arith.constant 0 : index
    %14 = vector.load %arg4[%c0_7, %c0_8] : memref<512x128xbf16, #tpu.memory_space<vmem>>, vector<512x128xbf16>
    tpu.vector_store %arg4[%c0_7, %c0_8], %13 {strides = array<i32>} : memref<512x128xbf16, #tpu.memory_space<vmem>>, vector<512x128xbf16>,
    return
  }
  func.func @transform_0(%arg0: i32) -> (i32, i32) {
    %c0_i32 = arith.constant 0 : i32
    %c0_i32_0 = arith.constant 0 : i32
    return %arg0, %c0_i32 : i32, i32
  }
  func.func @transform_1(%arg0: i32) -> (i32, i32) {
    %c0_i32 = arith.constant 0 : i32
    %c0_i32_0 = arith.constant 0 : i32
    %c0_i32_1 = arith.constant 0 : i32
    return %c0_i32, %c0_i32_0 : i32, i32
  }
  func.func @transform_2(%arg0: i32) -> (i32, i32) {
    %c0_i32 = arith.constant 0 : i32
    %c0_i32_0 = arith.constant 0 : i32
    %c0_i32_1 = arith.constant 0 : i32
    return %c0_i32, %c0_i32_0 : i32, i32
  }
  func.func @transform_3(%arg0: i32) -> (i32, i32) {
    %c0_i32 = arith.constant 0 : i32
    %c0_i32_0 = arith.constant 0 : i32
    return %arg0, %c0_i32 : i32, i32
  }
}

module attributes {stable_mosaic.version = 11 : i64} {
  func.func @_lambda_(%arg0: i32, %arg1: memref<1x18x18x128xbf16, #tpu.memory_space<vmem>>, %arg2: memref<9x128x128xbf16, #tpu.memory_space<vmem>>, %arg3: memref<1x128xf32, #tpu.memory_space<vmem>>, %arg4: memref<1x16x16x128xbf16, #tpu.memory_space<vmem>>, %arg5: memref<1x16x16x128xbf16, #tpu.memory_space<vmem>>, %arg6: memref<1x16x16x256xbf16, #tpu.memory_space<vmem>>) attributes {dimension_semantics = [#tpu.dimension_semantics<parallel>], iteration_bounds = array<i64: 2>, scalar_prefetch = 0 : i64, scratch_operands = 0 : i64, tpu.core_type = #tpu.core_type<tc>, window_params = [{transform_indices = @transform_0, window_bounds = array<i64: 1, 18, 18, 128>}, {pipeline_mode = #tpu.pipeline_mode<synchronous>, transform_indices = @transform_1, window_bounds = array<i64: 9, 128, 128>}, {pipeline_mode = #tpu.pipeline_mode<synchronous>, transform_indices = @transform_2, window_bounds = array<i64: 1, 128>}, {transform_indices = @transform_3, window_bounds = array<i64: 1, 16, 16, 128>}, {transform_indices = @transform_4, window_bounds = array<i64: 1, 16, 16, 128>}, {transform_indices = @transform_5, window_bounds = array<i64: 1, 16, 16, 256>}]} {
    %c0 = arith.constant 0 : index
    %c0_0 = arith.constant 0 : index
    %c0_1 = arith.constant 0 : index
    %c0_2 = arith.constant 0 : index
    %0 = vector.load %arg1[%c0, %c0_0, %c0_1, %c0_2] : memref<1x18x18x128xbf16, #tpu.memory_space<vmem>>, vector<1x18x18x128xbf16>
    %1 = vector.shape_cast %0 : vector<1x18x18x128xbf16> to vector<18x18x128xbf16>
    %2 = vector.extract_strided_slice %1 {offsets = [0, 0, 0], sizes = [16, 16, 128], strides = [1, 1, 1]} : vector<18x18x128xbf16> to vector<16x16x128xbf16>
    %3 = vector.shape_cast %2 : vector<16x16x128xbf16> to vector<256x128xbf16>
    %c0_3 = arith.constant 0 : index
    %c0_4 = arith.constant 0 : index
    %c0_5 = arith.constant 0 : index
    %4 = vector.load %arg2[%c0_3, %c0_4, %c0_5] : memref<9x128x128xbf16, #tpu.memory_space<vmem>>, vector<1x128x128xbf16>
    %5 = vector.shape_cast %4 : vector<1x128x128xbf16> to vector<128x128xbf16>
    %cst = arith.constant dense<0.000000e+00> : vector<256x128xf32>
    %6 = tpu.matmul %3, %5, %cst {dimension_numbers = #tpu.dot_dimension_numbers<[1], [0], [0], [1], [0, 0, 1, 1], [], []>} : vector<256x128xbf16>, vector<128x128xbf16>, vector<256x128xf32> -> vector<256x128xf32>
    %7 = vector.extract_strided_slice %1 {offsets = [0, 1, 0], sizes = [16, 16, 128], strides = [1, 1, 1]} : vector<18x18x128xbf16> to vector<16x16x128xbf16>
    %8 = vector.shape_cast %7 : vector<16x16x128xbf16> to vector<256x128xbf16>
    %c1 = arith.constant 1 : index
    %c0_6 = arith.constant 0 : index
    %c0_7 = arith.constant 0 : index
    %9 = vector.load %arg2[%c1, %c0_6, %c0_7] : memref<9x128x128xbf16, #tpu.memory_space<vmem>>, vector<1x128x128xbf16>
    %10 = vector.shape_cast %9 : vector<1x128x128xbf16> to vector<128x128xbf16>
    %cst_8 = arith.constant dense<0.000000e+00> : vector<256x128xf32>
    %11 = tpu.matmul %8, %10, %cst_8 {dimension_numbers = #tpu.dot_dimension_numbers<[1], [0], [0], [1], [0, 0, 1, 1], [], []>} : vector<256x128xbf16>, vector<128x128xbf16>, vector<256x128xf32> -> vector<256x128xf32>
    %12 = arith.addf %6, %11 : vector<256x128xf32>
    %13 = vector.extract_strided_slice %1 {offsets = [0, 2, 0], sizes = [16, 16, 128], strides = [1, 1, 1]} : vector<18x18x128xbf16> to vector<16x16x128xbf16>
    %14 = vector.shape_cast %13 : vector<16x16x128xbf16> to vector<256x128xbf16>
    %c2 = arith.constant 2 : index
    %c0_9 = arith.constant 0 : index
    %c0_10 = arith.constant 0 : index
    %15 = vector.load %arg2[%c2, %c0_9, %c0_10] : memref<9x128x128xbf16, #tpu.memory_space<vmem>>, vector<1x128x128xbf16>
    %16 = vector.shape_cast %15 : vector<1x128x128xbf16> to vector<128x128xbf16>
    %cst_11 = arith.constant dense<0.000000e+00> : vector<256x128xf32>
    %17 = tpu.matmul %14, %16, %cst_11 {dimension_numbers = #tpu.dot_dimension_numbers<[1], [0], [0], [1], [0, 0, 1, 1], [], []>} : vector<256x128xbf16>, vector<128x128xbf16>, vector<256x128xf32> -> vector<256x128xf32>
    %18 = arith.addf %12, %17 : vector<256x128xf32>
    %19 = vector.extract_strided_slice %1 {offsets = [1, 0, 0], sizes = [16, 16, 128], strides = [1, 1, 1]} : vector<18x18x128xbf16> to vector<16x16x128xbf16>
    %20 = vector.shape_cast %19 : vector<16x16x128xbf16> to vector<256x128xbf16>
    %c3 = arith.constant 3 : index
    %c0_12 = arith.constant 0 : index
    %c0_13 = arith.constant 0 : index
    %21 = vector.load %arg2[%c3, %c0_12, %c0_13] : memref<9x128x128xbf16, #tpu.memory_space<vmem>>, vector<1x128x128xbf16>
    %22 = vector.shape_cast %21 : vector<1x128x128xbf16> to vector<128x128xbf16>
    %cst_14 = arith.constant dense<0.000000e+00> : vector<256x128xf32>
    %23 = tpu.matmul %20, %22, %cst_14 {dimension_numbers = #tpu.dot_dimension_numbers<[1], [0], [0], [1], [0, 0, 1, 1], [], []>} : vector<256x128xbf16>, vector<128x128xbf16>, vector<256x128xf32> -> vector<256x128xf32>
    %24 = arith.addf %18, %23 : vector<256x128xf32>
    %25 = vector.extract_strided_slice %1 {offsets = [1, 1, 0], sizes = [16, 16, 128], strides = [1, 1, 1]} : vector<18x18x128xbf16> to vector<16x16x128xbf16>
    %26 = vector.shape_cast %25 : vector<16x16x128xbf16> to vector<256x128xbf16>
    %c4 = arith.constant 4 : index
    %c0_15 = arith.constant 0 : index
    %c0_16 = arith.constant 0 : index
    %27 = vector.load %arg2[%c4, %c0_15, %c0_16] : memref<9x128x128xbf16, #tpu.memory_space<vmem>>, vector<1x128x128xbf16>
    %28 = vector.shape_cast %27 : vector<1x128x128xbf16> to vector<128x128xbf16>
    %cst_17 = arith.constant dense<0.000000e+00> : vector<256x128xf32>
    %29 = tpu.matmul %26, %28, %cst_17 {dimension_numbers = #tpu.dot_dimension_numbers<[1], [0], [0], [1], [0, 0, 1, 1], [], []>} : vector<256x128xbf16>, vector<128x128xbf16>, vector<256x128xf32> -> vector<256x128xf32>
    %30 = arith.addf %24, %29 : vector<256x128xf32>
    %31 = vector.extract_strided_slice %1 {offsets = [1, 2, 0], sizes = [16, 16, 128], strides = [1, 1, 1]} : vector<18x18x128xbf16> to vector<16x16x128xbf16>
    %32 = vector.shape_cast %31 : vector<16x16x128xbf16> to vector<256x128xbf16>
    %c5 = arith.constant 5 : index
    %c0_18 = arith.constant 0 : index
    %c0_19 = arith.constant 0 : index
    %33 = vector.load %arg2[%c5, %c0_18, %c0_19] : memref<9x128x128xbf16, #tpu.memory_space<vmem>>, vector<1x128x128xbf16>
    %34 = vector.shape_cast %33 : vector<1x128x128xbf16> to vector<128x128xbf16>
    %cst_20 = arith.constant dense<0.000000e+00> : vector<256x128xf32>
    %35 = tpu.matmul %32, %34, %cst_20 {dimension_numbers = #tpu.dot_dimension_numbers<[1], [0], [0], [1], [0, 0, 1, 1], [], []>} : vector<256x128xbf16>, vector<128x128xbf16>, vector<256x128xf32> -> vector<256x128xf32>
    %36 = arith.addf %30, %35 : vector<256x128xf32>
    %37 = vector.extract_strided_slice %1 {offsets = [2, 0, 0], sizes = [16, 16, 128], strides = [1, 1, 1]} : vector<18x18x128xbf16> to vector<16x16x128xbf16>
    %38 = vector.shape_cast %37 : vector<16x16x128xbf16> to vector<256x128xbf16>
    %c6 = arith.constant 6 : index
    %c0_21 = arith.constant 0 : index
    %c0_22 = arith.constant 0 : index
    %39 = vector.load %arg2[%c6, %c0_21, %c0_22] : memref<9x128x128xbf16, #tpu.memory_space<vmem>>, vector<1x128x128xbf16>
    %40 = vector.shape_cast %39 : vector<1x128x128xbf16> to vector<128x128xbf16>
    %cst_23 = arith.constant dense<0.000000e+00> : vector<256x128xf32>
    %41 = tpu.matmul %38, %40, %cst_23 {dimension_numbers = #tpu.dot_dimension_numbers<[1], [0], [0], [1], [0, 0, 1, 1], [], []>} : vector<256x128xbf16>, vector<128x128xbf16>, vector<256x128xf32> -> vector<256x128xf32>
    %42 = arith.addf %36, %41 : vector<256x128xf32>
    %43 = vector.extract_strided_slice %1 {offsets = [2, 1, 0], sizes = [16, 16, 128], strides = [1, 1, 1]} : vector<18x18x128xbf16> to vector<16x16x128xbf16>
    %44 = vector.shape_cast %43 : vector<16x16x128xbf16> to vector<256x128xbf16>
    %c7 = arith.constant 7 : index
    %c0_24 = arith.constant 0 : index
    %c0_25 = arith.constant 0 : index
    %45 = vector.load %arg2[%c7, %c0_24, %c0_25] : memref<9x128x128xbf16, #tpu.memory_space<vmem>>, vector<1x128x128xbf16>
    %46 = vector.shape_cast %45 : vector<1x128x128xbf16> to vector<128x128xbf16>
    %cst_26 = arith.constant dense<0.000000e+00> : vector<256x128xf32>
    %47 = tpu.matmul %44, %46, %cst_26 {dimension_numbers = #tpu.dot_dimension_numbers<[1], [0], [0], [1], [0, 0, 1, 1], [], []>} : vector<256x128xbf16>, vector<128x128xbf16>, vector<256x128xf32> -> vector<256x128xf32>
    %48 = arith.addf %42, %47 : vector<256x128xf32>
    %49 = vector.extract_strided_slice %1 {offsets = [2, 2, 0], sizes = [16, 16, 128], strides = [1, 1, 1]} : vector<18x18x128xbf16> to vector<16x16x128xbf16>
    %50 = vector.shape_cast %49 : vector<16x16x128xbf16> to vector<256x128xbf16>
    %c8 = arith.constant 8 : index
    %c0_27 = arith.constant 0 : index
    %c0_28 = arith.constant 0 : index
    %51 = vector.load %arg2[%c8, %c0_27, %c0_28] : memref<9x128x128xbf16, #tpu.memory_space<vmem>>, vector<1x128x128xbf16>
    %52 = vector.shape_cast %51 : vector<1x128x128xbf16> to vector<128x128xbf16>
    %cst_29 = arith.constant dense<0.000000e+00> : vector<256x128xf32>
    %53 = tpu.matmul %50, %52, %cst_29 {dimension_numbers = #tpu.dot_dimension_numbers<[1], [0], [0], [1], [0, 0, 1, 1], [], []>} : vector<256x128xbf16>, vector<128x128xbf16>, vector<256x128xf32> -> vector<256x128xf32>
    %54 = arith.addf %48, %53 : vector<256x128xf32>
    %c0_30 = arith.constant 0 : index
    %c0_31 = arith.constant 0 : index
    %55 = vector.load %arg3[%c0_30, %c0_31] : memref<1x128xf32, #tpu.memory_space<vmem>>, vector<1x128xf32>
    %56 = vector.broadcast %55 : vector<1x128xf32> to vector<256x128xf32>
    %57 = arith.addf %54, %56 : vector<256x128xf32>
    %cst_32 = arith.constant 0.000000e+00 : f32
    %58 = vector.broadcast %cst_32 : f32 to vector<256x128xf32>
    %59 = arith.subf %58, %57 : vector<256x128xf32>
    %60 = math.exp %59 : vector<256x128xf32>
    %cst_33 = arith.constant 1.000000e+00 : f32
    %61 = vector.broadcast %cst_33 : f32 to vector<256x128xf32>
    %62 = arith.addf %61, %60 : vector<256x128xf32>
    %63 = tpu.reciprocal %62 {approx = true} : vector<256x128xf32> -> vector<256x128xf32>
    %64 = arith.mulf %57, %63 : vector<256x128xf32>
    %c0_34 = arith.constant 0 : index
    %c0_35 = arith.constant 0 : index
    %c0_36 = arith.constant 0 : index
    %c0_37 = arith.constant 0 : index
    %65 = vector.load %arg4[%c0_34, %c0_35, %c0_36, %c0_37] : memref<1x16x16x128xbf16, #tpu.memory_space<vmem>>, vector<1x16x16x128xbf16>
    %66 = vector.shape_cast %65 : vector<1x16x16x128xbf16> to vector<16x16x128xbf16>
    %67 = vector.shape_cast %66 : vector<16x16x128xbf16> to vector<256x128xbf16>
    %68 = arith.extf %67 : vector<256x128xbf16> to vector<256x128xf32>
    %69 = arith.addf %64, %68 : vector<256x128xf32>
    %70 = arith.truncf %69 : vector<256x128xf32> to vector<256x128xbf16>
    %71 = vector.shape_cast %70 : vector<256x128xbf16> to vector<16x16x128xbf16>
    %c0_38 = arith.constant 0 : index
    %c0_39 = arith.constant 0 : index
    %c0_40 = arith.constant 0 : index
    %c0_41 = arith.constant 0 : index
    %72 = vector.load %arg6[%c0_38, %c0_39, %c0_40, %c0_41] : memref<1x16x16x256xbf16, #tpu.memory_space<vmem>>, vector<1x16x16x128xbf16>
    %73 = vector.shape_cast %72 : vector<1x16x16x128xbf16> to vector<16x16x128xbf16>
    %74 = vector.shape_cast %71 : vector<16x16x128xbf16> to vector<1x16x16x128xbf16>
    tpu.vector_store %arg6[%c0_38, %c0_39, %c0_40, %c0_41], %74 {strides = array<i32>} : memref<1x16x16x256xbf16, #tpu.memory_space<vmem>>, vector<1x16x16x128xbf16>,
    %c0_42 = arith.constant 0 : index
    %c0_43 = arith.constant 0 : index
    %c0_44 = arith.constant 0 : index
    %c0_45 = arith.constant 0 : index
    %75 = vector.load %arg5[%c0_42, %c0_43, %c0_44, %c0_45] : memref<1x16x16x128xbf16, #tpu.memory_space<vmem>>, vector<1x16x16x128xbf16>
    %76 = vector.shape_cast %75 : vector<1x16x16x128xbf16> to vector<16x16x128xbf16>
    %c0_46 = arith.constant 0 : index
    %c0_47 = arith.constant 0 : index
    %c0_48 = arith.constant 0 : index
    %c128 = arith.constant 128 : index
    %77 = vector.load %arg6[%c0_46, %c0_47, %c0_48, %c128] : memref<1x16x16x256xbf16, #tpu.memory_space<vmem>>, vector<1x16x16x128xbf16>
    %78 = vector.shape_cast %77 : vector<1x16x16x128xbf16> to vector<16x16x128xbf16>
    %79 = vector.shape_cast %76 : vector<16x16x128xbf16> to vector<1x16x16x128xbf16>
    tpu.vector_store %arg6[%c0_46, %c0_47, %c0_48, %c128], %79 {strides = array<i32>} : memref<1x16x16x256xbf16, #tpu.memory_space<vmem>>, vector<1x16x16x128xbf16>,
    return
  }
  func.func @transform_0(%arg0: i32) -> (i32, i32, i32, i32) {
    %c0_i32 = arith.constant 0 : i32
    %c0_i32_0 = arith.constant 0 : i32
    %c0_i32_1 = arith.constant 0 : i32
    %c0_i32_2 = arith.constant 0 : i32
    return %arg0, %c0_i32, %c0_i32_0, %c0_i32_1 : i32, i32, i32, i32
  }
  func.func @transform_1(%arg0: i32) -> (i32, i32, i32) {
    %c0_i32 = arith.constant 0 : i32
    %c0_i32_0 = arith.constant 0 : i32
    %c0_i32_1 = arith.constant 0 : i32
    %c0_i32_2 = arith.constant 0 : i32
    return %c0_i32, %c0_i32_0, %c0_i32_1 : i32, i32, i32
  }
  func.func @transform_2(%arg0: i32) -> (i32, i32) {
    %c0_i32 = arith.constant 0 : i32
    %c0_i32_0 = arith.constant 0 : i32
    %c0_i32_1 = arith.constant 0 : i32
    return %c0_i32, %c0_i32_0 : i32, i32
  }
  func.func @transform_3(%arg0: i32) -> (i32, i32, i32, i32) {
    %c0_i32 = arith.constant 0 : i32
    %c0_i32_0 = arith.constant 0 : i32
    %c0_i32_1 = arith.constant 0 : i32
    %c0_i32_2 = arith.constant 0 : i32
    return %arg0, %c0_i32, %c0_i32_0, %c0_i32_1 : i32, i32, i32, i32
  }
  func.func @transform_4(%arg0: i32) -> (i32, i32, i32, i32) {
    %c0_i32 = arith.constant 0 : i32
    %c0_i32_0 = arith.constant 0 : i32
    %c1_i32 = arith.constant 1 : i32
    %c0_i32_1 = arith.constant 0 : i32
    return %arg0, %c0_i32, %c0_i32_0, %c1_i32 : i32, i32, i32, i32
  }
  func.func @transform_5(%arg0: i32) -> (i32, i32, i32, i32) {
    %c0_i32 = arith.constant 0 : i32
    %c0_i32_0 = arith.constant 0 : i32
    %c0_i32_1 = arith.constant 0 : i32
    %c0_i32_2 = arith.constant 0 : i32
    return %arg0, %c0_i32, %c0_i32_0, %c0_i32_1 : i32, i32, i32, i32
  }
}

</mosaic_0001>

<bundles_post_ra>
// kernel: _lambda_.6
= control target key start
LH: loop header
LB: loop body
LE: loop exit
PB: predicated region body
PF: predicated region fallthrough
CT: control target
= control target key end

     0   :  { %s3226_s0 = inlined_call_operand.vmem [shape: bf16[512,256], index: 0, kind: input, shape index: {}]   ;;  %s3227_s1 = inlined_call_operand.vmem [shape: bf16[128,128], index: 1, kind: input, shape index: {}]   ;;  %s3228_s2 = inlined_call_operand.vmem [shape: f32[1,128], index: 2, kind: input, shape index: {}]   ;;  %s3229_s3 = inlined_call_operand.vmem [shape: bf16[512,128], index: 3, kind: output, shape index: {}]  }
   0x1   :  { %v2132_v0 = vld [vmem:[%s3227_s1] sm:$0xff]   ;;  %v2133_v1 = vld [vmem:[%s3227_s1 + $0x8] sm:$0xff]   ;;  %v2134_v2 = vld [vmem:[%s3227_s1 + $0x10] sm:$0xff]  }
   0x2   :  { %2036 = vmatprep.subr.bf16.mxu0 %v2132_v0  ;;  %2116 = vmatprep.subr.bf16.mxu1 %v2132_v0  ;;  %v2135_v3 = vld [vmem:[%s3227_s1 + $0x18] sm:$0xff]   ;;  %v25_v4 = vld [vmem:[%s3226_s0] sm:$0xf]  ;;  %v27_v5 = vld [vmem:[%s3226_s0 + $0x8] sm:$0xf] }
   0x3   :  { %2037 = vmatpush3.bf16.msra.mxu0 %v2132_v0  ;;  %2124 = vmatpush3.bf16.msra.mxu1 %v2132_v0  ;;  %v89_v6 = vld [vmem:[%s3226_s0 + $0x100] sm:$0xf]  ;;  %26 = vst [vmem:[#allocation2] sm:$0xf] %v25_v4  ;;  %28 = vst [vmem:[#allocation2 + $0x4] sm:$0xf] %v27_v5 }
   0x4   :  { %2038 = vmatprep.subr.bf16.mxu0 %v2133_v1  ;;  %2117 = vmatprep.subr.bf16.mxu1 %v2133_v1  ;;  %90 = vst [vmem:[#allocation2 + $0x80] sm:$0xf] %v89_v6  ;;  %v91_v7 = vld [vmem:[%s3226_s0 + $0x108] sm:$0xf]  ;;  %v29_v8 = vld [vmem:[%s3226_s0 + $0x10] sm:$0xf] }
   0x5   :  { %v31_v9 = vld [vmem:[%s3226_s0 + $0x18] sm:$0xf]  ;;  %v2136_v10 = vld [vmem:[%s3227_s1 + $0x20] sm:$0xff]   ;;  %92 = vst [vmem:[#allocation2 + $0x84] sm:$0xf] %v91_v7  ;;  %v2137_v23 = vld [vmem:[%s3227_s1 + $0x28] sm:$0xff]  }
   0x6   :  { %30 = vst [vmem:[#allocation2 + $0x8] sm:$0xf] %v29_v8  ;;  %32 = vst [vmem:[#allocation2 + $0xc] sm:$0xf] %v31_v9  ;;  %v93_v11 = vld [vmem:[%s3226_s0 + $0x110] sm:$0xf] }
   0x7   :  { %2039 = vmatpush3.bf16.msra.mxu0 %v2133_v1  ;;  %2125 = vmatpush3.bf16.msra.mxu1 %v2133_v1  ;;  %v95_v12 = vld [vmem:[%s3226_s0 + $0x118] sm:$0xf]  ;;  %v33_v13 = vld [vmem:[%s3226_s0 + $0x20] sm:$0xf]  ;;  %94 = vst [vmem:[#allocation2 + $0x88] sm:$0xf] %v93_v11 }
   0x8   :  { %2040 = vmatprep.subr.bf16.mxu0 %v2134_v2  ;;  %2118 = vmatprep.subr.bf16.mxu1 %v2134_v2  ;;  %96 = vst [vmem:[#allocation2 + $0x8c] sm:$0xf] %v95_v12  ;;  %34 = vst [vmem:[#allocation2 + $0x10] sm:$0xf] %v33_v13  ;;  %v35_v14 = vld [vmem:[%s3226_s0 + $0x28] sm:$0xf] }
   0x9   :  { %v97_v15 = vld [vmem:[%s3226_s0 + $0x120] sm:$0xf]  ;;  %v99_v16 = vld [vmem:[%s3226_s0 + $0x128] sm:$0xf]  ;;  %36 = vst [vmem:[#allocation2 + $0x14] sm:$0xf] %v35_v14 }
   0xa   :  { %98 = vst [vmem:[#allocation2 + $0x90] sm:$0xf] %v97_v15  ;;  %100 = vst [vmem:[#allocation2 + $0x94] sm:$0xf] %v99_v16  ;;  %v37_v17 = vld [vmem:[%s3226_s0 + $0x30] sm:$0xf] }
   0xb   :  { %2041 = vmatpush3.bf16.msra.mxu0 %v2134_v2  ;;  %2126 = vmatpush3.bf16.msra.mxu1 %v2134_v2  ;;  %v39_v18 = vld [vmem:[%s3226_s0 + $0x38] sm:$0xf]  ;;  %v101_v19 = vld [vmem:[%s3226_s0 + $0x130] sm:$0xf]  ;;  %38 = vst [vmem:[#allocation2 + $0x18] sm:$0xf] %v37_v17 }
   0xc   :  { %2042 = vmatprep.subr.bf16.mxu0 %v2135_v3  ;;  %2119 = vmatprep.subr.bf16.mxu1 %v2135_v3  ;;  %40 = vst [vmem:[#allocation2 + $0x1c] sm:$0xf] %v39_v18  ;;  %102 = vst [vmem:[#allocation2 + $0x98] sm:$0xf] %v101_v19  ;;  %v103_v20 = vld [vmem:[%s3226_s0 + $0x138] sm:$0xf] }
   0xd   :  { %v41_v21 = vld [vmem:[%s3226_s0 + $0x40] sm:$0xf]  ;;  %v43_v22 = vld [vmem:[%s3226_s0 + $0x48] sm:$0xf]  ;;  %104 = vst [vmem:[#allocation2 + $0x9c] sm:$0xf] %v103_v20 }
   0xe   :  { %42 = vst [vmem:[#allocation2 + $0x20] sm:$0xf] %v41_v21  ;;  %44 = vst [vmem:[#allocation2 + $0x24] sm:$0xf] %v43_v22  ;;  %v105_v24 = vld [vmem:[%s3226_s0 + $0x140] sm:$0xf] }
   0xf   :  { %v107_v25 = vld [vmem:[%s3226_s0 + $0x148] sm:$0xf]  ;;  %v45_v26 = vld [vmem:[%s3226_s0 + $0x50] sm:$0xf]  ;;  %2043 = vmatpush3.bf16.msra.mxu0 %v2135_v3  ;;  %2127 = vmatpush3.bf16.msra.mxu1 %v2135_v3  ;;  %106 = vst [vmem:[#allocation2 + $0xa0] sm:$0xf] %v105_v24 }
  0x10   :  { %108 = vst [vmem:[#allocation2 + $0xa4] sm:$0xf] %v107_v25  ;;  %46 = vst [vmem:[#allocation2 + $0x28] sm:$0xf] %v45_v26  ;;  %v47_v27 = vld [vmem:[%s3226_s0 + $0x58] sm:$0xf]  ;;  %2044 = vmatprep.subr.bf16.mxu0 %v2136_v10  ;;  %2120 = vmatprep.subr.bf16.mxu1 %v2136_v10 }
  0x11   :  { %v109_v28 = vld [vmem:[%s3226_s0 + $0x150] sm:$0xf]  ;;  %v111_v29 = vld [vmem:[%s3226_s0 + $0x158] sm:$0xf]  ;;  %v2140_v30 = vld [vmem:[#allocation2] sm:$0xff]  }
  0x12   :  { %48 = vst [vmem:[#allocation2 + $0x2c] sm:$0xf] %v47_v27  ;;  %110 = vst [vmem:[#allocation2 + $0xa8] sm:$0xf] %v109_v28  ;;  %v2141_v31 = vld [vmem:[#allocation2 + $0x80] sm:$0xff]   ;;  %2052 = vmatprep.mubr.bf16.mxu0 %v2140_v30  ;;  %v2138_v32 = vld [vmem:[%s3227_s1 + $0x30] sm:$0xff]  }
  0x13   :  { %112 = vst [vmem:[#allocation2 + $0xac] sm:$0xf] %v111_v29  ;;  %2045 = vmatpush3.bf16.msra.mxu0 %v2136_v10  ;;  %2128 = vmatpush3.bf16.msra.mxu1 %v2136_v10  ;;  %v2139_v33 = vld [vmem:[%s3227_s1 + $0x38] sm:$0xff]   ;;  %v2142_v34 = vld [vmem:[#allocation2 + $0x8] sm:$0xff]   ;;  %v49_v36 = vld [vmem:[%s3226_s0 + $0x60] sm:$0xf] }
  0x14   :  { %2046 = vmatprep.subr.bf16.mxu0 %v2137_v23  ;;  %2121 = vmatprep.subr.bf16.mxu1 %v2137_v23  ;;  %v2143_v35 = vld [vmem:[#allocation2 + $0x88] sm:$0xff]   ;;  %v113_v38 = vld [vmem:[%s3226_s0 + $0x160] sm:$0xf]  ;;  %v2144_v39 = vld [vmem:[#allocation2 + $0x10] sm:$0xff]   ;;  %50 = vst [vmem:[#allocation2 + $0x30] sm:$0xf] %v49_v36 }
  0x15   :  { %2084 = vmatprep.mubr.bf16.mxu1 %v2141_v31  ;;  %v51_v37 = vld [vmem:[%s3226_s0 + $0x68] sm:$0xf]  ;;  %v2145_v40 = vld [vmem:[#allocation2 + $0x90] sm:$0xff]   ;;  %114 = vst [vmem:[#allocation2 + $0xb0] sm:$0xf] %v113_v38  ;;  %v2146_v62 = vld [vmem:[#allocation2 + $0x18] sm:$0xff]  }
  0x16   :  { %52 = vst [vmem:[#allocation2 + $0x34] sm:$0xf] %v51_v37  ;;  %v115_v41 = vld [vmem:[%s3226_s0 + $0x168] sm:$0xf]  ;;  %v53_v42 = vld [vmem:[%s3226_s0 + $0x70] sm:$0xf] }
  0x17   :  { %2047 = vmatpush3.bf16.msra.mxu0 %v2137_v23  ;;  %2129 = vmatpush3.bf16.msra.mxu1 %v2137_v23  ;;  %v55_v43 = vld [vmem:[%s3226_s0 + $0x78] sm:$0xf]  ;;  %116 = vst [vmem:[#allocation2 + $0xb4] sm:$0xf] %v115_v41  ;;  %54 = vst [vmem:[#allocation2 + $0x38] sm:$0xf] %v53_v42 }
  0x18   :  { %2048 = vmatprep.subr.bf16.mxu0 %v2138_v32  ;;  %2122 = vmatprep.subr.bf16.mxu1 %v2138_v32  ;;  %56 = vst [vmem:[#allocation2 + $0x3c] sm:$0xf] %v55_v43  ;;  %v117_v44 = vld [vmem:[%s3226_s0 + $0x170] sm:$0xf]  ;;  %v119_v45 = vld [vmem:[%s3226_s0 + $0x178] sm:$0xf] }
  0x19   :  { %v57_v46 = vld [vmem:[%s3226_s0 + $0x80] sm:$0xf]  ;;  %118 = vst [vmem:[#allocation2 + $0xb8] sm:$0xf] %v117_v44  ;;  %120 = vst [vmem:[#allocation2 + $0xbc] sm:$0xf] %v119_v45 }
  0x1a   :  { %58 = vst [vmem:[#allocation2 + $0x40] sm:$0xf] %v57_v46  ;;  %v59_v47 = vld [vmem:[%s3226_s0 + $0x88] sm:$0xf]  ;;  %v121_v48 = vld [vmem:[%s3226_s0 + $0x180] sm:$0xf] }
  0x1b   :  { %2049 = vmatpush3.bf16.msra.mxu0 %v2138_v32  ;;  %2130 = vmatpush3.bf16.msra.mxu1 %v2138_v32  ;;  %v123_v49 = vld [vmem:[%s3226_s0 + $0x188] sm:$0xf]  ;;  %60 = vst [vmem:[#allocation2 + $0x44] sm:$0xf] %v59_v47  ;;  %122 = vst [vmem:[#allocation2 + $0xc0] sm:$0xf] %v121_v48 }
  0x1c   :  { %2050 = vmatprep.subr.bf16.mxu0 %v2139_v33  ;;  %2123 = vmatprep.subr.bf16.mxu1 %v2139_v33  ;;  %124 = vst [vmem:[#allocation2 + $0xc4] sm:$0xf] %v123_v49  ;;  %v61_v50 = vld [vmem:[%s3226_s0 + $0x90] sm:$0xf]  ;;  %v63_v51 = vld [vmem:[%s3226_s0 + $0x98] sm:$0xf] }
  0x1d   :  { %v125_v52 = vld [vmem:[%s3226_s0 + $0x190] sm:$0xf]  ;;  %62 = vst [vmem:[#allocation2 + $0x48] sm:$0xf] %v61_v50  ;;  %64 = vst [vmem:[#allocation2 + $0x4c] sm:$0xf] %v63_v51 }
  0x1e   :  { %126 = vst [vmem:[#allocation2 + $0xc8] sm:$0xf] %v125_v52  ;;  %v127_v53 = vld [vmem:[%s3226_s0 + $0x198] sm:$0xf]  ;;  %v65_v54 = vld [vmem:[%s3226_s0 + $0xa0] sm:$0xf] }
  0x1f   :  { %2051 = vmatpush3.bf16.msra.mxu0 %v2139_v33  ;;  %2131 = vmatpush3.bf16.msra.mxu1 %v2139_v33  ;;  %v67_v55 = vld [vmem:[%s3226_s0 + $0xa8] sm:$0xf]  ;;  %128 = vst [vmem:[#allocation2 + $0xcc] sm:$0xf] %v127_v53  ;;  %66 = vst [vmem:[#allocation2 + $0x50] sm:$0xf] %v65_v54 }
  0x20   :  { %68 = vst [vmem:[#allocation2 + $0x54] sm:$0xf] %v67_v55  ;;  %v129_v56 = vld [vmem:[%s3226_s0 + $0x1a0] sm:$0xf]  ;;  %v131_v57 = vld [vmem:[%s3226_s0 + $0x1a8] sm:$0xf] }
  0x21   :  { %v69_v58 = vld [vmem:[%s3226_s0 + $0xb0] sm:$0xf]  ;;  %130 = vst [vmem:[#allocation2 + $0xd0] sm:$0xf] %v129_v56  ;;  %132 = vst [vmem:[#allocation2 + $0xd4] sm:$0xf] %v131_v57 }
  0x22   :  { %2053 = vmatmul.mubr.bf16.vlgmr.msra.gmra.mrb[0].mxu0 %v2142_v34  ;;  %2085 = vmatmul.mubr.bf16.vlgmr.msra.gmra.mrb[0].mxu1 %v2143_v35  ;;  %70 = vst [vmem:[#allocation2 + $0x58] sm:$0xf] %v69_v58  ;;  %v71_v59 = vld [vmem:[%s3226_s0 + $0xb8] sm:$0xf]  ;;  %v133_v60 = vld [vmem:[%s3226_s0 + $0x1b0] sm:$0xf] }
  0x23   :  { %2056 = vmatprep.mubr.bf16.mxu0 %v2144_v39  ;;  %2088 = vmatprep.mubr.bf16.mxu1 %v2145_v40  ;;  %v135_v61 = vld [vmem:[%s3226_s0 + $0x1b8] sm:$0xf]  ;;  %72 = vst [vmem:[#allocation2 + $0x5c] sm:$0xf] %v71_v59  ;;  %134 = vst [vmem:[#allocation2 + $0xd8] sm:$0xf] %v133_v60 }
  0x24   :  { %136 = vst [vmem:[#allocation2 + $0xdc] sm:$0xf] %v135_v61  ;;  %v2147_v63 = vld [vmem:[#allocation2 + $0x98] sm:$0xff]   ;;  %v2148_v0 = vld [vmem:[#allocation2 + $0x20] sm:$0xff]   ;;  %v2150_v2 = vld [vmem:[#allocation2 + $0x28] sm:$0xff]  }
  0x25   :  { %v2149_v1 = vld [vmem:[#allocation2 + $0xa0] sm:$0xff]   ;;  %v2151_v3 = vld [vmem:[#allocation2 + $0xa8] sm:$0xff]   ;;  %v2152_v4 = vld [vmem:[#allocation2 + $0x30] sm:$0xff]  }
  0x26   :  { %v2153_v5 = vld [vmem:[#allocation2 + $0xb0] sm:$0xff]   ;;  %v73_v6 = vld [vmem:[%s3226_s0 + $0xc0] sm:$0xf]  ;;  %v75_v7 = vld [vmem:[%s3226_s0 + $0xc8] sm:$0xf] }
  0x27   :  { %v137_v8 = vld [vmem:[%s3226_s0 + $0x1c0] sm:$0xf]  ;;  %74 = vst [vmem:[#allocation2 + $0x60] sm:$0xf] %v73_v6  ;;  %76 = vst [vmem:[#allocation2 + $0x64] sm:$0xf] %v75_v7 }
  0x28   :  { %138 = vst [vmem:[#allocation2 + $0xe0] sm:$0xf] %v137_v8  ;;  %v139_v9 = vld [vmem:[%s3226_s0 + $0x1c8] sm:$0xf]  ;;  %v77_v10 = vld [vmem:[%s3226_s0 + $0xd0] sm:$0xf] }
  0x29   :  { %v79_v11 = vld [vmem:[%s3226_s0 + $0xd8] sm:$0xf]  ;;  %140 = vst [vmem:[#allocation2 + $0xe4] sm:$0xf] %v139_v9  ;;  %78 = vst [vmem:[#allocation2 + $0x68] sm:$0xf] %v77_v10 }
  0x2a   :  { %2057 = vmatmul.mubr.bf16.gmra.mrb[4].mxu0 %v2146_v62  ;;  %2089 = vmatmul.mubr.bf16.gmra.mrb[4].mxu1 %v2147_v63  ;;  %80 = vst [vmem:[#allocation2 + $0x6c] sm:$0xf] %v79_v11  ;;  %v141_v12 = vld [vmem:[%s3226_s0 + $0x1d0] sm:$0xf]  ;;  %v143_v13 = vld [vmem:[%s3226_s0 + $0x1d8] sm:$0xf] }
  0x2b   :  { %2060 = vmatprep.mubr.bf16.mxu0 %v2148_v0  ;;  %2092 = vmatprep.mubr.bf16.mxu1 %v2149_v1  ;;  %v81_v14 = vld [vmem:[%s3226_s0 + $0xe0] sm:$0xf]  ;;  %142 = vst [vmem:[#allocation2 + $0xe8] sm:$0xf] %v141_v12  ;;  %144 = vst [vmem:[#allocation2 + $0xec] sm:$0xf] %v143_v13 }
  0x2c   :  { %82 = vst [vmem:[#allocation2 + $0x70] sm:$0xf] %v81_v14  ;;  %v83_v15 = vld [vmem:[%s3226_s0 + $0xe8] sm:$0xf]  ;;  %v145_v16 = vld [vmem:[%s3226_s0 + $0x1e0] sm:$0xf] }
  0x2d   :  { %v147_v17 = vld [vmem:[%s3226_s0 + $0x1e8] sm:$0xf]  ;;  %84 = vst [vmem:[#allocation2 + $0x74] sm:$0xf] %v83_v15  ;;  %146 = vst [vmem:[#allocation2 + $0xf0] sm:$0xf] %v145_v16 }
  0x2e   :  { %148 = vst [vmem:[#allocation2 + $0xf4] sm:$0xf] %v147_v17  ;;  %v85_v18 = vld [vmem:[%s3226_s0 + $0xf0] sm:$0xf]  ;;  %v87_v19 = vld [vmem:[%s3226_s0 + $0xf8] sm:$0xf] }
  0x2f   :  { %v149_v20 = vld [vmem:[%s3226_s0 + $0x1f0] sm:$0xf]  ;;  %86 = vst [vmem:[#allocation2 + $0x78] sm:$0xf] %v85_v18  ;;  %88 = vst [vmem:[#allocation2 + $0x7c] sm:$0xf] %v87_v19 }
  0x30   :  { %150 = vst [vmem:[#allocation2 + $0xf8] sm:$0xf] %v149_v20  ;;  %v151_v21 = vld [vmem:[%s3226_s0 + $0x1f8] sm:$0xf]  ;;  %v2156_v24 = vld [vmem:[#allocation2 + $0x40] sm:$0xff]   ;;  %v2158_v26 = vld [vmem:[#allocation2 + $0x48] sm:$0xff]  }
  0x31   :  { %v2154_v22 = vld [vmem:[#allocation2 + $0x38] sm:$0xff]   ;;  %152 = vst [vmem:[#allocation2 + $0xfc] sm:$0xf] %v151_v21  ;;  %v2157_v25 = vld [vmem:[#allocation2 + $0xc0] sm:$0xff]   ;;  %v2159_v27 = vld [vmem:[#allocation2 + $0xc8] sm:$0xff]  }
  0x32   :  { %2061 = vmatmul.mubr.bf16.gmra.mrb[8].mxu0 %v2150_v2  ;;  %2093 = vmatmul.mubr.bf16.gmra.mrb[8].mxu1 %v2151_v3  ;;  %v2155_v23 = vld [vmem:[#allocation2 + $0xb8] sm:$0xff]   ;;  %v2160_v28 = vld [vmem:[#allocation2 + $0x50] sm:$0xff]   ;;  %v2164_v32 = vld [vmem:[#allocation2 + $0x60] sm:$0xff]  }
  0x33   :  { %2064 = vmatprep.mubr.bf16.mxu0 %v2152_v4  ;;  %2096 = vmatprep.mubr.bf16.mxu1 %v2153_v5  ;;  %v2161_v29 = vld [vmem:[#allocation2 + $0xd0] sm:$0xff]   ;;  %v2162_v30 = vld [vmem:[#allocation2 + $0x58] sm:$0xff]   ;;  %v2165_v33 = vld [vmem:[#allocation2 + $0xe0] sm:$0xff]  }
  0x34   :  { %v2163_v31 = vld [vmem:[#allocation2 + $0xd8] sm:$0xff]   ;;  %v2166_v34 = vld [vmem:[#allocation2 + $0x68] sm:$0xff]   ;;  %v2168_v36 = vld [vmem:[#allocation2 + $0x70] sm:$0xff]  }
  0x35   :  { %v2167_v35 = vld [vmem:[#allocation2 + $0xe8] sm:$0xff]   ;;  %v2169_v37 = vld [vmem:[#allocation2 + $0xf0] sm:$0xff]   ;;  %v2668_v40 = vld [vmem:[%s3228_s2] ss:$0 sm:$0xff] }
  0x36   :  { %v2170_v38 = vld [vmem:[#allocation2 + $0x78] sm:$0xff]  }
  0x38   :  { %v2171_v39 = vld [vmem:[#allocation2 + $0xf8] sm:$0xff]  }
  0x3a   :  { %2065 = vmatmul.mubr.bf16.gmra.mrb[12].mxu0 %v2154_v22  ;;  %2097 = vmatmul.mubr.bf16.gmra.mrb[12].mxu1 %v2155_v23 }
  0x3b   :  { %2068 = vmatprep.mubr.bf16.mxu0 %v2156_v24  ;;  %2100 = vmatprep.mubr.bf16.mxu1 %v2157_v25 }
  0x42   :  { %2069 = vmatmul.mubr.bf16.gmra.mrb[16].mxu0 %v2158_v26  ;;  %2101 = vmatmul.mubr.bf16.gmra.mrb[16].mxu1 %v2159_v27 }
  0x43   :  { %2072 = vmatprep.mubr.bf16.mxu0 %v2160_v28  ;;  %2104 = vmatprep.mubr.bf16.mxu1 %v2161_v29 }
  0x4a   :  { %2073 = vmatmul.mubr.bf16.gmra.mrb[20].mxu0 %v2162_v30  ;;  %2105 = vmatmul.mubr.bf16.gmra.mrb[20].mxu1 %v2163_v31 }
  0x4b   :  { %2076 = vmatprep.mubr.bf16.mxu0 %v2164_v32  ;;  %2108 = vmatprep.mubr.bf16.mxu1 %v2165_v33 }
  0x52   :  { %2077 = vmatmul.mubr.bf16.gmra.mrb[24].mxu0 %v2166_v34  ;;  %2109 = vmatmul.mubr.bf16.gmra.mrb[24].mxu1 %v2167_v35 }
  0x53   :  { %2080 = vmatprep.mubr.bf16.mxu0 %v2168_v36  ;;  %2112 = vmatprep.mubr.bf16.mxu1 %v2169_v37 }
  0x5a   :  { %2081 = vmatmul.mubr.bf16.gmra.mrb[28].mxu0 %v2170_v38  ;;  %2113 = vmatmul.mubr.bf16.gmra.mrb[28].mxu1 %v2171_v39 }
  0xf5   :  { %v2054_v41 = vpop.f32.mrb[0].mxu0  ;;  %v2086_v42 = vpop.f32.mrb[0].mxu1 }
  0xf6   :  { %v2671_v43 = vadd.f32 %v2054_v41, %v2668_v40  ;;  %v2674_v44 = vadd.f32 %v2086_v42, %v2668_v40  ;;  %v669_v45 = vpop.f32.mrb[1].mxu0  ;;  %v797_v46 = vpop.f32.mrb[1].mxu1 }
  0xf7   :  { %v2677_v47 = vadd.f32 %v2668_v40, %v669_v45  ;;  %v2680_v48 = vadd.f32 %v2668_v40, %v797_v46  ;;  %v2055_v49 = vpop.f32.mrb[2].mxu0  ;;  %v2087_v50 = vpop.f32.mrb[2].mxu1 }
  0xf8   :  { %v926_v51 = vsub.f32 0.0, %v2671_v43  ;;  %v958_v52 = vsub.f32 0.0, %v2674_v44  ;;  %v2685_v53 = vadd.f32 %v2055_v49, %v2668_v40  ;;  %v2688_v54 = vadd.f32 %v2087_v50, %v2668_v40  ;;  %v672_v55 = vpop.f32.mrb[3].mxu0  ;;  %v800_v56 = vpop.f32.mrb[3].mxu1 }
  0xf9   :  { %v924_v57 = vsub.f32 0.0, %v2677_v47  ;;  %v956_v58 = vsub.f32 0.0, %v2680_v48  ;;  %v2693_v59 = vadd.f32 %v2668_v40, %v672_v55  ;;  %v2696_v60 = vadd.f32 %v2668_v40, %v800_v56 }
  0xfa   :  { %v992_v61 = vmul.f32 1.442695, %v926_v51  ;;  %v1056_v62 = vmul.f32 1.442695, %v958_v52  ;;  %v927_v63 = vsub.f32 0.0, %v2685_v53  ;;  %v959_v0 = vsub.f32 0.0, %v2688_v54 }
  0xfb   :  { %v988_v1 = vmul.f32 1.442695, %v924_v57  ;;  %v1052_v2 = vmul.f32 1.442695, %v956_v58  ;;  %v925_v3 = vsub.f32 0.0, %v2693_v59  ;;  %v957_v4 = vsub.f32 0.0, %v2696_v60 }
  0xfc   :  { %2172 = vpow2.f32 %v992_v61  ;;  %v994_v5 = vmul.f32 1.442695, %v927_v63  ;;  %v1058_v6 = vmul.f32 1.442695, %v959_v0 }
  0xfd   :  { %2174 = vpow2.f32 %v1056_v62  ;;  %v2058_v7 = vpop.f32.mrb[4].mxu0  ;;  %v2090_v8 = vpop.f32.mrb[4].mxu1  ;;  %v990_v9 = vmul.f32 1.442695, %v925_v3  ;;  %v1054_v14 = vmul.f32 1.442695, %v957_v4 }
  0xfe   :  { %2176 = vpow2.f32 %v988_v1  ;;  %v2703_v10 = vadd.f32 %v2058_v7, %v2668_v40  ;;  %v2706_v11 = vadd.f32 %v2090_v8, %v2668_v40  ;;  %v685_v12 = vpop.f32.mrb[5].mxu0  ;;  %v813_v13 = vpop.f32.mrb[5].mxu1 }
  0xff   :  { %2178 = vpow2.f32 %v1052_v2  ;;  %v2709_v15 = vadd.f32 %v2668_v40, %v685_v12  ;;  %v2712_v16 = vadd.f32 %v2668_v40, %v813_v13  ;;  %v2059_v17 = vpop.f32.mrb[6].mxu0  ;;  %v2091_v18 = vpop.f32.mrb[6].mxu1 }
 0x100   :  { %2180 = vpow2.f32 %v994_v5  ;;  %v930_v19 = vsub.f32 0.0, %v2703_v10  ;;  %v962_v20 = vsub.f32 0.0, %v2706_v11  ;;  %v2717_v21 = vadd.f32 %v2059_v17, %v2668_v40  ;;  %v688_v22 = vpop.f32.mrb[7].mxu0  ;;  %v816_v23 = vpop.f32.mrb[7].mxu1 }
 0x101   :  { %2182 = vpow2.f32 %v1058_v6  ;;  %v928_v24 = vsub.f32 0.0, %v2709_v15  ;;  %v960_v25 = vsub.f32 0.0, %v2712_v16  ;;  %v2722_v26 = vadd.f32 %v2091_v18, %v2668_v40 }
 0x102   :  { %2184 = vpow2.f32 %v990_v9  ;;  %v1000_v27 = vmul.f32 1.442695, %v930_v19  ;;  %v1064_v28 = vmul.f32 1.442695, %v962_v20  ;;  %v931_v29 = vsub.f32 0.0, %v2717_v21 }
 0x103   :  { %2186 = vpow2.f32 %v1054_v14  ;;  %v996_v30 = vmul.f32 1.442695, %v928_v24  ;;  %v1060_v31 = vmul.f32 1.442695, %v960_v25  ;;  %v2726_v33 = vadd.f32 %v2668_v40, %v688_v22 }
 0x104   :  { %2188 = vpow2.f32 %v1000_v27  ;;  %v1002_v32 = vmul.f32 1.442695, %v931_v29  ;;  %v963_v37 = vsub.f32 0.0, %v2722_v26  ;;  %v2730_v45 = vadd.f32 %v2668_v40, %v816_v23 }
 0x105   :  { %2190 = vpow2.f32 %v1064_v28  ;;  %v2062_v34 = vpop.f32.mrb[8].mxu0  ;;  %v2094_v35 = vpop.f32.mrb[8].mxu1  ;;  %v929_v57 = vsub.f32 0.0, %v2726_v33 }
 0x106   :  { %v2173_v36 = vpop.eup %2172  ;;  %2192 = vpow2.f32 %v996_v30  ;;  %v701_v38 = vpop.f32.mrb[9].mxu0  ;;  %v2733_v63 = vmul.f32 1.442695, %v963_v37  ;;  %v961_v2 = vsub.f32 0.0, %v2730_v45  ;;  %v2737_v3 = vadd.f32 %v2062_v34, %v2668_v40 }
 0x107   :  { %v829_v39 = vpop.f32.mrb[9].mxu1  ;;  %v2175_v41 = vpop.eup %2174  ;;  %v1118_v42 = vadd.f32 1.0, %v2173_v36  ;;  %2194 = vpow2.f32 %v1060_v31  ;;  %v2740_v6 = vadd.f32 %v2094_v35, %v2668_v40  ;;  %v2743_v7 = vadd.f32 %v2668_v40, %v701_v38 }
 0x108   :  { %v2063_v46 = vpop.f32.mrb[10].mxu0  ;;  %v2095_v49 = vpop.f32.mrb[10].mxu1  ;;  %v1150_v51 = vadd.f32 1.0, %v2175_v41  ;;  %2196 = vpow2.f32 %v1002_v32  ;;  %v998_v12 = vmul.f32 1.442695, %v929_v57  ;;  %v2746_v13 = vadd.f32 %v2668_v40, %v829_v39 }
 0x109   :  { %v2177_v50 = vpop.eup %2176  ;;  %v704_v52 = vpop.f32.mrb[11].mxu0  ;;  %2198 = vrcp.f32 %v1118_v42  ;;  %v2749_v20 = vadd.f32 %v2063_v46, %v2668_v40  ;;  %v2752_v22 = vadd.f32 %v2095_v49, %v2668_v40  ;;  %v934_v28 = vsub.f32 0.0, %v2737_v3 }
 0x10a   :  { %v2179_v55 = vpop.eup %2178  ;;  %v1116_v56 = vadd.f32 1.0, %v2177_v50  ;;  %v832_v58 = vpop.f32.mrb[11].mxu1  ;;  %2200 = vrcp.f32 %v1150_v51  ;;  %v2758_v29 = vadd.f32 %v2668_v40, %v704_v52  ;;  %v966_v35 = vsub.f32 0.0, %v2740_v6 }
 0x10b   :  { %v2181_v61 = vpop.eup %2180  ;;  %v1148_v62 = vadd.f32 1.0, %v2179_v55  ;;  %v932_v36 = vsub.f32 0.0, %v2743_v7  ;;  %v1062_v42 = vmul.f32 1.442695, %v961_v2  ;;  %v964_v46 = vsub.f32 0.0, %v2746_v13 }
 0x10c   :  { %v2183_v0 = vpop.eup %2182  ;;  %2202 = vrcp.f32 %v1116_v56  ;;  %v1119_v1 = vadd.f32 1.0, %v2181_v61  ;;  %v935_v51 = vsub.f32 0.0, %v2749_v20  ;;  %v967_v52 = vsub.f32 0.0, %v2752_v22 }
 0x10d   :  { %v2185_v4 = vpop.eup %2184  ;;  %2204 = vrcp.f32 %v1148_v62  ;;  %v1151_v5 = vadd.f32 1.0, %v2183_v0  ;;  %v2066_v14 = vpop.f32.mrb[12].mxu0  ;;  %v933_v57 = vsub.f32 0.0, %v2758_v29  ;;  %v2775_v61 = vadd.f32 %v2668_v40, %v832_v58 }
 0x10e   :  { %v2187_v8 = vpop.eup %2186  ;;  %2206 = vrcp.f32 %v1119_v1  ;;  %v1117_v9 = vadd.f32 1.0, %v2185_v4  ;;  %v2098_v17 = vpop.f32.mrb[12].mxu1  ;;  %v1008_v0 = vmul.f32 1.442695, %v934_v28  ;;  %v1072_v1 = vmul.f32 1.442695, %v966_v35 }
 0x10f   :  { %v2189_v18 = vpop.eup %2188  ;;  %2208 = vrcp.f32 %v1151_v5  ;;  %v1149_v19 = vadd.f32 1.0, %v2187_v8  ;;  %v717_v23 = vpop.f32.mrb[13].mxu0  ;;  %v1004_v2 = vmul.f32 1.442695, %v932_v36  ;;  %v1068_v5 = vmul.f32 1.442695, %v964_v46 }
 0x110   :  { %v2754_v24 = vpop.f32.mrb[13].mxu1  ;;  %v2191_v25 = vpop.eup %2190  ;;  %2210 = vrcp.f32 %v1117_v9  ;;  %v1122_v27 = vadd.f32 1.0, %v2189_v18  ;;  %v2778_v8 = vadd.f32 %v2066_v14, %v2668_v40  ;;  %v2781_v9 = vadd.f32 %v2098_v17, %v2668_v40 }
 0x111   :  { %v2760_v30 = vpop.f32.mrb[14].mxu0  ;;  %v2762_v31 = vpop.f32.mrb[14].mxu1  ;;  %2212 = vrcp.f32 %v1149_v19  ;;  %v1154_v34 = vadd.f32 1.0, %v2191_v25  ;;  %v1010_v25 = vmul.f32 1.442695, %v935_v51  ;;  %v965_v17 = vsub.f32 0.0, %v2775_v61 }
 0x112   :  { %v2193_v32 = vpop.eup %2192  ;;  %v2766_v37 = vpop.f32.mrb[15].mxu0  ;;  %2214 = vrcp.f32 %v1122_v27  ;;  %v1074_v27 = vmul.f32 1.442695, %v967_v52  ;;  %v1006_v35 = vmul.f32 1.442695, %v933_v57  ;;  %v938_v52 = vsub.f32 0.0, %v2778_v8 }
 0x113   :  { %v2768_v38 = vpop.f32.mrb[15].mxu1  ;;  %v2195_v39 = vpop.eup %2194  ;;  %v1120_v41 = vadd.f32 1.0, %v2193_v32  ;;  %2216 = vrcp.f32 %v1154_v34 }
 0x114   :  { %v2197_v49 = vpop.eup %2196  ;;  %v1152_v50 = vadd.f32 1.0, %v2195_v39 }
 0x115   :  { %v2199_v55 = vpop.eup %2198  ;;  %2218 = vrcp.f32 %v1120_v41  ;;  %v1123_v56 = vadd.f32 1.0, %v2197_v49  ;;  %v2783_v18 = vpop.f32.mrb[16].mxu0  ;;  %v2801_v49 = vadd.f32 %v2668_v40, %v717_v23 }
 0x116   :  { %v2201_v62 = vpop.eup %2200  ;;  %2220 = vrcp.f32 %v1152_v50  ;;  %v2785_v19 = vpop.f32.mrb[16].mxu1  ;;  %v1246_v14 = vmul.f32 %v2199_v55, %v2671_v43  ;;  %v970_v55 = vsub.f32 0.0, %v2781_v9 }
 0x117   :  { %v2203_v4 = vpop.eup %2202  ;;  %2222 = vrcp.f32 %v1123_v56  ;;  %v2788_v28 = vpop.f32.mrb[17].mxu0 }
 0x118   :  { %v2205_v58 = vpop.eup %2204  ;;  %2224 = vpow2.f32 %v2733_v63  ;;  %v2790_v32 = vpop.f32.mrb[17].mxu1  ;;  %v1278_v63 = vmul.f32 %v2201_v62, %v2674_v44  ;;  %v1244_v44 = vmul.f32 %v2203_v4, %v2677_v47 }
 0x119   :  { %v2207_v34 = vpop.eup %2206  ;;  %2226 = vpow2.f32 %v998_v12  ;;  %v2794_v36 = vpop.f32.mrb[18].mxu0  ;;  %v1276_v57 = vmul.f32 %v2205_v58, %v2680_v48  ;;  %v1016_v48 = vmul.f32 1.442695, %v938_v52  ;;  %v2853_v52 = vadd.f32 %v2762_v31, %v2668_v40 }
 0x11a   :  { %v2796_v39 = vpop.f32.mrb[18].mxu1  ;;  %v2209_v41 = vpop.eup %2208  ;;  %v1247_v46 = vmul.f32 %v2207_v34, %v2685_v53  ;;  %2228 = vpow2.f32 %v1062_v42 }
 0x11b   :  { %v2803_v50 = vpop.f32.mrb[19].mxu0  ;;  %v2805_v43 = vpop.f32.mrb[19].mxu1  ;;  %v1279_v51 = vmul.f32 %v2209_v41, %v2688_v54  ;;  %2230 = vpow2.f32 %v1008_v0  ;;  %v1070_v41 = vmul.f32 1.442695, %v965_v17  ;;  %v2843_v17 = vadd.f32 %v2760_v30, %v2668_v40 }
 0x11c   :  { %v2211_v12 = vpop.eup %2210  ;;  %v1813_v53 = vpack.c.bf16 %v1247_v46, %v1246_v14  ;;  %2232 = vpow2.f32 %v1072_v1 }
 0x11d   :  { %v2213_v56 = vpop.eup %2212  ;;  %v1245_v42 = vmul.f32 %v2211_v12, %v2693_v59  ;;  %v1893_v62 = vpack.c.bf16 %v1279_v51, %v1278_v63  ;;  %2234 = vpow2.f32 %v1004_v2  ;;  %v2824_v1 = vpop.f32.mrb[20].mxu0 }
 0x11e   :  { %v2215_v23 = vpop.eup %2214  ;;  %v1277_v34 = vmul.f32 %v2213_v56, %v2696_v60  ;;  %1965 = vst [vmem:[%s3229_s3 + $0x8] sm:$0xff] %v1813_v53   ;;  %2236 = vpow2.f32 %v1068_v5  ;;  %v2822_v60 = vadd.f32 %v2668_v40, %v2754_v24  ;;  %v2826_v2 = vpop.f32.mrb[20].mxu1  ;;  %v1080_v5 = vmul.f32 1.442695, %v970_v55 }
 0x11f   :  { %v2217_v54 = vpop.eup %2216  ;;  %v1808_v0 = vpack.c.bf16 %v1245_v42, %v1244_v44  ;;  %1981 = vst [vmem:[%s3229_s3 + $0x88] sm:$0xff] %v1893_v62   ;;  %2238 = vpow2.f32 %v1010_v25  ;;  %v2833_v58 = vpop.f32.mrb[21].mxu0  ;;  %v936_v24 = vsub.f32 0.0, %v2801_v49  ;;  %v1250_v12 = vmul.f32 %v2215_v23, %v2703_v10 }
 0x120   :  { %v2219_v47 = vpop.eup %2218  ;;  %v1888_v59 = vpack.c.bf16 %v1277_v34, %v1276_v57  ;;  %2240 = vpow2.f32 %v1074_v27  ;;  %v2835_v25 = vpop.f32.mrb[21].mxu1  ;;  %v968_v44 = vsub.f32 0.0, %v2822_v60  ;;  %v939_v23 = vsub.f32 0.0, %v2843_v17 }
 0x121   :  { %v2828_v4 = vpop.eup %2220  ;;  %1809 = vst [vmem:[%s3229_s3] sm:$0xff] %v1808_v0   ;;  %2242 = vpow2.f32 %v1006_v35  ;;  %v2845_v63 = vpop.f32.mrb[22].mxu0  ;;  %v2864_v34 = vmul.f32 1.442695, %v936_v24  ;;  %v971_v0 = vsub.f32 0.0, %v2853_v52 }
 0x122   :  { %v2223_v14 = vpop.eup %2222  ;;  %1980 = vst [vmem:[%s3229_s3 + $0x80] sm:$0xff] %v1888_v59   ;;  %v2847_v27 = vpop.f32.mrb[22].mxu1  ;;  %2244 = vpow2.f32 %v1070_v41 }
 0x123   :  { %v2225_v46 = vpop.eup %2224  ;;  %v1251_v51 = vmul.f32 %v2223_v14, %v2717_v21  ;;  %v2855_v35 = vpop.f32.mrb[23].mxu0  ;;  %2246 = vpow2.f32 %v1016_v48  ;;  %v2867_v48 = vmul.f32 1.442695, %v968_v44 }
 0x124   :  { %v2857_v55 = vpop.f32.mrb[23].mxu1  ;;  %v2227_v30 = vpop.eup %2226  ;;  %v1155_v56 = vadd.f32 1.0, %v2225_v46  ;;  %2248 = vpow2.f32 %v1080_v5  ;;  %v2871_v5 = vadd.f32 %v2668_v40, %v2766_v37 }
 0x125   :  { %v2229_v53 = vpop.eup %2228  ;;  %v1823_v42 = vpack.c.bf16 %v1251_v51, %v1250_v12  ;;  %v1121_v57 = vadd.f32 1.0, %v2227_v30  ;;  %v2873_v14 = vpop.f32.mrb[24].mxu0  ;;  %v2878_v51 = vmul.f32 %v2217_v54, %v2706_v11  ;;  %v2882_v30 = vadd.f32 %v2668_v40, %v2768_v38 }
 0x126   :  { %v2231_v10 = vpop.eup %2230  ;;  %2250 = vrcp.f32 %v1155_v56  ;;  %v1153_v21 = vadd.f32 1.0, %v2229_v53  ;;  %v2875_v46 = vpop.f32.mrb[24].mxu1  ;;  %v2889_v53 = vmul.f32 %v2219_v47, %v2709_v15 }
 0x127   :  { %v2233_v31 = vpop.eup %2232  ;;  %1967 = vst [vmem:[%s3229_s3 + $0x18] sm:$0xff] %v1823_v42   ;;  %2252 = vrcp.f32 %v1121_v57  ;;  %v1126_v62 = vadd.f32 1.0, %v2231_v10  ;;  %v2884_v56 = vpop.f32.mrb[25].mxu0  ;;  %v2891_v57 = vmul.f32 1.442695, %v939_v23  ;;  %v2909_v23 = vmul.f32 %v2828_v4, %v2712_v16 }
 0x128   :  { %v2235_v41 = vpop.eup %2234  ;;  %2254 = vrcp.f32 %v1153_v21  ;;  %v1158_v59 = vadd.f32 1.0, %v2233_v31  ;;  %v2886_v44 = vpop.f32.mrb[25].mxu1  ;;  %v2897_v21 = vmul.f32 1.442695, %v971_v0  ;;  %v2901_v31 = vadd.f32 %v2783_v18, %v2668_v40 }
 0x129   :  { %v2237_v12 = vpop.eup %2236  ;;  %2256 = vrcp.f32 %v1126_v62  ;;  %v1124_v24 = vadd.f32 1.0, %v2235_v41  ;;  %v2893_v11 = vpop.f32.mrb[26].mxu0  ;;  %v2915_v18 = vadd.f32 %v2785_v19, %v2668_v40  ;;  %v2919_v16 = vadd.f32 %v2668_v40, %v2788_v28 }
 0x12a   :  { %v2239_v37 = vpop.eup %2238  ;;  %2258 = vrcp.f32 %v1158_v59  ;;  %v1156_v42 = vadd.f32 1.0, %v2237_v12  ;;  %v2895_v54 = vpop.f32.mrb[26].mxu1  ;;  %3233 = vst [vmem:[#allocation3_spill] sm:$0xff] %v2901_v31  ;;  %v937_v59 = vsub.f32 0.0, %v2871_v5  ;;  %v2923_v4 = vadd.f32 %v2668_v40, %v2790_v32 }
 0x12b   :  { %v2241_v10 = vpop.eup %2240  ;;  %2260 = vrcp.f32 %v1124_v24  ;;  %v1127_v38 = vadd.f32 1.0, %v2239_v37  ;;  %v2903_v62 = vpop.f32.mrb[27].mxu0  ;;  %v969_v24 = vsub.f32 0.0, %v2882_v30  ;;  %3236 = vst [vmem:[#allocation6_spill] sm:$0xff] %v2915_v18  ;;  %v2928_v19 = vadd.f32 %v2794_v36, %v2668_v40 }
 0x12c   :  { %3234 = vst [vmem:[#allocation4_spill] sm:$0xff] %v2903_v62  ;;  %v2905_v15 = vpop.f32.mrb[27].mxu1  ;;  %v2243_v47 = vpop.eup %2242  ;;  %2262 = vrcp.f32 %v1156_v42  ;;  %v1159_v41 = vadd.f32 1.0, %v2241_v10  ;;  %3237 = vst [vmem:[#allocation7_spill] sm:$0xff] %v2923_v4  ;;  %v2932_v28 = vadd.f32 %v2796_v39, %v2668_v40  ;;  %v2942_v36 = vadd.f32 %v2668_v40, %v2803_v50 }
 0x12d   :  { %3235 = vst [vmem:[#allocation5_spill] sm:$0xff] %v2905_v15  ;;  %v2245_v12 = vpop.eup %2244  ;;  %2264 = vrcp.f32 %v1127_v38  ;;  %v1125_v0 = vadd.f32 1.0, %v2243_v47  ;;  %v942_v38 = vsub.f32 0.0, %v2901_v31  ;;  %v2934_v62 = vpop.f32.mrb[28].mxu0  ;;  %v974_v31 = vsub.f32 0.0, %v2915_v18 }
 0x12e   :  { %v2247_v37 = vpop.eup %2246  ;;  %2266 = vrcp.f32 %v1159_v41  ;;  %v1157_v15 = vadd.f32 1.0, %v2245_v12  ;;  %v1014_v12 = vmul.f32 1.442695, %v937_v59  ;;  %3238 = vst [vmem:[#allocation8_spill] sm:$0xff] %v2934_v62  ;;  %v2936_v32 = vpop.f32.mrb[28].mxu1  ;;  %v972_v62 = vsub.f32 0.0, %v2923_v4 }
 0x12f   :  { %v2249_v42 = vpop.eup %2248  ;;  %2268 = vrcp.f32 %v1125_v0  ;;  %v1130_v10 = vadd.f32 1.0, %v2247_v37  ;;  %3239 = vst [vmem:[#allocation9_spill] sm:$0xff] %v2936_v32  ;;  %v2946_v59 = vpop.f32.mrb[29].mxu1  ;;  %v940_v32 = vsub.f32 0.0, %v2919_v16  ;;  %v1078_v4 = vmul.f32 1.442695, %v969_v24 }
 0x130   :  { %v2251_v47 = vpop.eup %2250  ;;  %2270 = vrcp.f32 %v1157_v15  ;;  %v1162_v41 = vadd.f32 1.0, %v2249_v42  ;;  %v2944_v15 = vpop.f32.mrb[29].mxu0  ;;  %3241 = vst [vmem:[#allocation11_spill] sm:$0xff] %v2946_v59  ;;  %v943_v59 = vsub.f32 0.0, %v2928_v19  ;;  %v1084_v24 = vmul.f32 1.442695, %v972_v62 }
 0x131   :  { %v2253_v0 = vpop.eup %2252  ;;  %v1283_v37 = vmul.f32 %v2251_v47, %v2722_v26  ;;  %2272 = vrcp.f32 %v1130_v10  ;;  %3240 = vst [vmem:[#allocation10_spill] sm:$0xff] %v2944_v15  ;;  %v2951_v26 = vpop.f32.mrb[30].mxu0 }
 0x132   :  { %v2255_v39 = vpop.eup %2254  ;;  %v1249_v42 = vmul.f32 %v2253_v0, %v2726_v33  ;;  %2274 = vrcp.f32 %v1162_v41  ;;  %3242 = vst [vmem:[#allocation12_spill] sm:$0xff] %v2951_v26  ;;  %v2953_v10 = vpop.f32.mrb[30].mxu1 }
 0x133   :  { %3243 = vst [vmem:[#allocation13_spill] sm:$0xff] %v2953_v10  ;;  %v2257_v47 = vpop.eup %2256  ;;  %v1903_v50 = vpack.c.bf16 %v1283_v37, %v2878_v51  ;;  %v1281_v18 = vmul.f32 %v2255_v39, %v2730_v45  ;;  %2276 = vpow2.f32 %v2864_v34  ;;  %v2959_v15 = vpop.f32.mrb[31].mxu0  ;;  %v975_v10 = vsub.f32 0.0, %v2932_v28 }
 0x134   :  { %v2961_v33 = vpop.f32.mrb[31].mxu1  ;;  %v2259_v41 = vpop.eup %2258  ;;  %v1818_v0 = vpack.c.bf16 %v1249_v42, %v2889_v53  ;;  %2278 = vpow2.f32 %v2867_v48  ;;  %v1024_v34 = vmul.f32 1.442695, %v942_v38  ;;  %v941_v51 = vsub.f32 0.0, %v2942_v36 }
 0x135   :  { %3244 = vst [vmem:[#allocation14_spill] sm:$0xff] %v2961_v33  ;;  %v2261_v26 = vpop.eup %2260  ;;  %1983 = vst [vmem:[%s3229_s3 + $0x98] sm:$0xff] %v1903_v50   ;;  %v1898_v45 = vpack.c.bf16 %v1281_v18, %v2909_v23  ;;  %2280 = vpow2.f32 %v2891_v57  ;;  %v1088_v48 = vmul.f32 1.442695, %v974_v31  ;;  %v1020_v23 = vmul.f32 1.442695, %v940_v32 }
 0x136   :  { %v2263_v37 = vpop.eup %2262  ;;  %1966 = vst [vmem:[%s3229_s3 + $0x10] sm:$0xff] %v1818_v0   ;;  %2282 = vpow2.f32 %v2897_v21  ;;  %v1026_v57 = vmul.f32 1.442695, %v943_v59  ;;  %v1254_v38 = vmul.f32 %v2257_v47, %v2737_v3  ;;  %v1090_v42 = vmul.f32 1.442695, %v975_v10 }
 0x137   :  { %v2265_v53 = vpop.eup %2264  ;;  %1982 = vst [vmem:[%s3229_s3 + $0x90] sm:$0xff] %v1898_v45   ;;  %2284 = vpow2.f32 %v1014_v12  ;;  %v1286_v21 = vmul.f32 %v2259_v41, %v2740_v6  ;;  %v1022_v0 = vmul.f32 1.442695, %v941_v51  ;;  %v1252_v12 = vmul.f32 %v2261_v26, %v2743_v7 }
 0x138   :  { %v2267_v18 = vpop.eup %2266  ;;  %v1255_v39 = vmul.f32 %v2265_v53, %v2749_v20  ;;  %2286 = vpow2.f32 %v1078_v4  ;;  %v1284_v3 = vmul.f32 %v2263_v37, %v2746_v13  ;;  %v2996_v7 = vadd.f32 %v2668_v40, %v2805_v43 }
 0x139   :  { %v2269_v50 = vpop.eup %2268  ;;  %v1287_v31 = vmul.f32 %v2267_v18, %v2752_v22  ;;  %2288 = vpow2.f32 %v1024_v34  ;;  %v3010_v43 = vadd.f32 %v2826_v2, %v2668_v40 }
 0x13a   :  { %v2271_v33 = vpop.eup %2270  ;;  %v1833_v32 = vpack.c.bf16 %v1255_v39, %v1254_v38  ;;  %v1253_v62 = vmul.f32 %v2269_v50, %v2758_v29  ;;  %2290 = vpow2.f32 %v1088_v48  ;;  %v3000_v29 = vadd.f32 %v2824_v1, %v2668_v40 }
 0x13b   :  { %v2985_v59 = vpop.eup %2272  ;;  %v1913_v20 = vpack.c.bf16 %v1287_v31, %v1286_v21  ;;  %v1285_v4 = vmul.f32 %v2271_v33, %v2775_v61  ;;  %2292 = vpow2.f32 %v1020_v23  ;;  %v3014_v1 = vadd.f32 %v2668_v40, %v2833_v58 }
 0x13c   :  { %v2989_v6 = vpop.eup %2274  ;;  %1969 = vst [vmem:[%s3229_s3 + $0x28] sm:$0xff] %v1833_v32   ;;  %v1828_v22 = vpack.c.bf16 %v1253_v62, %v1252_v12  ;;  %2294 = vpow2.f32 %v1084_v24  ;;  %v973_v34 = vsub.f32 0.0, %v2996_v7  ;;  %v946_v51 = vsub.f32 0.0, %v3000_v29 }
 0x13d   :  { %v2277_v13 = vpop.eup %2276  ;;  %1985 = vst [vmem:[%s3229_s3 + $0xa8] sm:$0xff] %v1913_v20   ;;  %v1908_v61 = vpack.c.bf16 %v1285_v4, %v1284_v3  ;;  %2296 = vpow2.f32 %v1026_v57  ;;  %v3023_v58 = vadd.f32 %v2668_v40, %v2835_v25  ;;  %v978_v23 = vsub.f32 0.0, %v3010_v43 }
 0x13e   :  { %v2279_v26 = vpop.eup %2278  ;;  %1968 = vst [vmem:[%s3229_s3 + $0x20] sm:$0xff] %v1828_v22   ;;  %v1128_v10 = vadd.f32 1.0, %v2277_v13  ;;  %2298 = vpow2.f32 %v1090_v42  ;;  %v944_v24 = vsub.f32 0.0, %v3014_v1  ;;  %v3029_v38 = vadd.f32 %v2845_v63, %v2668_v40 }
 0x13f   :  { %v2281_v47 = vpop.eup %2280  ;;  %1984 = vst [vmem:[%s3229_s3 + $0xa0] sm:$0xff] %v1908_v61   ;;  %v1160_v33 = vadd.f32 1.0, %v2279_v26  ;;  %2300 = vpow2.f32 %v1022_v0  ;;  %v3033_v39 = vadd.f32 %v2847_v27, %v2668_v40  ;;  %v1086_v50 = vmul.f32 1.442695, %v973_v34 }
 0x140   :  { %v2283_v41 = vpop.eup %2282  ;;  %2302 = vrcp.f32 %v1128_v10  ;;  %v1131_v45 = vadd.f32 1.0, %v2281_v47  ;;  %v1032_v21 = vmul.f32 1.442695, %v946_v51  ;;  %v976_v12 = vsub.f32 0.0, %v3023_v58 }
 0x141   :  { %v2285_v2 = vpop.eup %2284  ;;  %2304 = vrcp.f32 %v1160_v33  ;;  %v1163_v37 = vadd.f32 1.0, %v2283_v41  ;;  %v3038_v32 = vadd.f32 %v2668_v40, %v2855_v35  ;;  %v1096_v3 = vmul.f32 1.442695, %v978_v23 }
 0x142   :  { %v2287_v48 = vpop.eup %2286  ;;  %2306 = vrcp.f32 %v1131_v45  ;;  %v1129_v53 = vadd.f32 1.0, %v2285_v2  ;;  %v1028_v27 = vmul.f32 1.442695, %v944_v24  ;;  %v947_v22 = vsub.f32 0.0, %v3029_v38 }
 0x143   :  { %v2289_v57 = vpop.eup %2288  ;;  %2308 = vrcp.f32 %v1163_v37  ;;  %v1161_v18 = vadd.f32 1.0, %v2287_v48  ;;  %v979_v13 = vsub.f32 0.0, %v3033_v39  ;;  %v3044_v10 = vadd.f32 %v2668_v40, %v2857_v55 }
 0x144   :  { %v2291_v25 = vpop.eup %2290  ;;  %2310 = vrcp.f32 %v1129_v53  ;;  %v1134_v42 = vadd.f32 1.0, %v2289_v57  ;;  %v3048_v35 = vadd.f32 %v2873_v14, %v2668_v40  ;;  %v1092_v41 = vmul.f32 1.442695, %v976_v12 }
 0x145   :  { %v2293_v31 = vpop.eup %2292  ;;  %2312 = vrcp.f32 %v1161_v18  ;;  %v1166_v0 = vadd.f32 1.0, %v2291_v25  ;;  %v945_v45 = vsub.f32 0.0, %v3038_v32  ;;  %v3053_v2 = vadd.f32 %v2875_v46, %v2668_v40 }
 0x146   :  { %v2295_v63 = vpop.eup %2294  ;;  %2314 = vrcp.f32 %v1134_v42  ;;  %v1132_v62 = vadd.f32 1.0, %v2293_v31  ;;  %v3057_v55 = vadd.f32 %v2668_v40, %v2884_v56  ;;  %v1258_v14 = vmul.f32 %v2985_v59, %v2778_v8 }
 0x147   :  { %v2297_v20 = vpop.eup %2296  ;;  %2316 = vrcp.f32 %v1166_v0  ;;  %v1164_v4 = vadd.f32 1.0, %v2295_v63  ;;  %v1034_v48 = vmul.f32 1.442695, %v947_v22  ;;  %v1098_v53 = vmul.f32 1.442695, %v979_v13 }
 0x148   :  { %v2299_v61 = vpop.eup %2298  ;;  %2318 = vrcp.f32 %v1132_v62  ;;  %v1135_v26 = vadd.f32 1.0, %v2297_v20  ;;  %v1290_v24 = vmul.f32 %v2989_v6, %v2781_v9  ;;  %v977_v57 = vsub.f32 0.0, %v3044_v10 }
 0x149   :  { %v2301_v47 = vpop.eup %2300  ;;  %2320 = vrcp.f32 %v1164_v4  ;;  %v1167_v33 = vadd.f32 1.0, %v2299_v61  ;;  %v950_v46 = vsub.f32 0.0, %v3048_v35  ;;  %v1030_v25 = vmul.f32 1.442695, %v945_v45 }
 0x14a   :  { %v2303_v34 = vpop.eup %2302  ;;  %2322 = vrcp.f32 %v1135_v26  ;;  %v1133_v51 = vadd.f32 1.0, %v2301_v47  ;;  %v3068_v8 = vadd.f32 %v2668_v40, %v2886_v44  ;;  %v982_v9 = vsub.f32 0.0, %v3053_v2  ;;  %v3245_v47 = vld [vmem:[#allocation3_spill] sm:$0xff] }
 0x14b   :  { %v2305_v37 = vpop.eup %2304  ;;  %2324 = vrcp.f32 %v1167_v33  ;;  %v948_v6 = vsub.f32 0.0, %v3057_v55  ;;  %v1256_v0 = vmul.f32 %v2303_v34, %v2801_v49  ;;  %v1094_v20 = vmul.f32 1.442695, %v977_v57 }
 0x14c   :  { %v2307_v23 = vpop.eup %2306  ;;  %2326 = vrcp.f32 %v1133_v51  ;;  %v1288_v63 = vmul.f32 %v2305_v37, %v2822_v60  ;;  %v980_v49 = vsub.f32 0.0, %v3068_v8  ;;  %v3094_v13 = vadd.f32 %v2893_v11, %v2668_v40  ;;  %v3246_v51 = vld [vmem:[#allocation6_spill] sm:$0xff] }
 0x14d   :  { %v2309_v18 = vpop.eup %2308  ;;  %v1259_v56 = vmul.f32 %v2307_v23, %v2843_v17  ;;  %2328 = vpow2.f32 %v1086_v50  ;;  %v1036_v22 = vmul.f32 1.442695, %v948_v6  ;;  %v3098_v61 = vadd.f32 %v2895_v54, %v2668_v40 }
 0x14e   :  { %v2311_v59 = vpop.eup %2310  ;;  %v1291_v42 = vmul.f32 %v2309_v18, %v2853_v52  ;;  %2330 = vpow2.f32 %v1032_v21  ;;  %v1100_v45 = vmul.f32 1.442695, %v980_v49 }
 0x14f   :  { %v2313_v31 = vpop.eup %2312  ;;  %v1843_v12 = vpack.c.bf16 %v1259_v56, %v1258_v14  ;;  %v1257_v17 = vmul.f32 %v2311_v59, %v2871_v5  ;;  %2332 = vpow2.f32 %v1096_v3  ;;  %v1040_v5 = vmul.f32 1.442695, %v950_v46  ;;  %v2428_v59 = vld [vmem:[%s3228_s2] ss:$0 sm:$0xff] }
 0x150   :  { %v2315_v50 = vpop.eup %2314  ;;  %v1923_v44 = vpack.c.bf16 %v1291_v42, %v1290_v24  ;;  %v1289_v62 = vmul.f32 %v2313_v31, %v2882_v30  ;;  %2334 = vpow2.f32 %v1028_v27  ;;  %v1104_v3 = vmul.f32 1.442695, %v982_v9  ;;  %v3247_v42 = vld [vmem:[#allocation4_spill] sm:$0xff] }
 0x151   :  { %v2317_v52 = vpop.eup %2316  ;;  %1971 = vst [vmem:[%s3229_s3 + $0x38] sm:$0xff] %v1843_v12   ;;  %v1838_v21 = vpack.c.bf16 %v1257_v17, %v1256_v0  ;;  %2336 = vpow2.f32 %v1092_v41  ;;  %v1262_v33 = vmul.f32 %v2315_v50, %v3245_v47  ;;  %v3121_v9 = vadd.f32 %v2428_v59, %v3247_v42 }
 0x152   :  { %v2319_v4 = vpop.eup %2318  ;;  %1987 = vst [vmem:[%s3229_s3 + $0xb8] sm:$0xff] %v1923_v44   ;;  %v1918_v60 = vpack.c.bf16 %v1289_v62, %v1288_v63  ;;  %2338 = vpow2.f32 %v1034_v48  ;;  %v1294_v37 = vmul.f32 %v2317_v52, %v3246_v51  ;;  %v3248_v62 = vld [vmem:[#allocation5_spill] sm:$0xff]  ;;  %v3253_v51 = vld [vmem:[#allocation12_spill] sm:$0xff] }
 0x153   :  { %v3084_v30 = vpop.eup %2320  ;;  %1970 = vst [vmem:[%s3229_s3 + $0x30] sm:$0xff] %v1838_v21   ;;  %2340 = vpow2.f32 %v1098_v53  ;;  %v1260_v11 = vmul.f32 %v2319_v4, %v2919_v16  ;;  %v983_v16 = vsub.f32 0.0, %v3098_v61  ;;  %v3124_v52 = vadd.f32 %v2428_v59, %v3248_v62  ;;  %v3249_v21 = vld [vmem:[#allocation8_spill] sm:$0xff] }
 0x154   :  { %v2323_v27 = vpop.eup %2322  ;;  %1986 = vst [vmem:[%s3229_s3 + $0xb0] sm:$0xff] %v1918_v60   ;;  %2342 = vpow2.f32 %v1030_v25  ;;  %v949_v60 = vsub.f32 0.0, %v3121_v9 }
 0x155   :  { %v2325_v26 = vpop.eup %2324  ;;  %v1263_v41 = vmul.f32 %v2323_v27, %v2928_v19  ;;  %2344 = vpow2.f32 %v1094_v20  ;;  %v951_v19 = vsub.f32 0.0, %v3094_v13  ;;  %v1106_v50 = vmul.f32 1.442695, %v983_v16  ;;  %v3255_v16 = vld [vmem:[#allocation7_spill] sm:$0xff] }
 0x156   :  { %v2327_v34 = vpop.eup %2326  ;;  %v1295_v14 = vmul.f32 %v2325_v26, %v2932_v28  ;;  %2346 = vpow2.f32 %v1040_v5  ;;  %v3127_v20 = vadd.f32 %v2428_v59, %v3249_v21  ;;  %v3250_v5 = vld [vmem:[#allocation9_spill] sm:$0xff]  ;;  %v3251_v26 = vld [vmem:[#allocation10_spill] sm:$0xff] }
 0x157   :  { %v2329_v48 = vpop.eup %2328  ;;  %v1853_v53 = vpack.c.bf16 %v1263_v41, %v1262_v33  ;;  %v1261_v40 = vmul.f32 %v2327_v34, %v2942_v36  ;;  %2348 = vpow2.f32 %v1104_v3  ;;  %v1042_v17 = vmul.f32 1.442695, %v951_v19  ;;  %v3252_v33 = vld [vmem:[#allocation11_spill] sm:$0xff] }
 0x158   :  { %v2331_v54 = vpop.eup %2330  ;;  %v1933_v23 = vpack.c.bf16 %v1295_v14, %v1294_v37  ;;  %v1165_v24 = vadd.f32 1.0, %v2329_v48  ;;  %2350 = vpow2.f32 %v1036_v22  ;;  %v3131_v3 = vadd.f32 %v2428_v59, %v3250_v5  ;;  %v3254_v14 = vld [vmem:[#allocation13_spill] sm:$0xff] }
 0x159   :  { %v2333_v57 = vpop.eup %2332  ;;  %1973 = vst [vmem:[%s3229_s3 + $0x48] sm:$0xff] %v1853_v53   ;;  %v1848_v28 = vpack.c.bf16 %v1261_v40, %v1260_v11  ;;  %v1138_v46 = vadd.f32 1.0, %v2331_v54  ;;  %2352 = vpow2.f32 %v1100_v45  ;;  %v3134_v47 = vadd.f32 %v2428_v59, %v3251_v26 }
 0x15a   :  { %v2335_v18 = vpop.eup %2334  ;;  %1989 = vst [vmem:[%s3229_s3 + $0xc8] sm:$0xff] %v1933_v23   ;;  %2354 = vrcp.f32 %v1165_v24  ;;  %v1170_v36 = vadd.f32 1.0, %v2333_v57  ;;  %v3137_v41 = vadd.f32 %v2428_v59, %v3252_v33  ;;  %v3140_v37 = vadd.f32 %v2428_v59, %v3253_v51 }
 0x15b   :  { %v2337_v56 = vpop.eup %2336  ;;  %1972 = vst [vmem:[%s3229_s3 + $0x40] sm:$0xff] %v1848_v28   ;;  %2356 = vrcp.f32 %v1138_v46  ;;  %v1136_v25 = vadd.f32 1.0, %v2335_v18  ;;  %v3143_v48 = vadd.f32 %v2428_v59, %v3254_v14  ;;  %v981_v40 = vsub.f32 0.0, %v3124_v52 }
 0x15c   :  { %v2339_v6 = vpop.eup %2338  ;;  %2358 = vrcp.f32 %v1170_v36  ;;  %v1168_v31 = vadd.f32 1.0, %v2337_v56  ;;  %v954_v54 = vsub.f32 0.0, %v3127_v20  ;;  %v1038_v19 = vmul.f32 1.442695, %v949_v60 }
 0x15d   :  { %v2341_v0 = vpop.eup %2340  ;;  %2360 = vrcp.f32 %v1136_v25  ;;  %v1139_v12 = vadd.f32 1.0, %v2339_v6  ;;  %v986_v57 = vsub.f32 0.0, %v3131_v3  ;;  %v3149_v28 = vadd.f32 %v2428_v59, %v2959_v15 }
 0x15e   :  { %v2343_v63 = vpop.eup %2342  ;;  %2362 = vrcp.f32 %v1168_v31  ;;  %v1171_v44 = vadd.f32 1.0, %v2341_v0  ;;  %v1292_v18 = vmul.f32 %v3084_v30, %v3255_v16  ;;  %v952_v36 = vsub.f32 0.0, %v3134_v47 }
 0x15f   :  { %v2345_v49 = vpop.eup %2344  ;;  %2364 = vrcp.f32 %v1139_v12  ;;  %v1137_v4 = vadd.f32 1.0, %v2343_v63  ;;  %v984_v56 = vsub.f32 0.0, %v3137_v41  ;;  %v955_v6 = vsub.f32 0.0, %v3140_v37  ;;  %v3256_v12 = vld [vmem:[#allocation14_spill] sm:$0xff] }
 0x160   :  { %v2347_v27 = vpop.eup %2346  ;;  %2366 = vrcp.f32 %v1171_v44  ;;  %v1169_v22 = vadd.f32 1.0, %v2345_v49  ;;  %v987_v31 = vsub.f32 0.0, %v3143_v48  ;;  %v1102_v15 = vmul.f32 1.442695, %v981_v40 }
 0x161   :  { %v2349_v45 = vpop.eup %2348  ;;  %2368 = vrcp.f32 %v1137_v4  ;;  %v1142_v34 = vadd.f32 1.0, %v2347_v27  ;;  %v3159_v63 = vadd.f32 %v2428_v59, %v3256_v12  ;;  %v1048_v62 = vmul.f32 1.442695, %v954_v54 }
 0x162   :  { %v2351_v11 = vpop.eup %2350  ;;  %2370 = vrcp.f32 %v1169_v22  ;;  %v1174_v53 = vadd.f32 1.0, %v2349_v45  ;;  %v953_v21 = vsub.f32 0.0, %v3149_v28  ;;  %v1044_v4 = vmul.f32 1.442695, %v952_v36 }
 0x163   :  { %v2353_v23 = vpop.eup %2352  ;;  %v1140_v24 = vadd.f32 1.0, %v2351_v11  ;;  %2372 = vrcp.f32 %v1142_v34  ;;  %v1108_v5 = vmul.f32 1.442695, %v984_v56  ;;  %v1050_v27 = vmul.f32 1.442695, %v955_v6 }
 0x164   :  { %v2355_v46 = vpop.eup %2354  ;;  %2374 = vrcp.f32 %v1174_v53  ;;  %v1114_v59 = vmul.f32 1.442695, %v987_v31  ;;  %v985_v33 = vsub.f32 0.0, %v3159_v63  ;;  %v1046_v51 = vmul.f32 1.442695, %v953_v21 }
 0x165   :  { %v2357_v25 = vpop.eup %2356  ;;  %v1293_v42 = vmul.f32 %v2355_v46, %v2996_v7  ;;  %2376 = vrcp.f32 %v1140_v24  ;;  %v1112_v7 = vmul.f32 1.442695, %v986_v57 }
 0x166   :  { %v2359_v0 = vpop.eup %2358  ;;  %2378 = vpow2.f32 %v1042_v17  ;;  %v1266_v26 = vmul.f32 %v2357_v25, %v3000_v29 }
 0x167   :  { %v2361_v30 = vpop.eup %2360  ;;  %v1928_v44 = vpack.c.bf16 %v1293_v42, %v1292_v18  ;;  %2380 = vpow2.f32 %v1106_v50  ;;  %v1298_v45 = vmul.f32 %v2359_v0, %v3010_v43 }
 0x168   :  { %v2363_v49 = vpop.eup %2362  ;;  %2382 = vpow2.f32 %v1038_v19  ;;  %v1264_v11 = vmul.f32 %v2361_v30, %v3014_v1 }
 0x169   :  { %v2365_v60 = vpop.eup %2364  ;;  %1988 = vst [vmem:[%s3229_s3 + $0xc0] sm:$0xff] %v1928_v44   ;;  %2384 = vpow2.f32 %v1102_v15  ;;  %v1296_v29 = vmul.f32 %v2363_v49, %v3023_v58 }
 0x16a   :  { %v2367_v22 = vpop.eup %2366  ;;  %v1267_v17 = vmul.f32 %v2365_v60, %v3029_v38  ;;  %2386 = vpow2.f32 %v1048_v62 }
 0x16b   :  { %v2369_v50 = vpop.eup %2368  ;;  %v1299_v34 = vmul.f32 %v2367_v22, %v3033_v39  ;;  %2388 = vpow2.f32 %v1112_v7  ;;  %v1110_v39 = vmul.f32 1.442695, %v985_v33 }
 0x16c   :  { %v2371_v14 = vpop.eup %2370  ;;  %v1863_v53 = vpack.c.bf16 %v1267_v17, %v1266_v26  ;;  %v1265_v40 = vmul.f32 %v2369_v50, %v3038_v32  ;;  %2390 = vpow2.f32 %v1044_v4  ;;  %v1172_v32 = vadd.f32 1.0, %v2353_v23 }
 0x16d   :  { %v1943_v38 = vpack.c.bf16 %v1299_v34, %v1298_v45  ;;  %v1297_v54 = vmul.f32 %v2371_v14, %v3044_v10  ;;  %v2373_v24 = vpop.eup %2372  ;;  %2392 = vpow2.f32 %v1108_v5 }
 0x16e   :  { %1975 = vst [vmem:[%s3229_s3 + $0x58] sm:$0xff] %v1863_v53   ;;  %v1858_v43 = vpack.c.bf16 %v1265_v40, %v1264_v11  ;;  %v2375_v19 = vpop.eup %2374  ;;  %2394 = vpow2.f32 %v1050_v27  ;;  %v1270_v26 = vmul.f32 %v2373_v24, %v3048_v35 }
 0x16f   :  { %1991 = vst [vmem:[%s3229_s3 + $0xd8] sm:$0xff] %v1943_v38   ;;  %v1938_v1 = vpack.c.bf16 %v1297_v54, %v1296_v29  ;;  %v2377_v58 = vpop.eup %2376  ;;  %2396 = vpow2.f32 %v1114_v59  ;;  %v1302_v50 = vmul.f32 %v2375_v19, %v3053_v2 }
 0x170   :  { %1974 = vst [vmem:[%s3229_s3 + $0x50] sm:$0xff] %v1858_v43   ;;  %v2379_v10 = vpop.eup %2378  ;;  %2398 = vpow2.f32 %v1046_v51  ;;  %v1268_v51 = vmul.f32 %v2377_v58, %v3057_v55 }
 0x171   :  { %1990 = vst [vmem:[%s3229_s3 + $0xd0] sm:$0xff] %v1938_v1   ;;  %v2381_v57 = vpop.eup %2380  ;;  %v1143_v46 = vadd.f32 1.0, %v2379_v10  ;;  %2400 = vpow2.f32 %v1110_v39 }
 0x172   :  { %v2383_v16 = vpop.eup %2382  ;;  %2402 = vrcp.f32 %v1172_v32  ;;  %v1175_v18 = vadd.f32 1.0, %v2381_v57 }
 0x173   :  { %v2385_v23 = vpop.eup %2384  ;;  %2404 = vrcp.f32 %v1143_v46  ;;  %v1141_v36 = vadd.f32 1.0, %v2383_v16 }
 0x174   :  { %v2387_v56 = vpop.eup %2386  ;;  %2406 = vrcp.f32 %v1175_v18  ;;  %v1173_v25 = vadd.f32 1.0, %v2385_v23 }
 0x175   :  { %v2389_v42 = vpop.eup %2388  ;;  %2408 = vrcp.f32 %v1141_v36  ;;  %v1146_v6 = vadd.f32 1.0, %v2387_v56 }
 0x176   :  { %v2391_v31 = vpop.eup %2390  ;;  %2410 = vrcp.f32 %v1173_v25  ;;  %v1178_v0 = vadd.f32 1.0, %v2389_v42 }
 0x177   :  { %v2393_v15 = vpop.eup %2392  ;;  %2412 = vrcp.f32 %v1146_v6  ;;  %v1144_v12 = vadd.f32 1.0, %v2391_v31 }
 0x178   :  { %v2395_v30 = vpop.eup %2394  ;;  %2414 = vrcp.f32 %v1178_v0  ;;  %v1176_v44 = vadd.f32 1.0, %v2393_v15 }
 0x179   :  { %v2397_v62 = vpop.eup %2396  ;;  %2416 = vrcp.f32 %v1144_v12  ;;  %v1147_v21 = vadd.f32 1.0, %v2395_v30 }
 0x17a   :  { %v2399_v49 = vpop.eup %2398  ;;  %2418 = vrcp.f32 %v1176_v44  ;;  %v1179_v7 = vadd.f32 1.0, %v2397_v62 }
 0x17b   :  { %v2401_v4 = vpop.eup %2400  ;;  %2420 = vrcp.f32 %v1147_v21  ;;  %v1145_v60 = vadd.f32 1.0, %v2399_v49 }
 0x17c   :  { %v2403_v5 = vpop.eup %2402  ;;  %2422 = vrcp.f32 %v1179_v7  ;;  %v1177_v27 = vadd.f32 1.0, %v2401_v4 }
 0x17d   :  { %v2405_v59 = vpop.eup %2404  ;;  %2424 = vrcp.f32 %v1145_v60  ;;  %v1300_v40 = vmul.f32 %v2403_v5, %v3068_v8 }
 0x17e   :  { %v2407_v22 = vpop.eup %2406  ;;  %v1271_v17 = vmul.f32 %v2405_v59, %v3094_v13  ;;  %2426 = vrcp.f32 %v1177_v27 }
 0x17f   :  { %v2409_v33 = vpop.eup %2408  ;;  %v1303_v45 = vmul.f32 %v2407_v22, %v3098_v61 }
 0x180   :  { %v2411_v34 = vpop.eup %2410  ;;  %v1873_v14 = vpack.c.bf16 %v1271_v17, %v1270_v26  ;;  %v1269_v11 = vmul.f32 %v2409_v33, %v3121_v9 }
 0x181   :  { %v2413_v53 = vpop.eup %2412  ;;  %v1953_v29 = vpack.c.bf16 %v1303_v45, %v1302_v50  ;;  %v1301_v35 = vmul.f32 %v2411_v34, %v3124_v52 }
 0x182   :  { %v2415_v38 = vpop.eup %2414  ;;  %1977 = vst [vmem:[%s3229_s3 + $0x68] sm:$0xff] %v1873_v14   ;;  %v1868_v2 = vpack.c.bf16 %v1269_v11, %v1268_v51  ;;  %v1274_v52 = vmul.f32 %v2413_v53, %v3127_v20 }
 0x183   :  { %v2417_v13 = vpop.eup %2416  ;;  %1993 = vst [vmem:[%s3229_s3 + $0xe8] sm:$0xff] %v1953_v29   ;;  %v1948_v55 = vpack.c.bf16 %v1301_v35, %v1300_v40  ;;  %v1306_v43 = vmul.f32 %v2415_v38, %v3131_v3 }
 0x184   :  { %v2419_v61 = vpop.eup %2418  ;;  %1976 = vst [vmem:[%s3229_s3 + $0x60] sm:$0xff] %v1868_v2   ;;  %v1272_v1 = vmul.f32 %v2417_v13, %v3134_v47 }
 0x185   :  { %v2421_v8 = vpop.eup %2420  ;;  %1992 = vst [vmem:[%s3229_s3 + $0xe0] sm:$0xff] %v1948_v55   ;;  %v1304_v10 = vmul.f32 %v2419_v61, %v3137_v41 }
 0x186   :  { %v2423_v9 = vpop.eup %2422  ;;  %v1275_v54 = vmul.f32 %v2421_v8, %v3140_v37 }
 0x187   :  { %v2425_v24 = vpop.eup %2424  ;;  %v1307_v39 = vmul.f32 %v2423_v9, %v3143_v48 }
 0x188   :  { %v2427_v19 = vpop.eup %2426  ;;  %v1883_v32 = vpack.c.bf16 %v1275_v54, %v1274_v52  ;;  %v1273_v58 = vmul.f32 %v2425_v24, %v3149_v28 }
 0x189   :  { %v1963_v57 = vpack.c.bf16 %v1307_v39, %v1306_v43  ;;  %v1305_v46 = vmul.f32 %v2427_v19, %v3159_v63 }
 0x18a   :  { %1979 = vst [vmem:[%s3229_s3 + $0x78] sm:$0xff] %v1883_v32   ;;  %v1878_v20 = vpack.c.bf16 %v1273_v58, %v1272_v1 }
 0x18b   :  { %1995 = vst [vmem:[%s3229_s3 + $0xf8] sm:$0xff] %v1963_v57   ;;  %v1958_v3 = vpack.c.bf16 %v1305_v46, %v1304_v10 }
 0x18c   :  { %1978 = vst [vmem:[%s3229_s3 + $0x70] sm:$0xff] %v1878_v20  }
 0x18d   :  { %1994 = vst [vmem:[%s3229_s3 + $0xf0] sm:$0xff] %v1958_v3  }

// kernel: _lambda_.5
= control target key start
LH: loop header
LB: loop body
LE: loop exit
PB: predicated region body
PF: predicated region fallthrough
CT: control target
= control target key end

     0   :  { %v2713_v1 = vmov 0   ;;  %v97_v49 = vlaneseq  ;;  %s4079_s1 = inlined_call_operand.vmem [shape: bf16[128,256], index: 1, kind: input, shape index: {}]   ;;  %s4080_s0 = inlined_call_operand.vmem [shape: bf16[512,128], index: 0, kind: input, shape index: {}]   ;;  %s4081_s2 = inlined_call_operand.vmem [shape: f32[1,256], index: 2, kind: input, shape index: {}]   ;;  %s4082_s3 = inlined_call_operand.vmem [shape: bf16[512,256], index: 3, kind: output, shape index: {}]  }
   0x1   :  { %v2145_v0 = vld [vmem:[%s4079_s1 + $0x4] ss:$8 sps:$4 sm:$0xff]   ;;  %411 = vmatprep.mubr.bf16.mxu0 %v2713_v1  ;;  %571 = vmatprep.mubr.bf16.mxu1 %v2713_v1  ;;  %v2147_v2 = vld [vmem:[%s4079_s1] ss:$8 sps:$4 sm:$0xff]   ;;  %v2148_v3 = vld [vmem:[%s4079_s1 + $0x14] ss:$8 sps:$4 sm:$0xff]  }
   0x2   :  { %379 = vmatprep.subr.bf16.mxu0 %v2145_v0  ;;  %2128 = vmatprep.subr.bf16.mxu1 %v2145_v0  ;;  %v2150_v4 = vld [vmem:[%s4079_s1 + $0x10] ss:$8 sps:$4 sm:$0xff]   ;;  %v2151_v5 = vld [vmem:[%s4079_s1 + $0x24] ss:$8 sps:$4 sm:$0xff]   ;;  %v2153_v6 = vld [vmem:[%s4079_s1 + $0x20] ss:$8 sps:$4 sm:$0xff]  }
   0x3   :  { %380 = vmatpush1.bf16.msra.mxu0 %v2147_v2  ;;  %2136 = vmatpush1.bf16.msra.mxu1 %v2147_v2  ;;  %v2154_v7 = vld [vmem:[%s4079_s1 + $0x34] ss:$8 sps:$4 sm:$0xff]   ;;  %v2156_v8 = vld [vmem:[%s4079_s1 + $0x30] ss:$8 sps:$4 sm:$0xff]   ;;  %v2157_v9 = vld [vmem:[%s4079_s1 + $0x44] ss:$8 sps:$4 sm:$0xff]  }
   0x4   :  { %381 = vmatprep.subr.bf16.mxu0 %v2148_v3  ;;  %2129 = vmatprep.subr.bf16.mxu1 %v2148_v3  ;;  %v2159_v10 = vld [vmem:[%s4079_s1 + $0x40] ss:$8 sps:$4 sm:$0xff]   ;;  %v2160_v11 = vld [vmem:[%s4079_s1 + $0x54] ss:$8 sps:$4 sm:$0xff]   ;;  %v2162_v12 = vld [vmem:[%s4079_s1 + $0x50] ss:$8 sps:$4 sm:$0xff]  }
   0x5   :  { %v2163_v13 = vld [vmem:[%s4079_s1 + $0x64] ss:$8 sps:$4 sm:$0xff]   ;;  %v2165_v14 = vld [vmem:[%s4079_s1 + $0x60] ss:$8 sps:$4 sm:$0xff]   ;;  %v2166_v15 = vld [vmem:[%s4079_s1 + $0x74] ss:$8 sps:$4 sm:$0xff]  }
   0x6   :  { %v2168_v16 = vld [vmem:[%s4079_s1 + $0x70] ss:$8 sps:$4 sm:$0xff]   ;;  %v2169_v17 = vld [vmem:[%s4080_s0] sm:$0xff]   ;;  %v2171_v19 = vld [vmem:[%s4080_s0 + $0x8] sm:$0xff]   ;;  %v98_v50 = vshrl.u32 %v97_v49, 7 }
   0x7   :  { %382 = vmatpush1.bf16.msra.mxu0 %v2150_v4  ;;  %2137 = vmatpush1.bf16.msra.mxu1 %v2150_v4  ;;  %v2170_v18 = vld [vmem:[%s4080_s0 + $0x80] sm:$0xff]   ;;  %v2172_v20 = vld [vmem:[%s4080_s0 + $0x88] sm:$0xff]   ;;  %v2173_v21 = vld [vmem:[%s4080_s0 + $0x10] sm:$0xff]  }
   0x8   :  { %383 = vmatprep.subr.bf16.mxu0 %v2151_v5  ;;  %2130 = vmatprep.subr.bf16.mxu1 %v2151_v5  ;;  %v2174_v22 = vld [vmem:[%s4080_s0 + $0x90] sm:$0xff]   ;;  %v2175_v23 = vld [vmem:[%s4080_s0 + $0x18] sm:$0xff]   ;;  %v2177_v25 = vld [vmem:[%s4080_s0 + $0x20] sm:$0xff]   ;;  %v99_v51 = vsub.s32 0, %v98_v50  ;;  %v103_v53 = vsub.s32 1, %v98_v50 }
   0x9   :  { %v2176_v24 = vld [vmem:[%s4080_s0 + $0x98] sm:$0xff]   ;;  %v2178_v26 = vld [vmem:[%s4080_s0 + $0xa0] sm:$0xff]   ;;  %v2179_v27 = vld [vmem:[%s4080_s0 + $0x28] sm:$0xff]  }
   0xa   :  { %v2180_v28 = vld [vmem:[%s4080_s0 + $0xa8] sm:$0xff]   ;;  %v2181_v29 = vld [vmem:[%s4080_s0 + $0x30] sm:$0xff]   ;;  %v2183_v31 = vld [vmem:[%s4080_s0 + $0x38] sm:$0xff]  }
   0xb   :  { %384 = vmatpush1.bf16.msra.mxu0 %v2153_v6  ;;  %2138 = vmatpush1.bf16.msra.mxu1 %v2153_v6  ;;  %v2182_v30 = vld [vmem:[%s4080_s0 + $0xb0] sm:$0xff]   ;;  %v2184_v32 = vld [vmem:[%s4080_s0 + $0xb8] sm:$0xff]   ;;  %v2185_v33 = vld [vmem:[%s4080_s0 + $0x40] sm:$0xff]  }
   0xc   :  { %385 = vmatprep.subr.bf16.mxu0 %v2154_v7  ;;  %2131 = vmatprep.subr.bf16.mxu1 %v2154_v7  ;;  %v2186_v34 = vld [vmem:[%s4080_s0 + $0xc0] sm:$0xff]   ;;  %v2187_v35 = vld [vmem:[%s4080_s0 + $0x48] sm:$0xff]   ;;  %v2189_v37 = vld [vmem:[%s4080_s0 + $0x50] sm:$0xff]  }
   0xd   :  { %v2188_v36 = vld [vmem:[%s4080_s0 + $0xc8] sm:$0xff]   ;;  %v2190_v38 = vld [vmem:[%s4080_s0 + $0xd0] sm:$0xff]   ;;  %v2191_v39 = vld [vmem:[%s4080_s0 + $0x58] sm:$0xff]  }
   0xe   :  { %v2192_v40 = vld [vmem:[%s4080_s0 + $0xd8] sm:$0xff]   ;;  %v2193_v41 = vld [vmem:[%s4080_s0 + $0x60] sm:$0xff]   ;;  %v2195_v43 = vld [vmem:[%s4080_s0 + $0x68] sm:$0xff]  }
   0xf   :  { %386 = vmatpush1.bf16.msra.mxu0 %v2156_v8  ;;  %2139 = vmatpush1.bf16.msra.mxu1 %v2156_v8  ;;  %v2194_v42 = vld [vmem:[%s4080_s0 + $0xe0] sm:$0xff]   ;;  %v2196_v44 = vld [vmem:[%s4080_s0 + $0xe8] sm:$0xff]   ;;  %v2197_v45 = vld [vmem:[%s4080_s0 + $0x70] sm:$0xff]  }
  0x10   :  { %387 = vmatprep.subr.bf16.mxu0 %v2157_v9  ;;  %2132 = vmatprep.subr.bf16.mxu1 %v2157_v9  ;;  %v2198_v46 = vld [vmem:[%s4080_s0 + $0xf0] sm:$0xff]   ;;  %v2199_v47 = vld [vmem:[%s4080_s0 + $0x78] sm:$0xff]   ;;  %v95_v52 = vld [vmem:[%s4081_s2] sm:$0x3] }
  0x11   :  { %v2200_v48 = vld [vmem:[%s4080_s0 + $0xf8] sm:$0xff]   ;;  %v2913_v54 = vrot.slane %v95_v52, %v99_v51  ;;  %v2915_v55 = vrot.slane %v95_v52, %v103_v53 }
  0x13   :  { %388 = vmatpush1.bf16.msra.mxu0 %v2159_v10  ;;  %2140 = vmatpush1.bf16.msra.mxu1 %v2159_v10 }
  0x14   :  { %389 = vmatprep.subr.bf16.mxu0 %v2160_v11  ;;  %2133 = vmatprep.subr.bf16.mxu1 %v2160_v11 }
  0x17   :  { %390 = vmatpush1.bf16.msra.mxu0 %v2162_v12  ;;  %2141 = vmatpush1.bf16.msra.mxu1 %v2162_v12 }
  0x18   :  { %391 = vmatprep.subr.bf16.mxu0 %v2163_v13  ;;  %2134 = vmatprep.subr.bf16.mxu1 %v2163_v13 }
  0x1b   :  { %392 = vmatpush1.bf16.msra.mxu0 %v2165_v14  ;;  %2142 = vmatpush1.bf16.msra.mxu1 %v2165_v14 }
  0x1c   :  { %393 = vmatprep.subr.bf16.mxu0 %v2166_v15  ;;  %2135 = vmatprep.subr.bf16.mxu1 %v2166_v15 }
  0x1f   :  { %394 = vmatpush1.bf16.msra.mxu0 %v2168_v16  ;;  %2143 = vmatpush1.bf16.msra.mxu1 %v2168_v16 }
  0x22   :  { %412 = vmatmul.mubr.bf16.vlgmr.msra.gmra.mrb[0].mxu0 %v2169_v17  ;;  %572 = vmatmul.mubr.bf16.vlgmr.msra.gmra.mrb[0].mxu1 %v2170_v18 }
  0x23   :  { %421 = vmatprep.mubr.bf16.mxu0 %v2713_v1  ;;  %581 = vmatprep.mubr.bf16.mxu1 %v2713_v1 }
  0x2a   :  { %422 = vmatmul.mubr.bf16.gmra.mrb[4].mxu0 %v2171_v19  ;;  %582 = vmatmul.mubr.bf16.gmra.mrb[4].mxu1 %v2172_v20 }
  0x2b   :  { %431 = vmatprep.mubr.bf16.mxu0 %v2713_v1  ;;  %591 = vmatprep.mubr.bf16.mxu1 %v2713_v1 }
  0x32   :  { %432 = vmatmul.mubr.bf16.gmra.mrb[8].mxu0 %v2173_v21  ;;  %592 = vmatmul.mubr.bf16.gmra.mrb[8].mxu1 %v2174_v22 }
  0x33   :  { %441 = vmatprep.mubr.bf16.mxu0 %v2713_v1  ;;  %601 = vmatprep.mubr.bf16.mxu1 %v2713_v1 }
  0x3a   :  { %442 = vmatmul.mubr.bf16.gmra.mrb[12].mxu0 %v2175_v23  ;;  %602 = vmatmul.mubr.bf16.gmra.mrb[12].mxu1 %v2176_v24 }
  0x3b   :  { %451 = vmatprep.mubr.bf16.mxu0 %v2713_v1  ;;  %611 = vmatprep.mubr.bf16.mxu1 %v2713_v1 }
  0x42   :  { %452 = vmatmul.mubr.bf16.gmra.mrb[16].mxu0 %v2177_v25  ;;  %612 = vmatmul.mubr.bf16.gmra.mrb[16].mxu1 %v2178_v26 }
  0x43   :  { %461 = vmatprep.mubr.bf16.mxu0 %v2713_v1  ;;  %621 = vmatprep.mubr.bf16.mxu1 %v2713_v1 }
  0x4a   :  { %462 = vmatmul.mubr.bf16.gmra.mrb[20].mxu0 %v2179_v27  ;;  %622 = vmatmul.mubr.bf16.gmra.mrb[20].mxu1 %v2180_v28 }
  0x4b   :  { %471 = vmatprep.mubr.bf16.mxu0 %v2713_v1  ;;  %631 = vmatprep.mubr.bf16.mxu1 %v2713_v1 }
  0x52   :  { %472 = vmatmul.mubr.bf16.gmra.mrb[24].mxu0 %v2181_v29  ;;  %632 = vmatmul.mubr.bf16.gmra.mrb[24].mxu1 %v2182_v30 }
  0x53   :  { %481 = vmatprep.mubr.bf16.mxu0 %v2713_v1  ;;  %641 = vmatprep.mubr.bf16.mxu1 %v2713_v1 }
  0x5a   :  { %482 = vmatmul.mubr.bf16.gmra.mrb[28].mxu0 %v2183_v31  ;;  %642 = vmatmul.mubr.bf16.gmra.mrb[28].mxu1 %v2184_v32 }
  0x5b   :  { %491 = vmatprep.mubr.bf16.mxu0 %v2713_v1  ;;  %651 = vmatprep.mubr.bf16.mxu1 %v2713_v1 }
  0x62   :  { %492 = vmatmul.mubr.bf16.gmra.mrb[32].mxu0 %v2185_v33  ;;  %652 = vmatmul.mubr.bf16.gmra.mrb[32].mxu1 %v2186_v34 }
  0x63   :  { %501 = vmatprep.mubr.bf16.mxu0 %v2713_v1  ;;  %661 = vmatprep.mubr.bf16.mxu1 %v2713_v1 }
  0x6a   :  { %502 = vmatmul.mubr.bf16.gmra.mrb[36].mxu0 %v2187_v35  ;;  %662 = vmatmul.mubr.bf16.gmra.mrb[36].mxu1 %v2188_v36 }
  0x6b   :  { %511 = vmatprep.mubr.bf16.mxu0 %v2713_v1  ;;  %671 = vmatprep.mubr.bf16.mxu1 %v2713_v1 }
  0x72   :  { %512 = vmatmul.mubr.bf16.gmra.mrb[40].mxu0 %v2189_v37  ;;  %672 = vmatmul.mubr.bf16.gmra.mrb[40].mxu1 %v2190_v38 }
  0x73   :  { %521 = vmatprep.mubr.bf16.mxu0 %v2713_v1  ;;  %681 = vmatprep.mubr.bf16.mxu1 %v2713_v1 }
  0x7a   :  { %522 = vmatmul.mubr.bf16.gmra.mrb[44].mxu0 %v2191_v39  ;;  %682 = vmatmul.mubr.bf16.gmra.mrb[44].mxu1 %v2192_v40 }
  0x7b   :  { %531 = vmatprep.mubr.bf16.mxu0 %v2713_v1  ;;  %691 = vmatprep.mubr.bf16.mxu1 %v2713_v1 }
  0x82   :  { %532 = vmatmul.mubr.bf16.gmra.mrb[48].mxu0 %v2193_v41  ;;  %692 = vmatmul.mubr.bf16.gmra.mrb[48].mxu1 %v2194_v42 }
  0x83   :  { %541 = vmatprep.mubr.bf16.mxu0 %v2713_v1  ;;  %701 = vmatprep.mubr.bf16.mxu1 %v2713_v1 }
  0x8a   :  { %542 = vmatmul.mubr.bf16.gmra.mrb[52].mxu0 %v2195_v43  ;;  %702 = vmatmul.mubr.bf16.gmra.mrb[52].mxu1 %v2196_v44 }
  0x8b   :  { %551 = vmatprep.mubr.bf16.mxu0 %v2713_v1  ;;  %711 = vmatprep.mubr.bf16.mxu1 %v2713_v1 }
  0x92   :  { %552 = vmatmul.mubr.bf16.gmra.mrb[56].mxu0 %v2197_v45  ;;  %712 = vmatmul.mubr.bf16.gmra.mrb[56].mxu1 %v2198_v46 }
  0x93   :  { %561 = vmatprep.mubr.bf16.mxu0 %v2713_v1  ;;  %721 = vmatprep.mubr.bf16.mxu1 %v2713_v1 }
  0x9a   :  { %562 = vmatmul.mubr.bf16.gmra.mrb[60].mxu0 %v2199_v47  ;;  %722 = vmatmul.mubr.bf16.gmra.mrb[60].mxu1 %v2200_v48 }
  0xf5   :  { %v413_v56 = vpop.f32.mrb[0].mxu0  ;;  %v573_v57 = vpop.f32.mrb[0].mxu1 }
  0xf6   :  { %v2918_v58 = vadd.f32 %v413_v56, %v2913_v54  ;;  %v2921_v59 = vadd.f32 %v573_v57, %v2913_v54  ;;  %v415_v60 = vpop.f32.mrb[1].mxu0  ;;  %v575_v61 = vpop.f32.mrb[1].mxu1 }
  0xf7   :  { %v2924_v62 = vadd.f32 %v415_v60, %v2915_v55  ;;  %v2927_v63 = vadd.f32 %v575_v61, %v2915_v55  ;;  %v417_v0 = vpop.f32.mrb[2].mxu0  ;;  %v577_v1 = vpop.f32.mrb[2].mxu1 }
  0xf8   :  { %v732_v2 = vsub.f32 0.0, %v2918_v58  ;;  %v796_v3 = vsub.f32 0.0, %v2921_v59  ;;  %v2932_v4 = vadd.f32 %v417_v0, %v2913_v54  ;;  %v2935_v5 = vadd.f32 %v577_v1, %v2913_v54  ;;  %v419_v6 = vpop.f32.mrb[3].mxu0  ;;  %v579_v7 = vpop.f32.mrb[3].mxu1 }
  0xf9   :  { %v733_v8 = vsub.f32 0.0, %v2924_v62  ;;  %v797_v9 = vsub.f32 0.0, %v2927_v63  ;;  %v2940_v10 = vadd.f32 %v419_v6, %v2915_v55  ;;  %v2943_v11 = vadd.f32 %v579_v7, %v2915_v55 }
  0xfa   :  { %v860_v12 = vmul.f32 1.442695, %v732_v2  ;;  %v988_v13 = vmul.f32 1.442695, %v796_v3  ;;  %v734_v14 = vsub.f32 0.0, %v2932_v4  ;;  %v798_v15 = vsub.f32 0.0, %v2935_v5 }
  0xfb   :  { %v862_v16 = vmul.f32 1.442695, %v733_v8  ;;  %v990_v17 = vmul.f32 1.442695, %v797_v9  ;;  %v735_v18 = vsub.f32 0.0, %v2940_v10  ;;  %v799_v19 = vsub.f32 0.0, %v2943_v11 }
  0xfc   :  { %2201 = vpow2.f32 %v860_v12  ;;  %v864_v20 = vmul.f32 1.442695, %v734_v14  ;;  %v992_v21 = vmul.f32 1.442695, %v798_v15 }
  0xfd   :  { %2203 = vpow2.f32 %v988_v13  ;;  %v423_v22 = vpop.f32.mrb[4].mxu0  ;;  %v583_v23 = vpop.f32.mrb[4].mxu1  ;;  %v866_v24 = vmul.f32 1.442695, %v735_v18  ;;  %v994_v29 = vmul.f32 1.442695, %v799_v19 }
  0xfe   :  { %2205 = vpow2.f32 %v862_v16  ;;  %v2950_v25 = vadd.f32 %v423_v22, %v2913_v54  ;;  %v2953_v26 = vadd.f32 %v583_v23, %v2913_v54  ;;  %v425_v27 = vpop.f32.mrb[5].mxu0  ;;  %v585_v28 = vpop.f32.mrb[5].mxu1 }
  0xff   :  { %2207 = vpow2.f32 %v990_v17  ;;  %v2956_v30 = vadd.f32 %v425_v27, %v2915_v55  ;;  %v2959_v31 = vadd.f32 %v585_v28, %v2915_v55  ;;  %v427_v32 = vpop.f32.mrb[6].mxu0  ;;  %v587_v33 = vpop.f32.mrb[6].mxu1 }
 0x100   :  { %2209 = vpow2.f32 %v864_v20  ;;  %v736_v34 = vsub.f32 0.0, %v2950_v25  ;;  %v800_v35 = vsub.f32 0.0, %v2953_v26  ;;  %v2964_v36 = vadd.f32 %v427_v32, %v2913_v54  ;;  %v429_v37 = vpop.f32.mrb[7].mxu0  ;;  %v589_v38 = vpop.f32.mrb[7].mxu1 }
 0x101   :  { %2211 = vpow2.f32 %v992_v21  ;;  %v737_v39 = vsub.f32 0.0, %v2956_v30  ;;  %v801_v40 = vsub.f32 0.0, %v2959_v31  ;;  %v2970_v50 = vadd.f32 %v587_v33, %v2913_v54 }
 0x102   :  { %2213 = vpow2.f32 %v866_v24  ;;  %v868_v41 = vmul.f32 1.442695, %v736_v34  ;;  %v996_v42 = vmul.f32 1.442695, %v800_v35  ;;  %v738_v43 = vsub.f32 0.0, %v2964_v36 }
 0x103   :  { %2215 = vpow2.f32 %v994_v29  ;;  %v870_v44 = vmul.f32 1.442695, %v737_v39  ;;  %v998_v45 = vmul.f32 1.442695, %v801_v40  ;;  %v2973_v57 = vadd.f32 %v429_v37, %v2915_v55 }
 0x104   :  { %2217 = vpow2.f32 %v868_v41  ;;  %v872_v46 = vmul.f32 1.442695, %v738_v43  ;;  %v2976_v2 = vadd.f32 %v589_v38, %v2915_v55  ;;  %v802_v14 = vsub.f32 0.0, %v2970_v50 }
 0x105   :  { %2219 = vpow2.f32 %v996_v42  ;;  %v433_v47 = vpop.f32.mrb[8].mxu0  ;;  %v593_v48 = vpop.f32.mrb[8].mxu1  ;;  %v739_v18 = vsub.f32 0.0, %v2973_v57 }
 0x106   :  { %v2202_v49 = vpop.eup %2201  ;;  %2221 = vpow2.f32 %v870_v44  ;;  %v435_v51 = vpop.f32.mrb[9].mxu0  ;;  %v2979_v8 = vadd.f32 %v433_v47, %v2913_v54  ;;  %v2983_v15 = vadd.f32 %v593_v48, %v2913_v54  ;;  %v803_v21 = vsub.f32 0.0, %v2976_v2 }
 0x107   :  { %v595_v52 = vpop.f32.mrb[9].mxu1  ;;  %v2204_v53 = vpop.eup %2203  ;;  %v1116_v56 = vadd.f32 1.0, %v2202_v49  ;;  %2223 = vpow2.f32 %v998_v45  ;;  %v2988_v22 = vadd.f32 %v435_v51, %v2915_v55  ;;  %v1000_v35 = vmul.f32 1.442695, %v802_v14 }
 0x108   :  { %v437_v60 = vpop.f32.mrb[10].mxu0  ;;  %v597_v61 = vpop.f32.mrb[10].mxu1  ;;  %v1180_v1 = vadd.f32 1.0, %v2204_v53  ;;  %2225 = vpow2.f32 %v872_v46  ;;  %v740_v27 = vsub.f32 0.0, %v2979_v8  ;;  %v2992_v28 = vadd.f32 %v595_v52, %v2915_v55 }
 0x109   :  { %v2206_v0 = vpop.eup %2205  ;;  %v439_v3 = vpop.f32.mrb[11].mxu0  ;;  %2227 = vrcp.f32 %v1116_v56  ;;  %v804_v37 = vsub.f32 0.0, %v2983_v15  ;;  %v874_v42 = vmul.f32 1.442695, %v739_v18  ;;  %v3000_v43 = vadd.f32 %v437_v60, %v2913_v54 }
 0x10a   :  { %v2208_v6 = vpop.eup %2207  ;;  %v1117_v7 = vadd.f32 1.0, %v2206_v0  ;;  %v599_v9 = vpop.f32.mrb[11].mxu1  ;;  %2229 = vrcp.f32 %v1180_v1  ;;  %v1002_v48 = vmul.f32 1.442695, %v803_v21  ;;  %v741_v49 = vsub.f32 0.0, %v2988_v22 }
 0x10b   :  { %v2210_v12 = vpop.eup %2209  ;;  %v1181_v13 = vadd.f32 1.0, %v2208_v6  ;;  %v876_v0 = vmul.f32 1.442695, %v740_v27  ;;  %v805_v60 = vsub.f32 0.0, %v2992_v28  ;;  %v3021_v21 = vadd.f32 %v599_v9, %v2915_v55 }
 0x10c   :  { %v2212_v16 = vpop.eup %2211  ;;  %2231 = vrcp.f32 %v1117_v7  ;;  %v1118_v17 = vadd.f32 1.0, %v2210_v12  ;;  %v1004_v7 = vmul.f32 1.442695, %v804_v37  ;;  %v3013_v12 = vadd.f32 %v597_v61, %v2913_v54 }
 0x10d   :  { %v2214_v19 = vpop.eup %2213  ;;  %2233 = vrcp.f32 %v1181_v13  ;;  %v1182_v20 = vadd.f32 1.0, %v2212_v16  ;;  %v443_v29 = vpop.f32.mrb[12].mxu0  ;;  %v742_v16 = vsub.f32 0.0, %v3000_v43 }
 0x10e   :  { %v2216_v23 = vpop.eup %2215  ;;  %2235 = vrcp.f32 %v1118_v17  ;;  %v1119_v24 = vadd.f32 1.0, %v2214_v19  ;;  %v603_v32 = vpop.f32.mrb[12].mxu1  ;;  %v3017_v17 = vadd.f32 %v439_v3, %v2915_v55  ;;  %v3025_v27 = vadd.f32 %v443_v29, %v2913_v54 }
 0x10f   :  { %v2218_v33 = vpop.eup %2217  ;;  %2237 = vrcp.f32 %v1182_v20  ;;  %v1183_v34 = vadd.f32 1.0, %v2216_v23  ;;  %v2995_v38 = vpop.f32.mrb[13].mxu0  ;;  %v878_v20 = vmul.f32 1.442695, %v741_v49  ;;  %v806_v37 = vsub.f32 0.0, %v3013_v12 }
 0x110   :  { %v2997_v39 = vpop.f32.mrb[13].mxu1  ;;  %v2220_v40 = vpop.eup %2219  ;;  %2239 = vrcp.f32 %v1119_v24  ;;  %v1120_v41 = vadd.f32 1.0, %v2218_v33  ;;  %v1006_v24 = vmul.f32 1.442695, %v805_v60  ;;  %v3034_v9 = vadd.f32 %v603_v32, %v2913_v54 }
 0x111   :  { %v3002_v44 = vpop.f32.mrb[14].mxu0  ;;  %v3004_v45 = vpop.f32.mrb[14].mxu1  ;;  %2241 = vrcp.f32 %v1183_v34  ;;  %v1184_v47 = vadd.f32 1.0, %v2220_v40 }
 0x112   :  { %v2222_v46 = vpop.eup %2221  ;;  %v3007_v51 = vpop.f32.mrb[15].mxu0  ;;  %2243 = vrcp.f32 %v1120_v41 }
 0x113   :  { %v3009_v52 = vpop.f32.mrb[15].mxu1  ;;  %v2224_v53 = vpop.eup %2223  ;;  %v1121_v56 = vadd.f32 1.0, %v2222_v46  ;;  %2245 = vrcp.f32 %v1184_v47  ;;  %v880_v46 = vmul.f32 1.442695, %v742_v16  ;;  %v743_v47 = vsub.f32 0.0, %v3017_v17 }
 0x114   :  { %v2226_v1 = vpop.eup %2225  ;;  %v1185_v6 = vadd.f32 1.0, %v2224_v53  ;;  %v808_v16 = vsub.f32 0.0, %v3034_v9 }
 0x115   :  { %v2228_v13 = vpop.eup %2227  ;;  %2247 = vrcp.f32 %v1121_v56  ;;  %v1122_v14 = vadd.f32 1.0, %v2226_v1  ;;  %v3027_v33 = vpop.f32.mrb[16].mxu0  ;;  %v807_v56 = vsub.f32 0.0, %v3021_v21 }
 0x116   :  { %v2230_v18 = vpop.eup %2229  ;;  %v1372_v19 = vmul.f32 %v2228_v13, %v2918_v58  ;;  %2249 = vrcp.f32 %v1185_v6  ;;  %v3029_v3 = vpop.f32.mrb[16].mxu1  ;;  %v744_v13 = vsub.f32 0.0, %v3025_v27 }
 0x117   :  { %v2232_v23 = vpop.eup %2231  ;;  %v1436_v61 = vmul.f32 %v2230_v18, %v2921_v59  ;;  %2251 = vrcp.f32 %v1122_v14  ;;  %v3036_v40 = vpop.f32.mrb[17].mxu0 }
 0x118   :  { %v2234_v34 = vpop.eup %2233  ;;  %v1373_v58 = vmul.f32 %v2232_v23, %v2924_v62  ;;  %2253 = vpow2.f32 %v1000_v35  ;;  %v3038_v59 = vpop.f32.mrb[17].mxu1 }
 0x119   :  { %v2236_v41 = vpop.eup %2235  ;;  %v1437_v29 = vmul.f32 %v2234_v34, %v2927_v63  ;;  %2255 = vpow2.f32 %v874_v42  ;;  %v3042_v49 = vpop.f32.mrb[18].mxu0  ;;  %v1010_v34 = vmul.f32 1.442695, %v807_v56 }
 0x11a   :  { %v3044_v62 = vpop.f32.mrb[18].mxu1  ;;  %v2238_v35 = vpop.eup %2237  ;;  %v2064_v53 = vpack.c.bf16 %v1373_v58, %v1372_v19  ;;  %v1374_v32 = vmul.f32 %v2236_v41, %v2932_v4  ;;  %2257 = vpow2.f32 %v1002_v48  ;;  %v1008_v48 = vmul.f32 1.442695, %v806_v37 }
 0x11b   :  { %v3048_v60 = vpop.f32.mrb[19].mxu0  ;;  %v3050_v1 = vpop.f32.mrb[19].mxu1  ;;  %v2096_v42 = vpack.c.bf16 %v1437_v29, %v1436_v61  ;;  %v1438_v6 = vmul.f32 %v2238_v35, %v2935_v5  ;;  %2259 = vpow2.f32 %v876_v0  ;;  %v882_v0 = vmul.f32 1.442695, %v743_v47 }
 0x11c   :  { %v2240_v63 = vpop.eup %2239  ;;  %1884 = vst [vmem:[%s4082_s3] sm:$0xff] %v2064_v53  ;;  %2261 = vpow2.f32 %v1004_v7  ;;  %v884_v37 = vmul.f32 1.442695, %v744_v13 }
 0x11d   :  { %v2242_v14 = vpop.eup %2241  ;;  %v1375_v4 = vmul.f32 %v2240_v63, %v2940_v10  ;;  %1916 = vst [vmem:[%s4082_s3 + $0x100] sm:$0xff] %v2096_v42  ;;  %2263 = vpow2.f32 %v878_v20  ;;  %v3065_v41 = vpop.f32.mrb[20].mxu0  ;;  %v3075_v20 = vadd.f32 %v2995_v38, %v2915_v55 }
 0x11e   :  { %v2244_v18 = vpop.eup %2243  ;;  %v1439_v5 = vmul.f32 %v2242_v14, %v2943_v11  ;;  %2265 = vpow2.f32 %v1006_v24  ;;  %v3067_v29 = vpop.f32.mrb[20].mxu1 }
 0x11f   :  { %v2246_v19 = vpop.eup %2245  ;;  %v2065_v23 = vpack.c.bf16 %v1375_v4, %v1374_v32  ;;  %v1376_v61 = vmul.f32 %v2244_v18, %v2950_v25  ;;  %2267 = vpow2.f32 %v880_v46  ;;  %v1012_v25 = vmul.f32 1.442695, %v808_v16  ;;  %v3079_v24 = vpop.f32.mrb[21].mxu1 }
 0x120   :  { %v2248_v10 = vpop.eup %2247  ;;  %v2097_v7 = vpack.c.bf16 %v1439_v5, %v1438_v6  ;;  %v1440_v58 = vmul.f32 %v2246_v19, %v2953_v26  ;;  %2269 = vpow2.f32 %v1008_v48  ;;  %v3077_v26 = vpop.f32.mrb[21].mxu0  ;;  %v745_v48 = vsub.f32 0.0, %v3075_v20 }
 0x121   :  { %v2250_v35 = vpop.eup %2249  ;;  %1885 = vst [vmem:[%s4082_s3 + $0x8] sm:$0xff] %v2065_v23  ;;  %v1377_v11 = vmul.f32 %v2248_v10, %v2956_v30  ;;  %2271 = vpow2.f32 %v882_v0  ;;  %v3089_v30 = vadd.f32 %v2997_v39, %v2915_v55  ;;  %v3091_v53 = vpop.f32.mrb[22].mxu0  ;;  %v3109_v16 = vadd.f32 %v3004_v45, %v2913_v54 }
 0x122   :  { %v3081_v46 = vpop.eup %2251  ;;  %1917 = vst [vmem:[%s4082_s3 + $0x108] sm:$0xff] %v2097_v7  ;;  %v1441_v47 = vmul.f32 %v2250_v35, %v2959_v31  ;;  %v3093_v38 = vpop.f32.mrb[22].mxu1  ;;  %2273 = vpow2.f32 %v1010_v34  ;;  %v3101_v31 = vadd.f32 %v3002_v44, %v2913_v54  ;;  %v3117_v23 = vadd.f32 %v3007_v51, %v2915_v55 }
 0x123   :  { %v2254_v32 = vpop.eup %2253  ;;  %v2066_v56 = vpack.c.bf16 %v1377_v11, %v1376_v61  ;;  %v3095_v63 = vpop.f32.mrb[23].mxu0  ;;  %2275 = vpow2.f32 %v884_v37  ;;  %v809_v5 = vsub.f32 0.0, %v3089_v30  ;;  %v3122_v10 = vadd.f32 %v3009_v52, %v2915_v55 }
 0x124   :  { %v3097_v42 = vpop.f32.mrb[23].mxu1  ;;  %v2256_v6 = vpop.eup %2255  ;;  %v2098_v13 = vpack.c.bf16 %v1441_v47, %v1440_v58  ;;  %v1186_v14 = vadd.f32 1.0, %v2254_v32  ;;  %2277 = vpow2.f32 %v1012_v25  ;;  %v746_v34 = vsub.f32 0.0, %v3101_v31 }
 0x125   :  { %v2258_v39 = vpop.eup %2257  ;;  %1886 = vst [vmem:[%s4082_s3 + $0x10] sm:$0xff] %v2066_v56  ;;  %v1123_v4 = vadd.f32 1.0, %v2256_v6  ;;  %v3124_v7 = vpop.f32.mrb[24].mxu0  ;;  %v886_v11 = vmul.f32 1.442695, %v745_v48  ;;  %v810_v51 = vsub.f32 0.0, %v3109_v16 }
 0x126   :  { %v2260_v18 = vpop.eup %2259  ;;  %1918 = vst [vmem:[%s4082_s3 + $0x110] sm:$0xff] %v2098_v13  ;;  %2279 = vrcp.f32 %v1186_v14  ;;  %v1187_v44 = vadd.f32 1.0, %v2258_v39  ;;  %v3126_v58 = vpop.f32.mrb[24].mxu1  ;;  %v1014_v56 = vmul.f32 1.442695, %v809_v5  ;;  %v747_v39 = vsub.f32 0.0, %v3117_v23 }
 0x127   :  { %v2262_v0 = vpop.eup %2261  ;;  %2281 = vrcp.f32 %v1123_v4  ;;  %v1124_v19 = vadd.f32 1.0, %v2260_v18  ;;  %v3129_v25 = vpop.f32.mrb[25].mxu0  ;;  %v3138_v4 = vadd.f32 %v3027_v33, %v2913_v54  ;;  %v3149_v33 = vadd.f32 %v3029_v3, %v2913_v54 }
 0x128   :  { %v2264_v61 = vpop.eup %2263  ;;  %2283 = vrcp.f32 %v1187_v44  ;;  %v1188_v45 = vadd.f32 1.0, %v2262_v0  ;;  %v3131_v6 = vpop.f32.mrb[25].mxu1  ;;  %v888_v0 = vmul.f32 1.442695, %v746_v34  ;;  %v3155_v34 = vadd.f32 %v3036_v40, %v2915_v55 }
 0x129   :  { %v2266_v37 = vpop.eup %2265  ;;  %2285 = vrcp.f32 %v1124_v19  ;;  %v1125_v35 = vadd.f32 1.0, %v2264_v61  ;;  %v3133_v52 = vpop.f32.mrb[26].mxu0  ;;  %v811_v19 = vsub.f32 0.0, %v3122_v10 }
 0x12a   :  { %v2268_v47 = vpop.eup %2267  ;;  %2287 = vrcp.f32 %v1188_v45  ;;  %v1189_v32 = vadd.f32 1.0, %v2266_v37  ;;  %4083 = vst [vmem:[#allocation2_spill] sm:$0xff] %v3133_v52  ;;  %v3140_v48 = vpop.f32.mrb[26].mxu1  ;;  %v3160_v52 = vadd.f32 %v3038_v59, %v2915_v55 }
 0x12b   :  { %v2270_v13 = vpop.eup %2269  ;;  %2289 = vrcp.f32 %v1125_v35  ;;  %v1126_v14 = vadd.f32 1.0, %v2268_v47  ;;  %4084 = vst [vmem:[#allocation3_spill] sm:$0xff] %v3140_v48  ;;  %v3142_v18 = vpop.f32.mrb[27].mxu0  ;;  %v1016_v35 = vmul.f32 1.442695, %v810_v51  ;;  %v748_v51 = vsub.f32 0.0, %v3138_v4 }
 0x12c   :  { %4085 = vst [vmem:[#allocation4_spill] sm:$0xff] %v3142_v18  ;;  %v2272_v44 = vpop.eup %2271  ;;  %2291 = vrcp.f32 %v1189_v32  ;;  %v1190_v5 = vadd.f32 1.0, %v2270_v13  ;;  %v3145_v61 = vpop.f32.mrb[27].mxu1  ;;  %v1378_v18 = vmul.f32 %v3081_v46, %v2964_v36  ;;  %v1018_v48 = vmul.f32 1.442695, %v811_v19 }
 0x12d   :  { %4086 = vst [vmem:[#allocation5_spill] sm:$0xff] %v3145_v61  ;;  %v2274_v45 = vpop.eup %2273  ;;  %2293 = vrcp.f32 %v1126_v14  ;;  %v1127_v37 = vadd.f32 1.0, %v2272_v44  ;;  %v890_v14 = vmul.f32 1.442695, %v747_v39  ;;  %v3162_v36 = vpop.f32.mrb[28].mxu0  ;;  %v812_v39 = vsub.f32 0.0, %v3149_v33 }
 0x12e   :  { %v2276_v47 = vpop.eup %2275  ;;  %2295 = vrcp.f32 %v1190_v5  ;;  %v1191_v32 = vadd.f32 1.0, %v2274_v45  ;;  %4087 = vst [vmem:[#allocation6_spill] sm:$0xff] %v3162_v36  ;;  %v3164_v46 = vpop.f32.mrb[28].mxu1  ;;  %v3170_v45 = vadd.f32 %v3042_v49, %v2913_v54 }
 0x12f   :  { %v2278_v13 = vpop.eup %2277  ;;  %2297 = vrcp.f32 %v1127_v37  ;;  %v1128_v61 = vadd.f32 1.0, %v2276_v47  ;;  %4088 = vst [vmem:[#allocation7_spill] sm:$0xff] %v3164_v46  ;;  %v3172_v37 = vpop.f32.mrb[29].mxu0 }
 0x130   :  { %v2280_v44 = vpop.eup %2279  ;;  %2299 = vrcp.f32 %v1191_v32  ;;  %v1192_v3 = vadd.f32 1.0, %v2278_v13  ;;  %4089 = vst [vmem:[#allocation8_spill] sm:$0xff] %v3172_v37  ;;  %v3174_v19 = vpop.f32.mrb[29].mxu1  ;;  %v749_v32 = vsub.f32 0.0, %v3155_v34  ;;  %v892_v37 = vmul.f32 1.442695, %v748_v51 }
 0x131   :  { %v2282_v40 = vpop.eup %2281  ;;  %v1442_v5 = vmul.f32 %v2280_v44, %v2970_v50  ;;  %2301 = vrcp.f32 %v1128_v61  ;;  %4090 = vst [vmem:[#allocation9_spill] sm:$0xff] %v3174_v19  ;;  %v3180_v50 = vadd.f32 %v3044_v62, %v2913_v54  ;;  %v3182_v61 = vpop.f32.mrb[30].mxu0  ;;  %v3189_v19 = vadd.f32 %v3048_v60, %v2915_v55 }
 0x132   :  { %v2284_v59 = vpop.eup %2283  ;;  %v1379_v47 = vmul.f32 %v2282_v40, %v2973_v57  ;;  %2303 = vrcp.f32 %v1192_v3  ;;  %4091 = vst [vmem:[#allocation10_spill] sm:$0xff] %v3182_v61  ;;  %v3184_v13 = vpop.f32.mrb[30].mxu1 }
 0x133   :  { %4092 = vst [vmem:[#allocation11_spill] sm:$0xff] %v3184_v13  ;;  %v2286_v49 = vpop.eup %2285  ;;  %v1443_v44 = vmul.f32 %v2284_v59, %v2976_v2  ;;  %2305 = vpow2.f32 %v886_v11  ;;  %v3191_v57 = vpop.f32.mrb[31].mxu0  ;;  %v813_v13 = vsub.f32 0.0, %v3160_v52  ;;  %v750_v11 = vsub.f32 0.0, %v3170_v45 }
 0x134   :  { %v3193_v3 = vpop.f32.mrb[31].mxu1  ;;  %v2288_v40 = vpop.eup %2287  ;;  %v2067_v62 = vpack.c.bf16 %v1379_v47, %v1378_v18  ;;  %v1380_v46 = vmul.f32 %v2286_v49, %v2979_v8  ;;  %2307 = vpow2.f32 %v1014_v56  ;;  %v1020_v18 = vmul.f32 1.442695, %v812_v39 }
 0x135   :  { %v2290_v61 = vpop.eup %2289  ;;  %v2099_v36 = vpack.c.bf16 %v1443_v44, %v1442_v5  ;;  %v1444_v2 = vmul.f32 %v2288_v40, %v2983_v15  ;;  %2309 = vpow2.f32 %v888_v0  ;;  %v814_v8 = vsub.f32 0.0, %v3180_v50  ;;  %v3212_v39 = vpop.f32.mrb[32].mxu1 }
 0x136   :  { %v2292_v60 = vpop.eup %2291  ;;  %1887 = vst [vmem:[%s4082_s3 + $0x18] sm:$0xff] %v2067_v62  ;;  %v1381_v51 = vmul.f32 %v2290_v61, %v2988_v22  ;;  %2311 = vpow2.f32 %v1016_v35  ;;  %v894_v0 = vmul.f32 1.442695, %v749_v32  ;;  %v751_v5 = vsub.f32 0.0, %v3189_v19  ;;  %v3210_v35 = vpop.f32.mrb[32].mxu0 }
 0x137   :  { %v2294_v56 = vpop.eup %2293  ;;  %1919 = vst [vmem:[%s4082_s3 + $0x118] sm:$0xff] %v2099_v36  ;;  %v1445_v15 = vmul.f32 %v2292_v60, %v2992_v28  ;;  %2313 = vpow2.f32 %v890_v14  ;;  %v1022_v22 = vmul.f32 1.442695, %v813_v13  ;;  %v896_v28 = vmul.f32 1.442695, %v750_v11  ;;  %v3215_v14 = vpop.f32.mrb[33].mxu0 }
 0x138   :  { %v2296_v59 = vpop.eup %2295  ;;  %v2068_v47 = vpack.c.bf16 %v1381_v51, %v1380_v46  ;;  %v1382_v49 = vmul.f32 %v2294_v56, %v3000_v43  ;;  %2315 = vpow2.f32 %v1018_v48  ;;  %v3217_v32 = vpop.f32.mrb[33].mxu1  ;;  %v1024_v48 = vmul.f32 1.442695, %v814_v8 }
 0x139   :  { %v2298_v61 = vpop.eup %2297  ;;  %v2100_v44 = vpack.c.bf16 %v1445_v15, %v1444_v2  ;;  %v1446_v36 = vmul.f32 %v2296_v59, %v3013_v12  ;;  %2317 = vpow2.f32 %v892_v37  ;;  %v3223_v46 = vpop.f32.mrb[34].mxu0  ;;  %v898_v62 = vmul.f32 1.442695, %v751_v5 }
 0x13a   :  { %v2300_v40 = vpop.eup %2299  ;;  %1888 = vst [vmem:[%s4082_s3 + $0x20] sm:$0xff] %v2068_v47  ;;  %v1383_v43 = vmul.f32 %v2298_v61, %v3017_v17  ;;  %2319 = vpow2.f32 %v1020_v18  ;;  %v3225_v13 = vpop.f32.mrb[34].mxu1  ;;  %v3241_v51 = vadd.f32 %v3050_v1, %v2915_v55  ;;  %v3245_v18 = vadd.f32 %v3065_v41, %v2913_v54 }
 0x13b   :  { %v3227_v12 = vpop.eup %2301  ;;  %1920 = vst [vmem:[%s4082_s3 + $0x120] sm:$0xff] %v2100_v44  ;;  %v1447_v37 = vmul.f32 %v2300_v40, %v3021_v21  ;;  %2321 = vpow2.f32 %v894_v0  ;;  %v3233_v2 = vpop.f32.mrb[35].mxu0  ;;  %v3249_v56 = vadd.f32 %v3067_v29, %v2913_v54  ;;  %v3256_v1 = vadd.f32 %v3077_v26, %v2915_v55 }
 0x13c   :  { %v3235_v11 = vpop.f32.mrb[35].mxu1  ;;  %v3237_v17 = vpop.eup %2303  ;;  %v2069_v60 = vpack.c.bf16 %v1383_v43, %v1382_v49  ;;  %2323 = vpow2.f32 %v1022_v22  ;;  %v3263_v29 = vadd.f32 %v3079_v24, %v2915_v55  ;;  %v815_v49 = vsub.f32 0.0, %v3241_v51 }
 0x13d   :  { %v2306_v8 = vpop.eup %2305  ;;  %v2101_v21 = vpack.c.bf16 %v1447_v37, %v1446_v36  ;;  %2325 = vpow2.f32 %v896_v28  ;;  %v752_v22 = vsub.f32 0.0, %v3245_v18  ;;  %v3267_v26 = vpop.f32.mrb[36].mxu0  ;;  %v816_v28 = vsub.f32 0.0, %v3249_v56 }
 0x13e   :  { %v2308_v15 = vpop.eup %2307  ;;  %1889 = vst [vmem:[%s4082_s3 + $0x28] sm:$0xff] %v2069_v60  ;;  %v1129_v0 = vadd.f32 1.0, %v2306_v8  ;;  %2327 = vpow2.f32 %v1024_v48  ;;  %4093 = vst [vmem:[#allocation12_spill] sm:$0xff] %v3267_v26  ;;  %v3269_v61 = vpop.f32.mrb[36].mxu1  ;;  %v3274_v24 = vadd.f32 %v3091_v53, %v2913_v54  ;;  %v3283_v60 = vadd.f32 %v3093_v38, %v2913_v54 }
 0x13f   :  { %v2310_v41 = vpop.eup %2309  ;;  %1921 = vst [vmem:[%s4082_s3 + $0x128] sm:$0xff] %v2101_v21  ;;  %v1193_v5 = vadd.f32 1.0, %v2308_v15  ;;  %2329 = vpow2.f32 %v898_v62  ;;  %4094 = vst [vmem:[#allocation13_spill] sm:$0xff] %v3269_v61  ;;  %v3276_v40 = vpop.f32.mrb[37].mxu0  ;;  %v753_v62 = vsub.f32 0.0, %v3256_v1 }
 0x140   :  { %v2312_v59 = vpop.eup %2311  ;;  %2331 = vrcp.f32 %v1129_v0  ;;  %v1130_v47 = vadd.f32 1.0, %v2310_v41  ;;  %4095 = vst [vmem:[#allocation14_spill] sm:$0xff] %v3276_v40  ;;  %v3278_v43 = vpop.f32.mrb[37].mxu1  ;;  %v817_v0 = vsub.f32 0.0, %v3263_v29  ;;  %v818_v26 = vsub.f32 0.0, %v3283_v60 }
 0x141   :  { %v2314_v44 = vpop.eup %2313  ;;  %2333 = vrcp.f32 %v1193_v5  ;;  %v1194_v36 = vadd.f32 1.0, %v2312_v59  ;;  %4096 = vst [vmem:[#allocation15_spill] sm:$0xff] %v3278_v43  ;;  %v3285_v8 = vpop.f32.mrb[38].mxu0 }
 0x142   :  { %v2316_v48 = vpop.eup %2315  ;;  %2335 = vrcp.f32 %v1130_v47  ;;  %v1131_v37 = vadd.f32 1.0, %v2314_v44  ;;  %4097 = vst [vmem:[#allocation16_spill] sm:$0xff] %v3285_v8  ;;  %v3287_v21 = vpop.f32.mrb[38].mxu1  ;;  %v1026_v47 = vmul.f32 1.442695, %v815_v49  ;;  %v3298_v49 = vadd.f32 %v3095_v63, %v2915_v55 }
 0x143   :  { %4098 = vst [vmem:[#allocation17_spill] sm:$0xff] %v3287_v21  ;;  %v2318_v15 = vpop.eup %2317  ;;  %2337 = vrcp.f32 %v1194_v36  ;;  %v1195_v53 = vadd.f32 1.0, %v2316_v48  ;;  %v3290_v41 = vpop.f32.mrb[39].mxu0  ;;  %v900_v44 = vmul.f32 1.442695, %v752_v22  ;;  %v754_v21 = vsub.f32 0.0, %v3274_v24 }
 0x144   :  { %4099 = vst [vmem:[#allocation18_spill] sm:$0xff] %v3290_v41  ;;  %v2320_v5 = vpop.eup %2319  ;;  %2339 = vrcp.f32 %v1131_v37  ;;  %v1132_v59 = vadd.f32 1.0, %v2318_v15  ;;  %v3292_v43 = vpop.f32.mrb[39].mxu1  ;;  %v1028_v8 = vmul.f32 1.442695, %v816_v28  ;;  %v1384_v28 = vmul.f32 %v3227_v12, %v3025_v27 }
 0x145   :  { %v2322_v38 = vpop.eup %2321  ;;  %2341 = vrcp.f32 %v1195_v53  ;;  %v1196_v40 = vadd.f32 1.0, %v2320_v5  ;;  %v902_v48 = vmul.f32 1.442695, %v753_v62  ;;  %v1030_v15 = vmul.f32 1.442695, %v817_v0  ;;  %v3306_v62 = vpop.f32.mrb[40].mxu0 }
 0x146   :  { %v2324_v61 = vpop.eup %2323  ;;  %2343 = vrcp.f32 %v1132_v59  ;;  %v1133_v36 = vadd.f32 1.0, %v2322_v38  ;;  %v3304_v5 = vadd.f32 %v3097_v42, %v2915_v55  ;;  %4100 = vst [vmem:[#allocation19_spill] sm:$0xff] %v3306_v62  ;;  %v3308_v59 = vpop.f32.mrb[40].mxu1  ;;  %v904_v0 = vmul.f32 1.442695, %v754_v21 }
 0x147   :  { %v2326_v41 = vpop.eup %2325  ;;  %2345 = vrcp.f32 %v1196_v40  ;;  %v1197_v37 = vadd.f32 1.0, %v2324_v61  ;;  %4101 = vst [vmem:[#allocation20_spill] sm:$0xff] %v3308_v59  ;;  %v1448_v40 = vmul.f32 %v3237_v17, %v3034_v9  ;;  %v3312_v38 = vpop.f32.mrb[41].mxu0  ;;  %v3316_v42 = vadd.f32 %v3124_v7, %v2913_v54 }
 0x148   :  { %v2328_v22 = vpop.eup %2327  ;;  %2347 = vrcp.f32 %v1133_v36  ;;  %v1134_v53 = vadd.f32 1.0, %v2326_v41  ;;  %v1032_v41 = vmul.f32 1.442695, %v818_v26  ;;  %v3318_v36 = vpop.f32.mrb[41].mxu1  ;;  %v755_v17 = vsub.f32 0.0, %v3298_v49 }
 0x149   :  { %v2330_v61 = vpop.eup %2329  ;;  %2349 = vrcp.f32 %v1197_v37  ;;  %v1198_v63 = vadd.f32 1.0, %v2328_v22  ;;  %v3320_v59 = vpop.f32.mrb[42].mxu0  ;;  %v3326_v21 = vadd.f32 %v3126_v58, %v2913_v54 }
 0x14a   :  { %v2332_v27 = vpop.eup %2331  ;;  %2351 = vrcp.f32 %v1134_v53  ;;  %v1135_v12 = vadd.f32 1.0, %v2330_v61  ;;  %v3328_v37 = vpop.f32.mrb[42].mxu1  ;;  %v819_v53 = vsub.f32 0.0, %v3304_v5 }
 0x14b   :  { %v2334_v62 = vpop.eup %2333  ;;  %v1385_v9 = vmul.f32 %v2332_v27, %v3075_v20  ;;  %2353 = vrcp.f32 %v1198_v63  ;;  %4102 = vst [vmem:[#allocation21_spill] sm:$0xff] %v3328_v37  ;;  %v3330_v26 = vpop.f32.mrb[43].mxu0  ;;  %v3336_v20 = vadd.f32 %v3129_v25, %v2915_v55 }
 0x14c   :  { %4103 = vst [vmem:[#allocation22_spill] sm:$0xff] %v3330_v26  ;;  %v2336_v7 = vpop.eup %2335  ;;  %v1449_v22 = vmul.f32 %v2334_v62, %v3089_v30  ;;  %2355 = vrcp.f32 %v1135_v12  ;;  %v3338_v61 = vpop.f32.mrb[43].mxu1  ;;  %v3343_v26 = vadd.f32 %v3131_v6, %v2915_v55  ;;  %v756_v12 = vsub.f32 0.0, %v3316_v42 }
 0x14d   :  { %v2338_v63 = vpop.eup %2337  ;;  %v2070_v27 = vpack.c.bf16 %v1385_v9, %v1384_v28  ;;  %v1386_v58 = vmul.f32 %v2336_v7, %v3101_v31  ;;  %2357 = vpow2.f32 %v1026_v47  ;;  %v906_v31 = vmul.f32 1.442695, %v755_v17  ;;  %v3357_v9 = vpop.f32.mrb[44].mxu0 }
 0x14e   :  { %v2340_v37 = vpop.eup %2339  ;;  %v2102_v30 = vpack.c.bf16 %v1449_v22, %v1448_v40  ;;  %v1450_v62 = vmul.f32 %v2338_v63, %v3109_v16  ;;  %2359 = vpow2.f32 %v900_v44  ;;  %v820_v47 = vsub.f32 0.0, %v3326_v21  ;;  %4104 = vst [vmem:[#allocation23_spill] sm:$0xff] %v3357_v9  ;;  %v3359_v7 = vpop.f32.mrb[44].mxu1 }
 0x14f   :  { %v2342_v25 = vpop.eup %2341  ;;  %1890 = vst [vmem:[%s4082_s3 + $0x30] sm:$0xff] %v2070_v27  ;;  %v1387_v28 = vmul.f32 %v2340_v37, %v3117_v23  ;;  %2361 = vpow2.f32 %v1028_v8  ;;  %v1034_v44 = vmul.f32 1.442695, %v819_v53  ;;  %v757_v40 = vsub.f32 0.0, %v3336_v20  ;;  %4105 = vst [vmem:[#allocation24_spill] sm:$0xff] %v3359_v7  ;;  %v3363_v22 = vpop.f32.mrb[45].mxu0 }
 0x150   :  { %v2344_v6 = vpop.eup %2343  ;;  %1922 = vst [vmem:[%s4082_s3 + $0x130] sm:$0xff] %v2102_v30  ;;  %v1451_v16 = vmul.f32 %v2342_v25, %v3122_v10  ;;  %2363 = vpow2.f32 %v902_v48  ;;  %v821_v37 = vsub.f32 0.0, %v3343_v26  ;;  %4106 = vst [vmem:[#allocation25_spill] sm:$0xff] %v3363_v22  ;;  %v3365_v63 = vpop.f32.mrb[45].mxu1  ;;  %v908_v27 = vmul.f32 1.442695, %v756_v12 }
 0x151   :  { %v2346_v23 = vpop.eup %2345  ;;  %v2071_v8 = vpack.c.bf16 %v1387_v28, %v1386_v58  ;;  %v1388_v17 = vmul.f32 %v2344_v6, %v3138_v4  ;;  %2365 = vpow2.f32 %v1030_v15  ;;  %4107 = vst [vmem:[#allocation26_spill] sm:$0xff] %v3365_v63  ;;  %v3368_v30 = vpop.f32.mrb[46].mxu0  ;;  %v1036_v15 = vmul.f32 1.442695, %v820_v47  ;;  %v4112_v6 = vld [vmem:[#allocation2_spill] sm:$0xff] }
 0x152   :  { %v2348_v10 = vpop.eup %2347  ;;  %v2103_v48 = vpack.c.bf16 %v1451_v16, %v1450_v62  ;;  %v1452_v53 = vmul.f32 %v2346_v23, %v3149_v33  ;;  %2367 = vpow2.f32 %v904_v0  ;;  %4108 = vst [vmem:[#allocation27_spill] sm:$0xff] %v3368_v30  ;;  %v3370_v25 = vpop.f32.mrb[46].mxu1  ;;  %v910_v12 = vmul.f32 1.442695, %v757_v40 }
 0x153   :  { %4109 = vst [vmem:[#allocation28_spill] sm:$0xff] %v3370_v25  ;;  %v2350_v58 = vpop.eup %2349  ;;  %1891 = vst [vmem:[%s4082_s3 + $0x38] sm:$0xff] %v2071_v8  ;;  %v1389_v4 = vmul.f32 %v2348_v10, %v3155_v34  ;;  %2369 = vpow2.f32 %v1032_v41  ;;  %v3376_v28 = vpop.f32.mrb[47].mxu0  ;;  %v3386_v16 = vadd.f32 %v4112_v6, %v2913_v54  ;;  %v1038_v23 = vmul.f32 1.442695, %v821_v37  ;;  %v4114_v37 = vld [vmem:[#allocation4_spill] sm:$0xff] }
 0x154   :  { %4110 = vst [vmem:[#allocation29_spill] sm:$0xff] %v3376_v28  ;;  %v3378_v62 = vpop.f32.mrb[47].mxu1  ;;  %v2352_v33 = vpop.eup %2351  ;;  %1923 = vst [vmem:[%s4082_s3 + $0x138] sm:$0xff] %v2103_v48  ;;  %v1453_v0 = vmul.f32 %v2350_v58, %v3160_v52  ;;  %2371 = vpow2.f32 %v906_v31  ;;  %v4113_v31 = vld [vmem:[#allocation3_spill] sm:$0xff]  ;;  %v3405_v48 = vadd.f32 %v4114_v37, %v2915_v55  ;;  %v4127_v28 = vld [vmem:[#allocation9_spill] sm:$0xff] }
 0x155   :  { %4111 = vst [vmem:[#allocation30_spill] sm:$0xff] %v3378_v62  ;;  %v3388_v34 = vpop.eup %2353  ;;  %v2072_v41 = vpack.c.bf16 %v1389_v4, %v1388_v17  ;;  %v1390_v47 = vmul.f32 %v2352_v33, %v3170_v45  ;;  %2373 = vpow2.f32 %v1034_v44  ;;  %v3397_v40 = vadd.f32 %v4113_v31, %v2913_v54 }
 0x156   :  { %v2356_v8 = vpop.eup %2355  ;;  %v2104_v10 = vpack.c.bf16 %v1453_v0, %v1452_v53  ;;  %2375 = vpow2.f32 %v908_v27  ;;  %v758_v44 = vsub.f32 0.0, %v3386_v16  ;;  %v3407_v53 = vpop.f32.mrb[48].mxu0 }
 0x157   :  { %v2358_v62 = vpop.eup %2357  ;;  %1892 = vst [vmem:[%s4082_s3 + $0x40] sm:$0xff] %v2072_v41  ;;  %v1391_v52 = vmul.f32 %v2356_v8, %v3189_v19  ;;  %2377 = vpow2.f32 %v1036_v15  ;;  %4115 = vst [vmem:[#allocation2_spill] sm:$0xff] %v3407_v53  ;;  %v3409_v19 = vpop.f32.mrb[48].mxu1  ;;  %v4117_v15 = vld [vmem:[#allocation5_spill] sm:$0xff]  ;;  %v4120_v41 = vld [vmem:[#allocation6_spill] sm:$0xff]  ;;  %v822_v31 = vsub.f32 0.0, %v3397_v40 }
 0x158   :  { %v2360_v17 = vpop.eup %2359  ;;  %1924 = vst [vmem:[%s4082_s3 + $0x140] sm:$0xff] %v2104_v10  ;;  %v1199_v45 = vadd.f32 1.0, %v2358_v62  ;;  %2379 = vpow2.f32 %v910_v12  ;;  %4116 = vst [vmem:[#allocation3_spill] sm:$0xff] %v3409_v19  ;;  %v3413_v33 = vadd.f32 %v4117_v15, %v2915_v55  ;;  %v3415_v62 = vpop.f32.mrb[49].mxu0  ;;  %v3421_v8 = vadd.f32 %v4120_v41, %v2913_v54 }
 0x159   :  { %v2362_v27 = vpop.eup %2361  ;;  %v2073_v58 = vpack.c.bf16 %v1391_v52, %v1390_v47  ;;  %v1136_v4 = vadd.f32 1.0, %v2360_v17  ;;  %2381 = vpow2.f32 %v1038_v23  ;;  %4118 = vst [vmem:[#allocation4_spill] sm:$0xff] %v3415_v62  ;;  %v3417_v0 = vpop.f32.mrb[49].mxu1  ;;  %v4123_v17 = vld [vmem:[#allocation7_spill] sm:$0xff] }
 0x15a   :  { %4119 = vst [vmem:[#allocation5_spill] sm:$0xff] %v3417_v0  ;;  %v2364_v12 = vpop.eup %2363  ;;  %2383 = vrcp.f32 %v1199_v45  ;;  %v1200_v6 = vadd.f32 1.0, %v2362_v27  ;;  %v3423_v10 = vpop.f32.mrb[50].mxu0  ;;  %v3433_v45 = vadd.f32 %v4123_v17, %v2913_v54  ;;  %v760_v17 = vsub.f32 0.0, %v3421_v8 }
 0x15b   :  { %4121 = vst [vmem:[#allocation6_spill] sm:$0xff] %v3423_v10  ;;  %v3425_v47 = vpop.f32.mrb[50].mxu1  ;;  %v2366_v23 = vpop.eup %2365  ;;  %1893 = vst [vmem:[%s4082_s3 + $0x48] sm:$0xff] %v2073_v58  ;;  %2385 = vrcp.f32 %v1136_v4  ;;  %v1137_v52 = vadd.f32 1.0, %v2364_v12  ;;  %v912_v4 = vmul.f32 1.442695, %v758_v44 }
 0x15c   :  { %4122 = vst [vmem:[#allocation31_spill] sm:$0xff] %v3425_v47  ;;  %v3435_v37 = vpop.f32.mrb[51].mxu0  ;;  %v3437_v27 = vpop.f32.mrb[51].mxu1  ;;  %2387 = vrcp.f32 %v1200_v6  ;;  %v1201_v41 = vadd.f32 1.0, %v2366_v23  ;;  %v759_v47 = vsub.f32 0.0, %v3405_v48  ;;  %v823_v12 = vsub.f32 0.0, %v3413_v33 }
 0x15d   :  { %4124 = vst [vmem:[#allocation7_spill] sm:$0xff] %v3435_v37  ;;  %4125 = vst [vmem:[#allocation32_spill] sm:$0xff] %v3437_v27  ;;  %v2368_v15 = vpop.eup %2367  ;;  %2389 = vrcp.f32 %v1137_v52  ;;  %v4126_v37 = vld [vmem:[#allocation8_spill] sm:$0xff]  ;;  %v1040_v23 = vmul.f32 1.442695, %v822_v31  ;;  %v824_v53 = vsub.f32 0.0, %v3433_v45 }
 0x15e   :  { %v2370_v10 = vpop.eup %2369  ;;  %v1138_v58 = vadd.f32 1.0, %v2368_v15  ;;  %2391 = vrcp.f32 %v1201_v41  ;;  %v3444_v19 = vadd.f32 %v4126_v37, %v2915_v55  ;;  %v914_v15 = vmul.f32 1.442695, %v759_v47  ;;  %v3453_v25 = vpop.f32.mrb[52].mxu1 }
 0x15f   :  { %v2372_v0 = vpop.eup %2371  ;;  %v1202_v62 = vadd.f32 1.0, %v2370_v10  ;;  %v3449_v41 = vadd.f32 %v4127_v28, %v2915_v55  ;;  %v3451_v10 = vpop.f32.mrb[52].mxu0  ;;  %4129 = vst [vmem:[#allocation9_spill] sm:$0xff] %v3453_v25 }
 0x160   :  { %v2374_v27 = vpop.eup %2373  ;;  %2393 = vrcp.f32 %v1138_v58  ;;  %v1139_v6 = vadd.f32 1.0, %v2372_v0  ;;  %4128 = vst [vmem:[#allocation8_spill] sm:$0xff] %v3451_v10  ;;  %v1042_v58 = vmul.f32 1.442695, %v823_v12  ;;  %v4130_v0 = vld [vmem:[#allocation10_spill] sm:$0xff]  ;;  %v3459_v63 = vpop.f32.mrb[53].mxu0  ;;  %v1454_v12 = vmul.f32 %v3388_v34, %v3180_v50 }
 0x161   :  { %v2376_v52 = vpop.eup %2375  ;;  %2395 = vrcp.f32 %v1202_v62  ;;  %v1203_v44 = vadd.f32 1.0, %v2374_v27  ;;  %v3457_v31 = vadd.f32 %v4130_v0, %v2913_v54  ;;  %4131 = vst [vmem:[#allocation10_spill] sm:$0xff] %v3459_v63  ;;  %v3461_v62 = vpop.f32.mrb[53].mxu1  ;;  %v916_v27 = vmul.f32 1.442695, %v760_v17 }
 0x162   :  { %v2378_v37 = vpop.eup %2377  ;;  %2397 = vrcp.f32 %v1139_v6  ;;  %v1140_v30 = vadd.f32 1.0, %v2376_v52  ;;  %4132 = vst [vmem:[#allocation33_spill] sm:$0xff] %v3461_v62  ;;  %v761_v10 = vsub.f32 0.0, %v3444_v19  ;;  %v3464_v22 = vpop.f32.mrb[54].mxu0  ;;  %v1044_v52 = vmul.f32 1.442695, %v824_v53 }
 0x163   :  { %v2380_v47 = vpop.eup %2379  ;;  %2399 = vrcp.f32 %v1203_v44  ;;  %v1204_v28 = vadd.f32 1.0, %v2378_v37  ;;  %4133 = vst [vmem:[#allocation34_spill] sm:$0xff] %v3464_v22  ;;  %v3468_v0 = vpop.f32.mrb[54].mxu1  ;;  %v825_v17 = vsub.f32 0.0, %v3449_v41  ;;  %v4134_v37 = vld [vmem:[#allocation11_spill] sm:$0xff]  ;;  %v3483_v34 = vadd.f32 %v3191_v57, %v2915_v55 }
 0x164   :  { %v2382_v25 = vpop.eup %2381  ;;  %2401 = vrcp.f32 %v1140_v30  ;;  %v1141_v6 = vadd.f32 1.0, %v2380_v47  ;;  %v3470_v63 = vpop.f32.mrb[55].mxu0  ;;  %v3475_v7 = vadd.f32 %v4134_v37, %v2913_v54  ;;  %v762_v30 = vsub.f32 0.0, %v3457_v31 }
 0x165   :  { %v2384_v62 = vpop.eup %2383  ;;  %2403 = vrcp.f32 %v1204_v28  ;;  %v1205_v44 = vadd.f32 1.0, %v2382_v25  ;;  %v3477_v22 = vpop.f32.mrb[55].mxu1  ;;  %v918_v47 = vmul.f32 1.442695, %v761_v10  ;;  %v3488_v28 = vadd.f32 %v3193_v3, %v2915_v55 }
 0x166   :  { %4135 = vst [vmem:[#allocation11_spill] sm:$0xff] %v3477_v22  ;;  %v2386_v9 = vpop.eup %2385  ;;  %v1455_v50 = vmul.f32 %v2384_v62, %v3241_v51  ;;  %2405 = vrcp.f32 %v1141_v6  ;;  %v3493_v62 = vadd.f32 %v3210_v35, %v2913_v54  ;;  %v3497_v10 = vpop.f32.mrb[56].mxu0  ;;  %v920_v35 = vmul.f32 1.442695, %v762_v30 }
 0x167   :  { %v2388_v53 = vpop.eup %2387  ;;  %v1392_v25 = vmul.f32 %v2386_v9, %v3245_v18  ;;  %2407 = vrcp.f32 %v1205_v44  ;;  %v1046_v18 = vmul.f32 1.442695, %v825_v17  ;;  %v826_v9 = vsub.f32 0.0, %v3475_v7  ;;  %v3499_v3 = vpop.f32.mrb[56].mxu1 }
 0x168   :  { %v2390_v37 = vpop.eup %2389  ;;  %v2105_v22 = vpack.c.bf16 %v1455_v50, %v1454_v12  ;;  %v1456_v51 = vmul.f32 %v2388_v53, %v3249_v56  ;;  %2409 = vpow2.f32 %v912_v4  ;;  %v763_v4 = vsub.f32 0.0, %v3483_v34 }
 0x169   :  { %v2392_v57 = vpop.eup %2391  ;;  %v1393_v6 = vmul.f32 %v2390_v37, %v3256_v1  ;;  %2411 = vpow2.f32 %v1040_v23  ;;  %v3506_v1 = vpop.f32.mrb[57].mxu0  ;;  %v827_v53 = vsub.f32 0.0, %v3488_v28 }
 0x16a   :  { %v2394_v44 = vpop.eup %2393  ;;  %1925 = vst [vmem:[%s4082_s3 + $0x148] sm:$0xff] %v2105_v22  ;;  %v1457_v56 = vmul.f32 %v2392_v57, %v3263_v29  ;;  %2413 = vpow2.f32 %v914_v15  ;;  %4136 = vst [vmem:[#allocation35_spill] sm:$0xff] %v3506_v1  ;;  %v3508_v23 = vpop.f32.mrb[57].mxu1  ;;  %v764_v57 = vsub.f32 0.0, %v3493_v62 }
 0x16b   :  { %4137 = vst [vmem:[#allocation36_spill] sm:$0xff] %v3508_v23  ;;  %v2396_v12 = vpop.eup %2395  ;;  %v2074_v17 = vpack.c.bf16 %v1393_v6, %v1392_v25  ;;  %v1394_v50 = vmul.f32 %v2394_v44, %v3274_v24  ;;  %2415 = vpow2.f32 %v1042_v58  ;;  %v3512_v37 = vpop.f32.mrb[58].mxu0  ;;  %v1048_v58 = vmul.f32 1.442695, %v826_v9 }
 0x16c   :  { %v3514_v22 = vpop.f32.mrb[58].mxu1  ;;  %v2398_v29 = vpop.eup %2397  ;;  %v2106_v15 = vpack.c.bf16 %v1457_v56, %v1456_v51  ;;  %v1458_v30 = vmul.f32 %v2396_v12, %v3283_v60  ;;  %2417 = vpow2.f32 %v916_v27  ;;  %v922_v27 = vmul.f32 1.442695, %v763_v4 }
 0x16d   :  { %v3518_v1 = vpop.f32.mrb[59].mxu0  ;;  %v3520_v23 = vpop.f32.mrb[59].mxu1  ;;  %1894 = vst [vmem:[%s4082_s3 + $0x50] sm:$0xff] %v2074_v17  ;;  %v1395_v24 = vmul.f32 %v2398_v29, %v3298_v49  ;;  %2419 = vpow2.f32 %v1044_v52  ;;  %v1050_v12 = vmul.f32 1.442695, %v827_v53 }
 0x16e   :  { %4138 = vst [vmem:[#allocation37_spill] sm:$0xff] %v3520_v23  ;;  %v2400_v25 = vpop.eup %2399  ;;  %1926 = vst [vmem:[%s4082_s3 + $0x150] sm:$0xff] %v2106_v15  ;;  %2421 = vpow2.f32 %v918_v47  ;;  %v924_v52 = vmul.f32 1.442695, %v764_v57  ;;  %v3536_v47 = vpop.f32.mrb[60].mxu0  ;;  %v3554_v15 = vadd.f32 %v3215_v14, %v2915_v55 }
 0x16f   :  { %v2402_v6 = vpop.eup %2401  ;;  %v1459_v60 = vmul.f32 %v2400_v25, %v3304_v5  ;;  %v2075_v44 = vpack.c.bf16 %v1395_v24, %v1394_v50  ;;  %2423 = vpow2.f32 %v1046_v18  ;;  %v3538_v4 = vpop.f32.mrb[60].mxu1  ;;  %v3546_v18 = vadd.f32 %v3212_v39, %v2913_v54 }
 0x170   :  { %v2404_v51 = vpop.eup %2403  ;;  %v1396_v56 = vmul.f32 %v2402_v6, %v3316_v42  ;;  %2425 = vpow2.f32 %v920_v35  ;;  %v3548_v35 = vpop.f32.mrb[61].mxu0  ;;  %v3562_v25 = vadd.f32 %v3217_v32, %v2915_v55 }
 0x171   :  { %v2406_v17 = vpop.eup %2405  ;;  %v2107_v23 = vpack.c.bf16 %v1459_v60, %v1458_v30  ;;  %v1460_v49 = vmul.f32 %v2404_v51, %v3326_v21  ;;  %1895 = vst [vmem:[%s4082_s3 + $0x58] sm:$0xff] %v2075_v44  ;;  %2427 = vpow2.f32 %v1048_v58  ;;  %4139 = vst [vmem:[#allocation38_spill] sm:$0xff] %v3548_v35  ;;  %v3573_v60 = vadd.f32 %v3223_v46, %v2913_v54 }
 0x172   :  { %v2408_v9 = vpop.eup %2407  ;;  %v1397_v5 = vmul.f32 %v2406_v17, %v3336_v20  ;;  %2429 = vpow2.f32 %v922_v27  ;;  %v3550_v20 = vpop.f32.mrb[61].mxu1  ;;  %v828_v51 = vsub.f32 0.0, %v3546_v18  ;;  %v3581_v44 = vadd.f32 %v3225_v13, %v2913_v54 }
 0x173   :  { %v2410_v42 = vpop.eup %2409  ;;  %1927 = vst [vmem:[%s4082_s3 + $0x158] sm:$0xff] %v2107_v23  ;;  %v1461_v21 = vmul.f32 %v2408_v9, %v3343_v26  ;;  %4140 = vst [vmem:[#allocation39_spill] sm:$0xff] %v3550_v20  ;;  %2431 = vpow2.f32 %v1050_v12  ;;  %v3556_v23 = vpop.f32.mrb[62].mxu0  ;;  %v765_v17 = vsub.f32 0.0, %v3554_v15  ;;  %v3587_v9 = vadd.f32 %v3233_v2, %v2915_v55 }
 0x174   :  { %v2412_v50 = vpop.eup %2411  ;;  %v2076_v53 = vpack.c.bf16 %v1397_v5, %v1396_v56  ;;  %v1142_v29 = vadd.f32 1.0, %v2410_v42  ;;  %4141 = vst [vmem:[#allocation40_spill] sm:$0xff] %v3556_v23  ;;  %v3558_v26 = vpop.f32.mrb[62].mxu1  ;;  %2433 = vpow2.f32 %v924_v52  ;;  %v829_v52 = vsub.f32 0.0, %v3562_v25 }
 0x175   :  { %4142 = vst [vmem:[#allocation41_spill] sm:$0xff] %v3558_v26  ;;  %v2414_v30 = vpop.eup %2413  ;;  %v2108_v57 = vpack.c.bf16 %v1461_v21, %v1460_v49  ;;  %v1206_v39 = vadd.f32 1.0, %v2412_v50  ;;  %v3564_v24 = vpop.f32.mrb[63].mxu0  ;;  %v766_v13 = vsub.f32 0.0, %v3573_v60  ;;  %v3592_v21 = vadd.f32 %v3235_v11, %v2915_v55 }
 0x176   :  { %4143 = vst [vmem:[#allocation42_spill] sm:$0xff] %v3564_v24  ;;  %v3566_v58 = vpop.f32.mrb[63].mxu1  ;;  %v2416_v6 = vpop.eup %2415  ;;  %1896 = vst [vmem:[%s4082_s3 + $0x60] sm:$0xff] %v2076_v53  ;;  %2435 = vrcp.f32 %v1142_v29  ;;  %v1143_v14 = vadd.f32 1.0, %v2414_v30  ;;  %v1052_v29 = vmul.f32 1.442695, %v828_v51 }
 0x177   :  { %4144 = vst [vmem:[#allocation43_spill] sm:$0xff] %v3566_v58  ;;  %v2418_v27 = vpop.eup %2417  ;;  %1928 = vst [vmem:[%s4082_s3 + $0x160] sm:$0xff] %v2108_v57  ;;  %2437 = vrcp.f32 %v1206_v39  ;;  %v1207_v32 = vadd.f32 1.0, %v2416_v6  ;;  %v830_v30 = vsub.f32 0.0, %v3581_v44  ;;  %v926_v2 = vmul.f32 1.442695, %v765_v17 }
 0x178   :  { %v2420_v56 = vpop.eup %2419  ;;  %2439 = vrcp.f32 %v1143_v14  ;;  %v1144_v12 = vadd.f32 1.0, %v2418_v27  ;;  %v4145_v6 = vld [vmem:[#allocation12_spill] sm:$0xff]  ;;  %v767_v11 = vsub.f32 0.0, %v3587_v9  ;;  %v928_v51 = vmul.f32 1.442695, %v766_v13 }
 0x179   :  { %v2422_v46 = vpop.eup %2421  ;;  %2441 = vrcp.f32 %v1207_v32  ;;  %v1208_v49 = vadd.f32 1.0, %v2420_v56  ;;  %v3597_v14 = vadd.f32 %v4145_v6, %v2913_v54  ;;  %v1054_v56 = vmul.f32 1.442695, %v829_v52 }
 0x17a   :  { %v2424_v5 = vpop.eup %2423  ;;  %2443 = vrcp.f32 %v1144_v12  ;;  %v1145_v42 = vadd.f32 1.0, %v2422_v46  ;;  %v1056_v17 = vmul.f32 1.442695, %v830_v30  ;;  %v4148_v30 = vld [vmem:[#allocation15_spill] sm:$0xff] }
 0x17b   :  { %v2426_v50 = vpop.eup %2425  ;;  %2445 = vrcp.f32 %v1208_v49  ;;  %v1209_v53 = vadd.f32 1.0, %v2424_v5  ;;  %v831_v49 = vsub.f32 0.0, %v3592_v21  ;;  %v768_v52 = vsub.f32 0.0, %v3597_v14 }
 0x17c   :  { %v2428_v57 = vpop.eup %2427  ;;  %2447 = vrcp.f32 %v1145_v42  ;;  %v1146_v39 = vadd.f32 1.0, %v2426_v50  ;;  %v4146_v50 = vld [vmem:[#allocation13_spill] sm:$0xff] }
 0x17d   :  { %v2430_v27 = vpop.eup %2429  ;;  %2449 = vrcp.f32 %v1209_v53  ;;  %v1210_v32 = vadd.f32 1.0, %v2428_v57  ;;  %v3603_v6 = vadd.f32 %v4146_v50, %v2913_v54  ;;  %v4147_v57 = vld [vmem:[#allocation14_spill] sm:$0xff] }
 0x17e   :  { %v2432_v12 = vpop.eup %2431  ;;  %2451 = vrcp.f32 %v1146_v39  ;;  %v1147_v46 = vadd.f32 1.0, %v2430_v27  ;;  %v3608_v39 = vadd.f32 %v4147_v57, %v2915_v55 }
 0x17f   :  { %v2434_v5 = vpop.eup %2433  ;;  %2453 = vrcp.f32 %v1210_v32  ;;  %v1211_v42 = vadd.f32 1.0, %v2432_v12  ;;  %v930_v32 = vmul.f32 1.442695, %v767_v11  ;;  %v3613_v12 = vadd.f32 %v4148_v30, %v2915_v55 }
 0x180   :  { %v2436_v58 = vpop.eup %2435  ;;  %2455 = vrcp.f32 %v1147_v46  ;;  %v1148_v53 = vadd.f32 1.0, %v2434_v5  ;;  %v1058_v46 = vmul.f32 1.442695, %v831_v49  ;;  %v4149_v5 = vld [vmem:[#allocation16_spill] sm:$0xff]  ;;  %v769_v49 = vsub.f32 0.0, %v3608_v39 }
 0x181   :  { %v2438_v13 = vpop.eup %2437  ;;  %v1398_v27 = vmul.f32 %v2436_v58, %v3386_v16  ;;  %2457 = vrcp.f32 %v1211_v42  ;;  %v3618_v26 = vadd.f32 %v4149_v5, %v2913_v54  ;;  %v832_v16 = vsub.f32 0.0, %v3603_v6  ;;  %v4150_v58 = vld [vmem:[#allocation17_spill] sm:$0xff] }
 0x182   :  { %v2440_v50 = vpop.eup %2439  ;;  %v1462_v24 = vmul.f32 %v2438_v13, %v3397_v40  ;;  %2459 = vrcp.f32 %v1148_v53  ;;  %v3624_v11 = vadd.f32 %v4150_v58, %v2913_v54  ;;  %v932_v40 = vmul.f32 1.442695, %v768_v52 }
 0x183   :  { %v2442_v57 = vpop.eup %2441  ;;  %v1399_v23 = vmul.f32 %v2440_v50, %v3405_v48  ;;  %2461 = vpow2.f32 %v1052_v29  ;;  %v833_v48 = vsub.f32 0.0, %v3613_v12  ;;  %v770_v58 = vsub.f32 0.0, %v3618_v26 }
 0x184   :  { %v2444_v42 = vpop.eup %2443  ;;  %v1463_v30 = vmul.f32 %v2442_v57, %v3413_v33  ;;  %2463 = vpow2.f32 %v926_v2 }
 0x185   :  { %v2446_v53 = vpop.eup %2445  ;;  %v2077_v13 = vpack.c.bf16 %v1399_v23, %v1398_v27  ;;  %v1400_v5 = vmul.f32 %v2444_v42, %v3421_v8  ;;  %2465 = vpow2.f32 %v1054_v56  ;;  %v1060_v23 = vmul.f32 1.442695, %v832_v16 }
 0x186   :  { %v2448_v29 = vpop.eup %2447  ;;  %v2109_v50 = vpack.c.bf16 %v1463_v30, %v1462_v24  ;;  %v1464_v20 = vmul.f32 %v2446_v53, %v3433_v45  ;;  %2467 = vpow2.f32 %v928_v51  ;;  %v834_v8 = vsub.f32 0.0, %v3624_v11 }
 0x187   :  { %v2450_v35 = vpop.eup %2449  ;;  %1897 = vst [vmem:[%s4082_s3 + $0x68] sm:$0xff] %v2077_v13  ;;  %v1401_v33 = vmul.f32 %v2448_v29, %v3444_v19  ;;  %2469 = vpow2.f32 %v1056_v17  ;;  %v934_v24 = vmul.f32 1.442695, %v769_v49  ;;  %v1062_v27 = vmul.f32 1.442695, %v833_v48  ;;  %v4152_v13 = vld [vmem:[#allocation19_spill] sm:$0xff] }
 0x188   :  { %v2452_v2 = vpop.eup %2451  ;;  %1929 = vst [vmem:[%s4082_s3 + $0x168] sm:$0xff] %v2109_v50  ;;  %v1465_v45 = vmul.f32 %v2450_v35, %v3449_v41  ;;  %2471 = vpow2.f32 %v930_v32  ;;  %v936_v16 = vmul.f32 1.442695, %v770_v58  ;;  %v1064_v35 = vmul.f32 1.442695, %v834_v8  ;;  %v4153_v29 = vld [vmem:[#allocation20_spill] sm:$0xff] }
 0x189   :  { %v2454_v56 = vpop.eup %2453  ;;  %v2078_v51 = vpack.c.bf16 %v1401_v33, %v1400_v5  ;;  %v1402_v52 = vmul.f32 %v2452_v2, %v3457_v31  ;;  %2473 = vpow2.f32 %v1058_v46  ;;  %v4151_v46 = vld [vmem:[#allocation18_spill] sm:$0xff]  ;;  %v3663_v5 = vadd.f32 %v4152_v13, %v2913_v54 }
 0x18a   :  { %v2456_v19 = vpop.eup %2455  ;;  %v2110_v17 = vpack.c.bf16 %v1465_v45, %v1464_v20  ;;  %v1466_v57 = vmul.f32 %v2454_v56, %v3475_v7  ;;  %2475 = vpow2.f32 %v932_v40  ;;  %v3655_v30 = vadd.f32 %v4151_v46, %v2915_v55 }
 0x18b   :  { %v2458_v42 = vpop.eup %2457  ;;  %1898 = vst [vmem:[%s4082_s3 + $0x70] sm:$0xff] %v2078_v51  ;;  %v1403_v41 = vmul.f32 %v2456_v19, %v3483_v34  ;;  %2477 = vpow2.f32 %v1060_v23  ;;  %v3659_v34 = vadd.f32 %v3292_v43, %v2915_v55  ;;  %v3670_v50 = vadd.f32 %v4153_v29, %v2913_v54 }
 0x18c   :  { %v3647_v32 = vpop.eup %2459  ;;  %1930 = vst [vmem:[%s4082_s3 + $0x170] sm:$0xff] %v2110_v17  ;;  %v1467_v31 = vmul.f32 %v2458_v42, %v3488_v28  ;;  %2479 = vpow2.f32 %v934_v24  ;;  %v3677_v33 = vadd.f32 %v3312_v38, %v2915_v55  ;;  %v771_v2 = vsub.f32 0.0, %v3655_v30 }
 0x18d   :  { %v2462_v7 = vpop.eup %2461  ;;  %v2079_v20 = vpack.c.bf16 %v1403_v41, %v1402_v52  ;;  %2481 = vpow2.f32 %v1062_v27  ;;  %v3682_v45 = vadd.f32 %v3318_v36, %v2915_v55  ;;  %v835_v51 = vsub.f32 0.0, %v3659_v34 }
 0x18e   :  { %v2464_v40 = vpop.eup %2463  ;;  %v2111_v49 = vpack.c.bf16 %v1467_v31, %v1466_v57  ;;  %v1212_v53 = vadd.f32 1.0, %v2462_v7  ;;  %2483 = vpow2.f32 %v936_v16  ;;  %v772_v52 = vsub.f32 0.0, %v3663_v5 }
 0x18f   :  { %v2466_v28 = vpop.eup %2465  ;;  %1899 = vst [vmem:[%s4082_s3 + $0x78] sm:$0xff] %v2079_v20  ;;  %v1149_v48 = vadd.f32 1.0, %v2464_v40  ;;  %2485 = vpow2.f32 %v1064_v35  ;;  %v836_v19 = vsub.f32 0.0, %v3670_v50  ;;  %v3689_v17 = vadd.f32 %v3320_v59, %v2913_v54 }
 0x190   :  { %v2468_v43 = vpop.eup %2467  ;;  %1931 = vst [vmem:[%s4082_s3 + $0x178] sm:$0xff] %v2111_v49  ;;  %2487 = vrcp.f32 %v1212_v53  ;;  %v1213_v58 = vadd.f32 1.0, %v2466_v28  ;;  %v773_v16 = vsub.f32 0.0, %v3677_v33  ;;  %v938_v35 = vmul.f32 1.442695, %v771_v2 }
 0x191   :  { %v2470_v23 = vpop.eup %2469  ;;  %2489 = vrcp.f32 %v1149_v48  ;;  %v1150_v8 = vadd.f32 1.0, %v2468_v43  ;;  %v837_v31 = vsub.f32 0.0, %v3682_v45  ;;  %v1066_v46 = vmul.f32 1.442695, %v835_v51  ;;  %v4154_v43 = vld [vmem:[#allocation21_spill] sm:$0xff] }
 0x192   :  { %v2472_v24 = vpop.eup %2471  ;;  %2491 = vrcp.f32 %v1213_v58  ;;  %v1214_v56 = vadd.f32 1.0, %v2470_v23  ;;  %v940_v40 = vmul.f32 1.442695, %v772_v52  ;;  %v1068_v53 = vmul.f32 1.442695, %v836_v19 }
 0x193   :  { %v2474_v27 = vpop.eup %2473  ;;  %2493 = vrcp.f32 %v1150_v8  ;;  %v1151_v38 = vadd.f32 1.0, %v2472_v24  ;;  %v774_v13 = vsub.f32 0.0, %v3689_v17  ;;  %v942_v29 = vmul.f32 1.442695, %v773_v16  ;;  %v4155_v24 = vld [vmem:[#allocation22_spill] sm:$0xff]  ;;  %v4156_v16 = vld [vmem:[#allocation23_spill] sm:$0xff] }
 0x194   :  { %v2476_v57 = vpop.eup %2475  ;;  %2495 = vrcp.f32 %v1214_v56  ;;  %v1215_v36 = vadd.f32 1.0, %v2474_v27  ;;  %v3696_v58 = vadd.f32 %v4154_v43, %v2913_v54  ;;  %v1070_v2 = vmul.f32 1.442695, %v837_v31 }
 0x195   :  { %v2478_v42 = vpop.eup %2477  ;;  %2497 = vrcp.f32 %v1151_v38  ;;  %v1152_v41 = vadd.f32 1.0, %v2476_v57  ;;  %v3700_v56 = vadd.f32 %v4155_v24, %v2915_v55  ;;  %v1404_v52 = vmul.f32 %v3647_v32, %v3493_v62  ;;  %v4157_v32 = vld [vmem:[#allocation24_spill] sm:$0xff] }
 0x196   :  { %v2480_v7 = vpop.eup %2479  ;;  %2499 = vrcp.f32 %v1215_v36  ;;  %v1216_v20 = vadd.f32 1.0, %v2478_v42  ;;  %v3706_v38 = vadd.f32 %v3338_v61, %v2915_v55  ;;  %v944_v36 = vmul.f32 1.442695, %v774_v13 }
 0x197   :  { %v2482_v49 = vpop.eup %2481  ;;  %2501 = vrcp.f32 %v1152_v41  ;;  %v1153_v59 = vadd.f32 1.0, %v2480_v7  ;;  %v3711_v42 = vadd.f32 %v4156_v16, %v2913_v54  ;;  %v838_v62 = vsub.f32 0.0, %v3696_v58 }
 0x198   :  { %v2484_v28 = vpop.eup %2483  ;;  %2503 = vrcp.f32 %v1216_v20  ;;  %v1217_v48 = vadd.f32 1.0, %v2482_v49  ;;  %v3717_v7 = vadd.f32 %v4157_v32, %v2913_v54  ;;  %v4158_v49 = vld [vmem:[#allocation25_spill] sm:$0xff] }
 0x199   :  { %v2486_v23 = vpop.eup %2485  ;;  %2505 = vrcp.f32 %v1153_v59  ;;  %v1154_v8 = vadd.f32 1.0, %v2484_v28  ;;  %v3723_v59 = vadd.f32 %v4158_v49, %v2915_v55  ;;  %v4160_v49 = vld [vmem:[#allocation27_spill] sm:$0xff] }
 0x19a   :  { %v2488_v51 = vpop.eup %2487  ;;  %2507 = vrcp.f32 %v1217_v48  ;;  %v1218_v27 = vadd.f32 1.0, %v2486_v23  ;;  %v839_v48 = vsub.f32 0.0, %v3706_v38 }
 0x19b   :  { %v2490_v19 = vpop.eup %2489  ;;  %v1468_v57 = vmul.f32 %v2488_v51, %v3546_v18  ;;  %2509 = vrcp.f32 %v1154_v8  ;;  %v775_v18 = vsub.f32 0.0, %v3700_v56  ;;  %v1072_v51 = vmul.f32 1.442695, %v838_v62 }
 0x19c   :  { %v2492_v41 = vpop.eup %2491  ;;  %v1405_v31 = vmul.f32 %v2490_v19, %v3554_v15  ;;  %2511 = vrcp.f32 %v1218_v27 }
 0x19d   :  { %v2494_v61 = vpop.eup %2493  ;;  %v1469_v20 = vmul.f32 %v2492_v41, %v3562_v25  ;;  %2513 = vpow2.f32 %v938_v35  ;;  %v776_v25 = vsub.f32 0.0, %v3711_v42 }
 0x19e   :  { %v2496_v13 = vpop.eup %2495  ;;  %v2080_v28 = vpack.c.bf16 %v1405_v31, %v1404_v52  ;;  %v1406_v15 = vmul.f32 %v2494_v61, %v3573_v60  ;;  %2515 = vpow2.f32 %v1066_v46  ;;  %v840_v60 = vsub.f32 0.0, %v3717_v7  ;;  %v4159_v61 = vld [vmem:[#allocation26_spill] sm:$0xff] }
 0x19f   :  { %v2498_v43 = vpop.eup %2497  ;;  %v2112_v23 = vpack.c.bf16 %v1469_v20, %v1468_v57  ;;  %v1470_v8 = vmul.f32 %v2496_v13, %v3581_v44  ;;  %2517 = vpow2.f32 %v940_v40  ;;  %v946_v40 = vmul.f32 1.442695, %v775_v18 }
 0x1a0   :  { %v2500_v35 = vpop.eup %2499  ;;  %1900 = vst [vmem:[%s4082_s3 + $0x80] sm:$0xff] %v2080_v28  ;;  %v1407_v24 = vmul.f32 %v2498_v43, %v3587_v9  ;;  %2519 = vpow2.f32 %v1068_v53  ;;  %v777_v52 = vsub.f32 0.0, %v3723_v59  ;;  %v1074_v9 = vmul.f32 1.442695, %v839_v48  ;;  %v4162_v43 = vld [vmem:[#allocation29_spill] sm:$0xff] }
 0x1a1   :  { %v2502_v46 = vpop.eup %2501  ;;  %1932 = vst [vmem:[%s4082_s3 + $0x180] sm:$0xff] %v2112_v23  ;;  %v1471_v44 = vmul.f32 %v2500_v35, %v3592_v21  ;;  %2521 = vpow2.f32 %v942_v29  ;;  %v948_v31 = vmul.f32 1.442695, %v776_v25  ;;  %v1076_v29 = vmul.f32 1.442695, %v840_v60  ;;  %v4163_v35 = vld [vmem:[#allocation30_spill] sm:$0xff] }
 0x1a2   :  { %v2504_v27 = vpop.eup %2503  ;;  %v2081_v19 = vpack.c.bf16 %v1407_v24, %v1406_v15  ;;  %v1408_v57 = vmul.f32 %v2502_v46, %v3597_v14  ;;  %2523 = vpow2.f32 %v1070_v2  ;;  %v3755_v20 = vadd.f32 %v4159_v61, %v2915_v55  ;;  %v4161_v15 = vld [vmem:[#allocation28_spill] sm:$0xff] }
 0x1a3   :  { %v2506_v53 = vpop.eup %2505  ;;  %v2113_v16 = vpack.c.bf16 %v1471_v44, %v1470_v8  ;;  %v1472_v41 = vmul.f32 %v2504_v27, %v3603_v6  ;;  %2525 = vpow2.f32 %v944_v36  ;;  %v950_v6 = vmul.f32 1.442695, %v777_v52  ;;  %v4164_v44 = vld [vmem:[#allocation2_spill] sm:$0xff] }
 0x1a4   :  { %v2508_v62 = vpop.eup %2507  ;;  %1901 = vst [vmem:[%s4082_s3 + $0x88] sm:$0xff] %v2081_v19  ;;  %v1409_v21 = vmul.f32 %v2506_v53, %v3608_v39  ;;  %2527 = vpow2.f32 %v1072_v51  ;;  %v3759_v13 = vadd.f32 %v4160_v49, %v2913_v54  ;;  %v3766_v48 = vadd.f32 %v4161_v15, %v2913_v54 }
 0x1a5   :  { %v3745_v32 = vpop.eup %2509  ;;  %1933 = vst [vmem:[%s4082_s3 + $0x188] sm:$0xff] %v2113_v16  ;;  %v1473_v14 = vmul.f32 %v2508_v62, %v3613_v12  ;;  %2529 = vpow2.f32 %v946_v40  ;;  %v3770_v23 = vadd.f32 %v4162_v43, %v2915_v55  ;;  %v3777_v24 = vadd.f32 %v4163_v35, %v2915_v55 }
 0x1a6   :  { %v3751_v2 = vpop.eup %2511  ;;  %v2082_v36 = vpack.c.bf16 %v1409_v21, %v1408_v57  ;;  %2531 = vpow2.f32 %v1074_v9  ;;  %v841_v46 = vsub.f32 0.0, %v3755_v20  ;;  %v3782_v40 = vadd.f32 %v4164_v44, %v2913_v54  ;;  %v4165_v21 = vld [vmem:[#allocation3_spill] sm:$0xff] }
 0x1a7   :  { %v2514_v39 = vpop.eup %2513  ;;  %v2114_v18 = vpack.c.bf16 %v1473_v14, %v1472_v41  ;;  %2533 = vpow2.f32 %v948_v31  ;;  %v778_v19 = vsub.f32 0.0, %v3759_v13  ;;  %v842_v53 = vsub.f32 0.0, %v3766_v48 }
 0x1a8   :  { %v2516_v28 = vpop.eup %2515  ;;  %1902 = vst [vmem:[%s4082_s3 + $0x90] sm:$0xff] %v2082_v36  ;;  %v1155_v12 = vadd.f32 1.0, %v2514_v39  ;;  %2535 = vpow2.f32 %v1076_v29  ;;  %v779_v16 = vsub.f32 0.0, %v3770_v23  ;;  %v843_v62 = vsub.f32 0.0, %v3777_v24 }
 0x1a9   :  { %v2518_v8 = vpop.eup %2517  ;;  %1934 = vst [vmem:[%s4082_s3 + $0x190] sm:$0xff] %v2114_v18  ;;  %v1219_v25 = vadd.f32 1.0, %v2516_v28  ;;  %2537 = vpow2.f32 %v950_v6  ;;  %v3790_v29 = vadd.f32 %v4165_v21, %v2913_v54  ;;  %v1078_v36 = vmul.f32 1.442695, %v841_v46  ;;  %v4166_v28 = vld [vmem:[#allocation4_spill] sm:$0xff] }
 0x1aa   :  { %v2520_v51 = vpop.eup %2519  ;;  %2539 = vrcp.f32 %v1155_v12  ;;  %v1156_v60 = vadd.f32 1.0, %v2518_v8  ;;  %v780_v61 = vsub.f32 0.0, %v3782_v40  ;;  %v952_v49 = vmul.f32 1.442695, %v778_v19  ;;  %v4167_v19 = vld [vmem:[#allocation5_spill] sm:$0xff] }
 0x1ab   :  { %v2522_v52 = vpop.eup %2521  ;;  %2541 = vrcp.f32 %v1219_v25  ;;  %v1220_v27 = vadd.f32 1.0, %v2520_v51  ;;  %v3795_v12 = vadd.f32 %v4166_v28, %v2915_v55  ;;  %v1080_v8 = vmul.f32 1.442695, %v842_v53 }
 0x1ac   :  { %v2524_v57 = vpop.eup %2523  ;;  %2543 = vrcp.f32 %v1156_v60  ;;  %v1157_v9 = vadd.f32 1.0, %v2522_v52  ;;  %v954_v25 = vmul.f32 1.442695, %v779_v16  ;;  %v1082_v60 = vmul.f32 1.442695, %v843_v62 }
 0x1ad   :  { %v2526_v41 = vpop.eup %2525  ;;  %2545 = vrcp.f32 %v1220_v27  ;;  %v1221_v31 = vadd.f32 1.0, %v2524_v57  ;;  %v844_v46 = vsub.f32 0.0, %v3790_v29  ;;  %v956_v27 = vmul.f32 1.442695, %v780_v61 }
 0x1ae   :  { %v2528_v14 = vpop.eup %2527  ;;  %2547 = vrcp.f32 %v1157_v9  ;;  %v1158_v6 = vadd.f32 1.0, %v2526_v41  ;;  %v3800_v57 = vadd.f32 %v4167_v19, %v2915_v55  ;;  %v1410_v41 = vmul.f32 %v3745_v32, %v3618_v26  ;;  %v4169_v26 = vld [vmem:[#allocation31_spill] sm:$0xff] }
 0x1af   :  { %v2530_v39 = vpop.eup %2529  ;;  %2549 = vrcp.f32 %v1221_v31  ;;  %v1222_v18 = vadd.f32 1.0, %v2528_v14  ;;  %v781_v16 = vsub.f32 0.0, %v3795_v12  ;;  %v1474_v62 = vmul.f32 %v3751_v2, %v3624_v11  ;;  %v4168_v14 = vld [vmem:[#allocation6_spill] sm:$0xff]  ;;  %v4170_v2 = vld [vmem:[#allocation7_spill] sm:$0xff] }
 0x1b0   :  { %v2532_v15 = vpop.eup %2531  ;;  %2551 = vrcp.f32 %v1158_v6  ;;  %v1159_v43 = vadd.f32 1.0, %v2530_v39  ;;  %v3809_v6 = vadd.f32 %v4168_v14, %v2913_v54  ;;  %v3814_v32 = vadd.f32 %v4169_v26, %v2913_v54 }
 0x1b1   :  { %v2534_v35 = vpop.eup %2533  ;;  %2553 = vrcp.f32 %v1222_v18  ;;  %v1223_v51 = vadd.f32 1.0, %v2532_v15  ;;  %v1084_v18 = vmul.f32 1.442695, %v844_v46  ;;  %v845_v11 = vsub.f32 0.0, %v3800_v57  ;;  %v4171_v46 = vld [vmem:[#allocation32_spill] sm:$0xff] }
 0x1b2   :  { %v2536_v44 = vpop.eup %2535  ;;  %2555 = vrcp.f32 %v1159_v43  ;;  %v1160_v52 = vadd.f32 1.0, %v2534_v35  ;;  %v3820_v43 = vadd.f32 %v4170_v2, %v2915_v55 }
 0x1b3   :  { %v2538_v9 = vpop.eup %2537  ;;  %2557 = vrcp.f32 %v1223_v51  ;;  %v1224_v53 = vadd.f32 1.0, %v2536_v44  ;;  %v3825_v44 = vadd.f32 %v4171_v46, %v2915_v55  ;;  %v4173_v46 = vld [vmem:[#allocation9_spill] sm:$0xff] }
 0x1b4   :  { %v2540_v31 = vpop.eup %2539  ;;  %2559 = vrcp.f32 %v1160_v52  ;;  %v1161_v21 = vadd.f32 1.0, %v2538_v9  ;;  %v782_v9 = vsub.f32 0.0, %v3809_v6 }
 0x1b5   :  { %v2542_v61 = vpop.eup %2541  ;;  %v1411_v39 = vmul.f32 %v2540_v31, %v3655_v30  ;;  %2561 = vrcp.f32 %v1224_v53 }
 0x1b6   :  { %v2544_v28 = vpop.eup %2543  ;;  %v1475_v15 = vmul.f32 %v2542_v61, %v3659_v34  ;;  %2563 = vrcp.f32 %v1161_v21  ;;  %v960_v26 = vmul.f32 1.442695, %v782_v9  ;;  %v4174_v9 = vld [vmem:[#allocation10_spill] sm:$0xff] }
 0x1b7   :  { %v2546_v35 = vpop.eup %2545  ;;  %v2083_v51 = vpack.c.bf16 %v1411_v39, %v1410_v41  ;;  %v1412_v30 = vmul.f32 %v2544_v28, %v3663_v5  ;;  %2565 = vpow2.f32 %v1078_v36  ;;  %v958_v5 = vmul.f32 1.442695, %v781_v16 }
 0x1b8   :  { %v2548_v52 = vpop.eup %2547  ;;  %v2115_v19 = vpack.c.bf16 %v1475_v15, %v1474_v62  ;;  %v1476_v34 = vmul.f32 %v2546_v35, %v3670_v50  ;;  %2567 = vpow2.f32 %v952_v49  ;;  %v846_v36 = vsub.f32 0.0, %v3814_v32 }
 0x1b9   :  { %v2550_v53 = vpop.eup %2549  ;;  %1903 = vst [vmem:[%s4082_s3 + $0x98] sm:$0xff] %v2083_v51  ;;  %v1413_v41 = vmul.f32 %v2548_v52, %v3677_v33  ;;  %2569 = vpow2.f32 %v1080_v8  ;;  %v1086_v49 = vmul.f32 1.442695, %v845_v11  ;;  %v783_v62 = vsub.f32 0.0, %v3820_v43 }
 0x1ba   :  { %v2552_v31 = vpop.eup %2551  ;;  %1935 = vst [vmem:[%s4082_s3 + $0x198] sm:$0xff] %v2115_v19  ;;  %v1477_v50 = vmul.f32 %v2550_v53, %v3682_v45  ;;  %2571 = vpow2.f32 %v954_v25  ;;  %v847_v33 = vsub.f32 0.0, %v3825_v44  ;;  %v1088_v25 = vmul.f32 1.442695, %v846_v36  ;;  %v4175_v36 = vld [vmem:[#allocation33_spill] sm:$0xff] }
 0x1bb   :  { %v2554_v21 = vpop.eup %2553  ;;  %v2084_v14 = vpack.c.bf16 %v1413_v41, %v1412_v30  ;;  %v1414_v61 = vmul.f32 %v2552_v31, %v3689_v17  ;;  %2573 = vpow2.f32 %v1082_v60  ;;  %v4172_v60 = vld [vmem:[#allocation8_spill] sm:$0xff]  ;;  %v3863_v52 = vadd.f32 %v4173_v46, %v2913_v54  ;;  %v4177_v46 = vld [vmem:[#allocation11_spill] sm:$0xff] }
 0x1bc   :  { %v2556_v8 = vpop.eup %2555  ;;  %v2116_v16 = vpack.c.bf16 %v1477_v50, %v1476_v34  ;;  %v1478_v39 = vmul.f32 %v2554_v21, %v3696_v58  ;;  %2575 = vpow2.f32 %v956_v27  ;;  %v962_v58 = vmul.f32 1.442695, %v783_v62  ;;  %v4176_v62 = vld [vmem:[#allocation34_spill] sm:$0xff] }
 0x1bd   :  { %v2558_v28 = vpop.eup %2557  ;;  %1904 = vst [vmem:[%s4082_s3 + $0xa0] sm:$0xff] %v2084_v14  ;;  %v1415_v45 = vmul.f32 %v2556_v8, %v3700_v56  ;;  %2577 = vpow2.f32 %v1084_v18  ;;  %v3852_v27 = vadd.f32 %v4172_v60, %v2913_v54  ;;  %v1090_v18 = vmul.f32 1.442695, %v847_v33 }
 0x1be   :  { %v2560_v15 = vpop.eup %2559  ;;  %1936 = vst [vmem:[%s4082_s3 + $0x1a0] sm:$0xff] %v2116_v16  ;;  %v1479_v17 = vmul.f32 %v2558_v28, %v3706_v38  ;;  %2579 = vpow2.f32 %v958_v5  ;;  %v3871_v53 = vadd.f32 %v4174_v9, %v2915_v55  ;;  %v3875_v31 = vadd.f32 %v4175_v36, %v2915_v55 }
 0x1bf   :  { %v3854_v11 = vpop.eup %2561  ;;  %v2085_v2 = vpack.c.bf16 %v1415_v45, %v1414_v61  ;;  %v1416_v56 = vmul.f32 %v2560_v15, %v3711_v42  ;;  %2581 = vpow2.f32 %v1086_v49  ;;  %v784_v34 = vsub.f32 0.0, %v3852_v27 }
 0x1c0   :  { %v2564_v35 = vpop.eup %2563  ;;  %v2117_v51 = vpack.c.bf16 %v1479_v17, %v1478_v39  ;;  %2583 = vpow2.f32 %v960_v26  ;;  %v3879_v21 = vadd.f32 %v4176_v62, %v2913_v54  ;;  %v848_v33 = vsub.f32 0.0, %v3863_v52 }
 0x1c1   :  { %v2566_v30 = vpop.eup %2565  ;;  %1905 = vst [vmem:[%s4082_s3 + $0xa8] sm:$0xff] %v2085_v2  ;;  %v1417_v38 = vmul.f32 %v2564_v35, %v3723_v59  ;;  %2585 = vpow2.f32 %v1088_v25  ;;  %v3887_v8 = vadd.f32 %v3468_v0, %v2913_v54  ;;  %v785_v26 = vsub.f32 0.0, %v3871_v53 }
 0x1c2   :  { %v2568_v19 = vpop.eup %2567  ;;  %1937 = vst [vmem:[%s4082_s3 + $0x1a8] sm:$0xff] %v2117_v51  ;;  %v1225_v42 = vadd.f32 1.0, %v2566_v30  ;;  %2587 = vpow2.f32 %v962_v58  ;;  %v964_v25 = vmul.f32 1.442695, %v784_v34  ;;  %v849_v15 = vsub.f32 0.0, %v3875_v31 }
 0x1c3   :  { %v2570_v41 = vpop.eup %2569  ;;  %v2086_v59 = vpack.c.bf16 %v1417_v38, %v1416_v56  ;;  %v1162_v5 = vadd.f32 1.0, %v2568_v19  ;;  %2589 = vpow2.f32 %v1090_v18  ;;  %v786_v60 = vsub.f32 0.0, %v3879_v21 }
 0x1c4   :  { %v2572_v50 = vpop.eup %2571  ;;  %2591 = vrcp.f32 %v1225_v42  ;;  %v1226_v49 = vadd.f32 1.0, %v2570_v41  ;;  %v3894_v0 = vadd.f32 %v3470_v63, %v2915_v55  ;;  %v1092_v18 = vmul.f32 1.442695, %v848_v33 }
 0x1c5   :  { %v2574_v14 = vpop.eup %2573  ;;  %1906 = vst [vmem:[%s4082_s3 + $0xb0] sm:$0xff] %v2086_v59  ;;  %2593 = vrcp.f32 %v1162_v5  ;;  %v1163_v61 = vadd.f32 1.0, %v2572_v50  ;;  %v850_v35 = vsub.f32 0.0, %v3887_v8  ;;  %v966_v38 = vmul.f32 1.442695, %v785_v26 }
 0x1c6   :  { %v2576_v16 = vpop.eup %2575  ;;  %2595 = vrcp.f32 %v1226_v49  ;;  %v1227_v39 = vadd.f32 1.0, %v2574_v14  ;;  %v3899_v19 = vadd.f32 %v4177_v46, %v2915_v55  ;;  %v1094_v9 = vmul.f32 1.442695, %v849_v15 }
 0x1c7   :  { %v2578_v28 = vpop.eup %2577  ;;  %2597 = vrcp.f32 %v1163_v61  ;;  %v1164_v45 = vadd.f32 1.0, %v2576_v16  ;;  %v3903_v63 = vadd.f32 %v3497_v10, %v2913_v54  ;;  %v968_v5 = vmul.f32 1.442695, %v786_v60 }
 0x1c8   :  { %v2580_v17 = vpop.eup %2579  ;;  %2599 = vrcp.f32 %v1227_v39  ;;  %v1228_v58 = vadd.f32 1.0, %v2578_v28  ;;  %v787_v36 = vsub.f32 0.0, %v3894_v0  ;;  %v1480_v49 = vmul.f32 %v3854_v11, %v3717_v7  ;;  %v4178_v7 = vld [vmem:[#allocation35_spill] sm:$0xff] }
 0x1c9   :  { %v2582_v2 = vpop.eup %2581  ;;  %2601 = vrcp.f32 %v1164_v45  ;;  %v1165_v56 = vadd.f32 1.0, %v2580_v17  ;;  %v1096_v14 = vmul.f32 1.442695, %v850_v35  ;;  %v851_v16 = vsub.f32 0.0, %v3899_v19 }
 0x1ca   :  { %v2584_v51 = vpop.eup %2583  ;;  %2603 = vrcp.f32 %v1228_v58  ;;  %v1229_v30 = vadd.f32 1.0, %v2582_v2  ;;  %v3911_v10 = vadd.f32 %v3499_v3, %v2913_v54  ;;  %v788_v28 = vsub.f32 0.0, %v3903_v63  ;;  %v4179_v58 = vld [vmem:[#allocation36_spill] sm:$0xff] }
 0x1cb   :  { %v2586_v42 = vpop.eup %2585  ;;  %2605 = vrcp.f32 %v1165_v56  ;;  %v1166_v34 = vadd.f32 1.0, %v2584_v51  ;;  %v3917_v11 = vadd.f32 %v4178_v7, %v2915_v55  ;;  %v970_v17 = vmul.f32 1.442695, %v787_v36 }
 0x1cc   :  { %v2588_v41 = vpop.eup %2587  ;;  %2607 = vrcp.f32 %v1229_v30  ;;  %v1230_v59 = vadd.f32 1.0, %v2586_v42  ;;  %v3922_v60 = vadd.f32 %v4179_v58, %v2915_v55  ;;  %v3927_v56 = vadd.f32 %v3512_v37, %v2913_v54 }
 0x1cd   :  { %v2590_v50 = vpop.eup %2589  ;;  %2609 = vrcp.f32 %v1166_v34  ;;  %v1167_v62 = vadd.f32 1.0, %v2588_v41  ;;  %v852_v30 = vsub.f32 0.0, %v3911_v10 }
 0x1ce   :  { %v2592_v61 = vpop.eup %2591  ;;  %2611 = vrcp.f32 %v1230_v59  ;;  %v1231_v33 = vadd.f32 1.0, %v2590_v50  ;;  %v790_v50 = vsub.f32 0.0, %v3927_v56 }
 0x1cf   :  { %v2594_v39 = vpop.eup %2593  ;;  %v1481_v26 = vmul.f32 %v2592_v61, %v3755_v20  ;;  %2613 = vrcp.f32 %v1167_v62 }
 0x1d0   :  { %v2596_v45 = vpop.eup %2595  ;;  %v1418_v15 = vmul.f32 %v2594_v39, %v3759_v13  ;;  %2615 = vrcp.f32 %v1231_v33  ;;  %v1098_v13 = vmul.f32 1.442695, %v851_v16 }
 0x1d1   :  { %v2598_v3 = vpop.eup %2597  ;;  %v2118_v2 = vpack.c.bf16 %v1481_v26, %v1480_v49  ;;  %v1482_v20 = vmul.f32 %v2596_v45, %v3766_v48  ;;  %2617 = vpow2.f32 %v964_v25  ;;  %v972_v48 = vmul.f32 1.442695, %v788_v28 }
 0x1d2   :  { %v2600_v35 = vpop.eup %2599  ;;  %v1419_v51 = vmul.f32 %v2598_v3, %v3770_v23  ;;  %2619 = vpow2.f32 %v1092_v18  ;;  %v789_v25 = vsub.f32 0.0, %v3917_v11  ;;  %v853_v23 = vsub.f32 0.0, %v3922_v60 }
 0x1d3   :  { %v2602_v46 = vpop.eup %2601  ;;  %1938 = vst [vmem:[%s4082_s3 + $0x1b0] sm:$0xff] %v2118_v2  ;;  %v1483_v42 = vmul.f32 %v2600_v35, %v3777_v24  ;;  %2621 = vpow2.f32 %v966_v38  ;;  %v1100_v38 = vmul.f32 1.442695, %v852_v30  ;;  %v4180_v2 = vld [vmem:[#allocation37_spill] sm:$0xff] }
 0x1d4   :  { %v2604_v37 = vpop.eup %2603  ;;  %v2087_v34 = vpack.c.bf16 %v1419_v51, %v1418_v15  ;;  %v1420_v41 = vmul.f32 %v2602_v46, %v3782_v40  ;;  %2623 = vpow2.f32 %v1094_v9  ;;  %v1102_v33 = vmul.f32 1.442695, %v853_v23 }
 0x1d5   :  { %v2606_v18 = vpop.eup %2605  ;;  %v2119_v59 = vpack.c.bf16 %v1483_v42, %v1482_v20  ;;  %v1484_v36 = vmul.f32 %v2604_v37, %v3790_v29  ;;  %2625 = vpow2.f32 %v968_v5  ;;  %v974_v29 = vmul.f32 1.442695, %v789_v25 }
 0x1d6   :  { %v2608_v49 = vpop.eup %2607  ;;  %1907 = vst [vmem:[%s4082_s3 + $0xb8] sm:$0xff] %v2087_v34  ;;  %v1421_v24 = vmul.f32 %v2606_v18, %v3795_v12  ;;  %2627 = vpow2.f32 %v1096_v14  ;;  %v976_v14 = vmul.f32 1.442695, %v790_v50  ;;  %v3981_v37 = vadd.f32 %v3536_v47, %v2913_v54  ;;  %v4181_v50 = vld [vmem:[#allocation38_spill] sm:$0xff] }
 0x1d7   :  { %v2610_v40 = vpop.eup %2609  ;;  %1939 = vst [vmem:[%s4082_s3 + $0x1b8] sm:$0xff] %v2119_v59  ;;  %v1485_v9 = vmul.f32 %v2608_v49, %v3800_v57  ;;  %2629 = vpow2.f32 %v970_v17  ;;  %v3985_v23 = vadd.f32 %v3538_v4, %v2913_v54  ;;  %v3989_v49 = vadd.f32 %v4181_v50, %v2915_v55 }
 0x1d8   :  { %v2612_v5 = vpop.eup %2611  ;;  %v2088_v62 = vpack.c.bf16 %v1421_v24, %v1420_v41  ;;  %v1422_v61 = vmul.f32 %v2610_v40, %v3809_v6  ;;  %2631 = vpow2.f32 %v1098_v13  ;;  %v4182_v40 = vld [vmem:[#allocation39_spill] sm:$0xff] }
 0x1d9   :  { %v2614_v16 = vpop.eup %2613  ;;  %v2120_v39 = vpack.c.bf16 %v1485_v9, %v1484_v36  ;;  %v1486_v12 = vmul.f32 %v2612_v5, %v3814_v32  ;;  %2633 = vpow2.f32 %v972_v48  ;;  %v3960_v32 = vadd.f32 %v3514_v22, %v2913_v54 }
 0x1da   :  { %v2616_v26 = vpop.eup %2615  ;;  %1908 = vst [vmem:[%s4082_s3 + $0xc0] sm:$0xff] %v2088_v62  ;;  %v1423_v57 = vmul.f32 %v2614_v16, %v3820_v43  ;;  %2635 = vpow2.f32 %v1100_v38  ;;  %v3964_v43 = vadd.f32 %v3518_v1, %v2915_v55  ;;  %v3993_v9 = vadd.f32 %v4182_v40, %v2915_v55 }
 0x1db   :  { %v2618_v28 = vpop.eup %2617  ;;  %1940 = vst [vmem:[%s4082_s3 + $0x1c0] sm:$0xff] %v2120_v39  ;;  %v1487_v6 = vmul.f32 %v2616_v26, %v3825_v44  ;;  %2637 = vpow2.f32 %v974_v29  ;;  %v3968_v44 = vadd.f32 %v4180_v2, %v2915_v55  ;;  %v854_v51 = vsub.f32 0.0, %v3960_v32  ;;  %v4183_v39 = vld [vmem:[#allocation40_spill] sm:$0xff] }
 0x1dc   :  { %v2620_v7 = vpop.eup %2619  ;;  %v2089_v45 = vpack.c.bf16 %v1423_v57, %v1422_v61  ;;  %v1168_v15 = vadd.f32 1.0, %v2618_v28  ;;  %2639 = vpow2.f32 %v1102_v33  ;;  %v791_v46 = vsub.f32 0.0, %v3964_v43  ;;  %v4184_v28 = vld [vmem:[#allocation41_spill] sm:$0xff] }
 0x1dd   :  { %v2622_v17 = vpop.eup %2621  ;;  %v2121_v58 = vpack.c.bf16 %v1487_v6, %v1486_v12  ;;  %v1232_v3 = vadd.f32 1.0, %v2620_v7  ;;  %2641 = vpow2.f32 %v976_v14  ;;  %v855_v25 = vsub.f32 0.0, %v3968_v44 }
 0x1de   :  { %v2624_v20 = vpop.eup %2623  ;;  %1909 = vst [vmem:[%s4082_s3 + $0xc8] sm:$0xff] %v2089_v45  ;;  %2643 = vrcp.f32 %v1168_v15  ;;  %v1169_v22 = vadd.f32 1.0, %v2622_v17  ;;  %v1104_v36 = vmul.f32 1.442695, %v854_v51  ;;  %v978_v47 = vmul.f32 1.442695, %v791_v46 }
 0x1df   :  { %v2626_v35 = vpop.eup %2625  ;;  %1941 = vst [vmem:[%s4082_s3 + $0x1c8] sm:$0xff] %v2121_v58  ;;  %2645 = vrcp.f32 %v1232_v3  ;;  %v1233_v1 = vadd.f32 1.0, %v2624_v20  ;;  %v1106_v5 = vmul.f32 1.442695, %v855_v25  ;;  %v792_v62 = vsub.f32 0.0, %v3981_v37  ;;  %v4185_v17 = vld [vmem:[#allocation42_spill] sm:$0xff] }
 0x1e0   :  { %v2628_v13 = vpop.eup %2627  ;;  %2647 = vrcp.f32 %v1169_v22  ;;  %v1170_v30 = vadd.f32 1.0, %v2626_v35  ;;  %v856_v16 = vsub.f32 0.0, %v3985_v23  ;;  %v3999_v12 = vadd.f32 %v4183_v39, %v2913_v54  ;;  %v4186_v22 = vld [vmem:[#allocation43_spill] sm:$0xff] }
 0x1e1   :  { %v2630_v42 = vpop.eup %2629  ;;  %2649 = vrcp.f32 %v1233_v1  ;;  %v1234_v48 = vadd.f32 1.0, %v2628_v13  ;;  %v793_v57 = vsub.f32 0.0, %v3989_v49  ;;  %v4004_v6 = vadd.f32 %v4184_v28, %v2913_v54 }
 0x1e2   :  { %v2632_v34 = vpop.eup %2631  ;;  %2651 = vrcp.f32 %v1170_v30  ;;  %v1171_v41 = vadd.f32 1.0, %v2630_v42  ;;  %v857_v15 = vsub.f32 0.0, %v3993_v9  ;;  %v4009_v58 = vadd.f32 %v4185_v17, %v2915_v55 }
 0x1e3   :  { %v2634_v18 = vpop.eup %2633  ;;  %2653 = vrcp.f32 %v1234_v48  ;;  %v1235_v59 = vadd.f32 1.0, %v2632_v34  ;;  %v980_v20 = vmul.f32 1.442695, %v792_v62  ;;  %v4014_v35 = vadd.f32 %v4186_v22, %v2915_v55 }
 0x1e4   :  { %v2636_v24 = vpop.eup %2635  ;;  %2655 = vrcp.f32 %v1171_v41  ;;  %v1172_v38 = vadd.f32 1.0, %v2634_v18  ;;  %v1108_v51 = vmul.f32 1.442695, %v856_v16  ;;  %v794_v13 = vsub.f32 0.0, %v3999_v12 }
 0x1e5   :  { %v2638_v29 = vpop.eup %2637  ;;  %2657 = vrcp.f32 %v1235_v59  ;;  %v1236_v4 = vadd.f32 1.0, %v2636_v24  ;;  %v982_v42 = vmul.f32 1.442695, %v793_v57  ;;  %v1110_v55 = vmul.f32 1.442695, %v857_v15 }
 0x1e6   :  { %v2640_v61 = vpop.eup %2639  ;;  %2659 = vrcp.f32 %v1172_v38  ;;  %v1173_v33 = vadd.f32 1.0, %v2638_v29  ;;  %v795_v34 = vsub.f32 0.0, %v4009_v58  ;;  %v859_v59 = vsub.f32 0.0, %v4014_v35 }
 0x1e7   :  { %v2642_v14 = vpop.eup %2641  ;;  %2661 = vrcp.f32 %v1236_v4  ;;  %v1237_v26 = vadd.f32 1.0, %v2640_v61  ;;  %v984_v24 = vmul.f32 1.442695, %v794_v13 }
 0x1e8   :  { %v2644_v7 = vpop.eup %2643  ;;  %2663 = vrcp.f32 %v1173_v33  ;;  %v1174_v45 = vadd.f32 1.0, %v2642_v14  ;;  %v1114_v62 = vmul.f32 1.442695, %v859_v59 }
 0x1e9   :  { %v2646_v3 = vpop.eup %2645  ;;  %v1424_v2 = vmul.f32 %v2644_v7, %v3852_v27  ;;  %2665 = vrcp.f32 %v1237_v26  ;;  %v858_v27 = vsub.f32 0.0, %v4004_v6 }
 0x1ea   :  { %v2648_v54 = vpop.eup %2647  ;;  %v1488_v1 = vmul.f32 %v2646_v3, %v3863_v52  ;;  %2667 = vrcp.f32 %v1174_v45 }
 0x1eb   :  { %v2650_v30 = vpop.eup %2649  ;;  %v1425_v46 = vmul.f32 %v2648_v54, %v3871_v53  ;;  %2669 = vpow2.f32 %v1104_v36 }
 0x1ec   :  { %v2652_v48 = vpop.eup %2651  ;;  %v1489_v25 = vmul.f32 %v2650_v30, %v3875_v31  ;;  %2671 = vpow2.f32 %v978_v47  ;;  %v1112_v47 = vmul.f32 1.442695, %v858_v27 }
 0x1ed   :  { %v2654_v41 = vpop.eup %2653  ;;  %v2090_v52 = vpack.c.bf16 %v1425_v46, %v1424_v2  ;;  %v1426_v18 = vmul.f32 %v2652_v48, %v3879_v21  ;;  %2673 = vpow2.f32 %v1106_v5 }
 0x1ee   :  { %v2656_v50 = vpop.eup %2655  ;;  %v2122_v53 = vpack.c.bf16 %v1489_v25, %v1488_v1  ;;  %v1490_v36 = vmul.f32 %v2654_v41, %v3887_v8  ;;  %2675 = vpow2.f32 %v980_v20  ;;  %v986_v8 = vmul.f32 1.442695, %v795_v34 }
 0x1ef   :  { %v2658_v38 = vpop.eup %2657  ;;  %1910 = vst [vmem:[%s4082_s3 + $0xd0] sm:$0xff] %v2090_v52  ;;  %v1427_v31 = vmul.f32 %v2656_v50, %v3894_v0  ;;  %2677 = vpow2.f32 %v1108_v51 }
 0x1f0   :  { %v2660_v40 = vpop.eup %2659  ;;  %1942 = vst [vmem:[%s4082_s3 + $0x1d0] sm:$0xff] %v2122_v53  ;;  %v1491_v21 = vmul.f32 %v2658_v38, %v3899_v19  ;;  %2679 = vpow2.f32 %v982_v42 }
 0x1f1   :  { %v2662_v29 = vpop.eup %2661  ;;  %v2091_v4 = vpack.c.bf16 %v1427_v31, %v1426_v18  ;;  %v1428_v5 = vmul.f32 %v2660_v40, %v3903_v63  ;;  %2681 = vpow2.f32 %v1110_v55 }
 0x1f2   :  { %v2664_v61 = vpop.eup %2663  ;;  %v2123_v33 = vpack.c.bf16 %v1491_v21, %v1490_v36  ;;  %v1492_v0 = vmul.f32 %v2662_v29, %v3911_v10  ;;  %2683 = vpow2.f32 %v984_v24 }
 0x1f3   :  { %v2666_v16 = vpop.eup %2665  ;;  %1911 = vst [vmem:[%s4082_s3 + $0xd8] sm:$0xff] %v2091_v4  ;;  %v1429_v19 = vmul.f32 %v2664_v61, %v3917_v11  ;;  %2685 = vpow2.f32 %v1112_v47 }
 0x1f4   :  { %v2668_v39 = vpop.eup %2667  ;;  %1943 = vst [vmem:[%s4082_s3 + $0x1d8] sm:$0xff] %v2123_v33  ;;  %v1493_v63 = vmul.f32 %v2666_v16, %v3922_v60  ;;  %2687 = vpow2.f32 %v986_v8 }
 0x1f5   :  { %v2670_v14 = vpop.eup %2669  ;;  %v2092_v26 = vpack.c.bf16 %v1429_v19, %v1428_v5  ;;  %2689 = vpow2.f32 %v1114_v62  ;;  %v1430_v55 = vmul.f32 %v2668_v39, %v3927_v56 }
 0x1f6   :  { %v2672_v10 = vpop.eup %2671  ;;  %v2124_v57 = vpack.c.bf16 %v1493_v63, %v1492_v0  ;;  %v1238_v28 = vadd.f32 1.0, %v2670_v14 }
 0x1f7   :  { %v2674_v7 = vpop.eup %2673  ;;  %1912 = vst [vmem:[%s4082_s3 + $0xe0] sm:$0xff] %v2092_v26  ;;  %v1175_v11 = vadd.f32 1.0, %v2672_v10 }
 0x1f8   :  { %v2676_v45 = vpop.eup %2675  ;;  %1944 = vst [vmem:[%s4082_s3 + $0x1e0] sm:$0xff] %v2124_v57  ;;  %2691 = vrcp.f32 %v1238_v28  ;;  %v1239_v60 = vadd.f32 1.0, %v2674_v7 }
 0x1f9   :  { %v2678_v15 = vpop.eup %2677  ;;  %2693 = vrcp.f32 %v1175_v11  ;;  %v1176_v17 = vadd.f32 1.0, %v2676_v45 }
 0x1fa   :  { %v2680_v3 = vpop.eup %2679  ;;  %2695 = vrcp.f32 %v1239_v60  ;;  %v1240_v2 = vadd.f32 1.0, %v2678_v15 }
 0x1fb   :  { %v2682_v20 = vpop.eup %2681  ;;  %2697 = vrcp.f32 %v1176_v17  ;;  %v1177_v22 = vadd.f32 1.0, %v2680_v3 }
 0x1fc   :  { %v2684_v54 = vpop.eup %2683  ;;  %2699 = vrcp.f32 %v1240_v2  ;;  %v1241_v1 = vadd.f32 1.0, %v2682_v20 }
 0x1fd   :  { %v2686_v51 = vpop.eup %2685  ;;  %2701 = vrcp.f32 %v1177_v22  ;;  %v1178_v13 = vadd.f32 1.0, %v2684_v54 }
 0x1fe   :  { %v2688_v30 = vpop.eup %2687  ;;  %2703 = vrcp.f32 %v1241_v1  ;;  %v1242_v46 = vadd.f32 1.0, %v2686_v51 }
 0x1ff   :  { %v2690_v42 = vpop.eup %2689  ;;  %2705 = vrcp.f32 %v1178_v13  ;;  %v1179_v27 = vadd.f32 1.0, %v2688_v30 }
 0x200   :  { %2707 = vrcp.f32 %v1242_v46  ;;  %v1243_v48 = vadd.f32 1.0, %v2690_v42 }
 0x201   :  { %2709 = vrcp.f32 %v1179_v27 }
 0x202   :  { %v2692_v25 = vpop.eup %2691  ;;  %2711 = vrcp.f32 %v1243_v48 }
 0x203   :  { %v2694_v34 = vpop.eup %2693  ;;  %v1494_v41 = vmul.f32 %v2692_v25, %v3960_v32 }
 0x204   :  { %v2696_v52 = vpop.eup %2695  ;;  %v1431_v18 = vmul.f32 %v2694_v34, %v3964_v43 }
 0x205   :  { %v2698_v59 = vpop.eup %2697  ;;  %v1495_v50 = vmul.f32 %v2696_v52, %v3968_v44 }
 0x206   :  { %v2700_v53 = vpop.eup %2699  ;;  %v2093_v36 = vpack.c.bf16 %v1431_v18, %v1430_v55  ;;  %v1432_v24 = vmul.f32 %v2698_v59, %v3981_v37 }
 0x207   :  { %v2702_v38 = vpop.eup %2701  ;;  %v2125_v31 = vpack.c.bf16 %v1495_v50, %v1494_v41  ;;  %v1496_v47 = vmul.f32 %v2700_v53, %v3985_v23 }
 0x208   :  { %v2704_v40 = vpop.eup %2703  ;;  %1913 = vst [vmem:[%s4082_s3 + $0xe8] sm:$0xff] %v2093_v36  ;;  %v1433_v56 = vmul.f32 %v2702_v38, %v3989_v49 }
 0x209   :  { %v2706_v32 = vpop.eup %2705  ;;  %1945 = vst [vmem:[%s4082_s3 + $0x1e8] sm:$0xff] %v2125_v31  ;;  %v1497_v43 = vmul.f32 %v2704_v40, %v3993_v9 }
 0x20a   :  { %v2708_v44 = vpop.eup %2707  ;;  %v2094_v37 = vpack.c.bf16 %v1433_v56, %v1432_v24  ;;  %v1434_v21 = vmul.f32 %v2706_v32, %v3999_v12 }
 0x20b   :  { %v2710_v8 = vpop.eup %2709  ;;  %v2126_v23 = vpack.c.bf16 %v1497_v43, %v1496_v47  ;;  %v1498_v29 = vmul.f32 %v2708_v44, %v4004_v6 }
 0x20c   :  { %v2712_v4 = vpop.eup %2711  ;;  %1914 = vst [vmem:[%s4082_s3 + $0xf0] sm:$0xff] %v2094_v37  ;;  %v1435_v49 = vmul.f32 %v2710_v8, %v4009_v58 }
 0x20d   :  { %1946 = vst [vmem:[%s4082_s3 + $0x1f0] sm:$0xff] %v2126_v23  ;;  %v1499_v9 = vmul.f32 %v2712_v4, %v4014_v35 }
 0x20e   :  { %v2095_v5 = vpack.c.bf16 %v1435_v49, %v1434_v21 }
 0x20f   :  { %v2127_v62 = vpack.c.bf16 %v1499_v9, %v1498_v29 }
 0x210   :  { %1915 = vst [vmem:[%s4082_s3 + $0xf8] sm:$0xff] %v2095_v5 }
 0x211   :  { %1947 = vst [vmem:[%s4082_s3 + $0x1f8] sm:$0xff] %v2127_v62 }

// kernel: _lambda_.8
= control target key start
LH: loop header
LB: loop body
LE: loop exit
PB: predicated region body
PF: predicated region fallthrough
CT: control target
= control target key end

     0   :  { %s2833_s1 = inlined_call_operand.vmem [shape: bf16[128,128], index: 1, kind: input, shape index: {}]   ;;  %s2834_s0 = inlined_call_operand.vmem [shape: bf16[512,128], index: 0, kind: input, shape index: {}]   ;;  %s2835_s2 = inlined_call_operand.vmem [shape: f32[1,128], index: 2, kind: input, shape index: {}]   ;;  %s2836_s3 = inlined_call_operand.vmem [shape: bf16[512,128], index: 3, kind: output, shape index: {}]  }
   0x1   :  { %v1835_v0 = vld [vmem:[%s2833_s1] sm:$0xff]   ;;  %v1836_v1 = vld [vmem:[%s2833_s1 + $0x8] sm:$0xff]   ;;  %v1837_v2 = vld [vmem:[%s2833_s1 + $0x10] sm:$0xff]  }
   0x2   :  { %1739 = vmatprep.subr.bf16.mxu0 %v1835_v0  ;;  %1819 = vmatprep.subr.bf16.mxu1 %v1835_v0  ;;  %v1838_v3 = vld [vmem:[%s2833_s1 + $0x18] sm:$0xff]   ;;  %v1843_v4 = vld [vmem:[%s2834_s0] sm:$0xff]   ;;  %v1840_v7 = vld [vmem:[%s2833_s1 + $0x28] sm:$0xff]  }
   0x3   :  { %1740 = vmatpush3.bf16.msra.mxu0 %v1835_v0  ;;  %1827 = vmatpush3.bf16.msra.mxu1 %v1835_v0  ;;  %v1844_v5 = vld [vmem:[%s2834_s0 + $0x80] sm:$0xff]   ;;  %v1841_v8 = vld [vmem:[%s2833_s1 + $0x30] sm:$0xff]   ;;  %v1842_v9 = vld [vmem:[%s2833_s1 + $0x38] sm:$0xff]  }
   0x4   :  { %1741 = vmatprep.subr.bf16.mxu0 %v1836_v1  ;;  %1820 = vmatprep.subr.bf16.mxu1 %v1836_v1  ;;  %v1839_v6 = vld [vmem:[%s2833_s1 + $0x20] sm:$0xff]   ;;  %v1845_v10 = vld [vmem:[%s2834_s0 + $0x8] sm:$0xff]   ;;  %v1847_v12 = vld [vmem:[%s2834_s0 + $0x10] sm:$0xff]  }
   0x5   :  { %1755 = vmatprep.mubr.bf16.mxu0 %v1843_v4  ;;  %1787 = vmatprep.mubr.bf16.mxu1 %v1844_v5  ;;  %v1846_v11 = vld [vmem:[%s2834_s0 + $0x88] sm:$0xff]   ;;  %v1848_v13 = vld [vmem:[%s2834_s0 + $0x90] sm:$0xff]   ;;  %v1849_v14 = vld [vmem:[%s2834_s0 + $0x18] sm:$0xff]  }
   0x6   :  { %v1850_v15 = vld [vmem:[%s2834_s0 + $0x98] sm:$0xff]   ;;  %v1851_v16 = vld [vmem:[%s2834_s0 + $0x20] sm:$0xff]   ;;  %v1853_v18 = vld [vmem:[%s2834_s0 + $0x28] sm:$0xff]  }
   0x7   :  { %1742 = vmatpush3.bf16.msra.mxu0 %v1836_v1  ;;  %1828 = vmatpush3.bf16.msra.mxu1 %v1836_v1  ;;  %v1852_v17 = vld [vmem:[%s2834_s0 + $0xa0] sm:$0xff]   ;;  %v1854_v19 = vld [vmem:[%s2834_s0 + $0xa8] sm:$0xff]   ;;  %v1855_v20 = vld [vmem:[%s2834_s0 + $0x30] sm:$0xff]  }
   0x8   :  { %1743 = vmatprep.subr.bf16.mxu0 %v1837_v2  ;;  %1821 = vmatprep.subr.bf16.mxu1 %v1837_v2  ;;  %v1856_v21 = vld [vmem:[%s2834_s0 + $0xb0] sm:$0xff]   ;;  %v1857_v22 = vld [vmem:[%s2834_s0 + $0x38] sm:$0xff]   ;;  %v1859_v24 = vld [vmem:[%s2834_s0 + $0x40] sm:$0xff]  }
   0x9   :  { %v1858_v23 = vld [vmem:[%s2834_s0 + $0xb8] sm:$0xff]   ;;  %v1860_v25 = vld [vmem:[%s2834_s0 + $0xc0] sm:$0xff]   ;;  %v1861_v26 = vld [vmem:[%s2834_s0 + $0x48] sm:$0xff]  }
   0xa   :  { %v1862_v27 = vld [vmem:[%s2834_s0 + $0xc8] sm:$0xff]   ;;  %v1863_v28 = vld [vmem:[%s2834_s0 + $0x50] sm:$0xff]   ;;  %v1865_v30 = vld [vmem:[%s2834_s0 + $0x58] sm:$0xff]  }
   0xb   :  { %1744 = vmatpush3.bf16.msra.mxu0 %v1837_v2  ;;  %1829 = vmatpush3.bf16.msra.mxu1 %v1837_v2  ;;  %v1864_v29 = vld [vmem:[%s2834_s0 + $0xd0] sm:$0xff]   ;;  %v1866_v31 = vld [vmem:[%s2834_s0 + $0xd8] sm:$0xff]   ;;  %v1867_v32 = vld [vmem:[%s2834_s0 + $0x60] sm:$0xff]  }
   0xc   :  { %1745 = vmatprep.subr.bf16.mxu0 %v1838_v3  ;;  %1822 = vmatprep.subr.bf16.mxu1 %v1838_v3  ;;  %v1868_v33 = vld [vmem:[%s2834_s0 + $0xe0] sm:$0xff]   ;;  %v1869_v34 = vld [vmem:[%s2834_s0 + $0x68] sm:$0xff]   ;;  %v1871_v36 = vld [vmem:[%s2834_s0 + $0x70] sm:$0xff]  }
   0xd   :  { %v1870_v35 = vld [vmem:[%s2834_s0 + $0xe8] sm:$0xff]   ;;  %v1872_v37 = vld [vmem:[%s2834_s0 + $0xf0] sm:$0xff]   ;;  %v1873_v38 = vld [vmem:[%s2834_s0 + $0x78] sm:$0xff]  }
   0xe   :  { %v1874_v39 = vld [vmem:[%s2834_s0 + $0xf8] sm:$0xff]   ;;  %v2275_v40 = vld [vmem:[%s2835_s2] ss:$0 sm:$0xff] }
   0xf   :  { %1746 = vmatpush3.bf16.msra.mxu0 %v1838_v3  ;;  %1830 = vmatpush3.bf16.msra.mxu1 %v1838_v3 }
  0x10   :  { %1747 = vmatprep.subr.bf16.mxu0 %v1839_v6  ;;  %1823 = vmatprep.subr.bf16.mxu1 %v1839_v6 }
  0x13   :  { %1748 = vmatpush3.bf16.msra.mxu0 %v1839_v6  ;;  %1831 = vmatpush3.bf16.msra.mxu1 %v1839_v6 }
  0x14   :  { %1749 = vmatprep.subr.bf16.mxu0 %v1840_v7  ;;  %1824 = vmatprep.subr.bf16.mxu1 %v1840_v7 }
  0x17   :  { %1750 = vmatpush3.bf16.msra.mxu0 %v1840_v7  ;;  %1832 = vmatpush3.bf16.msra.mxu1 %v1840_v7 }
  0x18   :  { %1751 = vmatprep.subr.bf16.mxu0 %v1841_v8  ;;  %1825 = vmatprep.subr.bf16.mxu1 %v1841_v8 }
  0x1b   :  { %1752 = vmatpush3.bf16.msra.mxu0 %v1841_v8  ;;  %1833 = vmatpush3.bf16.msra.mxu1 %v1841_v8 }
  0x1c   :  { %1753 = vmatprep.subr.bf16.mxu0 %v1842_v9  ;;  %1826 = vmatprep.subr.bf16.mxu1 %v1842_v9 }
  0x1f   :  { %1754 = vmatpush3.bf16.msra.mxu0 %v1842_v9  ;;  %1834 = vmatpush3.bf16.msra.mxu1 %v1842_v9 }
  0x22   :  { %1756 = vmatmul.mubr.bf16.vlgmr.msra.gmra.mrb[0].mxu0 %v1845_v10  ;;  %1788 = vmatmul.mubr.bf16.vlgmr.msra.gmra.mrb[0].mxu1 %v1846_v11 }
  0x23   :  { %1759 = vmatprep.mubr.bf16.mxu0 %v1847_v12  ;;  %1791 = vmatprep.mubr.bf16.mxu1 %v1848_v13 }
  0x2a   :  { %1760 = vmatmul.mubr.bf16.gmra.mrb[4].mxu0 %v1849_v14  ;;  %1792 = vmatmul.mubr.bf16.gmra.mrb[4].mxu1 %v1850_v15 }
  0x2b   :  { %1763 = vmatprep.mubr.bf16.mxu0 %v1851_v16  ;;  %1795 = vmatprep.mubr.bf16.mxu1 %v1852_v17 }
  0x32   :  { %1764 = vmatmul.mubr.bf16.gmra.mrb[8].mxu0 %v1853_v18  ;;  %1796 = vmatmul.mubr.bf16.gmra.mrb[8].mxu1 %v1854_v19 }
  0x33   :  { %1767 = vmatprep.mubr.bf16.mxu0 %v1855_v20  ;;  %1799 = vmatprep.mubr.bf16.mxu1 %v1856_v21 }
  0x3a   :  { %1768 = vmatmul.mubr.bf16.gmra.mrb[12].mxu0 %v1857_v22  ;;  %1800 = vmatmul.mubr.bf16.gmra.mrb[12].mxu1 %v1858_v23 }
  0x3b   :  { %1771 = vmatprep.mubr.bf16.mxu0 %v1859_v24  ;;  %1803 = vmatprep.mubr.bf16.mxu1 %v1860_v25 }
  0x42   :  { %1772 = vmatmul.mubr.bf16.gmra.mrb[16].mxu0 %v1861_v26  ;;  %1804 = vmatmul.mubr.bf16.gmra.mrb[16].mxu1 %v1862_v27 }
  0x43   :  { %1775 = vmatprep.mubr.bf16.mxu0 %v1863_v28  ;;  %1807 = vmatprep.mubr.bf16.mxu1 %v1864_v29 }
  0x4a   :  { %1776 = vmatmul.mubr.bf16.gmra.mrb[20].mxu0 %v1865_v30  ;;  %1808 = vmatmul.mubr.bf16.gmra.mrb[20].mxu1 %v1866_v31 }
  0x4b   :  { %1779 = vmatprep.mubr.bf16.mxu0 %v1867_v32  ;;  %1811 = vmatprep.mubr.bf16.mxu1 %v1868_v33 }
  0x52   :  { %1780 = vmatmul.mubr.bf16.gmra.mrb[24].mxu0 %v1869_v34  ;;  %1812 = vmatmul.mubr.bf16.gmra.mrb[24].mxu1 %v1870_v35 }
  0x53   :  { %1783 = vmatprep.mubr.bf16.mxu0 %v1871_v36  ;;  %1815 = vmatprep.mubr.bf16.mxu1 %v1872_v37 }
  0x5a   :  { %1784 = vmatmul.mubr.bf16.gmra.mrb[28].mxu0 %v1873_v38  ;;  %1816 = vmatmul.mubr.bf16.gmra.mrb[28].mxu1 %v1874_v39 }
  0xf5   :  { %v1757_v41 = vpop.f32.mrb[0].mxu0  ;;  %v1789_v42 = vpop.f32.mrb[0].mxu1 }
  0xf6   :  { %v2278_v43 = vadd.f32 %v1757_v41, %v2275_v40  ;;  %v2281_v44 = vadd.f32 %v1789_v42, %v2275_v40  ;;  %v376_v45 = vpop.f32.mrb[1].mxu0  ;;  %v504_v46 = vpop.f32.mrb[1].mxu1 }
  0xf7   :  { %v2284_v47 = vadd.f32 %v2275_v40, %v376_v45  ;;  %v2287_v48 = vadd.f32 %v2275_v40, %v504_v46  ;;  %v1758_v49 = vpop.f32.mrb[2].mxu0  ;;  %v1790_v50 = vpop.f32.mrb[2].mxu1 }
  0xf8   :  { %v633_v51 = vsub.f32 0.0, %v2278_v43  ;;  %v665_v52 = vsub.f32 0.0, %v2281_v44  ;;  %v2292_v53 = vadd.f32 %v1758_v49, %v2275_v40  ;;  %v2295_v54 = vadd.f32 %v1790_v50, %v2275_v40  ;;  %v379_v55 = vpop.f32.mrb[3].mxu0  ;;  %v507_v56 = vpop.f32.mrb[3].mxu1 }
  0xf9   :  { %v631_v57 = vsub.f32 0.0, %v2284_v47  ;;  %v663_v58 = vsub.f32 0.0, %v2287_v48  ;;  %v2300_v59 = vadd.f32 %v2275_v40, %v379_v55  ;;  %v2303_v60 = vadd.f32 %v2275_v40, %v507_v56 }
  0xfa   :  { %v699_v61 = vmul.f32 1.442695, %v633_v51  ;;  %v763_v62 = vmul.f32 1.442695, %v665_v52  ;;  %v634_v63 = vsub.f32 0.0, %v2292_v53  ;;  %v666_v0 = vsub.f32 0.0, %v2295_v54 }
  0xfb   :  { %v695_v1 = vmul.f32 1.442695, %v631_v57  ;;  %v759_v2 = vmul.f32 1.442695, %v663_v58  ;;  %v632_v3 = vsub.f32 0.0, %v2300_v59  ;;  %v664_v4 = vsub.f32 0.0, %v2303_v60 }
  0xfc   :  { %1875 = vpow2.f32 %v699_v61  ;;  %v701_v5 = vmul.f32 1.442695, %v634_v63  ;;  %v765_v6 = vmul.f32 1.442695, %v666_v0 }
  0xfd   :  { %1877 = vpow2.f32 %v763_v62  ;;  %v1761_v7 = vpop.f32.mrb[4].mxu0  ;;  %v1793_v8 = vpop.f32.mrb[4].mxu1  ;;  %v697_v9 = vmul.f32 1.442695, %v632_v3  ;;  %v761_v14 = vmul.f32 1.442695, %v664_v4 }
  0xfe   :  { %1879 = vpow2.f32 %v695_v1  ;;  %v2310_v10 = vadd.f32 %v1761_v7, %v2275_v40  ;;  %v2313_v11 = vadd.f32 %v1793_v8, %v2275_v40  ;;  %v392_v12 = vpop.f32.mrb[5].mxu0  ;;  %v520_v13 = vpop.f32.mrb[5].mxu1 }
  0xff   :  { %1881 = vpow2.f32 %v759_v2  ;;  %v2316_v15 = vadd.f32 %v2275_v40, %v392_v12  ;;  %v2319_v16 = vadd.f32 %v2275_v40, %v520_v13  ;;  %v1762_v17 = vpop.f32.mrb[6].mxu0  ;;  %v1794_v18 = vpop.f32.mrb[6].mxu1 }
 0x100   :  { %1883 = vpow2.f32 %v701_v5  ;;  %v637_v19 = vsub.f32 0.0, %v2310_v10  ;;  %v669_v20 = vsub.f32 0.0, %v2313_v11  ;;  %v2324_v21 = vadd.f32 %v1762_v17, %v2275_v40  ;;  %v395_v22 = vpop.f32.mrb[7].mxu0  ;;  %v523_v23 = vpop.f32.mrb[7].mxu1 }
 0x101   :  { %1885 = vpow2.f32 %v765_v6  ;;  %v635_v24 = vsub.f32 0.0, %v2316_v15  ;;  %v667_v25 = vsub.f32 0.0, %v2319_v16  ;;  %v2329_v26 = vadd.f32 %v1794_v18, %v2275_v40 }
 0x102   :  { %1887 = vpow2.f32 %v697_v9  ;;  %v707_v27 = vmul.f32 1.442695, %v637_v19  ;;  %v771_v28 = vmul.f32 1.442695, %v669_v20  ;;  %v638_v29 = vsub.f32 0.0, %v2324_v21 }
 0x103   :  { %1889 = vpow2.f32 %v761_v14  ;;  %v703_v30 = vmul.f32 1.442695, %v635_v24  ;;  %v767_v31 = vmul.f32 1.442695, %v667_v25  ;;  %v2333_v33 = vadd.f32 %v2275_v40, %v395_v22 }
 0x104   :  { %1891 = vpow2.f32 %v707_v27  ;;  %v709_v32 = vmul.f32 1.442695, %v638_v29  ;;  %v670_v37 = vsub.f32 0.0, %v2329_v26  ;;  %v2337_v45 = vadd.f32 %v2275_v40, %v523_v23 }
 0x105   :  { %1893 = vpow2.f32 %v771_v28  ;;  %v1765_v34 = vpop.f32.mrb[8].mxu0  ;;  %v1797_v35 = vpop.f32.mrb[8].mxu1  ;;  %v636_v57 = vsub.f32 0.0, %v2333_v33 }
 0x106   :  { %v1876_v36 = vpop.eup %1875  ;;  %1895 = vpow2.f32 %v703_v30  ;;  %v408_v38 = vpop.f32.mrb[9].mxu0  ;;  %v2340_v63 = vmul.f32 1.442695, %v670_v37  ;;  %v668_v2 = vsub.f32 0.0, %v2337_v45  ;;  %v2344_v3 = vadd.f32 %v1765_v34, %v2275_v40 }
 0x107   :  { %v536_v39 = vpop.f32.mrb[9].mxu1  ;;  %v1878_v41 = vpop.eup %1877  ;;  %v825_v42 = vadd.f32 1.0, %v1876_v36  ;;  %1897 = vpow2.f32 %v767_v31  ;;  %v2347_v6 = vadd.f32 %v1797_v35, %v2275_v40  ;;  %v2350_v7 = vadd.f32 %v2275_v40, %v408_v38 }
 0x108   :  { %v1766_v46 = vpop.f32.mrb[10].mxu0  ;;  %v1798_v49 = vpop.f32.mrb[10].mxu1  ;;  %v857_v51 = vadd.f32 1.0, %v1878_v41  ;;  %1899 = vpow2.f32 %v709_v32  ;;  %v705_v12 = vmul.f32 1.442695, %v636_v57  ;;  %v2353_v13 = vadd.f32 %v2275_v40, %v536_v39 }
 0x109   :  { %v1880_v50 = vpop.eup %1879  ;;  %v411_v52 = vpop.f32.mrb[11].mxu0  ;;  %1901 = vrcp.f32 %v825_v42  ;;  %v2356_v20 = vadd.f32 %v1766_v46, %v2275_v40  ;;  %v2359_v22 = vadd.f32 %v1798_v49, %v2275_v40  ;;  %v641_v28 = vsub.f32 0.0, %v2344_v3 }
 0x10a   :  { %v1882_v55 = vpop.eup %1881  ;;  %v823_v56 = vadd.f32 1.0, %v1880_v50  ;;  %v539_v58 = vpop.f32.mrb[11].mxu1  ;;  %1903 = vrcp.f32 %v857_v51  ;;  %v2365_v29 = vadd.f32 %v2275_v40, %v411_v52  ;;  %v673_v35 = vsub.f32 0.0, %v2347_v6 }
 0x10b   :  { %v1884_v61 = vpop.eup %1883  ;;  %v855_v62 = vadd.f32 1.0, %v1882_v55  ;;  %v639_v36 = vsub.f32 0.0, %v2350_v7  ;;  %v769_v42 = vmul.f32 1.442695, %v668_v2  ;;  %v671_v46 = vsub.f32 0.0, %v2353_v13 }
 0x10c   :  { %v1886_v0 = vpop.eup %1885  ;;  %1905 = vrcp.f32 %v823_v56  ;;  %v826_v1 = vadd.f32 1.0, %v1884_v61  ;;  %v642_v51 = vsub.f32 0.0, %v2356_v20  ;;  %v674_v52 = vsub.f32 0.0, %v2359_v22 }
 0x10d   :  { %v1888_v4 = vpop.eup %1887  ;;  %1907 = vrcp.f32 %v855_v62  ;;  %v858_v5 = vadd.f32 1.0, %v1886_v0  ;;  %v1769_v14 = vpop.f32.mrb[12].mxu0  ;;  %v640_v57 = vsub.f32 0.0, %v2365_v29  ;;  %v2382_v61 = vadd.f32 %v2275_v40, %v539_v58 }
 0x10e   :  { %v1890_v8 = vpop.eup %1889  ;;  %1909 = vrcp.f32 %v826_v1  ;;  %v824_v9 = vadd.f32 1.0, %v1888_v4  ;;  %v1801_v17 = vpop.f32.mrb[12].mxu1  ;;  %v715_v0 = vmul.f32 1.442695, %v641_v28  ;;  %v779_v1 = vmul.f32 1.442695, %v673_v35 }
 0x10f   :  { %v1892_v18 = vpop.eup %1891  ;;  %1911 = vrcp.f32 %v858_v5  ;;  %v856_v19 = vadd.f32 1.0, %v1890_v8  ;;  %v424_v23 = vpop.f32.mrb[13].mxu0  ;;  %v711_v2 = vmul.f32 1.442695, %v639_v36  ;;  %v775_v5 = vmul.f32 1.442695, %v671_v46 }
 0x110   :  { %v2361_v24 = vpop.f32.mrb[13].mxu1  ;;  %v1894_v25 = vpop.eup %1893  ;;  %1913 = vrcp.f32 %v824_v9  ;;  %v829_v27 = vadd.f32 1.0, %v1892_v18  ;;  %v2385_v8 = vadd.f32 %v1769_v14, %v2275_v40  ;;  %v2388_v9 = vadd.f32 %v1801_v17, %v2275_v40 }
 0x111   :  { %v2367_v30 = vpop.f32.mrb[14].mxu0  ;;  %v2369_v31 = vpop.f32.mrb[14].mxu1  ;;  %1915 = vrcp.f32 %v856_v19  ;;  %v861_v34 = vadd.f32 1.0, %v1894_v25  ;;  %v717_v25 = vmul.f32 1.442695, %v642_v51  ;;  %v672_v17 = vsub.f32 0.0, %v2382_v61 }
 0x112   :  { %v1896_v32 = vpop.eup %1895  ;;  %v2373_v37 = vpop.f32.mrb[15].mxu0  ;;  %1917 = vrcp.f32 %v829_v27  ;;  %v781_v27 = vmul.f32 1.442695, %v674_v52  ;;  %v713_v35 = vmul.f32 1.442695, %v640_v57  ;;  %v645_v52 = vsub.f32 0.0, %v2385_v8 }
 0x113   :  { %v2375_v38 = vpop.f32.mrb[15].mxu1  ;;  %v1898_v39 = vpop.eup %1897  ;;  %v827_v41 = vadd.f32 1.0, %v1896_v32  ;;  %1919 = vrcp.f32 %v861_v34 }
 0x114   :  { %v1900_v49 = vpop.eup %1899  ;;  %v859_v50 = vadd.f32 1.0, %v1898_v39 }
 0x115   :  { %v1902_v55 = vpop.eup %1901  ;;  %1921 = vrcp.f32 %v827_v41  ;;  %v830_v56 = vadd.f32 1.0, %v1900_v49  ;;  %v2390_v18 = vpop.f32.mrb[16].mxu0  ;;  %v2408_v49 = vadd.f32 %v2275_v40, %v424_v23 }
 0x116   :  { %v1904_v62 = vpop.eup %1903  ;;  %1923 = vrcp.f32 %v859_v50  ;;  %v2392_v19 = vpop.f32.mrb[16].mxu1  ;;  %v953_v14 = vmul.f32 %v1902_v55, %v2278_v43  ;;  %v677_v55 = vsub.f32 0.0, %v2388_v9 }
 0x117   :  { %v1906_v4 = vpop.eup %1905  ;;  %1925 = vrcp.f32 %v830_v56  ;;  %v2395_v28 = vpop.f32.mrb[17].mxu0 }
 0x118   :  { %v1908_v58 = vpop.eup %1907  ;;  %1927 = vpow2.f32 %v2340_v63  ;;  %v2397_v32 = vpop.f32.mrb[17].mxu1  ;;  %v985_v63 = vmul.f32 %v1904_v62, %v2281_v44  ;;  %v951_v44 = vmul.f32 %v1906_v4, %v2284_v47 }
 0x119   :  { %v1910_v34 = vpop.eup %1909  ;;  %1929 = vpow2.f32 %v705_v12  ;;  %v2401_v36 = vpop.f32.mrb[18].mxu0  ;;  %v983_v57 = vmul.f32 %v1908_v58, %v2287_v48  ;;  %v723_v48 = vmul.f32 1.442695, %v645_v52  ;;  %v2460_v52 = vadd.f32 %v2369_v31, %v2275_v40 }
 0x11a   :  { %v2403_v39 = vpop.f32.mrb[18].mxu1  ;;  %v1912_v41 = vpop.eup %1911  ;;  %v954_v46 = vmul.f32 %v1910_v34, %v2292_v53  ;;  %1931 = vpow2.f32 %v769_v42 }
 0x11b   :  { %v2410_v50 = vpop.f32.mrb[19].mxu0  ;;  %v2412_v43 = vpop.f32.mrb[19].mxu1  ;;  %v986_v51 = vmul.f32 %v1912_v41, %v2295_v54  ;;  %1933 = vpow2.f32 %v715_v0  ;;  %v777_v41 = vmul.f32 1.442695, %v672_v17  ;;  %v2450_v17 = vadd.f32 %v2367_v30, %v2275_v40 }
 0x11c   :  { %v1914_v12 = vpop.eup %1913  ;;  %v1516_v53 = vpack.c.bf16 %v954_v46, %v953_v14  ;;  %1935 = vpow2.f32 %v779_v1 }
 0x11d   :  { %v1916_v56 = vpop.eup %1915  ;;  %v952_v42 = vmul.f32 %v1914_v12, %v2300_v59  ;;  %v1596_v62 = vpack.c.bf16 %v986_v51, %v985_v63  ;;  %1937 = vpow2.f32 %v711_v2  ;;  %v2431_v1 = vpop.f32.mrb[20].mxu0 }
 0x11e   :  { %v1918_v23 = vpop.eup %1917  ;;  %v984_v34 = vmul.f32 %v1916_v56, %v2303_v60  ;;  %1668 = vst [vmem:[%s2836_s3 + $0x8] sm:$0xff] %v1516_v53   ;;  %1939 = vpow2.f32 %v775_v5  ;;  %v2429_v60 = vadd.f32 %v2275_v40, %v2361_v24  ;;  %v2433_v2 = vpop.f32.mrb[20].mxu1  ;;  %v787_v5 = vmul.f32 1.442695, %v677_v55 }
 0x11f   :  { %v1920_v54 = vpop.eup %1919  ;;  %v1511_v0 = vpack.c.bf16 %v952_v42, %v951_v44  ;;  %1684 = vst [vmem:[%s2836_s3 + $0x88] sm:$0xff] %v1596_v62   ;;  %1941 = vpow2.f32 %v717_v25  ;;  %v2440_v58 = vpop.f32.mrb[21].mxu0  ;;  %v643_v24 = vsub.f32 0.0, %v2408_v49  ;;  %v957_v12 = vmul.f32 %v1918_v23, %v2310_v10 }
 0x120   :  { %v1922_v47 = vpop.eup %1921  ;;  %v1591_v59 = vpack.c.bf16 %v984_v34, %v983_v57  ;;  %1943 = vpow2.f32 %v781_v27  ;;  %v2442_v25 = vpop.f32.mrb[21].mxu1  ;;  %v675_v44 = vsub.f32 0.0, %v2429_v60  ;;  %v646_v23 = vsub.f32 0.0, %v2450_v17 }
 0x121   :  { %v2435_v4 = vpop.eup %1923  ;;  %1512 = vst [vmem:[%s2836_s3] sm:$0xff] %v1511_v0   ;;  %1945 = vpow2.f32 %v713_v35  ;;  %v2452_v63 = vpop.f32.mrb[22].mxu0  ;;  %v2471_v34 = vmul.f32 1.442695, %v643_v24  ;;  %v678_v0 = vsub.f32 0.0, %v2460_v52 }
 0x122   :  { %v1926_v14 = vpop.eup %1925  ;;  %1683 = vst [vmem:[%s2836_s3 + $0x80] sm:$0xff] %v1591_v59   ;;  %v2454_v27 = vpop.f32.mrb[22].mxu1  ;;  %1947 = vpow2.f32 %v777_v41 }
 0x123   :  { %v1928_v46 = vpop.eup %1927  ;;  %v958_v51 = vmul.f32 %v1926_v14, %v2324_v21  ;;  %v2462_v35 = vpop.f32.mrb[23].mxu0  ;;  %1949 = vpow2.f32 %v723_v48  ;;  %v2474_v48 = vmul.f32 1.442695, %v675_v44 }
 0x124   :  { %v2464_v55 = vpop.f32.mrb[23].mxu1  ;;  %v1930_v30 = vpop.eup %1929  ;;  %v862_v56 = vadd.f32 1.0, %v1928_v46  ;;  %1951 = vpow2.f32 %v787_v5  ;;  %v2478_v5 = vadd.f32 %v2275_v40, %v2373_v37 }
 0x125   :  { %v1932_v53 = vpop.eup %1931  ;;  %v1526_v42 = vpack.c.bf16 %v958_v51, %v957_v12  ;;  %v828_v57 = vadd.f32 1.0, %v1930_v30  ;;  %v2480_v14 = vpop.f32.mrb[24].mxu0  ;;  %v2485_v51 = vmul.f32 %v1920_v54, %v2313_v11  ;;  %v2489_v30 = vadd.f32 %v2275_v40, %v2375_v38 }
 0x126   :  { %v1934_v10 = vpop.eup %1933  ;;  %1953 = vrcp.f32 %v862_v56  ;;  %v860_v21 = vadd.f32 1.0, %v1932_v53  ;;  %v2482_v46 = vpop.f32.mrb[24].mxu1  ;;  %v2496_v53 = vmul.f32 %v1922_v47, %v2316_v15 }
 0x127   :  { %v1936_v31 = vpop.eup %1935  ;;  %1670 = vst [vmem:[%s2836_s3 + $0x18] sm:$0xff] %v1526_v42   ;;  %1955 = vrcp.f32 %v828_v57  ;;  %v833_v62 = vadd.f32 1.0, %v1934_v10  ;;  %v2491_v56 = vpop.f32.mrb[25].mxu0  ;;  %v2498_v57 = vmul.f32 1.442695, %v646_v23  ;;  %v2516_v23 = vmul.f32 %v2435_v4, %v2319_v16 }
 0x128   :  { %v1938_v41 = vpop.eup %1937  ;;  %1957 = vrcp.f32 %v860_v21  ;;  %v865_v59 = vadd.f32 1.0, %v1936_v31  ;;  %v2493_v44 = vpop.f32.mrb[25].mxu1  ;;  %v2504_v21 = vmul.f32 1.442695, %v678_v0  ;;  %v2508_v31 = vadd.f32 %v2390_v18, %v2275_v40 }
 0x129   :  { %v1940_v12 = vpop.eup %1939  ;;  %1959 = vrcp.f32 %v833_v62  ;;  %v831_v24 = vadd.f32 1.0, %v1938_v41  ;;  %v2500_v11 = vpop.f32.mrb[26].mxu0  ;;  %v2522_v18 = vadd.f32 %v2392_v19, %v2275_v40  ;;  %v2526_v16 = vadd.f32 %v2275_v40, %v2395_v28 }
 0x12a   :  { %v1942_v37 = vpop.eup %1941  ;;  %1961 = vrcp.f32 %v865_v59  ;;  %v863_v42 = vadd.f32 1.0, %v1940_v12  ;;  %v2502_v54 = vpop.f32.mrb[26].mxu1  ;;  %2840 = vst [vmem:[#allocation2_spill] sm:$0xff] %v2508_v31  ;;  %v644_v59 = vsub.f32 0.0, %v2478_v5  ;;  %v2530_v4 = vadd.f32 %v2275_v40, %v2397_v32 }
 0x12b   :  { %v1944_v10 = vpop.eup %1943  ;;  %1963 = vrcp.f32 %v831_v24  ;;  %v834_v38 = vadd.f32 1.0, %v1942_v37  ;;  %v2510_v62 = vpop.f32.mrb[27].mxu0  ;;  %v676_v24 = vsub.f32 0.0, %v2489_v30  ;;  %2843 = vst [vmem:[#allocation5_spill] sm:$0xff] %v2522_v18  ;;  %v2535_v19 = vadd.f32 %v2401_v36, %v2275_v40 }
 0x12c   :  { %2841 = vst [vmem:[#allocation3_spill] sm:$0xff] %v2510_v62  ;;  %v2512_v15 = vpop.f32.mrb[27].mxu1  ;;  %v1946_v47 = vpop.eup %1945  ;;  %1965 = vrcp.f32 %v863_v42  ;;  %v866_v41 = vadd.f32 1.0, %v1944_v10  ;;  %2844 = vst [vmem:[#allocation6_spill] sm:$0xff] %v2530_v4  ;;  %v2539_v28 = vadd.f32 %v2403_v39, %v2275_v40  ;;  %v2549_v36 = vadd.f32 %v2275_v40, %v2410_v50 }
 0x12d   :  { %2842 = vst [vmem:[#allocation4_spill] sm:$0xff] %v2512_v15  ;;  %v1948_v12 = vpop.eup %1947  ;;  %1967 = vrcp.f32 %v834_v38  ;;  %v832_v0 = vadd.f32 1.0, %v1946_v47  ;;  %v649_v38 = vsub.f32 0.0, %v2508_v31  ;;  %v2541_v62 = vpop.f32.mrb[28].mxu0  ;;  %v681_v31 = vsub.f32 0.0, %v2522_v18 }
 0x12e   :  { %v1950_v37 = vpop.eup %1949  ;;  %1969 = vrcp.f32 %v866_v41  ;;  %v864_v15 = vadd.f32 1.0, %v1948_v12  ;;  %v721_v12 = vmul.f32 1.442695, %v644_v59  ;;  %2845 = vst [vmem:[#allocation7_spill] sm:$0xff] %v2541_v62  ;;  %v2543_v32 = vpop.f32.mrb[28].mxu1  ;;  %v679_v62 = vsub.f32 0.0, %v2530_v4 }
 0x12f   :  { %v1952_v42 = vpop.eup %1951  ;;  %1971 = vrcp.f32 %v832_v0  ;;  %v837_v10 = vadd.f32 1.0, %v1950_v37  ;;  %2846 = vst [vmem:[#allocation8_spill] sm:$0xff] %v2543_v32  ;;  %v2553_v59 = vpop.f32.mrb[29].mxu1  ;;  %v647_v32 = vsub.f32 0.0, %v2526_v16  ;;  %v785_v4 = vmul.f32 1.442695, %v676_v24 }
 0x130   :  { %v1954_v47 = vpop.eup %1953  ;;  %1973 = vrcp.f32 %v864_v15  ;;  %v869_v41 = vadd.f32 1.0, %v1952_v42  ;;  %v2551_v15 = vpop.f32.mrb[29].mxu0  ;;  %2848 = vst [vmem:[#allocation10_spill] sm:$0xff] %v2553_v59  ;;  %v650_v59 = vsub.f32 0.0, %v2535_v19  ;;  %v791_v24 = vmul.f32 1.442695, %v679_v62 }
 0x131   :  { %v1956_v0 = vpop.eup %1955  ;;  %v990_v37 = vmul.f32 %v1954_v47, %v2329_v26  ;;  %1975 = vrcp.f32 %v837_v10  ;;  %2847 = vst [vmem:[#allocation9_spill] sm:$0xff] %v2551_v15  ;;  %v2558_v26 = vpop.f32.mrb[30].mxu0 }
 0x132   :  { %v1958_v39 = vpop.eup %1957  ;;  %v956_v42 = vmul.f32 %v1956_v0, %v2333_v33  ;;  %1977 = vrcp.f32 %v869_v41  ;;  %2849 = vst [vmem:[#allocation11_spill] sm:$0xff] %v2558_v26  ;;  %v2560_v10 = vpop.f32.mrb[30].mxu1 }
 0x133   :  { %2850 = vst [vmem:[#allocation12_spill] sm:$0xff] %v2560_v10  ;;  %v1960_v47 = vpop.eup %1959  ;;  %v1606_v50 = vpack.c.bf16 %v990_v37, %v2485_v51  ;;  %v988_v18 = vmul.f32 %v1958_v39, %v2337_v45  ;;  %1979 = vpow2.f32 %v2471_v34  ;;  %v2566_v15 = vpop.f32.mrb[31].mxu0  ;;  %v682_v10 = vsub.f32 0.0, %v2539_v28 }
 0x134   :  { %v2568_v33 = vpop.f32.mrb[31].mxu1  ;;  %v1962_v41 = vpop.eup %1961  ;;  %v1521_v0 = vpack.c.bf16 %v956_v42, %v2496_v53  ;;  %1981 = vpow2.f32 %v2474_v48  ;;  %v731_v34 = vmul.f32 1.442695, %v649_v38  ;;  %v648_v51 = vsub.f32 0.0, %v2549_v36 }
 0x135   :  { %2851 = vst [vmem:[#allocation13_spill] sm:$0xff] %v2568_v33  ;;  %v1964_v26 = vpop.eup %1963  ;;  %1686 = vst [vmem:[%s2836_s3 + $0x98] sm:$0xff] %v1606_v50   ;;  %v1601_v45 = vpack.c.bf16 %v988_v18, %v2516_v23  ;;  %1983 = vpow2.f32 %v2498_v57  ;;  %v795_v48 = vmul.f32 1.442695, %v681_v31  ;;  %v727_v23 = vmul.f32 1.442695, %v647_v32 }
 0x136   :  { %v1966_v37 = vpop.eup %1965  ;;  %1669 = vst [vmem:[%s2836_s3 + $0x10] sm:$0xff] %v1521_v0   ;;  %1985 = vpow2.f32 %v2504_v21  ;;  %v733_v57 = vmul.f32 1.442695, %v650_v59  ;;  %v961_v38 = vmul.f32 %v1960_v47, %v2344_v3  ;;  %v797_v42 = vmul.f32 1.442695, %v682_v10 }
 0x137   :  { %v1968_v53 = vpop.eup %1967  ;;  %1685 = vst [vmem:[%s2836_s3 + $0x90] sm:$0xff] %v1601_v45   ;;  %1987 = vpow2.f32 %v721_v12  ;;  %v993_v21 = vmul.f32 %v1962_v41, %v2347_v6  ;;  %v729_v0 = vmul.f32 1.442695, %v648_v51  ;;  %v959_v12 = vmul.f32 %v1964_v26, %v2350_v7 }
 0x138   :  { %v1970_v18 = vpop.eup %1969  ;;  %v962_v39 = vmul.f32 %v1968_v53, %v2356_v20  ;;  %1989 = vpow2.f32 %v785_v4  ;;  %v991_v3 = vmul.f32 %v1966_v37, %v2353_v13  ;;  %v2603_v7 = vadd.f32 %v2275_v40, %v2412_v43 }
 0x139   :  { %v1972_v50 = vpop.eup %1971  ;;  %v994_v31 = vmul.f32 %v1970_v18, %v2359_v22  ;;  %1991 = vpow2.f32 %v731_v34  ;;  %v2617_v43 = vadd.f32 %v2433_v2, %v2275_v40 }
 0x13a   :  { %v1974_v33 = vpop.eup %1973  ;;  %v1536_v32 = vpack.c.bf16 %v962_v39, %v961_v38  ;;  %v960_v62 = vmul.f32 %v1972_v50, %v2365_v29  ;;  %1993 = vpow2.f32 %v795_v48  ;;  %v2607_v29 = vadd.f32 %v2431_v1, %v2275_v40 }
 0x13b   :  { %v2592_v59 = vpop.eup %1975  ;;  %v1616_v20 = vpack.c.bf16 %v994_v31, %v993_v21  ;;  %v992_v4 = vmul.f32 %v1974_v33, %v2382_v61  ;;  %1995 = vpow2.f32 %v727_v23  ;;  %v2621_v1 = vadd.f32 %v2275_v40, %v2440_v58 }
 0x13c   :  { %v2596_v6 = vpop.eup %1977  ;;  %1672 = vst [vmem:[%s2836_s3 + $0x28] sm:$0xff] %v1536_v32   ;;  %v1531_v22 = vpack.c.bf16 %v960_v62, %v959_v12  ;;  %1997 = vpow2.f32 %v791_v24  ;;  %v680_v34 = vsub.f32 0.0, %v2603_v7  ;;  %v653_v51 = vsub.f32 0.0, %v2607_v29 }
 0x13d   :  { %v1980_v13 = vpop.eup %1979  ;;  %1688 = vst [vmem:[%s2836_s3 + $0xa8] sm:$0xff] %v1616_v20   ;;  %v1611_v61 = vpack.c.bf16 %v992_v4, %v991_v3  ;;  %1999 = vpow2.f32 %v733_v57  ;;  %v2630_v58 = vadd.f32 %v2275_v40, %v2442_v25  ;;  %v685_v23 = vsub.f32 0.0, %v2617_v43 }
 0x13e   :  { %v1982_v26 = vpop.eup %1981  ;;  %1671 = vst [vmem:[%s2836_s3 + $0x20] sm:$0xff] %v1531_v22   ;;  %v835_v10 = vadd.f32 1.0, %v1980_v13  ;;  %2001 = vpow2.f32 %v797_v42  ;;  %v651_v24 = vsub.f32 0.0, %v2621_v1  ;;  %v2636_v38 = vadd.f32 %v2452_v63, %v2275_v40 }
 0x13f   :  { %v1984_v47 = vpop.eup %1983  ;;  %1687 = vst [vmem:[%s2836_s3 + $0xa0] sm:$0xff] %v1611_v61   ;;  %v867_v33 = vadd.f32 1.0, %v1982_v26  ;;  %2003 = vpow2.f32 %v729_v0  ;;  %v2640_v39 = vadd.f32 %v2454_v27, %v2275_v40  ;;  %v793_v50 = vmul.f32 1.442695, %v680_v34 }
 0x140   :  { %v1986_v41 = vpop.eup %1985  ;;  %2005 = vrcp.f32 %v835_v10  ;;  %v838_v45 = vadd.f32 1.0, %v1984_v47  ;;  %v739_v21 = vmul.f32 1.442695, %v653_v51  ;;  %v683_v12 = vsub.f32 0.0, %v2630_v58 }
 0x141   :  { %v1988_v2 = vpop.eup %1987  ;;  %2007 = vrcp.f32 %v867_v33  ;;  %v870_v37 = vadd.f32 1.0, %v1986_v41  ;;  %v2645_v32 = vadd.f32 %v2275_v40, %v2462_v35  ;;  %v803_v3 = vmul.f32 1.442695, %v685_v23 }
 0x142   :  { %v1990_v48 = vpop.eup %1989  ;;  %2009 = vrcp.f32 %v838_v45  ;;  %v836_v53 = vadd.f32 1.0, %v1988_v2  ;;  %v735_v27 = vmul.f32 1.442695, %v651_v24  ;;  %v654_v22 = vsub.f32 0.0, %v2636_v38 }
 0x143   :  { %v1992_v57 = vpop.eup %1991  ;;  %2011 = vrcp.f32 %v870_v37  ;;  %v868_v18 = vadd.f32 1.0, %v1990_v48  ;;  %v686_v13 = vsub.f32 0.0, %v2640_v39  ;;  %v2651_v10 = vadd.f32 %v2275_v40, %v2464_v55 }
 0x144   :  { %v1994_v25 = vpop.eup %1993  ;;  %2013 = vrcp.f32 %v836_v53  ;;  %v841_v42 = vadd.f32 1.0, %v1992_v57  ;;  %v2655_v35 = vadd.f32 %v2480_v14, %v2275_v40  ;;  %v799_v41 = vmul.f32 1.442695, %v683_v12 }
 0x145   :  { %v1996_v31 = vpop.eup %1995  ;;  %2015 = vrcp.f32 %v868_v18  ;;  %v873_v0 = vadd.f32 1.0, %v1994_v25  ;;  %v652_v45 = vsub.f32 0.0, %v2645_v32  ;;  %v2660_v2 = vadd.f32 %v2482_v46, %v2275_v40 }
 0x146   :  { %v1998_v63 = vpop.eup %1997  ;;  %2017 = vrcp.f32 %v841_v42  ;;  %v839_v62 = vadd.f32 1.0, %v1996_v31  ;;  %v2664_v55 = vadd.f32 %v2275_v40, %v2491_v56  ;;  %v965_v14 = vmul.f32 %v2592_v59, %v2385_v8 }
 0x147   :  { %v2000_v20 = vpop.eup %1999  ;;  %2019 = vrcp.f32 %v873_v0  ;;  %v871_v4 = vadd.f32 1.0, %v1998_v63  ;;  %v741_v48 = vmul.f32 1.442695, %v654_v22  ;;  %v805_v53 = vmul.f32 1.442695, %v686_v13 }
 0x148   :  { %v2002_v61 = vpop.eup %2001  ;;  %2021 = vrcp.f32 %v839_v62  ;;  %v842_v26 = vadd.f32 1.0, %v2000_v20  ;;  %v997_v24 = vmul.f32 %v2596_v6, %v2388_v9  ;;  %v684_v57 = vsub.f32 0.0, %v2651_v10 }
 0x149   :  { %v2004_v47 = vpop.eup %2003  ;;  %2023 = vrcp.f32 %v871_v4  ;;  %v874_v33 = vadd.f32 1.0, %v2002_v61  ;;  %v657_v46 = vsub.f32 0.0, %v2655_v35  ;;  %v737_v25 = vmul.f32 1.442695, %v652_v45 }
 0x14a   :  { %v2006_v34 = vpop.eup %2005  ;;  %2025 = vrcp.f32 %v842_v26  ;;  %v840_v51 = vadd.f32 1.0, %v2004_v47  ;;  %v2675_v8 = vadd.f32 %v2275_v40, %v2493_v44  ;;  %v689_v9 = vsub.f32 0.0, %v2660_v2  ;;  %v2852_v47 = vld [vmem:[#allocation2_spill] sm:$0xff] }
 0x14b   :  { %v2008_v37 = vpop.eup %2007  ;;  %2027 = vrcp.f32 %v874_v33  ;;  %v655_v6 = vsub.f32 0.0, %v2664_v55  ;;  %v963_v0 = vmul.f32 %v2006_v34, %v2408_v49  ;;  %v801_v20 = vmul.f32 1.442695, %v684_v57 }
 0x14c   :  { %v2010_v23 = vpop.eup %2009  ;;  %2029 = vrcp.f32 %v840_v51  ;;  %v995_v63 = vmul.f32 %v2008_v37, %v2429_v60  ;;  %v687_v49 = vsub.f32 0.0, %v2675_v8  ;;  %v2701_v13 = vadd.f32 %v2500_v11, %v2275_v40  ;;  %v2853_v51 = vld [vmem:[#allocation5_spill] sm:$0xff] }
 0x14d   :  { %v2012_v18 = vpop.eup %2011  ;;  %v966_v56 = vmul.f32 %v2010_v23, %v2450_v17  ;;  %2031 = vpow2.f32 %v793_v50  ;;  %v743_v22 = vmul.f32 1.442695, %v655_v6  ;;  %v2705_v61 = vadd.f32 %v2502_v54, %v2275_v40 }
 0x14e   :  { %v2014_v59 = vpop.eup %2013  ;;  %v998_v42 = vmul.f32 %v2012_v18, %v2460_v52  ;;  %2033 = vpow2.f32 %v739_v21  ;;  %v807_v45 = vmul.f32 1.442695, %v687_v49 }
 0x14f   :  { %v2016_v31 = vpop.eup %2015  ;;  %v1546_v12 = vpack.c.bf16 %v966_v56, %v965_v14  ;;  %v964_v17 = vmul.f32 %v2014_v59, %v2478_v5  ;;  %2035 = vpow2.f32 %v803_v3  ;;  %v747_v5 = vmul.f32 1.442695, %v657_v46  ;;  %v2131_v59 = vld [vmem:[%s2835_s2] ss:$0 sm:$0xff] }
 0x150   :  { %v2018_v50 = vpop.eup %2017  ;;  %v1626_v44 = vpack.c.bf16 %v998_v42, %v997_v24  ;;  %v996_v62 = vmul.f32 %v2016_v31, %v2489_v30  ;;  %2037 = vpow2.f32 %v735_v27  ;;  %v811_v3 = vmul.f32 1.442695, %v689_v9  ;;  %v2854_v42 = vld [vmem:[#allocation3_spill] sm:$0xff] }
 0x151   :  { %v2020_v52 = vpop.eup %2019  ;;  %1674 = vst [vmem:[%s2836_s3 + $0x38] sm:$0xff] %v1546_v12   ;;  %v1541_v21 = vpack.c.bf16 %v964_v17, %v963_v0  ;;  %2039 = vpow2.f32 %v799_v41  ;;  %v969_v33 = vmul.f32 %v2018_v50, %v2852_v47  ;;  %v2728_v9 = vadd.f32 %v2131_v59, %v2854_v42 }
 0x152   :  { %v2022_v4 = vpop.eup %2021  ;;  %1690 = vst [vmem:[%s2836_s3 + $0xb8] sm:$0xff] %v1626_v44   ;;  %v1621_v60 = vpack.c.bf16 %v996_v62, %v995_v63  ;;  %2041 = vpow2.f32 %v741_v48  ;;  %v1001_v37 = vmul.f32 %v2020_v52, %v2853_v51  ;;  %v2855_v62 = vld [vmem:[#allocation4_spill] sm:$0xff]  ;;  %v2860_v51 = vld [vmem:[#allocation11_spill] sm:$0xff] }
 0x153   :  { %v2691_v30 = vpop.eup %2023  ;;  %1673 = vst [vmem:[%s2836_s3 + $0x30] sm:$0xff] %v1541_v21   ;;  %2043 = vpow2.f32 %v805_v53  ;;  %v967_v11 = vmul.f32 %v2022_v4, %v2526_v16  ;;  %v690_v16 = vsub.f32 0.0, %v2705_v61  ;;  %v2731_v52 = vadd.f32 %v2131_v59, %v2855_v62  ;;  %v2856_v21 = vld [vmem:[#allocation7_spill] sm:$0xff] }
 0x154   :  { %v2026_v27 = vpop.eup %2025  ;;  %1689 = vst [vmem:[%s2836_s3 + $0xb0] sm:$0xff] %v1621_v60   ;;  %2045 = vpow2.f32 %v737_v25  ;;  %v656_v60 = vsub.f32 0.0, %v2728_v9 }
 0x155   :  { %v2028_v26 = vpop.eup %2027  ;;  %v970_v41 = vmul.f32 %v2026_v27, %v2535_v19  ;;  %2047 = vpow2.f32 %v801_v20  ;;  %v658_v19 = vsub.f32 0.0, %v2701_v13  ;;  %v813_v50 = vmul.f32 1.442695, %v690_v16  ;;  %v2862_v16 = vld [vmem:[#allocation6_spill] sm:$0xff] }
 0x156   :  { %v2030_v34 = vpop.eup %2029  ;;  %v1002_v14 = vmul.f32 %v2028_v26, %v2539_v28  ;;  %2049 = vpow2.f32 %v747_v5  ;;  %v2734_v20 = vadd.f32 %v2131_v59, %v2856_v21  ;;  %v2857_v5 = vld [vmem:[#allocation8_spill] sm:$0xff]  ;;  %v2858_v26 = vld [vmem:[#allocation9_spill] sm:$0xff] }
 0x157   :  { %v2032_v48 = vpop.eup %2031  ;;  %v1556_v53 = vpack.c.bf16 %v970_v41, %v969_v33  ;;  %v968_v40 = vmul.f32 %v2030_v34, %v2549_v36  ;;  %2051 = vpow2.f32 %v811_v3  ;;  %v749_v17 = vmul.f32 1.442695, %v658_v19  ;;  %v2859_v33 = vld [vmem:[#allocation10_spill] sm:$0xff] }
 0x158   :  { %v2034_v54 = vpop.eup %2033  ;;  %v1636_v23 = vpack.c.bf16 %v1002_v14, %v1001_v37  ;;  %v872_v24 = vadd.f32 1.0, %v2032_v48  ;;  %2053 = vpow2.f32 %v743_v22  ;;  %v2738_v3 = vadd.f32 %v2131_v59, %v2857_v5  ;;  %v2861_v14 = vld [vmem:[#allocation12_spill] sm:$0xff] }
 0x159   :  { %v2036_v57 = vpop.eup %2035  ;;  %1676 = vst [vmem:[%s2836_s3 + $0x48] sm:$0xff] %v1556_v53   ;;  %v1551_v28 = vpack.c.bf16 %v968_v40, %v967_v11  ;;  %v845_v46 = vadd.f32 1.0, %v2034_v54  ;;  %2055 = vpow2.f32 %v807_v45  ;;  %v2741_v47 = vadd.f32 %v2131_v59, %v2858_v26 }
 0x15a   :  { %v2038_v18 = vpop.eup %2037  ;;  %1692 = vst [vmem:[%s2836_s3 + $0xc8] sm:$0xff] %v1636_v23   ;;  %2057 = vrcp.f32 %v872_v24  ;;  %v877_v36 = vadd.f32 1.0, %v2036_v57  ;;  %v2744_v41 = vadd.f32 %v2131_v59, %v2859_v33  ;;  %v2747_v37 = vadd.f32 %v2131_v59, %v2860_v51 }
 0x15b   :  { %v2040_v56 = vpop.eup %2039  ;;  %1675 = vst [vmem:[%s2836_s3 + $0x40] sm:$0xff] %v1551_v28   ;;  %2059 = vrcp.f32 %v845_v46  ;;  %v843_v25 = vadd.f32 1.0, %v2038_v18  ;;  %v2750_v48 = vadd.f32 %v2131_v59, %v2861_v14  ;;  %v688_v40 = vsub.f32 0.0, %v2731_v52 }
 0x15c   :  { %v2042_v6 = vpop.eup %2041  ;;  %2061 = vrcp.f32 %v877_v36  ;;  %v875_v31 = vadd.f32 1.0, %v2040_v56  ;;  %v661_v54 = vsub.f32 0.0, %v2734_v20  ;;  %v745_v19 = vmul.f32 1.442695, %v656_v60 }
 0x15d   :  { %v2044_v0 = vpop.eup %2043  ;;  %2063 = vrcp.f32 %v843_v25  ;;  %v846_v12 = vadd.f32 1.0, %v2042_v6  ;;  %v693_v57 = vsub.f32 0.0, %v2738_v3  ;;  %v2756_v28 = vadd.f32 %v2131_v59, %v2566_v15 }
 0x15e   :  { %v2046_v63 = vpop.eup %2045  ;;  %2065 = vrcp.f32 %v875_v31  ;;  %v878_v44 = vadd.f32 1.0, %v2044_v0  ;;  %v999_v18 = vmul.f32 %v2691_v30, %v2862_v16  ;;  %v659_v36 = vsub.f32 0.0, %v2741_v47 }
 0x15f   :  { %v2048_v49 = vpop.eup %2047  ;;  %2067 = vrcp.f32 %v846_v12  ;;  %v844_v4 = vadd.f32 1.0, %v2046_v63  ;;  %v691_v56 = vsub.f32 0.0, %v2744_v41  ;;  %v662_v6 = vsub.f32 0.0, %v2747_v37  ;;  %v2863_v12 = vld [vmem:[#allocation13_spill] sm:$0xff] }
 0x160   :  { %v2050_v27 = vpop.eup %2049  ;;  %2069 = vrcp.f32 %v878_v44  ;;  %v876_v22 = vadd.f32 1.0, %v2048_v49  ;;  %v694_v31 = vsub.f32 0.0, %v2750_v48  ;;  %v809_v15 = vmul.f32 1.442695, %v688_v40 }
 0x161   :  { %v2052_v45 = vpop.eup %2051  ;;  %2071 = vrcp.f32 %v844_v4  ;;  %v849_v34 = vadd.f32 1.0, %v2050_v27  ;;  %v2766_v63 = vadd.f32 %v2131_v59, %v2863_v12  ;;  %v755_v62 = vmul.f32 1.442695, %v661_v54 }
 0x162   :  { %v2054_v11 = vpop.eup %2053  ;;  %2073 = vrcp.f32 %v876_v22  ;;  %v881_v53 = vadd.f32 1.0, %v2052_v45  ;;  %v660_v21 = vsub.f32 0.0, %v2756_v28  ;;  %v751_v4 = vmul.f32 1.442695, %v659_v36 }
 0x163   :  { %v2056_v23 = vpop.eup %2055  ;;  %v847_v24 = vadd.f32 1.0, %v2054_v11  ;;  %2075 = vrcp.f32 %v849_v34  ;;  %v815_v5 = vmul.f32 1.442695, %v691_v56  ;;  %v757_v27 = vmul.f32 1.442695, %v662_v6 }
 0x164   :  { %v2058_v46 = vpop.eup %2057  ;;  %2077 = vrcp.f32 %v881_v53  ;;  %v821_v59 = vmul.f32 1.442695, %v694_v31  ;;  %v692_v33 = vsub.f32 0.0, %v2766_v63  ;;  %v753_v51 = vmul.f32 1.442695, %v660_v21 }
 0x165   :  { %v2060_v25 = vpop.eup %2059  ;;  %v1000_v42 = vmul.f32 %v2058_v46, %v2603_v7  ;;  %2079 = vrcp.f32 %v847_v24  ;;  %v819_v7 = vmul.f32 1.442695, %v693_v57 }
 0x166   :  { %v2062_v0 = vpop.eup %2061  ;;  %2081 = vpow2.f32 %v749_v17  ;;  %v973_v26 = vmul.f32 %v2060_v25, %v2607_v29 }
 0x167   :  { %v2064_v30 = vpop.eup %2063  ;;  %v1631_v44 = vpack.c.bf16 %v1000_v42, %v999_v18  ;;  %2083 = vpow2.f32 %v813_v50  ;;  %v1005_v45 = vmul.f32 %v2062_v0, %v2617_v43 }
 0x168   :  { %v2066_v49 = vpop.eup %2065  ;;  %2085 = vpow2.f32 %v745_v19  ;;  %v971_v11 = vmul.f32 %v2064_v30, %v2621_v1 }
 0x169   :  { %v2068_v60 = vpop.eup %2067  ;;  %1691 = vst [vmem:[%s2836_s3 + $0xc0] sm:$0xff] %v1631_v44   ;;  %2087 = vpow2.f32 %v809_v15  ;;  %v1003_v29 = vmul.f32 %v2066_v49, %v2630_v58 }
 0x16a   :  { %v2070_v22 = vpop.eup %2069  ;;  %v974_v17 = vmul.f32 %v2068_v60, %v2636_v38  ;;  %2089 = vpow2.f32 %v755_v62 }
 0x16b   :  { %v2072_v50 = vpop.eup %2071  ;;  %v1006_v34 = vmul.f32 %v2070_v22, %v2640_v39  ;;  %2091 = vpow2.f32 %v819_v7  ;;  %v817_v39 = vmul.f32 1.442695, %v692_v33 }
 0x16c   :  { %v2074_v14 = vpop.eup %2073  ;;  %v1566_v53 = vpack.c.bf16 %v974_v17, %v973_v26  ;;  %v972_v40 = vmul.f32 %v2072_v50, %v2645_v32  ;;  %2093 = vpow2.f32 %v751_v4  ;;  %v879_v32 = vadd.f32 1.0, %v2056_v23 }
 0x16d   :  { %v1646_v38 = vpack.c.bf16 %v1006_v34, %v1005_v45  ;;  %v1004_v54 = vmul.f32 %v2074_v14, %v2651_v10  ;;  %v2076_v24 = vpop.eup %2075  ;;  %2095 = vpow2.f32 %v815_v5 }
 0x16e   :  { %1678 = vst [vmem:[%s2836_s3 + $0x58] sm:$0xff] %v1566_v53   ;;  %v1561_v43 = vpack.c.bf16 %v972_v40, %v971_v11  ;;  %v2078_v19 = vpop.eup %2077  ;;  %2097 = vpow2.f32 %v757_v27  ;;  %v977_v26 = vmul.f32 %v2076_v24, %v2655_v35 }
 0x16f   :  { %1694 = vst [vmem:[%s2836_s3 + $0xd8] sm:$0xff] %v1646_v38   ;;  %v1641_v1 = vpack.c.bf16 %v1004_v54, %v1003_v29  ;;  %v2080_v58 = vpop.eup %2079  ;;  %2099 = vpow2.f32 %v821_v59  ;;  %v1009_v50 = vmul.f32 %v2078_v19, %v2660_v2 }
 0x170   :  { %1677 = vst [vmem:[%s2836_s3 + $0x50] sm:$0xff] %v1561_v43   ;;  %v2082_v10 = vpop.eup %2081  ;;  %2101 = vpow2.f32 %v753_v51  ;;  %v975_v51 = vmul.f32 %v2080_v58, %v2664_v55 }
 0x171   :  { %1693 = vst [vmem:[%s2836_s3 + $0xd0] sm:$0xff] %v1641_v1   ;;  %v2084_v57 = vpop.eup %2083  ;;  %v850_v46 = vadd.f32 1.0, %v2082_v10  ;;  %2103 = vpow2.f32 %v817_v39 }
 0x172   :  { %v2086_v16 = vpop.eup %2085  ;;  %2105 = vrcp.f32 %v879_v32  ;;  %v882_v18 = vadd.f32 1.0, %v2084_v57 }
 0x173   :  { %v2088_v23 = vpop.eup %2087  ;;  %2107 = vrcp.f32 %v850_v46  ;;  %v848_v36 = vadd.f32 1.0, %v2086_v16 }
 0x174   :  { %v2090_v56 = vpop.eup %2089  ;;  %2109 = vrcp.f32 %v882_v18  ;;  %v880_v25 = vadd.f32 1.0, %v2088_v23 }
 0x175   :  { %v2092_v42 = vpop.eup %2091  ;;  %2111 = vrcp.f32 %v848_v36  ;;  %v853_v6 = vadd.f32 1.0, %v2090_v56 }
 0x176   :  { %v2094_v31 = vpop.eup %2093  ;;  %2113 = vrcp.f32 %v880_v25  ;;  %v885_v0 = vadd.f32 1.0, %v2092_v42 }
 0x177   :  { %v2096_v15 = vpop.eup %2095  ;;  %2115 = vrcp.f32 %v853_v6  ;;  %v851_v12 = vadd.f32 1.0, %v2094_v31 }
 0x178   :  { %v2098_v30 = vpop.eup %2097  ;;  %2117 = vrcp.f32 %v885_v0  ;;  %v883_v44 = vadd.f32 1.0, %v2096_v15 }
 0x179   :  { %v2100_v62 = vpop.eup %2099  ;;  %2119 = vrcp.f32 %v851_v12  ;;  %v854_v21 = vadd.f32 1.0, %v2098_v30 }
 0x17a   :  { %v2102_v49 = vpop.eup %2101  ;;  %2121 = vrcp.f32 %v883_v44  ;;  %v886_v7 = vadd.f32 1.0, %v2100_v62 }
 0x17b   :  { %v2104_v4 = vpop.eup %2103  ;;  %2123 = vrcp.f32 %v854_v21  ;;  %v852_v60 = vadd.f32 1.0, %v2102_v49 }
 0x17c   :  { %v2106_v5 = vpop.eup %2105  ;;  %2125 = vrcp.f32 %v886_v7  ;;  %v884_v27 = vadd.f32 1.0, %v2104_v4 }
 0x17d   :  { %v2108_v59 = vpop.eup %2107  ;;  %2127 = vrcp.f32 %v852_v60  ;;  %v1007_v40 = vmul.f32 %v2106_v5, %v2675_v8 }
 0x17e   :  { %v2110_v22 = vpop.eup %2109  ;;  %v978_v17 = vmul.f32 %v2108_v59, %v2701_v13  ;;  %2129 = vrcp.f32 %v884_v27 }
 0x17f   :  { %v2112_v33 = vpop.eup %2111  ;;  %v1010_v45 = vmul.f32 %v2110_v22, %v2705_v61 }
 0x180   :  { %v2114_v34 = vpop.eup %2113  ;;  %v1576_v14 = vpack.c.bf16 %v978_v17, %v977_v26  ;;  %v976_v11 = vmul.f32 %v2112_v33, %v2728_v9 }
 0x181   :  { %v2116_v53 = vpop.eup %2115  ;;  %v1656_v29 = vpack.c.bf16 %v1010_v45, %v1009_v50  ;;  %v1008_v35 = vmul.f32 %v2114_v34, %v2731_v52 }
 0x182   :  { %v2118_v38 = vpop.eup %2117  ;;  %1680 = vst [vmem:[%s2836_s3 + $0x68] sm:$0xff] %v1576_v14   ;;  %v1571_v2 = vpack.c.bf16 %v976_v11, %v975_v51  ;;  %v981_v52 = vmul.f32 %v2116_v53, %v2734_v20 }
 0x183   :  { %v2120_v13 = vpop.eup %2119  ;;  %1696 = vst [vmem:[%s2836_s3 + $0xe8] sm:$0xff] %v1656_v29   ;;  %v1651_v55 = vpack.c.bf16 %v1008_v35, %v1007_v40  ;;  %v1013_v43 = vmul.f32 %v2118_v38, %v2738_v3 }
 0x184   :  { %v2122_v61 = vpop.eup %2121  ;;  %1679 = vst [vmem:[%s2836_s3 + $0x60] sm:$0xff] %v1571_v2   ;;  %v979_v1 = vmul.f32 %v2120_v13, %v2741_v47 }
 0x185   :  { %v2124_v8 = vpop.eup %2123  ;;  %1695 = vst [vmem:[%s2836_s3 + $0xe0] sm:$0xff] %v1651_v55   ;;  %v1011_v10 = vmul.f32 %v2122_v61, %v2744_v41 }
 0x186   :  { %v2126_v9 = vpop.eup %2125  ;;  %v982_v54 = vmul.f32 %v2124_v8, %v2747_v37 }
 0x187   :  { %v2128_v24 = vpop.eup %2127  ;;  %v1014_v39 = vmul.f32 %v2126_v9, %v2750_v48 }
 0x188   :  { %v2130_v19 = vpop.eup %2129  ;;  %v1586_v32 = vpack.c.bf16 %v982_v54, %v981_v52  ;;  %v980_v58 = vmul.f32 %v2128_v24, %v2756_v28 }
 0x189   :  { %v1666_v57 = vpack.c.bf16 %v1014_v39, %v1013_v43  ;;  %v1012_v46 = vmul.f32 %v2130_v19, %v2766_v63 }
 0x18a   :  { %1682 = vst [vmem:[%s2836_s3 + $0x78] sm:$0xff] %v1586_v32   ;;  %v1581_v20 = vpack.c.bf16 %v980_v58, %v979_v1 }
 0x18b   :  { %1698 = vst [vmem:[%s2836_s3 + $0xf8] sm:$0xff] %v1666_v57   ;;  %v1661_v3 = vpack.c.bf16 %v1012_v46, %v1011_v10 }
 0x18c   :  { %1681 = vst [vmem:[%s2836_s3 + $0x70] sm:$0xff] %v1581_v20  }
 0x18d   :  { %1697 = vst [vmem:[%s2836_s3 + $0xf0] sm:$0xff] %v1661_v3  }

// kernel: _lambda_.7
= control target key start
LH: loop header
LB: loop body
LE: loop exit
PB: predicated region body
PF: predicated region fallthrough
CT: control target
= control target key end

     0   :  { %s5846_s15 = smov 0   ;;  %s5848_s16 = smov 0   ;;  %s7240_s0 = inlined_call_operand.vmem [shape: bf16[2,18,18,128], index: 0, kind: input, shape index: {}]   ;;  %s7241_s1 = inlined_call_operand.vmem [shape: bf16[9,128,128], index: 1, kind: input, shape index: {}]   ;;  %s7242_s2 = inlined_call_operand.vmem [shape: f32[1,128], index: 2, kind: input, shape index: {}]   ;;  %s7243_s3 = inlined_call_operand.vmem [shape: bf16[2,16,16,256], index: 3, kind: input, shape index: {}]   ;;  %s7244_s4 = inlined_call_operand.vmem [shape: bf16[2,16,16,128], index: 4, kind: output, shape index: {}]  }
   0x1   :  { %s5850_s17 = smov 0  }
   0x2 LB: > { %s4090_s18 = sadd.s32 4294967295, %s5819_s17   ;;  %s5863_s19 = sadd.s32 1, %s5819_s17   ;;  %s5819_s17 = sphi %s5850_s17, %s7290_s17   ;;  %s5815_s16 = sphi %s5848_s16, %s7289_s16   ;;  %s5811_s15 = sphi %s5846_s15, %s7288_s15  }
   0x3   : > { %s86_s20 = ssub.s32 %s5819_s17, %s5863_s19  ;;  %s89_s21 = sadd.s32 1, %s5815_s16 }
   0x4   : > { %p87_p0 = scmp.eq.s32.totalorder %s86_s20, 0  ;;  %p96_p1 = scmp.ne.s32.totalorder %s5815_s16, %s5811_s15 }
   0x5   : > { %p97_p2 = scmp.eq.s32.totalorder %s5819_s17, 0  ;;  %p4093_p4 = scmp.ge.s32.totalorder %s5819_s17, 2 }
   0x6   : > { %s5872_s22 = scalar_select %p87_p0, %s5815_s16, %s89_s21  }
   0x7   : > { %p98_p3 = por %p97_p2, %p96_p1  ;;  %154 = sbr.rel (%p4093_p4) target bundleno = 39 (0x27), region = 24 }
   0xe   : > { %165 = sbr.rel (!%p98_p3) target bundleno = 39 (0x27), region = 32  ;;  %s167_s23 = sand.u32 (%p98_p3), 1, %s5815_s16  }
   0xf   : > { %s4409_s24 = sshll.u32 (%p98_p3), %s5819_s17, 8  ;;  %s4094_s25 = sshll.u32 (%p98_p3), %s167_s23, 7 }
  0x10   : > { %s5880_s28 = scalar_lea.vmem (%p98_p3), %s7243_s3, %s4409_s24  ;;  %s5884_s29 = scalar_lea.vmem (%p98_p3), [#allocation2], %s4094_s25 }
  0x11   : > { %v188_v0 = vld [vmem:[%s5880_s28] sm:$0xf] (%p98_p3)  ;;  %v190_v1 = vld [vmem:[%s5880_s28 + $0x8] sm:$0xf] (%p98_p3)  ;;  %v192_v2 = vld [vmem:[%s5880_s28 + $0x10] sm:$0xf] (%p98_p3) }
  0x12   : > { %189 = vst [vmem:[%s5884_s29] sm:$0xf] (%p98_p3), %v188_v0  ;;  %191 = vst [vmem:[%s5884_s29 + $0x4] sm:$0xf] (%p98_p3), %v190_v1  ;;  %v194_v3 = vld [vmem:[%s5880_s28 + $0x18] sm:$0xf] (%p98_p3) }
  0x13   : > { %v196_v4 = vld [vmem:[%s5880_s28 + $0x20] sm:$0xf] (%p98_p3)  ;;  %193 = vst [vmem:[%s5884_s29 + $0x8] sm:$0xf] (%p98_p3), %v192_v2  ;;  %195 = vst [vmem:[%s5884_s29 + $0xc] sm:$0xf] (%p98_p3), %v194_v3 }
  0x14   : > { %197 = vst [vmem:[%s5884_s29 + $0x10] sm:$0xf] (%p98_p3), %v196_v4  ;;  %v198_v5 = vld [vmem:[%s5880_s28 + $0x28] sm:$0xf] (%p98_p3)  ;;  %v200_v6 = vld [vmem:[%s5880_s28 + $0x30] sm:$0xf] (%p98_p3) }
  0x15   : > { %v202_v7 = vld [vmem:[%s5880_s28 + $0x38] sm:$0xf]  ;;  %199 = vst [vmem:[%s5884_s29 + $0x14] sm:$0xf] %v198_v5  ;;  %201 = vst [vmem:[%s5884_s29 + $0x18] sm:$0xf] %v200_v6 }
  0x16   : > { %203 = vst [vmem:[%s5884_s29 + $0x1c] sm:$0xf] %v202_v7  ;;  %v204_v8 = vld [vmem:[%s5880_s28 + $0x40] sm:$0xf]  ;;  %v206_v9 = vld [vmem:[%s5880_s28 + $0x48] sm:$0xf] }
  0x17   : > { %v208_v10 = vld [vmem:[%s5880_s28 + $0x50] sm:$0xf]  ;;  %205 = vst [vmem:[%s5884_s29 + $0x20] sm:$0xf] %v204_v8  ;;  %207 = vst [vmem:[%s5884_s29 + $0x24] sm:$0xf] %v206_v9 }
  0x18   : > { %209 = vst [vmem:[%s5884_s29 + $0x28] sm:$0xf] %v208_v10  ;;  %v210_v11 = vld [vmem:[%s5880_s28 + $0x58] sm:$0xf]  ;;  %v212_v12 = vld [vmem:[%s5880_s28 + $0x60] sm:$0xf] }
  0x19   : > { %v214_v13 = vld [vmem:[%s5880_s28 + $0x68] sm:$0xf]  ;;  %211 = vst [vmem:[%s5884_s29 + $0x2c] sm:$0xf] %v210_v11  ;;  %213 = vst [vmem:[%s5884_s29 + $0x30] sm:$0xf] %v212_v12 }
  0x1a   : > { %215 = vst [vmem:[%s5884_s29 + $0x34] sm:$0xf] %v214_v13  ;;  %v216_v14 = vld [vmem:[%s5880_s28 + $0x70] sm:$0xf]  ;;  %v218_v15 = vld [vmem:[%s5880_s28 + $0x78] sm:$0xf] }
  0x1b   : > { %v220_v16 = vld [vmem:[%s5880_s28 + $0x80] sm:$0xf]  ;;  %217 = vst [vmem:[%s5884_s29 + $0x38] sm:$0xf] %v216_v14  ;;  %219 = vst [vmem:[%s5884_s29 + $0x3c] sm:$0xf] %v218_v15 }
  0x1c   : > { %221 = vst [vmem:[%s5884_s29 + $0x40] sm:$0xf] %v220_v16  ;;  %v222_v17 = vld [vmem:[%s5880_s28 + $0x88] sm:$0xf]  ;;  %v224_v18 = vld [vmem:[%s5880_s28 + $0x90] sm:$0xf] }
  0x1d   : > { %v226_v19 = vld [vmem:[%s5880_s28 + $0x98] sm:$0xf]  ;;  %223 = vst [vmem:[%s5884_s29 + $0x44] sm:$0xf] %v222_v17  ;;  %225 = vst [vmem:[%s5884_s29 + $0x48] sm:$0xf] %v224_v18 }
  0x1e   : > { %227 = vst [vmem:[%s5884_s29 + $0x4c] sm:$0xf] %v226_v19  ;;  %v228_v20 = vld [vmem:[%s5880_s28 + $0xa0] sm:$0xf]  ;;  %v230_v21 = vld [vmem:[%s5880_s28 + $0xa8] sm:$0xf] }
  0x1f   : > { %v232_v22 = vld [vmem:[%s5880_s28 + $0xb0] sm:$0xf]  ;;  %229 = vst [vmem:[%s5884_s29 + $0x50] sm:$0xf] %v228_v20  ;;  %231 = vst [vmem:[%s5884_s29 + $0x54] sm:$0xf] %v230_v21 }
  0x20   : > { %233 = vst [vmem:[%s5884_s29 + $0x58] sm:$0xf] %v232_v22  ;;  %v234_v23 = vld [vmem:[%s5880_s28 + $0xb8] sm:$0xf]  ;;  %v236_v24 = vld [vmem:[%s5880_s28 + $0xc0] sm:$0xf] }
  0x21   : > { %v238_v25 = vld [vmem:[%s5880_s28 + $0xc8] sm:$0xf]  ;;  %235 = vst [vmem:[%s5884_s29 + $0x5c] sm:$0xf] %v234_v23  ;;  %237 = vst [vmem:[%s5884_s29 + $0x60] sm:$0xf] %v236_v24 }
  0x22   : > { %239 = vst [vmem:[%s5884_s29 + $0x64] sm:$0xf] %v238_v25  ;;  %v240_v26 = vld [vmem:[%s5880_s28 + $0xd0] sm:$0xf]  ;;  %v242_v27 = vld [vmem:[%s5880_s28 + $0xd8] sm:$0xf] }
  0x23   : > { %v244_v28 = vld [vmem:[%s5880_s28 + $0xe0] sm:$0xf]  ;;  %241 = vst [vmem:[%s5884_s29 + $0x68] sm:$0xf] %v240_v26  ;;  %243 = vst [vmem:[%s5884_s29 + $0x6c] sm:$0xf] %v242_v27 }
  0x24   : > { %245 = vst [vmem:[%s5884_s29 + $0x70] sm:$0xf] %v244_v28  ;;  %v246_v29 = vld [vmem:[%s5880_s28 + $0xe8] sm:$0xf]  ;;  %v248_v30 = vld [vmem:[%s5880_s28 + $0xf0] sm:$0xf] }
  0x25   : > { %v250_v31 = vld [vmem:[%s5880_s28 + $0xf8] sm:$0xf]  ;;  %247 = vst [vmem:[%s5884_s29 + $0x74] sm:$0xf] %v246_v29  ;;  %249 = vst [vmem:[%s5884_s29 + $0x78] sm:$0xf] %v248_v30 }
  0x26   : > { %251 = vst [vmem:[%s5884_s29 + $0x7c] sm:$0xf] %v250_v31 }
  0x27 PF: > { %p4097_p5 = scmp.ge.s32.totalorder %s5819_s17, 1  ;;  %p337_p6 = scmp.lt.s32.totalorder %s5819_s17, 3 }
  0x29   : > { %p338_p7 = pnand %p4097_p5, %p337_p6 }
  0x2b   : > { %341 = sbr.rel (%p338_p7) target bundleno = 638 (0x27e), region = 73 }
  0x32   : > { %v5562_v32 = vld [vmem:[%s7241_s1 + $0x40] sm:$0xff]   ;;  %p374_p8 = scmp.lt.s32.totalorder %s4090_s18, 1  ;;  %v5564_v34 = vld [vmem:[%s7241_s1 + $0x48] sm:$0xff]   ;;  %v5566_v36 = vld [vmem:[%s7241_s1 + $0x50] sm:$0xff]   ;;  %vm455_vm0 = vsmask.f32 3328 }
  0x33   : > { %v5563_v33 = vld [vmem:[%s7241_s1 + $0x100] sm:$0xff]   ;;  %4833 = vmatprep.subr.bf16.mxu1 %v5562_v32  ;;  %v5565_v35 = vld [vmem:[%s7241_s1 + $0x108] sm:$0xff]   ;;  %v5567_v37 = vld [vmem:[%s7241_s1 + $0x110] sm:$0xff]   ;;  %vm456_vm1 = vsmask.f32 7440  ;;  %vm1453_vm3 = vcmask 1042432  }
  0x34   : > { %5025 = vmatprep.subr.bf16.mxu0 %v5563_v33  ;;  %4834 = vmatpush3.bf16.msra.mxu1 %v5562_v32  ;;  %s7292_s18 = smov (!%p374_p8, %s4090_s18), 1  ;;  %v5568_v38 = vld [vmem:[%s7241_s1 + $0x58] sm:$0xff]   ;;  %v5570_v40 = vld [vmem:[%s7241_s1 + $0x60] sm:$0xff]   ;;  %v5572_v42 = vld [vmem:[%s7241_s1 + $0x68] sm:$0xff]   ;;  %vm1454_vm4 = vcmask 1046532   ;;  %s344_s8 = sand.u32 1, %s5811_s15  }
  0x35   : > { %5026 = vmatpush3.bf16.msra.mxu0 %v5563_v33  ;;  %4835 = vmatprep.subr.bf16.mxu1 %v5564_v34  ;;  %v5569_v39 = vld [vmem:[%s7241_s1 + $0x118] sm:$0xff]   ;;  %s5537_s26 = smul.u32 216, %s7292_s18  ;;  %v5571_v41 = vld [vmem:[%s7241_s1 + $0x120] sm:$0xff]   ;;  %v5573_v43 = vld [vmem:[%s7241_s1 + $0x128] sm:$0xff]   ;;  %s4098_s9 = sshll.u32 %s344_s8, 7 }
  0x36   : > { %5027 = vmatprep.subr.bf16.mxu0 %v5565_v35  ;;  %v5574_v49 = vld [vmem:[%s7241_s1 + $0x70] sm:$0xff]   ;;  %v5576_v4 = vld [vmem:[%s7241_s1 + $0x78] sm:$0xff]   ;;  %vm6035_vm2 = vmor %vm455_vm0, %vm456_vm1  ;;  %s6974_s15 = scalar_lea.vmem [#allocation2], %s4098_s9  ;;  %s4410_s10 = sshll.u32 %s7292_s18, 7 }
  0x37   : > { %s5990_s6 = scalar_lea.vmem %s7240_s0, %s5537_s26  ;;  %v5575_v63 = vld [vmem:[%s7241_s1 + $0x130] sm:$0xff]   ;;  %v5577_v21 = vld [vmem:[%s7241_s1 + $0x138] sm:$0xff]   ;;  %v5578_v33 = vld [vmem:[%s7241_s1] sm:$0xff]   ;;  %s7093_s12 = scalar_lea.vmem %s7244_s4, %s4410_s10 }
  0x38   : > { %4836 = vmatpush3.bf16.msra.mxu1 %v5564_v34  ;;  %v5999_v44 = vld [vmem:[%s5990_s6] sm:$0xf]  ;;  %v6002_v45 = vld [vmem:[%s5990_s6 + $0x4] sm:$0xf]  ;;  %v387_v46 = vld [vmem:[%s5990_s6 + $0x8] sm:$0x1] }
  0x39   : > { %5028 = vmatpush3.bf16.msra.mxu0 %v5565_v35  ;;  %4837 = vmatprep.subr.bf16.mxu1 %v5566_v36  ;;  %v459_v47 = vshrl.u32 %v5999_v44, 16  ;;  %v462_v48 = vshll.u32 %v5999_v44, 16  ;;  %v468_v50 = vshll.u32 %v6002_v45, 16  ;;  %v472_v51 = vshrl.u32 %v6002_v45, 16  ;;  %v6013_v53 = vld [vmem:[%s5990_s6 + $0xc] sm:$0xf]  ;;  %vm6242_vm5 = vmor %vm1453_vm3, %vm1454_vm4 }
  0x3a   : > { %5029 = vmatprep.subr.bf16.mxu0 %v5567_v37  ;;  %v478_v52 = vshll.u32 %v387_v46, 16  ;;  %v6016_v56 = vld [vmem:[%s5990_s6 + $0x10] sm:$0xf]  ;;  %v6019_v57 = vld [vmem:[%s5990_s6 + $0x14] sm:$0x1]  ;;  %v483_v62 = vshrl.u32 %v6013_v53, 16 }
  0x3b   : > { %v461_v54 = vrot.slane %v459_v47, 4  ;;  %v464_v55 = vrot.slane %v462_v48, 5  ;;  %v470_v59 = vrot.slane %v468_v50, 5  ;;  %v474_v60 = vrot.slane %v472_v51, 4  ;;  %v6041_v9 = vld [vmem:[%s5990_s6 + $0x18] sm:$0xf] }
  0x3c   : > { %4838 = vmatpush3.bf16.msra.mxu1 %v5566_v36  ;;  %v480_v61 = vrot.slane %v478_v52, 5  ;;  %v486_v1 = vshll.u32 %v6013_v53, 16  ;;  %v492_v2 = vshll.u32 %v6016_v56, 16  ;;  %v496_v3 = vshrl.u32 %v6016_v56, 16  ;;  %v6044_v10 = vld [vmem:[%s5990_s6 + $0x1c] sm:$0xf] }
  0x3d   : > { %5030 = vmatpush3.bf16.msra.mxu0 %v5567_v37  ;;  %4839 = vmatprep.subr.bf16.mxu1 %v5568_v38  ;;  %v465_v0 = vor.u32 %v464_v55, %v461_v54  ;;  %v475_v6 = vor.u32 %v474_v60, %v470_v59  ;;  %v485_v7 = vrot.slane %v483_v62, 4  ;;  %v502_v8 = vshll.u32 %v6019_v57, 16  ;;  %v6051_v16 = vld [vmem:[%s5990_s6 + $0x20] sm:$0x1]  ;;  %v6068_v35 = vld [vmem:[%s5990_s6 + $0x24] sm:$0xf] }
  0x3e   : > { %5031 = vmatprep.subr.bf16.mxu0 %v5569_v39  ;;  %v6048_v11 = vcombine.low %v6013_v53, %v6016_v56  ;;  %v488_v13 = vrot.slane %v486_v1, 5  ;;  %v494_v14 = vrot.slane %v492_v2, 5  ;;  %v498_v15 = vrot.slane %v496_v3, 4  ;;  %v6083_v46 = vld [vmem:[%s5990_s6 + $0x2c] sm:$0x1]  ;;  %v5796_v5 = vld [vmem:[%s7241_s1 + $0x138] sm:$0xff]  }
  0x3f   : > { %v466_v12 = vrot.slane %v465_v0, 4  ;;  %v476_v17 = vrot.slane %v475_v6, 4  ;;  %v504_v18 = vrot.slane %v502_v8, 5  ;;  %v507_v19 = vshrl.u32 %v6041_v9, 16  ;;  %v6088_v54 = vld [vmem:[%s5990_s6 + $0x30] sm:$0xf] }
  0x40   : > { %4840 = vmatpush3.bf16.msra.mxu1 %v5568_v38  ;;  %v510_v20 = vshll.u32 %v6041_v9, 16  ;;  %v489_v23 = vor.u32 %v488_v13, %v485_v7  ;;  %v499_v24 = vor.u32 %v498_v15, %v494_v14  ;;  %v516_v25 = vshll.u32 %v6044_v10, 16  ;;  %v6093_v62 = vld [vmem:[%s5990_s6 + $0x34] sm:$0xf]  ;;  %v5581_v2 = vld [vmem:[%s7241_s1 + $0x8] sm:$0xff]  }
  0x41   : > { %5032 = vmatpush3.bf16.msra.mxu0 %v5569_v39  ;;  %4841 = vmatprep.subr.bf16.mxu1 %v5570_v40  ;;  %v471_v22 = vsel %vm6035_vm2, %v466_v12, %v470_v59  ;;  %v481_v26 = vsel %vm6035_vm2, %v476_v17, %v480_v61  ;;  %v509_v27 = vrot.slane %v507_v19, 4  ;;  %v520_v29 = vshrl.u32 %v6044_v10, 16  ;;  %v6102_v3 = vld [vmem:[%s5990_s6 + $0x38] sm:$0x1] }
  0x42   : > { %5033 = vmatprep.subr.bf16.mxu0 %v5571_v41  ;;  %v512_v28 = vrot.slane %v510_v20, 5  ;;  %v4118_v30 = vcombine.low %v471_v22, %v481_v26  ;;  %v490_v31 = vrot.slane %v489_v23, 4  ;;  %v500_v32 = vrot.slane %v499_v24, 4  ;;  %v6117_v26 = vld [vmem:[%s5990_s6 + $0x3c] sm:$0xf] }
  0x43   : > { %v518_v34 = vrot.slane %v516_v25, 5  ;;  %v522_v37 = vrot.slane %v520_v29, 4  ;;  %v526_v38 = vshll.u32 %v6051_v16, 16  ;;  %v1475_v39 = vrot.slane %v6051_v16, 5 }
  0x44   : > { %4842 = vmatpush3.bf16.msra.mxu1 %v5570_v40  ;;  %v513_v36 = vor.u32 %v512_v28, %v509_v27  ;;  %v5579_v40 = vld [vmem:[%s7241_s1 + $0x140] sm:$0xff]   ;;  %4849 = vmatprep.mubr.bf16.mxu1 %v4118_v30  ;;  %v531_v47 = vshrl.u32 %v6068_v35, 16  ;;  %v534_v48 = vshll.u32 %v6068_v35, 16  ;;  %v550_v1 = vshll.u32 %v6083_v46, 16  ;;  %v5584_v27 = vld [vmem:[%s7241_s1 + $0x10] sm:$0xff]  }
  0x45   : > { %5034 = vmatpush3.bf16.msra.mxu0 %v5571_v41  ;;  %4843 = vmatprep.subr.bf16.mxu1 %v5572_v42  ;;  %v6076_v41 = vld [vmem:[%s5990_s6 + $0x28] sm:$0xf]  ;;  %v523_v51 = vor.u32 %v522_v37, %v518_v34  ;;  %v528_v52 = vrot.slane %v526_v38, 5  ;;  %v558_v12 = vshll.u32 %v6088_v54, 16  ;;  %v568_v24 = vshrl.u32 %v6093_v62, 16 }
  0x46   : > { %5035 = vmatprep.subr.bf16.mxu0 %v5573_v43  ;;  %v514_v50 = vrot.slane %v513_v36, 4  ;;  %v533_v55 = vrot.slane %v531_v47, 4  ;;  %v536_v59 = vrot.slane %v534_v48, 5  ;;  %v540_v60 = vshll.u32 %v6076_v41, 16  ;;  %v5582_v48 = vld [vmem:[%s7241_s1 + $0x150] sm:$0xff]  }
  0x47   : > { %v544_v61 = vshrl.u32 %v6076_v41, 16  ;;  %v524_v0 = vrot.slane %v523_v51, 4  ;;  %v552_v15 = vrot.slane %v550_v1, 5  ;;  %v560_v22 = vrot.slane %v558_v12, 5  ;;  %v6157_v1 = vld [vmem:[%s5990_s6 + $0x50] sm:$0x1] }
  0x48   : > { %4844 = vmatpush3.bf16.msra.mxu1 %v5572_v42  ;;  %v495_v42 = vsel %vm6035_vm2, %v490_v31, %v494_v14  ;;  %v537_v6 = vor.u32 %v536_v59, %v533_v55  ;;  %v542_v7 = vrot.slane %v540_v60, 5  ;;  %v5580_v14 = vld [vmem:[%s7241_s1 + $0x148] sm:$0xff]   ;;  %v574_v25 = vshll.u32 %v6102_v3, 16 }
  0x49   : > { %5036 = vmatpush3.bf16.msra.mxu0 %v5573_v43  ;;  %4845 = vmatprep.subr.bf16.mxu1 %v5574_v49  ;;  %v505_v43 = vsel %vm6035_vm2, %v500_v32, %v504_v18  ;;  %v546_v8 = vrot.slane %v544_v61, 4  ;;  %v529_v13 = vsel %vm6035_vm2, %v524_v0, %v528_v52  ;;  %v564_v18 = vshll.u32 %v6093_v62, 16  ;;  %v6131_v32 = vld [vmem:[%s5990_s6 + $0x40] sm:$0xf]  ;;  %v6148_v59 = vld [vmem:[%s5990_s6 + $0x48] sm:$0xf] }
  0x4a   : > { %5037 = vmatprep.subr.bf16.mxu0 %v5575_v63  ;;  %v538_v20 = vrot.slane %v537_v6, 4  ;;  %v6124_v28 = vcombine.low %v6041_v9, %v6044_v10  ;;  %v570_v36 = vrot.slane %v568_v24, 4  ;;  %v576_v37 = vrot.slane %v574_v25, 5  ;;  %v6151_v60 = vld [vmem:[%s5990_s6 + $0x4c] sm:$0xf] }
  0x4b   : > { %v566_v23 = vrot.slane %v564_v18, 5  ;;  %v582_v38 = vshll.u32 %v6117_v26, 16  ;;  %v612_v12 = vshll.u32 %v6151_v60, 16  ;;  %v616_v18 = vshrl.u32 %v6151_v60, 16 }
  0x4c   : > { %4846 = vmatpush3.bf16.msra.mxu1 %v5574_v49  ;;  %v4119_v49 = vcombine.low %v495_v42, %v505_v43  ;;  %v543_v29 = vsel %vm6035_vm2, %v538_v20, %v542_v7  ;;  %v588_v42 = vshll.u32 %v6131_v32, 16 }
  0x4d   : > { %5038 = vmatpush3.bf16.msra.mxu0 %v5575_v63  ;;  %4847 = vmatprep.subr.bf16.mxu1 %v5576_v4  ;;  %v519_v63 = vsel %vm6035_vm2, %v514_v50, %v518_v34  ;;  %v579_v34 = vshrl.u32 %v6117_v26, 16  ;;  %v571_v51 = vor.u32 %v570_v36, %v566_v23  ;;  %v584_v52 = vrot.slane %v582_v38, 5  ;;  %v6188_v38 = vld [vmem:[%s5990_s6 + $0x58] sm:$0xf] }
  0x4e   : > { %5039 = vmatprep.subr.bf16.mxu0 %v5577_v21  ;;  %5041 = vmatprep.mubr.bf16.mxu0 %v4119_v49  ;;  %v6112_v19 = vcombine.low %v519_v63, %v529_v13  ;;  %v590_v55 = vrot.slane %v588_v42, 5  ;;  %v5583_v13 = vld [vmem:[%s7241_s1 + $0x158] sm:$0xff]  }
  0x4f   : > { %v572_v6 = vrot.slane %v571_v51, 4  ;;  %v6191_v42 = vld [vmem:[%s5990_s6 + $0x5c] sm:$0x1] }
  0x50   : > { %4848 = vmatpush3.bf16.msra.mxu1 %v5576_v4  ;;  %v555_v4 = vshrl.u32 %v6088_v54, 16 }
  0x51   : > { %5040 = vmatpush3.bf16.msra.mxu0 %v5577_v21  ;;  %4881 = vmatprep.subr.bf16.mxu1 %v5578_v33  ;;  %v547_v21 = vor.u32 %v546_v8, %v542_v7  ;;  %v606_v8 = vshll.u32 %v6148_v59, 16  ;;  %v577_v20 = vsel %vm6035_vm2, %v572_v6, %v576_v37  ;;  %v6185_v37 = vld [vmem:[%s5990_s6 + $0x54] sm:$0xf] }
  0x52   : > { %5073 = vmatprep.subr.bf16.mxu0 %v5579_v40  ;;  %v557_v17 = vrot.slane %v555_v4, 4  ;;  %v5587_v4 = vld [vmem:[%s7241_s1 + $0x18] sm:$0xff]   ;;  %v627_v51 = vshrl.u32 %v6185_v37, 16 }
  0x53   : > { %4850 = vmatmul.mubr.bf16.vlgmr.msra.gmra.mrb[0].mxu1 %v4119_v49  ;;  %v548_v30 = vrot.slane %v547_v21, 4  ;;  %v592_v49 = vshrl.u32 %v6131_v32, 16 }
  0x54   : > { %4882 = vmatpush3.bf16.msra.mxu1 %v5578_v33  ;;  %5042 = vmatmul.mubr.bf16.vlgmr.msra.gmra.mrb[0].mxu0 %v6112_v19  ;;  %v561_v31 = vor.u32 %v560_v22, %v557_v17  ;;  %v6134_v33 = vld [vmem:[%s5990_s6 + $0x44] sm:$0x1]  ;;  %v608_v22 = vrot.slane %v606_v8, 5  ;;  %v640_v8 = vshrl.u32 %v6188_v38, 16 }
  0x55   : > { %4883 = vmatprep.subr.bf16.mxu1 %v5581_v2  ;;  %4853 = vmatprep.mubr.bf16.mxu1 %v6112_v19  ;;  %v553_v43 = vsel %vm6035_vm2, %v548_v30, %v552_v15  ;;  %v594_v63 = vrot.slane %v592_v49, 4  ;;  %v598_v0 = vshll.u32 %v6134_v33, 16  ;;  %v622_v30 = vshll.u32 %v6157_v1, 16 }
  0x56   : > { %5074 = vmatpush3.bf16.msra.mxu0 %v5579_v40  ;;  %v562_v47 = vrot.slane %v561_v31, 4  ;;  %v581_v40 = vrot.slane %v579_v34, 4  ;;  %v6145_v50 = vcombine.low %v543_v29, %v553_v43  ;;  %v618_v29 = vrot.slane %v616_v18, 4  ;;  %v5585_v31 = vld [vmem:[%s7241_s1 + $0x160] sm:$0xff]   ;;  %v6225_v18 = vld [vmem:[%s5990_s6 + $0x68] sm:$0x1] }
  0x57   : > { %5075 = vmatprep.subr.bf16.mxu0 %v5580_v14  ;;  %v595_v15 = vor.u32 %v594_v63, %v590_v55  ;;  %v600_v17 = vrot.slane %v598_v0, 5  ;;  %v5590_v34 = vld [vmem:[%s7241_s1 + $0x20] sm:$0xff]   ;;  %v6195_v43 = vcombine.low %v6068_v35, %v6076_v41  ;;  %v624_v49 = vrot.slane %v622_v30, 5 }
  0x58   : > { %4884 = vmatpush3.bf16.msra.mxu1 %v5581_v2  ;;  %7263 = vst [vmem:[#allocation3_spill] sm:$0xff] %v6145_v50  ;;  %v567_v61 = vsel %vm6035_vm2, %v562_v47, %v566_v23  ;;  %v603_v2 = vshrl.u32 %v6148_v59, 16  ;;  %5045 = vmatprep.mubr.bf16.mxu0 %v6145_v50  ;;  %v585_v7 = vor.u32 %v584_v52, %v581_v40  ;;  %v614_v23 = vrot.slane %v612_v12, 5  ;;  %v6211_v0 = vld [vmem:[%s5990_s6 + $0x60] sm:$0xf] }
  0x59   : > { %4885 = vmatprep.subr.bf16.mxu1 %v5584_v27  ;;  %v6173_v24 = vcombine.low %v567_v61, %v577_v20  ;;  %v596_v25 = vrot.slane %v595_v15, 4  ;;  %v6199_v47 = vcombine.low %v6088_v54, %v6093_v62  ;;  %v630_v61 = vshll.u32 %v6185_v37, 16  ;;  %v6219_v15 = vld [vmem:[%s5990_s6 + $0x64] sm:$0xf] }
  0x5a   : > { %5076 = vmatpush3.bf16.msra.mxu0 %v5580_v14  ;;  %v605_v14 = vrot.slane %v603_v2, 4  ;;  %v586_v21 = vrot.slane %v585_v7, 4  ;;  %v619_v40 = vor.u32 %v618_v29, %v614_v23  ;;  %v636_v63 = vshll.u32 %v6188_v38, 16  ;;  %v5592_v2 = vld [vmem:[%s7241_s1 + $0x28] sm:$0xff]  }
  0x5b   : > { %4854 = vmatmul.mubr.bf16.gmra.mrb[4].mxu1 %v6145_v50  ;;  %5077 = vmatprep.subr.bf16.mxu0 %v5582_v48  ;;  %7264 = vst [vmem:[#allocation4_spill] sm:$0xff] %v6173_v24  ;;  %v629_v7 = vrot.slane %v627_v51, 4  ;;  %v646_v12 = vshll.u32 %v6191_v42, 16  ;;  %v651_v20 = vshrl.u32 %v6211_v0, 16  ;;  %v670_v51 = vshll.u32 %v6225_v18, 16 }
  0x5c   : > { %4886 = vmatpush3.bf16.msra.mxu1 %v5584_v27  ;;  %v591_v36 = vsel %vm6035_vm2, %v586_v21, %v590_v55  ;;  %v609_v27 = vor.u32 %v608_v22, %v605_v14  ;;  %5046 = vmatmul.mubr.bf16.gmra.mrb[4].mxu0 %v6173_v24  ;;  %v620_v6 = vrot.slane %v619_v40, 4  ;;  %v638_v14 = vrot.slane %v636_v63, 5 }
  0x5d   : > { %4887 = vmatprep.subr.bf16.mxu1 %v5587_v4  ;;  %4857 = vmatprep.mubr.bf16.mxu1 %v6173_v24  ;;  %v642_v22 = vrot.slane %v640_v8, 4  ;;  %v6253_v8 = vld [vmem:[%s5990_s6 + $0x6c] sm:$0xf] }
  0x5e   : > { %5078 = vmatpush3.bf16.msra.mxu0 %v5582_v48  ;;  %v601_v48 = vsel %vm6035_vm2, %v596_v25, %v600_v17  ;;  %v610_v55 = vrot.slane %v609_v27, 4  ;;  %v625_v21 = vsel %vm6035_vm2, %v620_v6, %v624_v49  ;;  %v648_v25 = vrot.slane %v646_v12, 5 }
  0x5f   : > { %5079 = vmatprep.subr.bf16.mxu0 %v5583_v13  ;;  %v6206_v52 = vcombine.low %v591_v36, %v601_v48  ;;  %v653_v36 = vrot.slane %v651_v20, 4  ;;  %v660_v27 = vshll.u32 %v6219_v15, 16  ;;  %v643_v48 = vor.u32 %v642_v22, %v638_v14 }
  0x60   : > { %4888 = vmatpush3.bf16.msra.mxu1 %v5587_v4  ;;  %v615_v17 = vsel %vm6035_vm2, %v610_v55, %v614_v23  ;;  %v632_v4 = vrot.slane %v630_v61, 5  ;;  %v654_v23 = vshll.u32 %v6211_v0, 16  ;;  %v664_v49 = vshrl.u32 %v6219_v15, 16  ;;  %v5594_v61 = vld [vmem:[%s7241_s1 + $0x30] sm:$0xff]  }
  0x61   : > { %7265 = vst [vmem:[#allocation5_spill] sm:$0xff] %v6206_v52  ;;  %4889 = vmatprep.subr.bf16.mxu1 %v5590_v34  ;;  %5049 = vmatprep.mubr.bf16.mxu0 %v6206_v52  ;;  %v6235_v29 = vcombine.low %v615_v17, %v625_v21  ;;  %v662_v63 = vrot.slane %v660_v27, 5  ;;  %v4167_v6 = vrot.slane %v6013_v53, 9  ;;  %v644_v12 = vrot.slane %v643_v48, 4  ;;  %v6260_v21 = vld [vmem:[%s5990_s6 + $0x70] sm:$0xf] }
  0x62   : > { %5080 = vmatpush3.bf16.msra.mxu0 %v5583_v13  ;;  %v5586_v13 = vld [vmem:[%s7241_s1 + $0x168] sm:$0xff]   ;;  %v633_v30 = vor.u32 %v632_v4, %v629_v7  ;;  %v656_v40 = vrot.slane %v654_v23, 5  ;;  %v1465_v7 = vrot.slane %v6016_v56, 5  ;;  %v666_v4 = vrot.slane %v664_v49, 4 }
  0x63   : > { %4858 = vmatmul.mubr.bf16.gmra.mrb[8].mxu1 %v6206_v52  ;;  %5081 = vmatprep.subr.bf16.mxu0 %v5585_v31  ;;  %7266 = vst [vmem:[#allocation6_spill] sm:$0xff] %v6235_v29  ;;  %v672_v20 = vrot.slane %v670_v51, 5  ;;  %v1468_v23 = vrot.slane %v6019_v57, 5  ;;  %v649_v27 = vsel %vm6035_vm2, %v644_v12, %v648_v25  ;;  %v684_v51 = vshll.u32 %v6260_v21, 16 }
  0x64   : > { %4890 = vmatpush3.bf16.msra.mxu1 %v5590_v34  ;;  %4861 = vmatprep.mubr.bf16.mxu1 %v6235_v29  ;;  %v634_v34 = vrot.slane %v633_v30, 4  ;;  %v657_v17 = vor.u32 %v656_v40, %v653_v36  ;;  %v1466_v56 = vsel %vm6242_vm5, %v4167_v6, %v1465_v7  ;;  %v1467_v22 = vrot.slane %v1465_v7, 4  ;;  %v6268_v30 = vld [vmem:[%s5990_s6 + $0x74] sm:$0x1]  ;;  %v5596_v36 = vld [vmem:[%s7241_s1 + $0x38] sm:$0xff]  }
  0x65   : > { %4891 = vmatprep.subr.bf16.mxu1 %v5592_v2  ;;  %5050 = vmatmul.mubr.bf16.gmra.mrb[8].mxu0 %v6235_v29  ;;  %v667_v40 = vor.u32 %v666_v4, %v662_v63  ;;  %v686_v4 = vrot.slane %v684_v51, 5  ;;  %v1486_v52 = vrot.slane %v6093_v62, 5 }
  0x66   : > { %5082 = vmatpush3.bf16.msra.mxu0 %v5585_v31  ;;  %v5588_v31 = vld [vmem:[%s7241_s1 + $0x170] sm:$0xff]   ;;  %v639_v53 = vsel %vm6035_vm2, %v634_v34, %v638_v14  ;;  %v658_v48 = vrot.slane %v657_v17, 4  ;;  %v675_v14 = vshrl.u32 %v6253_v8, 16  ;;  %v1469_v57 = vsel %vm6242_vm5, %v1467_v22, %v1468_v23  ;;  %v6283_v34 = vld [vmem:[%s5990_s6 + $0x78] sm:$0xf] }
  0x67   : > { %5083 = vmatprep.subr.bf16.mxu0 %v5586_v13  ;;  %v6276_v49 = vcombine.low %v639_v53, %v649_v27  ;;  %v668_v6 = vrot.slane %v667_v40, 4  ;;  %v6290_v7 = vcombine.low %v1466_v56, %v1469_v57  ;;  %v688_v53 = vshrl.u32 %v6260_v21, 16  ;;  %v6297_v22 = vld [vmem:[%s5990_s6 + $0x7c] sm:$0xf] }
  0x68   : > { %4892 = vmatpush3.bf16.msra.mxu1 %v5592_v2  ;;  %v678_v2 = vshll.u32 %v6253_v8, 16  ;;  %v663_v25 = vsel %vm6035_vm2, %v658_v48, %v662_v63  ;;  %v677_v12 = vrot.slane %v675_v14, 4  ;;  %v694_v63 = vshll.u32 %v6268_v30, 16  ;;  %v6304_v48 = vld [vmem:[%s5990_s6 + $0x80] sm:$0x1] }
  0x69   : > { %4893 = vmatprep.subr.bf16.mxu1 %v5594_v61  ;;  %7269 = vst [vmem:[#allocation7_spill] sm:$0xff] %v6276_v49  ;;  %5053 = vmatprep.mubr.bf16.mxu0 %v6276_v49  ;;  %v673_v23 = vsel %vm6035_vm2, %v668_v6, %v672_v20  ;;  %v4168_v27 = vrot.slane %v6041_v9, 9  ;;  %v1472_v56 = vrot.slane %v6044_v10, 5  ;;  %v699_v40 = vshrl.u32 %v6283_v34, 16  ;;  %v6312_v20 = vld [vmem:[%s7241_s1 + $0x80] sm:$0xff]  }
  0x6a   : > { %5084 = vmatpush3.bf16.msra.mxu0 %v5586_v13  ;;  %v5589_v13 = vld [vmem:[%s7241_s1 + $0x178] sm:$0xff]   ;;  %v680_v17 = vrot.slane %v678_v2, 5  ;;  %v6307_v14 = vcombine.low %v663_v25, %v673_v23  ;;  %v690_v2 = vrot.slane %v688_v53, 4  ;;  %v696_v51 = vrot.slane %v694_v63, 5  ;;  %v6321_v6 = vld [vmem:[%s5990_s6 + $0x84] sm:$0xf] }
  0x6b   : > { %5085 = vmatprep.subr.bf16.mxu0 %v5588_v31  ;;  %4862 = vmatmul.mubr.bf16.gmra.mrb[12].mxu1 %v6276_v49  ;;  %v1473_v9 = vsel %vm6242_vm5, %v4168_v27, %v1472_v56  ;;  %v1474_v10 = vrot.slane %v1472_v56, 4  ;;  %v701_v25 = vrot.slane %v699_v40, 4  ;;  %v708_v53 = vshll.u32 %v6297_v22, 16 }
  0x6c   : > { %4894 = vmatpush3.bf16.msra.mxu1 %v5594_v61  ;;  %7270 = vst [vmem:[#allocation8_spill] sm:$0xff] %v6307_v14  ;;  %v681_v57 = vor.u32 %v680_v17, %v677_v12  ;;  %v5591_v61 = vld [vmem:[%s7241_s1 + $0x180] sm:$0xff]   ;;  %4865 = vmatprep.mubr.bf16.mxu1 %v6307_v14  ;;  %v691_v17 = vor.u32 %v690_v2, %v686_v4  ;;  %v712_v63 = vshrl.u32 %v6297_v22, 16  ;;  %v718_v56 = vshll.u32 %v6304_v48, 16 }
  0x6d   : > { %4895 = vmatprep.subr.bf16.mxu1 %v5596_v36  ;;  %5054 = vmatmul.mubr.bf16.gmra.mrb[12].mxu0 %v6307_v14  ;;  %v1476_v23 = vsel %vm6242_vm5, %v1474_v10, %v1475_v39  ;;  %v4169_v40 = vrot.slane %v6068_v35, 9  ;;  %v710_v14 = vrot.slane %v708_v53, 5  ;;  %v6341_v35 = vld [vmem:[%s5990_s6 + $0x88] sm:$0xf] }
  0x6e   : > { %5086 = vmatpush3.bf16.msra.mxu0 %v5588_v31  ;;  %v702_v31 = vshll.u32 %v6283_v34, 16  ;;  %v682_v12 = vrot.slane %v681_v57, 4  ;;  %5089 = vmatprep.mubr.bf16.mxu0 %v6290_v7  ;;  %v692_v2 = vrot.slane %v691_v17, 4  ;;  %v6336_v58 = vcombine.low %v1473_v9, %v1476_v23 }
  0x6f   : > { %5087 = vmatprep.subr.bf16.mxu0 %v5589_v13  ;;  %v714_v39 = vrot.slane %v712_v63, 4  ;;  %v720_v10 = vrot.slane %v718_v56, 5  ;;  %v723_v9 = vshrl.u32 %v6321_v6, 16  ;;  %v5593_v63 = vld [vmem:[%s7241_s1 + $0x188] sm:$0xff]   ;;  %v6360_v56 = vld [vmem:[%s5990_s6 + $0x90] sm:$0xf] }
  0x70   : > { %v704_v27 = vrot.slane %v702_v31, 5  ;;  %4896 = vmatpush3.bf16.msra.mxu1 %v5596_v36  ;;  %v687_v57 = vsel %vm6035_vm2, %v682_v12, %v686_v4  ;;  %v1479_v31 = vrot.slane %v6076_v41, 5  ;;  %v697_v36 = vsel %vm6035_vm2, %v692_v2, %v696_v51  ;;  %v6347_v4 = vld [vmem:[%s5990_s6 + $0x8c] sm:$0x1]  ;;  %v6363_v2 = vld [vmem:[%s5990_s6 + $0x94] sm:$0xf] }
  0x71   : > { %4929 = vmatprep.subr.bf16.mxu1 %v6312_v20  ;;  %v726_v12 = vshll.u32 %v6321_v6, 16  ;;  %v715_v53 = vor.u32 %v714_v39, %v710_v14  ;;  %v725_v23 = vrot.slane %v723_v9, 4  ;;  %v742_v39 = vshll.u32 %v6347_v4, 16 }
  0x72   : > { %5088 = vmatpush3.bf16.msra.mxu0 %v5589_v13  ;;  %v705_v16 = vor.u32 %v704_v27, %v701_v25  ;;  %v1482_v13 = vrot.slane %v6083_v46, 5  ;;  %v6351_v25 = vcombine.low %v687_v57, %v697_v36  ;;  %v1480_v41 = vsel %vm6242_vm5, %v4169_v40, %v1479_v31 }
  0x73   : > { %5121 = vmatprep.subr.bf16.mxu0 %v5591_v61  ;;  %v1481_v51 = vrot.slane %v1479_v31, 4  ;;  %v728_v46 = vrot.slane %v726_v12, 5  ;;  %v732_v27 = vshll.u32 %v6341_v35, 16  ;;  %v736_v40 = vshrl.u32 %v6341_v35, 16 }
  0x74   : > { %7271 = vst [vmem:[#allocation9_spill] sm:$0xff] %v6351_v25  ;;  %v706_v17 = vrot.slane %v705_v16, 4  ;;  %4866 = vmatmul.mubr.bf16.gmra.mrb[16].mxu1 %v6351_v25  ;;  %v716_v16 = vrot.slane %v715_v53, 4  ;;  %v4170_v12 = vrot.slane %v6088_v54, 9  ;;  %v744_v53 = vrot.slane %v742_v39, 5  ;;  %v5595_v54 = vld [vmem:[%s7241_s1 + $0x190] sm:$0xff]  }
  0x75   : > { %5090 = vmatmul.mubr.bf16.vlgmr.msra.gmra.mrb[0].mxu0 %v6336_v58  ;;  %v1483_v31 = vsel %vm6242_vm5, %v1481_v51, %v1482_v13  ;;  %v729_v36 = vor.u32 %v728_v46, %v725_v23  ;;  %v734_v9 = vrot.slane %v732_v27, 5  ;;  %v1489_v13 = vrot.slane %v6102_v3, 5  ;;  %v6399_v27 = vld [vmem:[%s5990_s6 + $0x9c] sm:$0xf] }
  0x76   : > { %v711_v57 = vsel %vm6035_vm2, %v706_v17, %v710_v14  ;;  %5122 = vmatpush3.bf16.msra.mxu0 %v5591_v61  ;;  %v721_v25 = vsel %vm6035_vm2, %v716_v16, %v720_v10  ;;  %v6376_v14 = vcombine.low %v1480_v41, %v1483_v31  ;;  %v738_v17 = vrot.slane %v736_v40, 4  ;;  %v6387_v10 = vld [vmem:[%s5990_s6 + $0x98] sm:$0x1]  ;;  %v6402_v31 = vld [vmem:[%s5990_s6 + $0xa0] sm:$0xf] }
  0x77   : > { %v6378_v49 = vcombine.low %v711_v57, %v721_v25  ;;  %v730_v29 = vrot.slane %v729_v36, 4  ;;  %5123 = vmatprep.subr.bf16.mxu0 %v5593_v63  ;;  %v747_v25 = vshrl.u32 %v6360_v56, 16  ;;  %v750_v41 = vshll.u32 %v6360_v56, 16 }
  0x78   : > { %5093 = vmatprep.mubr.bf16.mxu0 %v6376_v14  ;;  %v739_v61 = vor.u32 %v738_v17, %v734_v9  ;;  %v756_v51 = vshll.u32 %v6363_v2, 16  ;;  %v1487_v3 = vsel %vm6242_vm5, %v4170_v12, %v1486_v52  ;;  %v1488_v23 = vrot.slane %v1486_v52, 4  ;;  %v6409_v52 = vld [vmem:[%s5990_s6 + $0xa4] sm:$0x1] }
  0x79   : > { %7272 = vst [vmem:[#allocation10_spill] sm:$0xff] %v6378_v49  ;;  %4869 = vmatprep.mubr.bf16.mxu1 %v6378_v49  ;;  %v735_v62 = vsel %vm6035_vm2, %v730_v29, %v734_v9  ;;  %v760_v46 = vshrl.u32 %v6363_v2, 16  ;;  %v749_v16 = vrot.slane %v747_v25, 4  ;;  %v752_v40 = vrot.slane %v750_v41, 5 }
  0x7a   : > { %v740_v57 = vrot.slane %v739_v61, 4  ;;  %5124 = vmatpush3.bf16.msra.mxu0 %v5593_v63  ;;  %v758_v39 = vrot.slane %v756_v51, 5  ;;  %v1490_v36 = vsel %vm6242_vm5, %v1488_v23, %v1489_v13  ;;  %v766_v29 = vshll.u32 %v6387_v10, 16  ;;  %v5597_v13 = vld [vmem:[%s7241_s1 + $0x198] sm:$0xff]  }
  0x7b   : > { %v762_v17 = vrot.slane %v760_v46, 4  ;;  %v4171_v9 = vrot.slane %v6117_v26, 9  ;;  %5125 = vmatprep.subr.bf16.mxu0 %v5595_v54  ;;  %v6413_v12 = vcombine.low %v1487_v3, %v1490_v36  ;;  %v753_v61 = vor.u32 %v752_v40, %v749_v16 }
  0x7c   : > { %v745_v63 = vsel %vm6035_vm2, %v740_v57, %v744_v53  ;;  %v1493_v25 = vrot.slane %v6131_v32, 5  ;;  %v768_v26 = vrot.slane %v766_v29, 5  ;;  %v1496_v23 = vrot.slane %v6134_v33, 5  ;;  %v6427_v57 = vld [vmem:[%s5990_s6 + $0xa8] sm:$0xf] }
  0x7d   : > { %v6419_v41 = vcombine.low %v735_v62, %v745_v63  ;;  %v763_v51 = vor.u32 %v762_v17, %v758_v39  ;;  %5094 = vmatmul.mubr.bf16.gmra.mrb[4].mxu0 %v6413_v12  ;;  %v754_v46 = vrot.slane %v753_v61, 4  ;;  %v771_v32 = vshrl.u32 %v6399_v27, 16  ;;  %v5601_v62 = vld [vmem:[%s7241_s1 + $0x1a0] sm:$0xff]   ;;  %v6437_v17 = vld [vmem:[%s5990_s6 + $0xac] sm:$0xf] }
  0x7e   : > { %v1494_v53 = vsel %vm6242_vm5, %v4171_v9, %v1493_v25  ;;  %v1495_v3 = vrot.slane %v1493_v25, 4  ;;  %v774_v33 = vshll.u32 %v6399_v27, 16  ;;  %v780_v40 = vshll.u32 %v6402_v31, 16  ;;  %5126 = vmatpush3.bf16.msra.mxu0 %v5595_v54 }
  0x7f   : > { %7273 = vst [vmem:[#allocation11_spill] sm:$0xff] %v6419_v41  ;;  %4870 = vmatmul.mubr.bf16.gmra.mrb[20].mxu1 %v6419_v41  ;;  %v764_v16 = vrot.slane %v763_v51, 4  ;;  %v784_v36 = vshrl.u32 %v6402_v31, 16  ;;  %v759_v29 = vsel %vm6035_vm2, %v754_v46, %v758_v39  ;;  %v773_v63 = vrot.slane %v771_v32, 4  ;;  %5127 = vmatprep.subr.bf16.mxu0 %v5597_v13  ;;  %v6452_v46 = vld [vmem:[%s5990_s6 + $0xb0] sm:$0x1] }
  0x80   : > { %v1497_v9 = vsel %vm6242_vm5, %v1495_v3, %v1496_v23  ;;  %v790_v61 = vshll.u32 %v6409_v52, 16  ;;  %v776_v41 = vrot.slane %v774_v33, 5  ;;  %v782_v49 = vrot.slane %v780_v40, 5 }
  0x81   : > { %v769_v25 = vsel %vm6035_vm2, %v764_v16, %v768_v26  ;;  %v6446_v51 = vcombine.low %v1494_v53, %v1497_v9  ;;  %v786_v24 = vrot.slane %v784_v36, 4  ;;  %v4172_v39 = vrot.slane %v6148_v59, 9 }
  0x82   : > { %v6448_v54 = vcombine.low %v759_v29, %v769_v25  ;;  %v792_v50 = vrot.slane %v790_v61, 5  ;;  %v777_v23 = vor.u32 %v776_v41, %v773_v63  ;;  %v1500_v3 = vrot.slane %v6151_v60, 5  ;;  %5128 = vmatpush3.bf16.msra.mxu0 %v5597_v13  ;;  %v5605_v60 = vld [vmem:[%s7241_s1 + $0x1a8] sm:$0xff]  }
  0x83   : > { %5097 = vmatprep.mubr.bf16.mxu0 %v6446_v51  ;;  %v1503_v32 = vrot.slane %v6157_v1, 5  ;;  %v795_v26 = vshrl.u32 %v6427_v57, 16  ;;  %v787_v53 = vor.u32 %v786_v24, %v782_v49  ;;  %v798_v16 = vshll.u32 %v6427_v57, 16  ;;  %5129 = vmatprep.subr.bf16.mxu0 %v5601_v62 }
  0x84   : > { %7274 = vst [vmem:[#allocation12_spill] sm:$0xff] %v6448_v54  ;;  %4873 = vmatprep.mubr.bf16.mxu1 %v6448_v54  ;;  %v804_v33 = vshll.u32 %v6437_v17, 16  ;;  %v808_v59 = vshrl.u32 %v6437_v17, 16  ;;  %v778_v41 = vrot.slane %v777_v23, 4  ;;  %v1501_v1 = vsel %vm6242_vm5, %v4172_v39, %v1500_v3  ;;  %v6474_v54 = vld [vmem:[%s5990_s6 + $0xb4] sm:$0xf] }
  0x85   : > { %v1502_v13 = vrot.slane %v1500_v3, 4  ;;  %v797_v40 = vrot.slane %v795_v26, 4  ;;  %v788_v24 = vrot.slane %v787_v53, 4  ;;  %v800_v36 = vrot.slane %v798_v16, 5  ;;  %v6481_v16 = vld [vmem:[%s5990_s6 + $0xb8] sm:$0xf] }
  0x86   : > { %v806_v29 = vrot.slane %v804_v33, 5  ;;  %v810_v9 = vrot.slane %v808_v59, 4  ;;  %v783_v63 = vsel %vm6035_vm2, %v778_v41, %v782_v49  ;;  %v814_v25 = vshll.u32 %v6452_v46, 16  ;;  %5130 = vmatpush3.bf16.msra.mxu0 %v5601_v62  ;;  %v5609_v49 = vld [vmem:[%s7241_s1 + $0x1b0] sm:$0xff]   ;;  %v6491_v59 = vld [vmem:[%s5990_s6 + $0xbc] sm:$0x1] }
  0x87   : > { %v1504_v61 = vsel %vm6242_vm5, %v1502_v13, %v1503_v32  ;;  %v4173_v23 = vrot.slane %v6185_v37, 9  ;;  %v793_v39 = vsel %vm6035_vm2, %v788_v24, %v792_v50  ;;  %v801_v26 = vor.u32 %v800_v36, %v797_v40  ;;  %5131 = vmatprep.subr.bf16.mxu0 %v5605_v60  ;;  %v5613_v36 = vld [vmem:[%s7241_s1 + $0x1b8] sm:$0xff]  }
  0x88   : > { %v6478_v3 = vcombine.low %v1501_v1, %v1504_v61  ;;  %v811_v53 = vor.u32 %v810_v9, %v806_v29  ;;  %v6486_v32 = vcombine.low %v783_v63, %v793_v39  ;;  %v816_v37 = vrot.slane %v814_v25, 5 }
  0x89   : > { %v1507_v33 = vrot.slane %v6188_v38, 5  ;;  %v1510_v62 = vrot.slane %v6191_v42, 5  ;;  %v802_v50 = vrot.slane %v801_v26, 4  ;;  %v819_v1 = vshrl.u32 %v6474_v54, 16 }
  0x8a   : > { %7275 = vst [vmem:[#allocation13_spill] sm:$0xff] %v6486_v32  ;;  %5098 = vmatmul.mubr.bf16.gmra.mrb[8].mxu0 %v6478_v3  ;;  %v812_v41 = vrot.slane %v811_v53, 4  ;;  %v822_v13 = vshll.u32 %v6474_v54, 16  ;;  %4874 = vmatmul.mubr.bf16.gmra.mrb[24].mxu1 %v6486_v32  ;;  %v828_v38 = vshll.u32 %v6481_v16, 16  ;;  %v832_v42 = vshrl.u32 %v6481_v16, 16 }
  0x8b   : > { %v1508_v40 = vsel %vm6242_vm5, %v4173_v23, %v1507_v33  ;;  %v1509_v24 = vrot.slane %v1507_v33, 4  ;;  %5132 = vmatpush3.bf16.msra.mxu0 %v5605_v60  ;;  %v807_v9 = vsel %vm6035_vm2, %v802_v50, %v806_v29  ;;  %v821_v61 = vrot.slane %v819_v1, 4 }
  0x8c   : > { %v817_v63 = vsel %vm6035_vm2, %v812_v41, %v816_v37  ;;  %v824_v25 = vrot.slane %v822_v13, 5  ;;  %5133 = vmatprep.subr.bf16.mxu0 %v5609_v49  ;;  %v830_v26 = vrot.slane %v828_v38, 5  ;;  %v834_v60 = vrot.slane %v832_v42, 4 }
  0x8d   : > { %v6508_v23 = vcombine.low %v807_v9, %v817_v63  ;;  %v1511_v39 = vsel %vm6242_vm5, %v1509_v24, %v1510_v62  ;;  %v838_v32 = vshll.u32 %v6491_v59, 16  ;;  %v4174_v29 = vrot.slane %v6211_v0, 9  ;;  %v6523_v62 = vld [vmem:[%s7241_s1 + $0x1c0] sm:$0xff]  }
  0x8e   : > { %v6512_v53 = vcombine.low %v1508_v40, %v1511_v39  ;;  %v825_v33 = vor.u32 %v824_v25, %v821_v61  ;;  %v835_v37 = vor.u32 %v834_v60, %v830_v26  ;;  %v1514_v50 = vrot.slane %v6219_v15, 5 }
  0x8f   : > { %4877 = vmatprep.mubr.bf16.mxu1 %v6508_v23  ;;  %v1517_v41 = vrot.slane %v6225_v18, 5  ;;  %v4175_v1 = vrot.slane %v6253_v8, 9  ;;  %5134 = vmatpush3.bf16.msra.mxu0 %v5609_v49  ;;  %v840_v40 = vrot.slane %v838_v32, 5  ;;  %v1521_v24 = vrot.slane %v6260_v21, 5 }
  0x90   : > { %5101 = vmatprep.mubr.bf16.mxu0 %v6512_v53  ;;  %v826_v13 = vrot.slane %v825_v33, 4  ;;  %v1524_v38 = vrot.slane %v6268_v30, 5  ;;  %5135 = vmatprep.subr.bf16.mxu0 %v5613_v36  ;;  %v836_v42 = vrot.slane %v835_v37, 4  ;;  %v1515_v18 = vsel %vm6242_vm5, %v4174_v29, %v1514_v50 }
  0x91   : > { %v1516_v9 = vrot.slane %v1514_v50, 4  ;;  %v4176_v49 = vrot.slane %v6283_v34, 9  ;;  %v1522_v61 = vsel %vm6242_vm5, %v4175_v1, %v1521_v24  ;;  %v1523_v25 = vrot.slane %v1521_v24, 4 }
  0x92   : > { %v831_v63 = vsel %vm6035_vm2, %v826_v13, %v830_v26  ;;  %v1528_v32 = vrot.slane %v6297_v22, 5  ;;  %v841_v30 = vsel %vm6035_vm2, %v836_v42, %v840_v40  ;;  %v1531_v60 = vrot.slane %v6304_v48, 5 }
  0x93   : > { %v1518_v39 = vsel %vm6242_vm5, %v1516_v9, %v1517_v41  ;;  %v4177_v33 = vrot.slane %v6321_v6, 9  ;;  %5136 = vmatpush3.bf16.msra.mxu0 %v5613_v36  ;;  %v6542_v29 = vcombine.low %v831_v63, %v841_v30  ;;  %v1525_v37 = vsel %vm6242_vm5, %v1523_v25, %v1524_v38  ;;  %v5604_v25 = vld [vmem:[%s7241_s1 + $0x88] sm:$0xff]  }
  0x94   : > { %v6544_v26 = vcombine.low %v1515_v18, %v1518_v39  ;;  %5169 = vmatprep.subr.bf16.mxu0 %v6523_v62  ;;  %v6549_v50 = vcombine.low %v1522_v61, %v1525_v37  ;;  %v1530_v1 = vrot.slane %v1528_v32, 4  ;;  %v1535_v13 = vrot.slane %v6341_v35, 5 }
  0x95   : > { %v1538_v41 = vrot.slane %v6347_v4, 5  ;;  %4878 = vmatmul.mubr.bf16.gmra.mrb[28].mxu1 %v6542_v29  ;;  %v7276_v48 = vcombine.low %v5999_v44, %v6002_v45  ;;  %v1529_v36 = vsel %vm6242_vm5, %v4176_v49, %v1528_v32  ;;  %v1542_v38 = vrot.slane %v6363_v2, 5 }
  0x96   : > { %5102 = vmatmul.mubr.bf16.gmra.mrb[12].mxu0 %v6544_v26  ;;  %v1532_v40 = vsel %vm6242_vm5, %v1530_v1, %v1531_v60  ;;  %v1537_v24 = vrot.slane %v1535_v13, 4  ;;  %v1549_v4 = vrot.slane %v6402_v31, 5  ;;  %v1536_v42 = vsel %vm6242_vm5, %v4177_v33, %v1535_v13 }
  0x97   : > { %4897 = vmatprep.mubr.bf16.mxu1 %v7276_v48  ;;  %5105 = vmatprep.mubr.bf16.mxu0 %v6549_v50  ;;  %v6569_v45 = vcombine.low %v1529_v36, %v1532_v40  ;;  %v4178_v18 = vrot.slane %v6360_v56, 9  ;;  %v1545_v9 = vrot.slane %v6387_v10, 5  ;;  %v1544_v49 = vrot.slane %v1542_v38, 4 }
  0x98   : > { %v1539_v44 = vsel %vm6242_vm5, %v1537_v24, %v1538_v41  ;;  %v4179_v63 = vrot.slane %v6399_v27, 9  ;;  %v1551_v32 = vrot.slane %v1549_v4, 4  ;;  %v1552_v30 = vrot.slane %v6409_v52, 5 }
  0x99   : > { %v6574_v61 = vcombine.low %v1536_v42, %v1539_v44  ;;  %v1543_v39 = vsel %vm6242_vm5, %v4178_v18, %v1542_v38  ;;  %v1556_v10 = vrot.slane %v6437_v17, 5  ;;  %v6587_v60 = vcombine.low %v6211_v0, %v6219_v15  ;;  %v5608_v15 = vld [vmem:[%s7241_s1 + $0x90] sm:$0xff]   ;;  %v435_v38 = vld [vmem:[%s5990_s6 + $0xc8] sm:$0x1]  ;;  %v5781_v42 = vld [vmem:[%s5990_s6 + $0x40] sm:$0xf] }
  0x9a   : > { %v1546_v52 = vsel %vm6242_vm5, %v1544_v49, %v1545_v9  ;;  %v1550_v33 = vsel %vm6242_vm5, %v4179_v63, %v1549_v4  ;;  %v4180_v37 = vrot.slane %v6427_v57, 9  ;;  %v6598_v1 = vcombine.low %v6253_v8, %v6260_v21  ;;  %v5780_v4 = vld [vmem:[%s5990_s6 + $0x3c] sm:$0xf]  ;;  %v5782_v9 = vld [vmem:[%s5990_s6 + $0x48] sm:$0xf] }
  0x9b   : > { %v1553_v0 = vsel %vm6242_vm5, %v1551_v32, %v1552_v30  ;;  %v6609_v13 = vcombine.low %v6283_v34, %v6297_v22  ;;  %v6613_v8 = vcombine.low %v6321_v6, %v6341_v35  ;;  %v6617_v21 = vcombine.low %v6360_v56, %v6363_v2  ;;  %v6637_v56 = vld [vmem:[%s5990_s6 + $0xc4] sm:$0xf]  ;;  %v5783_v49 = vld [vmem:[%s5990_s6 + $0x4c] sm:$0xf] }
  0x9c   : > { %v6621_v41 = vcombine.low %v6399_v27, %v6402_v31  ;;  %v6625_v48 = vcombine.low %v6427_v57, %v6437_v17  ;;  %v6627_v36 = vcombine.low %v1543_v39, %v1546_v52  ;;  %v1558_v34 = vrot.slane %v1556_v10, 4  ;;  %v5612_v57 = vld [vmem:[%s7241_s1 + $0x98] sm:$0xff]  }
  0x9d   : > { %4898 = vmatmul.mubr.bf16.vlgmr.msra.gmra.mrb[0].mxu1 %v6048_v11  ;;  %v1559_v22 = vrot.slane %v6452_v46, 5  ;;  %v6632_v6 = vcombine.low %v6474_v54, %v6481_v16  ;;  %v6634_v35 = vcombine.low %v1550_v33, %v1553_v0  ;;  %v4181_v2 = vrot.slane %v6474_v54, 9  ;;  %v6651_v46 = vld [vmem:[%s5990_s6 + $0xc0] sm:$0xf] }
  0x9e   : > { %5106 = vmatmul.mubr.bf16.gmra.mrb[16].mxu0 %v6569_v45  ;;  %4930 = vmatpush3.bf16.msra.mxu1 %v6312_v20  ;;  %v1563_v20 = vrot.slane %v6481_v16, 5  ;;  %v1566_v31 = vrot.slane %v6491_v59, 5  ;;  %v1557_v17 = vsel %vm6242_vm5, %v4180_v37, %v1556_v10  ;;  %v2443_v16 = vrot.slane %v6637_v56, 5  ;;  %v5616_v59 = vld [vmem:[%s7241_s1 + $0xa0] sm:$0xff]  }
  0x9f   : > { %4901 = vmatprep.mubr.bf16.mxu1 %v6124_v28  ;;  %5109 = vmatprep.mubr.bf16.mxu0 %v6574_v61  ;;  %v1560_v54 = vsel %vm6242_vm5, %v1558_v34, %v1559_v22  ;;  %v6666_v44 = vcombine.low %v5780_v4, %v5781_v42  ;;  %v6672_v63 = vcombine.low %v5782_v9, %v5783_v49  ;;  %v2158_v32 = vshll.u32 %v6651_v46, 16  ;;  %v5620_v22 = vld [vmem:[%s7241_s1 + $0xa8] sm:$0xff]   ;;  %v5624_v4 = vld [vmem:[%s7241_s1 + $0xb0] sm:$0xff]   ;;  %v5785_v42 = vld [vmem:[%s5990_s6 + $0x58] sm:$0xf] }
  0xa0   : > { %4931 = vmatprep.subr.bf16.mxu1 %v5604_v25  ;;  %v1565_v27 = vrot.slane %v1563_v20, 4  ;;  %v1564_v40 = vsel %vm6242_vm5, %v4181_v2, %v1563_v20  ;;  %v6668_v18 = vcombine.low %v1557_v17, %v1560_v54  ;;  %v2164_v30 = vshll.u32 %v6637_v56, 16 }
  0xa1   : > { %v2168_v39 = vshrl.u32 %v6637_v56, 16  ;;  %v4272_v52 = vrot.slane %v6651_v46, 9  ;;  %v2445_v33 = vrot.slane %v2443_v16, 4  ;;  %v2446_v37 = vrot.slane %v435_v38, 5 }
  0xa2   : > { %4932 = vmatpush3.bf16.msra.mxu1 %v5604_v25  ;;  %v1567_v24 = vsel %vm6242_vm5, %v1565_v27, %v1566_v31  ;;  %v2155_v25 = vshrl.u32 %v6651_v46, 16  ;;  %v2166_v20 = vrot.slane %v2164_v30, 5  ;;  %v2174_v31 = vshll.u32 %v435_v38, 16  ;;  %v5784_v38 = vld [vmem:[%s5990_s6 + $0x54] sm:$0xf]  ;;  %v5630_v30 = vld [vmem:[%s7241_s1 + $0xc0] sm:$0xff]  }
  0xa3   : > { %4933 = vmatprep.subr.bf16.mxu1 %v5608_v15  ;;  %v6678_v10 = vcombine.low %v1564_v40, %v1567_v24  ;;  %v2170_v34 = vrot.slane %v2168_v39, 4  ;;  %v2447_v17 = vsel %vm6242_vm5, %v2445_v33, %v2446_v37  ;;  %v6697_v9 = vcombine.low %v5784_v38, %v5785_v42  ;;  %v5621_v39 = vld [vmem:[%s7241_s1 + $0x1c8] sm:$0xff]   ;;  %v5629_v33 = vld [vmem:[%s7241_s1 + $0x1d8] sm:$0xff]   ;;  %v5634_v38 = vld [vmem:[%s7241_s1 + $0xd0] sm:$0xff]  }
  0xa4   : > { %v2157_v0 = vrot.slane %v2155_v25, 4  ;;  %v2176_v24 = vrot.slane %v2174_v31, 5  ;;  %v5637_v42 = vld [vmem:[%s7241_s1 + $0xd8] sm:$0xff]  }
  0xa5   : > { %4902 = vmatmul.mubr.bf16.gmra.mrb[4].mxu1 %v6195_v43  ;;  %v2171_v27 = vor.u32 %v2170_v34, %v2166_v20  ;;  %v5788_v34 = vld [vmem:[%s5990_s6] sm:$0xf] }
  0xa6   : > { %5110 = vmatmul.mubr.bf16.gmra.mrb[20].mxu0 %v6627_v36  ;;  %4905 = vmatprep.mubr.bf16.mxu1 %v6199_v47 }
  0xa7   : > { %5113 = vmatprep.mubr.bf16.mxu0 %v6634_v35  ;;  %4934 = vmatpush3.bf16.msra.mxu1 %v5608_v15  ;;  %v2160_v15 = vrot.slane %v2158_v32, 5  ;;  %v2172_v40 = vrot.slane %v2171_v27, 4  ;;  %v5628_v32 = vld [vmem:[%s7241_s1 + $0xb8] sm:$0xff]   ;;  %v5633_v27 = vld [vmem:[%s7241_s1 + $0x1e8] sm:$0xff]  }
  0xa8   : > { %4935 = vmatprep.subr.bf16.mxu1 %v5612_v57 }
  0xa9   : > { %v2161_v2 = vor.u32 %v2160_v15, %v2157_v0  ;;  %v5631_v0 = vld [vmem:[%s7241_s1 + $0x1e0] sm:$0xff]   ;;  %v5787_v15 = vld [vmem:[%s5990_s6 + $0x8] sm:$0x1] }
  0xab   : > { %4936 = vmatpush3.bf16.msra.mxu1 %v5612_v57  ;;  %v2444_v57 = vsel %vm6242_vm5, %v4272_v52, %v2443_v16  ;;  %v2162_v54 = vrot.slane %v2161_v2, 4  ;;  %v5625_v52 = vld [vmem:[%s7241_s1 + $0x1d0] sm:$0xff]  }
  0xac   : > { %4937 = vmatprep.subr.bf16.mxu1 %v5616_v59  ;;  %v6699_v49 = vcombine.low %v2444_v57, %v2447_v17  ;;  %v5635_v17 = vld [vmem:[%s7241_s1 + $0x1f0] sm:$0xff]  }
  0xad   : > { %4906 = vmatmul.mubr.bf16.gmra.mrb[8].mxu1 %v6666_v44  ;;  %v2167_v16 = vsel %vm6035_vm2, %v2162_v54, %v2166_v20  ;;  %v1461_v20 = vrot.slane %v5787_v15, 5  ;;  %v7279_v15 = vld [vmem:[#allocation5_spill] sm:$0xff] }
  0xae   : > { %5114 = vmatmul.mubr.bf16.gmra.mrb[24].mxu0 %v6668_v18  ;;  %4909 = vmatprep.mubr.bf16.mxu1 %v6672_v63 }
  0xaf   : > { %5117 = vmatprep.mubr.bf16.mxu0 %v6678_v10  ;;  %4938 = vmatpush3.bf16.msra.mxu1 %v5616_v59  ;;  %v2177_v59 = vsel %vm6035_vm2, %v2172_v40, %v2176_v24  ;;  %v5639_v40 = vld [vmem:[%s7241_s1 + $0x1f8] sm:$0xff]   ;;  %v5641_v24 = vld [vmem:[%s7241_s1 + $0x200] sm:$0xff]  }
  0xb0   : > { %4939 = vmatprep.subr.bf16.mxu1 %v5620_v22  ;;  %v6705_v25 = vcombine.low %v2167_v16, %v2177_v59  ;;  %v6786_v16 = vcombine.low %v6651_v46, %v6637_v56  ;;  %v5642_v59 = vld [vmem:[%s7241_s1 + $0xe8] sm:$0xff]   ;;  %v5644_v56 = vld [vmem:[%s7241_s1 + $0xf0] sm:$0xff]  }
  0xb3   : > { %4940 = vmatpush3.bf16.msra.mxu1 %v5620_v22  ;;  %v4166_v22 = vrot.slane %v5788_v34, 9  ;;  %v5648_v34 = vld [vmem:[%s7241_s1 + $0x220] sm:$0xff]  }
  0xb4   : > { %4941 = vmatprep.subr.bf16.mxu1 %v5624_v4 }
  0xb5   : > { %4910 = vmatmul.mubr.bf16.gmra.mrb[12].mxu1 %v6697_v9 }
  0xb6   : > { %5118 = vmatmul.mubr.bf16.gmra.mrb[28].mxu0 %v6699_v49  ;;  %4913 = vmatprep.mubr.bf16.mxu1 %v6587_v60 }
  0xb7   : > { %5137 = vmatprep.mubr.bf16.mxu0 %v6124_v28  ;;  %4942 = vmatpush3.bf16.msra.mxu1 %v5624_v4  ;;  %v5632_v4 = vld [vmem:[%s7241_s1 + $0xc8] sm:$0xff]  }
  0xb8   : > { %4943 = vmatprep.subr.bf16.mxu1 %v5628_v32 }
  0xbb   : > { %4944 = vmatpush3.bf16.msra.mxu1 %v5628_v32  ;;  %v6796_v32 = vld [vmem:[%s5990_s6 + $0xcc] sm:$0xf] }
  0xbc   : > { %4977 = vmatprep.subr.bf16.mxu1 %v5630_v30 }
  0xbd   : > { %4914 = vmatmul.mubr.bf16.gmra.mrb[16].mxu1 %v6598_v1 }
  0xbe   : > { %5138 = vmatmul.mubr.bf16.vlgmr.msra.gmra.mrb[0].mxu0 %v6195_v43  ;;  %4917 = vmatprep.mubr.bf16.mxu1 %v6609_v13 }
  0xbf   : > { %5170 = vmatpush3.bf16.msra.mxu0 %v6523_v62  ;;  %5141 = vmatprep.mubr.bf16.mxu0 %v6199_v47  ;;  %v5786_v62 = vld [vmem:[%s5990_s6 + $0x4] sm:$0xf] }
  0xc0   : > { %5171 = vmatprep.subr.bf16.mxu0 %v5621_v39  ;;  %v1458_v37 = vrot.slane %v5786_v62, 5  ;;  %v7277_v62 = vld [vmem:[#allocation3_spill] sm:$0xff] }
  0xc2   : > { %v1460_v2 = vrot.slane %v1458_v37, 4  ;;  %v1459_v31 = vsel %vm6242_vm5, %v4166_v22, %v1458_v37  ;;  %v5645_v37 = vld [vmem:[%s7241_s1 + $0x210] sm:$0xff]   ;;  %v5649_v22 = vld [vmem:[%s7241_s1 + $0x228] sm:$0xff]  }
  0xc3   : > { %5172 = vmatpush3.bf16.msra.mxu0 %v5621_v39  ;;  %v5646_v39 = vld [vmem:[%s7241_s1 + $0xf8] sm:$0xff]  }
  0xc4   : > { %5173 = vmatprep.subr.bf16.mxu0 %v5625_v52  ;;  %v1462_v57 = vsel %vm6242_vm5, %v1460_v2, %v1461_v20  ;;  %v7280_v20 = vld [vmem:[#allocation6_spill] sm:$0xff]  ;;  %v7281_v2 = vld [vmem:[#allocation7_spill] sm:$0xff] }
  0xc5   : > { %4918 = vmatmul.mubr.bf16.gmra.mrb[20].mxu1 %v6613_v8  ;;  %v4198_v54 = vcombine.low %v1459_v31, %v1462_v57  ;;  %v5650_v31 = vld [vmem:[%s7241_s1 + $0x230] sm:$0xff]   ;;  %v5651_v57 = vld [vmem:[%s7241_s1 + $0x238] sm:$0xff]  }
  0xc6   : > { %5142 = vmatmul.mubr.bf16.gmra.mrb[4].mxu0 %v6666_v44  ;;  %4921 = vmatprep.mubr.bf16.mxu1 %v6617_v21 }
  0xc7   : > { %5145 = vmatprep.mubr.bf16.mxu0 %v6672_v63  ;;  %5174 = vmatpush3.bf16.msra.mxu0 %v5625_v52  ;;  %v5643_v52 = vld [vmem:[%s7241_s1 + $0x208] sm:$0xff]  }
  0xc8   : > { %5175 = vmatprep.subr.bf16.mxu0 %v5629_v33 }
  0xcb   : > { %5176 = vmatpush3.bf16.msra.mxu0 %v5629_v33  ;;  %v5789_v33 = vld [vmem:[%s7241_s1 + $0x100] sm:$0xff]  }
  0xcc   : > { %5177 = vmatprep.subr.bf16.mxu0 %v5631_v0 }
  0xcd   : > { %4922 = vmatmul.mubr.bf16.gmra.mrb[24].mxu1 %v6621_v41 }
  0xce   : > { %5146 = vmatmul.mubr.bf16.gmra.mrb[8].mxu0 %v6697_v9  ;;  %4925 = vmatprep.mubr.bf16.mxu1 %v6625_v48 }
  0xcf   : > { %5149 = vmatprep.mubr.bf16.mxu0 %v6587_v60  ;;  %5178 = vmatpush3.bf16.msra.mxu0 %v5631_v0  ;;  %v5647_v0 = vld [vmem:[%s7241_s1 + $0x218] sm:$0xff]  }
  0xd0   : > { %5179 = vmatprep.subr.bf16.mxu0 %v5633_v27 }
  0xd3   : > { %5180 = vmatpush3.bf16.msra.mxu0 %v5633_v27  ;;  %v7282_v27 = vld [vmem:[#allocation8_spill] sm:$0xff] }
  0xd4   : > { %5181 = vmatprep.subr.bf16.mxu0 %v5635_v17 }
  0xd5   : > { %4926 = vmatmul.mubr.bf16.gmra.mrb[28].mxu1 %v6632_v6 }
  0xd6   : > { %5150 = vmatmul.mubr.bf16.gmra.mrb[12].mxu0 %v6598_v1  ;;  %4945 = vmatprep.mubr.bf16.mxu1 %v4198_v54  ;;  %v7284_v54 = vld [vmem:[#allocation10_spill] sm:$0xff] }
  0xd7   : > { %5153 = vmatprep.mubr.bf16.mxu0 %v6609_v13  ;;  %5182 = vmatpush3.bf16.msra.mxu0 %v5635_v17  ;;  %v7283_v17 = vld [vmem:[#allocation9_spill] sm:$0xff] }
  0xd8   : > { %5183 = vmatprep.subr.bf16.mxu0 %v5639_v40 }
  0xdb   : > { %5184 = vmatpush3.bf16.msra.mxu0 %v5639_v40  ;;  %v7285_v40 = vld [vmem:[#allocation11_spill] sm:$0xff] }
  0xdc   : > { %5217 = vmatprep.subr.bf16.mxu0 %v5641_v24 }
  0xdd   : > { %4946 = vmatmul.mubr.bf16.vlgmr.msra.gmra.mrb[0].mxu1 %v6290_v7  ;;  %v5640_v7 = vld [vmem:[%s7241_s1 + $0xe0] sm:$0xff]  }
  0xde   : > { %5154 = vmatmul.mubr.bf16.gmra.mrb[16].mxu0 %v6613_v8  ;;  %4978 = vmatpush3.bf16.msra.mxu1 %v5630_v30  ;;  %v6799_v30 = vld [vmem:[%s5990_s6 + $0xd0] sm:$0xf] }
  0xdf   : > { %4949 = vmatprep.mubr.bf16.mxu1 %v6336_v58  ;;  %5157 = vmatprep.mubr.bf16.mxu0 %v6617_v21  ;;  %v4314_v46 = vcombine.low %v6796_v32, %v6799_v30 }
  0xe0   : > { %4979 = vmatprep.subr.bf16.mxu1 %v5632_v4 }
  0xe2   : > { %4980 = vmatpush3.bf16.msra.mxu1 %v5632_v4  ;;  %v2978_v4 = vshll.u32 %v6796_v32, 16 }
  0xe3   : > { %4981 = vmatprep.subr.bf16.mxu1 %v5634_v38 }
  0xe5   : > { %4950 = vmatmul.mubr.bf16.gmra.mrb[4].mxu1 %v6376_v14 }
  0xe6   : > { %5158 = vmatmul.mubr.bf16.gmra.mrb[20].mxu0 %v6621_v41  ;;  %4953 = vmatprep.mubr.bf16.mxu1 %v6413_v12 }
  0xe7   : > { %5161 = vmatprep.mubr.bf16.mxu0 %v6625_v48  ;;  %4982 = vmatpush3.bf16.msra.mxu1 %v5634_v38  ;;  %v2988_v38 = vshrl.u32 %v6799_v30, 16 }
  0xe8   : > { %4983 = vmatprep.subr.bf16.mxu1 %v5637_v42 }
  0xeb   : > { %4984 = vmatpush3.bf16.msra.mxu1 %v5637_v42  ;;  %v7286_v42 = vld [vmem:[#allocation12_spill] sm:$0xff] }
  0xec   : > { %4985 = vmatprep.subr.bf16.mxu1 %v5640_v7 }
  0xed   : > { %4954 = vmatmul.mubr.bf16.gmra.mrb[8].mxu1 %v6446_v51 }
  0xee   : > { %5162 = vmatmul.mubr.bf16.gmra.mrb[24].mxu0 %v6632_v6  ;;  %4957 = vmatprep.mubr.bf16.mxu1 %v6478_v3 }
  0xef   : > { %5165 = vmatprep.mubr.bf16.mxu0 %v6786_v16  ;;  %4986 = vmatpush3.bf16.msra.mxu1 %v5640_v7 }
  0xf0   : > { %4987 = vmatprep.subr.bf16.mxu1 %v5642_v59 }
  0xf3   : > { %4988 = vmatpush3.bf16.msra.mxu1 %v5642_v59  ;;  %v2980_v59 = vrot.slane %v2978_v4, 5 }
  0xf4   : > { %4989 = vmatprep.subr.bf16.mxu1 %v5644_v56 }
  0xf5   : > { %4958 = vmatmul.mubr.bf16.gmra.mrb[12].mxu1 %v6512_v53 }
  0xf6   : > { %5166 = vmatmul.mubr.bf16.gmra.mrb[28].mxu0 %v4314_v46  ;;  %4961 = vmatprep.mubr.bf16.mxu1 %v6544_v26  ;;  %v2990_v46 = vrot.slane %v2988_v38, 4 }
  0xf7   : > { %5185 = vmatprep.mubr.bf16.mxu0 %v6112_v19  ;;  %4990 = vmatpush3.bf16.msra.mxu1 %v5644_v56  ;;  %v7278_v19 = vld [vmem:[#allocation4_spill] sm:$0xff] }
  0xf8   : > { %4991 = vmatprep.subr.bf16.mxu1 %v5646_v39 }
  0xfb   : > { %4992 = vmatpush3.bf16.msra.mxu1 %v5646_v39  ;;  %v5791_v39 = vld [vmem:[%s7241_s1 + $0x110] sm:$0xff]  }
  0xfc   : > { %5265 = vmatprep.subr.bf16.mxu1 %v5789_v33 }
  0xfd   : > { %4962 = vmatmul.mubr.bf16.gmra.mrb[16].mxu1 %v6549_v50 }
  0xfe   : > { %5186 = vmatmul.mubr.bf16.vlgmr.msra.gmra.mrb[0].mxu0 %v7277_v62  ;;  %4965 = vmatprep.mubr.bf16.mxu1 %v6569_v45 }
  0xff   : > { %5218 = vmatpush3.bf16.msra.mxu0 %v5641_v24  ;;  %5189 = vmatprep.mubr.bf16.mxu0 %v7278_v19  ;;  %v2975_v24 = vshrl.u32 %v6796_v32, 16 }
 0x100   : > { %5219 = vmatprep.subr.bf16.mxu0 %v5643_v52 }
 0x101   : > { %v2977_v7 = vrot.slane %v2975_v24, 4 }
 0x103   : > { %5220 = vmatpush3.bf16.msra.mxu0 %v5643_v52  ;;  %v7287_v52 = vld [vmem:[#allocation13_spill] sm:$0xff] }
 0x104   : > { %5221 = vmatprep.subr.bf16.mxu0 %v5645_v37 }
 0x105   : > { %4966 = vmatmul.mubr.bf16.gmra.mrb[20].mxu1 %v6574_v61 }
 0x106   : > { %5190 = vmatmul.mubr.bf16.gmra.mrb[4].mxu0 %v7279_v15  ;;  %4969 = vmatprep.mubr.bf16.mxu1 %v6627_v36 }
 0x107   : > { %5193 = vmatprep.mubr.bf16.mxu0 %v7280_v20  ;;  %5222 = vmatpush3.bf16.msra.mxu0 %v5645_v37  ;;  %v5792_v37 = vld [vmem:[%s7241_s1 + $0x118] sm:$0xff]  }
 0x108   : > { %5223 = vmatprep.subr.bf16.mxu0 %v5647_v0 }
 0x10b   : > { %5224 = vmatpush3.bf16.msra.mxu0 %v5647_v0 }
 0x10c   : > { %5225 = vmatprep.subr.bf16.mxu0 %v5648_v34 }
 0x10d   : > { %4970 = vmatmul.mubr.bf16.gmra.mrb[24].mxu1 %v6634_v35 }
 0x10e   : > { %5194 = vmatmul.mubr.bf16.gmra.mrb[8].mxu0 %v7281_v2  ;;  %4973 = vmatprep.mubr.bf16.mxu1 %v6668_v18 }
 0x10f   : > { %5197 = vmatprep.mubr.bf16.mxu0 %v7282_v27  ;;  %5226 = vmatpush3.bf16.msra.mxu0 %v5648_v34 }
 0x110   : > { %5227 = vmatprep.subr.bf16.mxu0 %v5649_v22 }
 0x113   : > { %5228 = vmatpush3.bf16.msra.mxu0 %v5649_v22  ;;  %v5794_v22 = vld [vmem:[%s7241_s1 + $0x128] sm:$0xff]  }
 0x114   : > { %5229 = vmatprep.subr.bf16.mxu0 %v5650_v31 }
 0x115   : > { %4974 = vmatmul.mubr.bf16.gmra.mrb[28].mxu1 %v6678_v10 }
 0x116   : > { %5198 = vmatmul.mubr.bf16.gmra.mrb[12].mxu0 %v7283_v17  ;;  %4993 = vmatprep.mubr.bf16.mxu1 %v6048_v11  ;;  %v2984_v11 = vshll.u32 %v6799_v30, 16 }
 0x117   : > { %5201 = vmatprep.mubr.bf16.mxu0 %v7284_v54  ;;  %5230 = vmatpush3.bf16.msra.mxu0 %v5650_v31 }
 0x118   : > { %5231 = vmatprep.subr.bf16.mxu0 %v5651_v57  ;;  %v2986_v56 = vrot.slane %v2984_v11, 5 }
 0x11a   : > { %v2991_v62 = vor.u32 %v2990_v46, %v2986_v56  ;;  %v6977_v46 = vld [vmem:[%s6974_s15 + $0x8] sm:$0xff]  }
 0x11b   : > { %5232 = vmatpush3.bf16.msra.mxu0 %v5651_v57 }
 0x11c   : > { %v2992_v15 = vrot.slane %v2991_v62, 4 }
 0x11d   : > { %4994 = vmatmul.mubr.bf16.vlgmr.msra.gmra.mrb[0].mxu1 %v6124_v28  ;;  %v5790_v28 = vld [vmem:[%s7241_s1 + $0x108] sm:$0xff]  }
 0x11e   : > { %5202 = vmatmul.mubr.bf16.gmra.mrb[16].mxu0 %v7285_v40  ;;  %5273 = vmatpush3.bf16.msra.mxu1 %v5789_v33  ;;  %v2981_v33 = vor.u32 %v2980_v59, %v2977_v7 }
 0x11f   : > { %4997 = vmatprep.mubr.bf16.mxu1 %v6195_v43  ;;  %5205 = vmatprep.mubr.bf16.mxu0 %v7286_v42  ;;  %v6867_v43 = vld [vmem:[%s5990_s6 + $0xd4] sm:$0x1] }
 0x120   : > { %5266 = vmatprep.subr.bf16.mxu1 %v5790_v28  ;;  %v2994_v19 = vshll.u32 %v6867_v43, 16  ;;  %v2982_v0 = vrot.slane %v2981_v33, 4  ;;  %v6980_v33 = vld [vmem:[%s6974_s15] sm:$0xff]  }
 0x122   : > { %5274 = vmatpush3.bf16.msra.mxu1 %v5790_v28  ;;  %v2996_v20 = vrot.slane %v2994_v19, 5 }
 0x123   : > { %5267 = vmatprep.subr.bf16.mxu1 %v5791_v39 }
 0x124   : > { %v2997_v34 = vsel %vm6035_vm2, %v2992_v15, %v2996_v20 }
 0x125   : > { %4998 = vmatmul.mubr.bf16.gmra.mrb[4].mxu1 %v6199_v47  ;;  %v5793_v47 = vld [vmem:[%s7241_s1 + $0x120] sm:$0xff]  }
 0x126   : > { %5206 = vmatmul.mubr.bf16.gmra.mrb[20].mxu0 %v7287_v52  ;;  %5001 = vmatprep.mubr.bf16.mxu1 %v6666_v44  ;;  %v2987_v44 = vsel %vm6035_vm2, %v2982_v0, %v2986_v56  ;;  %v6986_v0 = vld [vmem:[%s6974_s15 + $0x18] sm:$0xff]  }
 0x127   : > { %5209 = vmatprep.mubr.bf16.mxu0 %v6508_v23  ;;  %5275 = vmatpush3.bf16.msra.mxu1 %v5791_v39  ;;  %v4339_v2 = vcombine.low %v2987_v44, %v2997_v34  ;;  %v6994_v34 = vld [vmem:[%s6974_s15 + $0x10] sm:$0xff]  }
 0x128   : > { %5268 = vmatprep.subr.bf16.mxu1 %v5792_v37 }
 0x12b   : > { %5276 = vmatpush3.bf16.msra.mxu1 %v5792_v37 }
 0x12c   : > { %5269 = vmatprep.subr.bf16.mxu1 %v5793_v47 }
 0x12d   : > { %5002 = vmatmul.mubr.bf16.gmra.mrb[8].mxu1 %v6672_v63  ;;  %v5795_v63 = vld [vmem:[%s7241_s1 + $0x130] sm:$0xff]  }
 0x12e   : > { %5210 = vmatmul.mubr.bf16.gmra.mrb[24].mxu0 %v6542_v29  ;;  %5005 = vmatprep.mubr.bf16.mxu1 %v6697_v9 }
 0x12f   : > { %5213 = vmatprep.mubr.bf16.mxu0 %v6705_v25  ;;  %5277 = vmatpush3.bf16.msra.mxu1 %v5793_v47  ;;  %v4449_v47 = vunpack.c.l.bf16 %v6977_v46 }
 0x130   : > { %5270 = vmatprep.subr.bf16.mxu1 %v5794_v22 }
 0x133   : > { %5278 = vmatpush3.bf16.msra.mxu1 %v5794_v22 }
 0x134   : > { %5271 = vmatprep.subr.bf16.mxu1 %v5795_v63 }
 0x135   : > { %5006 = vmatmul.mubr.bf16.gmra.mrb[12].mxu1 %v6587_v60 }
 0x136   : > { %5214 = vmatmul.mubr.bf16.gmra.mrb[28].mxu0 %v4339_v2  ;;  %5009 = vmatprep.mubr.bf16.mxu1 %v6598_v1  ;;  %v4445_v2 = vunpack.c.l.bf16 %v6980_v33 }
 0x137   : > { %5233 = vmatprep.mubr.bf16.mxu0 %v6336_v58  ;;  %5279 = vmatpush3.bf16.msra.mxu1 %v5795_v63  ;;  %v3263_v58 = vrot.slane %v6799_v30, 5  ;;  %v4450_v63 = vunpack.c.h.bf16 %v6977_v46 }
 0x138   : > { %5272 = vmatprep.subr.bf16.mxu1 %v5796_v5 }
 0x13b   : > { %5280 = vmatpush3.bf16.msra.mxu1 %v5796_v5 }
 0x13d   : > { %5010 = vmatmul.mubr.bf16.gmra.mrb[16].mxu1 %v6609_v13 }
 0x13e   : > { %5234 = vmatmul.mubr.bf16.vlgmr.msra.gmra.mrb[0].mxu0 %v6376_v14  ;;  %5013 = vmatprep.mubr.bf16.mxu1 %v6613_v8  ;;  %v4348_v14 = vrot.slane %v6796_v32, 9 }
 0x13f   : > { %5237 = vmatprep.mubr.bf16.mxu0 %v6413_v12  ;;  %v3265_v12 = vrot.slane %v3263_v58, 4 }
 0x145   : > { %5014 = vmatmul.mubr.bf16.gmra.mrb[20].mxu1 %v6617_v21 }
 0x146   : > { %5238 = vmatmul.mubr.bf16.gmra.mrb[4].mxu0 %v6446_v51  ;;  %5017 = vmatprep.mubr.bf16.mxu1 %v6621_v41  ;;  %v3266_v51 = vrot.slane %v6867_v43, 5 }
 0x147   : > { %5241 = vmatprep.mubr.bf16.mxu0 %v6478_v3  ;;  %v3264_v3 = vsel %vm6242_vm5, %v4348_v14, %v3263_v58  ;;  %v4446_v14 = vunpack.c.h.bf16 %v6980_v33 }
 0x14d   : > { %5018 = vmatmul.mubr.bf16.gmra.mrb[24].mxu1 %v6625_v48 }
 0x14e   : > { %5242 = vmatmul.mubr.bf16.gmra.mrb[8].mxu0 %v6512_v53  ;;  %5021 = vmatprep.mubr.bf16.mxu1 %v6632_v6  ;;  %v3267_v53 = vsel %vm6242_vm5, %v3265_v12, %v3266_v51  ;;  %v4457_v51 = vunpack.c.l.bf16 %v6986_v0 }
 0x14f   : > { %5245 = vmatprep.mubr.bf16.mxu0 %v6544_v26  ;;  %v4365_v26 = vcombine.low %v3264_v3, %v3267_v53  ;;  %v7009_v53 = vld [vmem:[%s6974_s15 + $0x28] sm:$0xff]  }
 0x155   : > { %5022 = vmatmul.mubr.bf16.gmra.mrb[28].mxu1 %v6786_v16 }
 0x156   : > { %5246 = vmatmul.mubr.bf16.gmra.mrb[12].mxu0 %v6549_v50  ;;  %5057 = vmatprep.mubr.bf16.mxu1 %v7283_v17 }
 0x157   : > { %5249 = vmatprep.mubr.bf16.mxu0 %v6569_v45 }
 0x15d   : > { %5058 = vmatmul.mubr.bf16.vlgmr.msra.gmra.mrb[16].mxu1 %v7284_v54 }
 0x15e   : > { %5250 = vmatmul.mubr.bf16.gmra.mrb[16].mxu0 %v6574_v61  ;;  %5061 = vmatprep.mubr.bf16.mxu1 %v7285_v40 }
 0x15f   : > { %5253 = vmatprep.mubr.bf16.mxu0 %v6627_v36 }
 0x165   : > { %5062 = vmatmul.mubr.bf16.gmra.mrb[20].mxu1 %v7286_v42 }
 0x166   : > { %5254 = vmatmul.mubr.bf16.gmra.mrb[20].mxu0 %v6634_v35  ;;  %5065 = vmatprep.mubr.bf16.mxu1 %v7287_v52 }
 0x167   : > { %5257 = vmatprep.mubr.bf16.mxu0 %v6668_v18 }
 0x16d   : > { %5066 = vmatmul.mubr.bf16.gmra.mrb[24].mxu1 %v6508_v23 }
 0x16e   : > { %5258 = vmatmul.mubr.bf16.gmra.mrb[24].mxu0 %v6678_v10  ;;  %5069 = vmatprep.mubr.bf16.mxu1 %v6542_v29  ;;  %v6955_v10 = vld [vmem:[%s7242_s2] ss:$0 sm:$0xff] }
 0x16f   : > { %5261 = vmatprep.mubr.bf16.mxu0 %v6699_v49 }
 0x175   : > { %5070 = vmatmul.mubr.bf16.gmra.mrb[28].mxu1 %v6705_v25 }
 0x176   : > { %5262 = vmatmul.mubr.bf16.gmra.mrb[28].mxu0 %v4365_v26 }
 0x1f0   : > { %v4995_v50 = vpop.f32.mrb[0].mxu1 }
 0x1f1   : > { %v1995_v45 = vpop.f32.mrb[1].mxu1 }
 0x1f2   : > { %v4996_v61 = vpop.f32.mrb[2].mxu1 }
 0x1f3   : > { %v1998_v23 = vpop.f32.mrb[3].mxu1 }
 0x1f8   : > { %v4999_v60 = vpop.f32.mrb[4].mxu1 }
 0x1f9   : > { %v2011_v1 = vpop.f32.mrb[5].mxu1 }
 0x1fa   : > { %v5000_v29 = vpop.f32.mrb[6].mxu1 }
 0x1fb   : > { %v2014_v13 = vpop.f32.mrb[7].mxu1 }
 0x200   : > { %v6936_v8 = vpop.f32.mrb[8].mxu1 }
 0x201   : > { %v6938_v21 = vpop.f32.mrb[9].mxu1 }
 0x202   : > { %v6940_v41 = vpop.f32.mrb[10].mxu1 }
 0x203   : > { %v6942_v55 = vpop.f32.mrb[11].mxu1 }
 0x208   : > { %v6944_v48 = vpop.f32.mrb[12].mxu1 }
 0x209   : > { %v6946_v36 = vpop.f32.mrb[13].mxu1 }
 0x20a   : > { %v6948_v6 = vpop.f32.mrb[14].mxu1 }
 0x20b   : > { %v6950_v35 = vpop.f32.mrb[15].mxu1 }
 0x211   : > { %v5235_v18 = vpop.f32.mrb[0].mxu0 }
 0x212   : > { %v5281_v9 = vadd.f32 %v5235_v18, %v4995_v50  ;;  %v3371_v49 = vpop.f32.mrb[1].mxu0  ;;  %v4453_v50 = vunpack.c.l.bf16 %v6994_v34 }
 0x213   : > { %v5282_v25 = vadd.f32 %v3371_v49, %v1995_v45  ;;  %v5236_v16 = vpop.f32.mrb[2].mxu0  ;;  %v4458_v45 = vunpack.c.h.bf16 %v6986_v0  ;;  %v4465_v49 = vunpack.c.l.bf16 %v7009_v53 }
 0x214   : > { %v6959_v32 = vadd.f32 %v5281_v9, %v6955_v10  ;;  %v5283_v30 = vadd.f32 %v5236_v16, %v4996_v61  ;;  %v3374_v27 = vpop.f32.mrb[3].mxu0 }
 0x215   : > { %v6962_v31 = vadd.f32 %v5282_v25, %v6955_v10  ;;  %v5284_v57 = vadd.f32 %v3374_v27, %v1998_v23 }
 0x216   : > { %v3571_v17 = vsub.f32 0.0, %v6959_v32  ;;  %v6966_v54 = vadd.f32 %v5283_v30, %v6955_v10 }
 0x217   : > { %v3569_v40 = vsub.f32 0.0, %v6962_v31  ;;  %v6970_v24 = vadd.f32 %v5284_v57, %v6955_v10 }
 0x218   : > { %v3605_v4 = vmul.f32 1.442695, %v3571_v17  ;;  %v3572_v38 = vsub.f32 0.0, %v6966_v54 }
 0x219   : > { %v3601_v11 = vmul.f32 1.442695, %v3569_v40  ;;  %v3570_v42 = vsub.f32 0.0, %v6970_v24  ;;  %v5239_v28 = vpop.f32.mrb[4].mxu0 }
 0x21a   : > { %5652 = vpow2.f32 %v3605_v4  ;;  %v3607_v7 = vmul.f32 1.442695, %v3572_v38  ;;  %v5285_v59 = vadd.f32 %v5239_v28, %v4999_v60  ;;  %v3387_v56 = vpop.f32.mrb[5].mxu0  ;;  %v7015_v60 = vld [vmem:[%s6974_s15 + $0x20] sm:$0xff]  }
 0x21b   : > { %5654 = vpow2.f32 %v3601_v11  ;;  %v3603_v39 = vmul.f32 1.442695, %v3570_v42  ;;  %v5286_v43 = vadd.f32 %v3387_v56, %v2011_v1  ;;  %v5240_v52 = vpop.f32.mrb[6].mxu0  ;;  %v4461_v57 = vunpack.c.l.bf16 %v7015_v60 }
 0x21c   : > { %5656 = vpow2.f32 %v3607_v7  ;;  %v6983_v62 = vadd.f32 %v5285_v59, %v6955_v10  ;;  %v5287_v19 = vadd.f32 %v5240_v52, %v5000_v29  ;;  %v3390_v37 = vpop.f32.mrb[7].mxu0  ;;  %v4454_v29 = vunpack.c.h.bf16 %v6994_v34  ;;  %v7040_v52 = vld [vmem:[%s6974_s15 + $0x38] sm:$0xff]  }
 0x21d   : > { %5658 = vpow2.f32 %v3603_v39  ;;  %v6989_v15 = vadd.f32 %v5286_v43, %v6955_v10  ;;  %v5288_v20 = vadd.f32 %v3390_v37, %v2014_v13 }
 0x21e   : > { %v3575_v44 = vsub.f32 0.0, %v6983_v62  ;;  %v6997_v22 = vadd.f32 %v5287_v19, %v6955_v10 }
 0x21f   : > { %v3573_v5 = vsub.f32 0.0, %v6989_v15  ;;  %v7003_v58 = vadd.f32 %v5288_v20, %v6955_v10  ;;  %v7044_v20 = vld [vmem:[%s6974_s15 + $0x30] sm:$0xff]  }
 0x220   : > { %v3613_v12 = vmul.f32 1.442695, %v3575_v44  ;;  %v3576_v3 = vsub.f32 0.0, %v6997_v22 }
 0x221   : > { %v3609_v26 = vmul.f32 1.442695, %v3573_v5  ;;  %v3574_v61 = vsub.f32 0.0, %v7003_v58  ;;  %v5243_v23 = vpop.f32.mrb[8].mxu0 }
 0x222   : > { %5660 = vpow2.f32 %v3613_v12  ;;  %v3615_v1 = vmul.f32 1.442695, %v3576_v3  ;;  %v5289_v13 = vadd.f32 %v5243_v23, %v6936_v8  ;;  %v3403_v18 = vpop.f32.mrb[9].mxu0  ;;  %v4462_v12 = vunpack.c.h.bf16 %v7015_v60 }
 0x223   : > { %5662 = vpow2.f32 %v3609_v26  ;;  %v3611_v9 = vmul.f32 1.442695, %v3574_v61  ;;  %v5290_v25 = vadd.f32 %v3403_v18, %v6938_v21  ;;  %v5244_v16 = vpop.f32.mrb[10].mxu0  ;;  %v4473_v23 = vunpack.c.l.bf16 %v7040_v52 }
 0x224   : > { %v5653_v30 = vpop.eup %5652  ;;  %5664 = vpow2.f32 %v3615_v1  ;;  %v7022_v27 = vadd.f32 %v5289_v13, %v6955_v10  ;;  %v5291_v17 = vadd.f32 %v5244_v16, %v6940_v41  ;;  %v3406_v40 = vpop.f32.mrb[11].mxu0  ;;  %v4466_v41 = vunpack.c.h.bf16 %v7009_v53 }
 0x225   : > { %v5655_v8 = vpop.eup %5654  ;;  %v3667_v4 = vadd.f32 1.0, %v5653_v30  ;;  %5666 = vpow2.f32 %v3611_v9  ;;  %v7027_v38 = vadd.f32 %v5290_v25, %v6955_v10  ;;  %v5292_v21 = vadd.f32 %v3406_v40, %v6942_v55 }
 0x226   : > { %v5657_v11 = vpop.eup %5656  ;;  %v3665_v42 = vadd.f32 1.0, %v5655_v8  ;;  %v3579_v28 = vsub.f32 0.0, %v7022_v27  ;;  %v7032_v7 = vadd.f32 %v5291_v17, %v6955_v10  ;;  %v4469_v9 = vunpack.c.l.bf16 %v7044_v20 }
 0x227   : > { %v5659_v59 = vpop.eup %5658  ;;  %5668 = vrcp.f32 %v3667_v4  ;;  %v3668_v56 = vadd.f32 1.0, %v5657_v11  ;;  %v3577_v39 = vsub.f32 0.0, %v7027_v38  ;;  %v7037_v43 = vadd.f32 %v5292_v21, %v6955_v10 }
 0x228   : > { %5670 = vrcp.f32 %v3665_v42  ;;  %v3666_v55 = vadd.f32 1.0, %v5659_v59  ;;  %v3621_v19 = vmul.f32 1.442695, %v3579_v28  ;;  %v3580_v37 = vsub.f32 0.0, %v7032_v7 }
 0x229   : > { %5672 = vrcp.f32 %v3668_v56  ;;  %v3617_v44 = vmul.f32 1.442695, %v3577_v39  ;;  %v3578_v5 = vsub.f32 0.0, %v7037_v43  ;;  %v5247_v3 = vpop.f32.mrb[12].mxu0  ;;  %v4474_v40 = vunpack.c.h.bf16 %v7040_v52 }
 0x22a   : > { %5674 = vrcp.f32 %v3666_v55  ;;  %v3623_v26 = vmul.f32 1.442695, %v3580_v37  ;;  %v5293_v61 = vadd.f32 %v5247_v3, %v6944_v48  ;;  %v3419_v1 = vpop.f32.mrb[13].mxu0 }
 0x22b   : > { %5676 = vpow2.f32 %v3621_v19  ;;  %v3619_v13 = vmul.f32 1.442695, %v3578_v5  ;;  %v5294_v18 = vadd.f32 %v3419_v1, %v6946_v36  ;;  %v5248_v25 = vpop.f32.mrb[14].mxu0 }
 0x22c   : > { %v5661_v16 = vpop.eup %5660  ;;  %5678 = vpow2.f32 %v3617_v44  ;;  %v7053_v30 = vadd.f32 %v5293_v61, %v6955_v10  ;;  %v5295_v17 = vadd.f32 %v5248_v25, %v6948_v6  ;;  %v3422_v48 = vpop.f32.mrb[15].mxu0 }
 0x22d   : > { %v5663_v8 = vpop.eup %5662  ;;  %v3671_v4 = vadd.f32 1.0, %v5661_v16  ;;  %5680 = vpow2.f32 %v3623_v26  ;;  %v7058_v21 = vadd.f32 %v5294_v18, %v6955_v10  ;;  %v5296_v36 = vadd.f32 %v3422_v48, %v6950_v35 }
 0x22e   : > { %v5665_v11 = vpop.eup %5664  ;;  %v3669_v42 = vadd.f32 1.0, %v5663_v8  ;;  %5682 = vpow2.f32 %v3619_v13  ;;  %v3583_v28 = vsub.f32 0.0, %v7053_v30  ;;  %v7063_v59 = vadd.f32 %v5295_v17, %v6955_v10 }
 0x22f   : > { %v5667_v6 = vpop.eup %5666  ;;  %5684 = vrcp.f32 %v3671_v4  ;;  %v3672_v56 = vadd.f32 1.0, %v5665_v11  ;;  %v3581_v39 = vsub.f32 0.0, %v7058_v21  ;;  %v7067_v55 = vadd.f32 %v5296_v36, %v6955_v10 }
 0x230   : > { %5686 = vrcp.f32 %v3669_v42  ;;  %v3670_v19 = vadd.f32 1.0, %v5667_v6  ;;  %v3629_v37 = vmul.f32 1.442695, %v3583_v28  ;;  %v3584_v35 = vsub.f32 0.0, %v7063_v59  ;;  %v5059_v61 = vpop.f32.mrb[16].mxu1 }
 0x231   : > { %v5669_v44 = vpop.eup %5668  ;;  %5688 = vrcp.f32 %v3672_v56  ;;  %v3625_v5 = vmul.f32 1.442695, %v3581_v39  ;;  %v3582_v3 = vsub.f32 0.0, %v7067_v55  ;;  %v4470_v26 = vunpack.c.h.bf16 %v7044_v20  ;;  %v5251_v1 = vpop.f32.mrb[16].mxu0 }
 0x232   : > { %v5671_v13 = vpop.eup %5670  ;;  %v3731_v18 = vmul.f32 %v5669_v44, %v6959_v32  ;;  %5690 = vrcp.f32 %v3670_v19  ;;  %v3631_v25 = vmul.f32 1.442695, %v3584_v35  ;;  %v5297_v16 = vadd.f32 %v5251_v1, %v5059_v61  ;;  %v2345_v17 = vpop.f32.mrb[17].mxu1 }
 0x233   : > { %v3435_v48 = vpop.f32.mrb[17].mxu0  ;;  %v5673_v8 = vpop.eup %5672  ;;  %v3729_v4 = vmul.f32 %v5671_v13, %v6962_v31  ;;  %5692 = vpow2.f32 %v3629_v37  ;;  %v3627_v36 = vmul.f32 1.442695, %v3582_v3 }
 0x234   : > { %v5298_v11 = vadd.f32 %v3435_v48, %v2345_v17  ;;  %v5060_v42 = vpop.f32.mrb[18].mxu1  ;;  %v5252_v28 = vpop.f32.mrb[18].mxu0  ;;  %v3827_v56 = vadd.f32 %v4449_v47, %v3731_v18  ;;  %v3732_v32 = vmul.f32 %v5673_v8, %v6966_v54  ;;  %5694 = vpow2.f32 %v3625_v5 }
 0x235   : > { %v5675_v6 = vpop.eup %5674  ;;  %v7079_v39 = vadd.f32 %v5297_v16, %v6955_v10  ;;  %v2348_v19 = vpop.f32.mrb[19].mxu1  ;;  %v3825_v31 = vadd.f32 %v4445_v2, %v3729_v4  ;;  %5696 = vpow2.f32 %v3631_v25  ;;  %v5299_v18 = vadd.f32 %v5252_v28, %v5060_v42 }
 0x236   : > { %v3438_v35 = vpop.f32.mrb[19].mxu0  ;;  %v5677_v44 = vpop.eup %5676  ;;  %v3730_v37 = vmul.f32 %v5675_v6, %v6970_v24  ;;  %v7085_v3 = vadd.f32 %v5298_v11, %v6955_v10  ;;  %v3828_v54 = vadd.f32 %v4450_v63, %v3732_v32  ;;  %5698 = vpow2.f32 %v3627_v36 }
 0x237   : > { %v5679_v47 = vpop.eup %5678  ;;  %v3675_v5 = vadd.f32 1.0, %v5677_v44  ;;  %v3587_v61 = vsub.f32 0.0, %v7079_v39  ;;  %v7101_v42 = vadd.f32 %v5299_v18, %v6955_v10  ;;  %v5300_v28 = vadd.f32 %v3438_v35, %v2348_v19 }
 0x238   : > { %v5681_v1 = vpop.eup %5680  ;;  %v3826_v24 = vadd.f32 %v4446_v14, %v3730_v37  ;;  %v3673_v2 = vadd.f32 1.0, %v5679_v47  ;;  %v3585_v13 = vsub.f32 0.0, %v7085_v3  ;;  %v4515_v63 = vpack.c.bf16 %v3828_v54, %v3827_v56  ;;  %v5063_v36 = vpop.f32.mrb[20].mxu1 }
 0x239   : > { %v5683_v46 = vpop.eup %5682  ;;  %5700 = vrcp.f32 %v3675_v5  ;;  %v3676_v25 = vadd.f32 1.0, %v5681_v1  ;;  %v3637_v16 = vmul.f32 1.442695, %v3587_v61  ;;  %v5255_v11 = vpop.f32.mrb[20].mxu0  ;;  %v3588_v19 = vsub.f32 0.0, %v7101_v42 }
 0x23a   : > { %v5685_v17 = vpop.eup %5684  ;;  %v4510_v48 = vpack.c.bf16 %v3826_v24, %v3825_v31  ;;  %5702 = vrcp.f32 %v3673_v2  ;;  %v3674_v8 = vadd.f32 1.0, %v5683_v46  ;;  %v3633_v4 = vmul.f32 1.442695, %v3585_v13  ;;  %4602 = vst [vmem:[%s7093_s12 + $0x8] sm:$0xff] %v4515_v63   ;;  %v2361_v6 = vpop.f32.mrb[21].mxu1 }
 0x23b   : > { %v5687_v33 = vpop.eup %5686  ;;  %v3735_v14 = vmul.f32 %v5685_v17, %v6983_v62  ;;  %5704 = vrcp.f32 %v3676_v25  ;;  %v3451_v56 = vpop.f32.mrb[21].mxu0  ;;  %v5301_v31 = vadd.f32 %v5255_v11, %v5063_v36  ;;  %v7113_v13 = vadd.f32 %v5300_v28, %v6955_v10 }
 0x23c   : > { %v5689_v32 = vpop.eup %5688  ;;  %4511 = vst [vmem:[%s7093_s12] sm:$0xff] %v4510_v48   ;;  %v3733_v44 = vmul.f32 %v5687_v33, %v6989_v15  ;;  %5706 = vrcp.f32 %v3674_v8  ;;  %v5302_v37 = vadd.f32 %v3451_v56, %v2361_v6  ;;  %v5064_v47 = vpop.f32.mrb[22].mxu1  ;;  %v3639_v46 = vmul.f32 1.442695, %v3588_v19 }
 0x23d   : > { %v5256_v54 = vpop.f32.mrb[22].mxu0  ;;  %v5691_v5 = vpop.eup %5690  ;;  %v3831_v62 = vadd.f32 %v4457_v51, %v3735_v14  ;;  %v3736_v61 = vmul.f32 %v5689_v32, %v6997_v22  ;;  %5708 = vpow2.f32 %v3637_v16  ;;  %v7118_v63 = vadd.f32 %v5301_v31, %v6955_v10 }
 0x23e   : > { %v2364_v35 = vpop.f32.mrb[23].mxu1  ;;  %v3454_v1 = vpop.f32.mrb[23].mxu0  ;;  %v3829_v15 = vadd.f32 %v4453_v50, %v3733_v44  ;;  %v3734_v2 = vmul.f32 %v5691_v5, %v7003_v58  ;;  %5710 = vpow2.f32 %v3633_v4  ;;  %v3586_v58 = vsub.f32 0.0, %v7113_v13 }
 0x23f   : > { %v5693_v24 = vpop.eup %5692  ;;  %v3832_v51 = vadd.f32 %v4458_v45, %v3736_v61  ;;  %v7124_v17 = vadd.f32 %v5302_v37, %v6955_v10  ;;  %v3591_v45 = vsub.f32 0.0, %v7118_v63  ;;  %v5303_v6 = vadd.f32 %v5256_v54, %v5064_v47 }
 0x240   : > { %v5695_v18 = vpop.eup %5694  ;;  %v3679_v22 = vadd.f32 1.0, %v5693_v24  ;;  %v3830_v16 = vadd.f32 %v4454_v29, %v3734_v2  ;;  %v3635_v11 = vmul.f32 1.442695, %v3586_v58  ;;  %v5067_v34 = vpop.f32.mrb[24].mxu1  ;;  %v5304_v37 = vadd.f32 %v3454_v1, %v2364_v35 }
 0x241   : > { %v5697_v25 = vpop.eup %5696  ;;  %v3677_v50 = vadd.f32 1.0, %v5695_v18  ;;  %v4525_v8 = vpack.c.bf16 %v3832_v51, %v3831_v62  ;;  %v5259_v29 = vpop.f32.mrb[24].mxu0  ;;  %v3645_v14 = vmul.f32 1.442695, %v3591_v45  ;;  %v3589_v28 = vsub.f32 0.0, %v7124_v17 }
 0x242   : > { %v5699_v48 = vpop.eup %5698  ;;  %5712 = vrcp.f32 %v3679_v22  ;;  %v3680_v0 = vadd.f32 1.0, %v5697_v25  ;;  %v4520_v4 = vpack.c.bf16 %v3830_v16, %v3829_v15  ;;  %v2377_v56 = vpop.f32.mrb[25].mxu1  ;;  %v5305_v5 = vadd.f32 %v5259_v29, %v5067_v34 }
 0x243   : > { %5714 = vrcp.f32 %v3677_v50  ;;  %v3678_v36 = vadd.f32 1.0, %v5699_v48  ;;  %v5701_v33 = vpop.eup %5700  ;;  %4604 = vst [vmem:[%s7093_s12 + $0x18] sm:$0xff] %v4525_v8   ;;  %v3467_v32 = vpop.f32.mrb[25].mxu0  ;;  %v3641_v15 = vmul.f32 1.442695, %v3589_v28  ;;  %v7133_v2 = vadd.f32 %v5303_v6, %v6955_v10 }
 0x244   : > { %5716 = vrcp.f32 %v3680_v0  ;;  %v5703_v44 = vpop.eup %5702  ;;  %4603 = vst [vmem:[%s7093_s12 + $0x10] sm:$0xff] %v4520_v4   ;;  %v3739_v31 = vmul.f32 %v5701_v33, %v7022_v27  ;;  %v5068_v62 = vpop.f32.mrb[26].mxu1  ;;  %v7139_v35 = vadd.f32 %v5304_v37, %v6955_v10  ;;  %v5306_v0 = vadd.f32 %v3467_v32, %v2377_v56 }
 0x245   : > { %5718 = vrcp.f32 %v3678_v36  ;;  %v5260_v61 = vpop.f32.mrb[26].mxu0  ;;  %v5705_v19 = vpop.eup %5704  ;;  %v3737_v24 = vmul.f32 %v5703_v44, %v7027_v38 }
 0x246   : > { %5720 = vpow2.f32 %v3639_v46  ;;  %v2380_v47 = vpop.f32.mrb[27].mxu1  ;;  %v3470_v54 = vpop.f32.mrb[27].mxu0  ;;  %v3835_v51 = vadd.f32 %v4465_v49, %v3739_v31  ;;  %v3740_v27 = vmul.f32 %v5705_v19, %v7032_v7  ;;  %v3592_v46 = vsub.f32 0.0, %v7133_v2 }
 0x247   : > { %v5707_v18 = vpop.eup %5706  ;;  %5722 = vpow2.f32 %v3635_v11  ;;  %v3833_v38 = vadd.f32 %v4461_v57, %v3737_v24  ;;  %v3590_v7 = vsub.f32 0.0, %v7139_v35  ;;  %v7151_v57 = vadd.f32 %v5305_v5, %v6955_v10 }
 0x248   : > { %v5709_v1 = vpop.eup %5708  ;;  %v3738_v22 = vmul.f32 %v5707_v18, %v7037_v43  ;;  %5724 = vpow2.f32 %v3645_v14  ;;  %v3836_v16 = vadd.f32 %v4466_v41, %v3740_v27  ;;  %v3647_v48 = vmul.f32 1.442695, %v3592_v46  ;;  %v5071_v45 = vpop.f32.mrb[28].mxu1 }
 0x249   : > { %v5711_v25 = vpop.eup %5710  ;;  %v3683_v49 = vadd.f32 1.0, %v5709_v1  ;;  %5726 = vpow2.f32 %v3641_v15  ;;  %v3643_v8 = vmul.f32 1.442695, %v3590_v7  ;;  %v5263_v53 = vpop.f32.mrb[28].mxu0  ;;  %v3595_v36 = vsub.f32 0.0, %v7151_v57 }
 0x24a   : > { %v3834_v50 = vadd.f32 %v4462_v12, %v3738_v22  ;;  %v3681_v58 = vadd.f32 1.0, %v5711_v25  ;;  %v4535_v43 = vpack.c.bf16 %v3836_v16, %v3835_v51  ;;  %v5307_v60 = vadd.f32 %v5260_v61, %v5068_v62  ;;  %v2393_v12 = vpop.f32.mrb[29].mxu1  ;;  %v3483_v11 = vpop.f32.mrb[29].mxu0 }
 0x24b   : > { %5728 = vrcp.f32 %v3683_v49  ;;  %v7157_v33 = vadd.f32 %v5306_v0, %v6955_v10  ;;  %v5308_v14 = vadd.f32 %v3470_v54, %v2380_v47  ;;  %v5072_v28 = vpop.f32.mrb[30].mxu1  ;;  %v5264_v6 = vpop.f32.mrb[30].mxu0  ;;  %v3653_v44 = vmul.f32 1.442695, %v3595_v36 }
 0x24c   : > { %v5713_v41 = vpop.eup %5712  ;;  %v4530_v4 = vpack.c.bf16 %v3834_v50, %v3833_v38  ;;  %5730 = vrcp.f32 %v3681_v58  ;;  %4606 = vst [vmem:[%s7093_s12 + $0x28] sm:$0xff] %v4535_v43   ;;  %v7162_v31 = vadd.f32 %v5307_v60, %v6955_v10  ;;  %v2396_v37 = vpop.f32.mrb[31].mxu1  ;;  %v5309_v46 = vadd.f32 %v5263_v53, %v5071_v45 }
 0x24d   : > { %v5715_v34 = vpop.eup %5714  ;;  %v3743_v29 = vmul.f32 %v5713_v41, %v7053_v30  ;;  %5732 = vpow2.f32 %v3647_v48  ;;  %v3486_v5 = vpop.f32.mrb[31].mxu0  ;;  %v3593_v19 = vsub.f32 0.0, %v7157_v33  ;;  %v7169_v24 = vadd.f32 %v5308_v14, %v6955_v10  ;;  %v4595_v41 = vld [vmem:[%s6974_s15 + $0x48] sm:$0xff]  }
 0x24e   : > { %v5717_v56 = vpop.eup %5716  ;;  %4605 = vst [vmem:[%s7093_s12 + $0x20] sm:$0xff] %v4530_v4   ;;  %v3741_v32 = vmul.f32 %v5715_v34, %v7058_v21  ;;  %5734 = vpow2.f32 %v3643_v8  ;;  %v3596_v54 = vsub.f32 0.0, %v7162_v31  ;;  %v7181_v7 = vadd.f32 %v5309_v46, %v6955_v10  ;;  %v4594_v34 = vld [vmem:[%s6974_s15 + $0x40] sm:$0xff]  }
 0x24f   : > { %v5719_v62 = vpop.eup %5718  ;;  %v3839_v30 = vadd.f32 %v4473_v23, %v3743_v29  ;;  %v3744_v61 = vmul.f32 %v5717_v56, %v7063_v59  ;;  %5736 = vpow2.f32 %v3653_v44  ;;  %v3649_v59 = vmul.f32 1.442695, %v3593_v19 }
 0x250   : > { %v5721_v15 = vpop.eup %5720  ;;  %v3837_v21 = vadd.f32 %v4469_v9, %v3741_v32  ;;  %v3742_v47 = vmul.f32 %v5719_v62, %v7067_v55  ;;  %v3594_v27 = vsub.f32 0.0, %v7169_v24  ;;  %v3655_v9 = vmul.f32 1.442695, %v3596_v54 }
 0x251   : > { %v5723_v18 = vpop.eup %5722  ;;  %v3840_v23 = vadd.f32 %v4474_v40, %v3744_v61  ;;  %v3684_v51 = vadd.f32 1.0, %v5721_v15  ;;  %v5310_v20 = vadd.f32 %v3483_v11, %v2393_v12  ;;  %v5312_v58 = vadd.f32 %v3486_v5, %v2396_v37 }
 0x252   : > { %v5725_v1 = vpop.eup %5724  ;;  %v3838_v38 = vadd.f32 %v4470_v26, %v3742_v47  ;;  %v3682_v22 = vadd.f32 1.0, %v5723_v18  ;;  %v3651_v49 = vmul.f32 1.442695, %v3594_v27  ;;  %v5311_v26 = vadd.f32 %v5264_v6, %v5072_v28  ;;  %v4596_v18 = vld [vmem:[%s6974_s15 + $0x50] sm:$0xff]  }
 0x253   : > { %v5727_v55 = vpop.eup %5726  ;;  %v4545_v25 = vpack.c.bf16 %v3840_v23, %v3839_v30  ;;  %5738 = vrcp.f32 %v3684_v51  ;;  %v3687_v16 = vadd.f32 1.0, %v5725_v1  ;;  %v3599_v43 = vsub.f32 0.0, %v7181_v7 }
 0x254   : > { %v4540_v52 = vpack.c.bf16 %v3838_v38, %v3837_v21  ;;  %5740 = vrcp.f32 %v3682_v22  ;;  %v3685_v40 = vadd.f32 1.0, %v5727_v55  ;;  %v7187_v0 = vadd.f32 %v5310_v20, %v6955_v10 }
 0x255   : > { %v5729_v50 = vpop.eup %5728  ;;  %4608 = vst [vmem:[%s7093_s12 + $0x38] sm:$0xff] %v4545_v25   ;;  %5742 = vrcp.f32 %v3687_v16  ;;  %v7190_v45 = vadd.f32 %v5311_v26, %v6955_v10  ;;  %v3661_v36 = vmul.f32 1.442695, %v3599_v43  ;;  %v7197_v14 = vadd.f32 %v5312_v58, %v6955_v10 }
 0x256   : > { %v5731_v48 = vpop.eup %5730  ;;  %4607 = vst [vmem:[%s7093_s12 + $0x30] sm:$0xff] %v4540_v52   ;;  %5744 = vrcp.f32 %v3685_v40  ;;  %v3597_v12 = vsub.f32 0.0, %v7187_v0  ;;  %v4481_v28 = vunpack.c.l.bf16 %v4595_v41  ;;  %v4482_v6 = vunpack.c.h.bf16 %v4595_v41 }
 0x257   : > { %v5733_v8 = vpop.eup %5732  ;;  %5746 = vpow2.f32 %v3649_v59  ;;  %v3600_v29 = vsub.f32 0.0, %v7190_v45  ;;  %v3747_v32 = vmul.f32 %v5729_v50, %v7079_v39  ;;  %v3598_v37 = vsub.f32 0.0, %v7197_v14  ;;  %v4597_v39 = vld [vmem:[%s6974_s15 + $0x58] sm:$0xff]  }
 0x258   : > { %v5735_v53 = vpop.eup %5734  ;;  %v3688_v4 = vadd.f32 1.0, %v5733_v8  ;;  %5748 = vpow2.f32 %v3655_v9  ;;  %v3657_v56 = vmul.f32 1.442695, %v3597_v12  ;;  %v3745_v62 = vmul.f32 %v5731_v48, %v7085_v3 }
 0x259   : > { %v3686_v60 = vadd.f32 1.0, %v5735_v53  ;;  %5750 = vpow2.f32 %v3651_v49  ;;  %v5737_v11 = vpop.eup %5736  ;;  %v3663_v44 = vmul.f32 1.442695, %v3600_v29  ;;  %v4477_v30 = vunpack.c.l.bf16 %v4594_v34 }
 0x25a   : > { %5752 = vrcp.f32 %v3688_v4  ;;  %v4478_v61 = vunpack.c.h.bf16 %v4594_v34  ;;  %v3691_v19 = vadd.f32 1.0, %v5737_v11  ;;  %v3659_v21 = vmul.f32 1.442695, %v3598_v37 }
 0x25b   : > { %5754 = vrcp.f32 %v3686_v60  ;;  %v3843_v51 = vadd.f32 %v4481_v28, %v3747_v32  ;;  %v3841_v27 = vadd.f32 %v4477_v30, %v3745_v62  ;;  %v4485_v9 = vunpack.c.l.bf16 %v4596_v18 }
 0x25c   : > { %5756 = vpow2.f32 %v3661_v36  ;;  %v4490_v16 = vunpack.c.h.bf16 %v4597_v39  ;;  %v4486_v50 = vunpack.c.h.bf16 %v4596_v18 }
 0x25d   : > { %v5739_v5 = vpop.eup %5738  ;;  %5758 = vpow2.f32 %v3657_v56 }
 0x25e   : > { %v5741_v10 = vpop.eup %5740  ;;  %v3748_v15 = vmul.f32 %v5739_v5, %v7101_v42  ;;  %5760 = vpow2.f32 %v3663_v44  ;;  %v4489_v42 = vunpack.c.l.bf16 %v4597_v39 }
 0x25f   : > { %v5743_v47 = vpop.eup %5742  ;;  %v3746_v54 = vmul.f32 %v5741_v10, %v7113_v13  ;;  %5762 = vpow2.f32 %v3659_v21 }
 0x260   : > { %v5745_v23 = vpop.eup %5744  ;;  %v3844_v59 = vadd.f32 %v4482_v6, %v3748_v15  ;;  %5764 = vrcp.f32 %v3691_v19  ;;  %v3751_v25 = vmul.f32 %v5743_v47, %v7118_v63  ;;  %v4598_v6 = vld [vmem:[%s6974_s15 + $0x60] sm:$0xff]  }
 0x261   : > { %v5747_v3 = vpop.eup %5746  ;;  %v3842_v1 = vadd.f32 %v4478_v61, %v3746_v54  ;;  %v3749_v40 = vmul.f32 %v5745_v23, %v7124_v17  ;;  %v4493_v30 = vunpack.c.l.bf16 %v4598_v6  ;;  %v4494_v61 = vunpack.c.h.bf16 %v4598_v6  ;;  %v4601_v54 = vld [vmem:[%s6974_s15 + $0x78] sm:$0xff]   ;;  %v4600_v23 = vld [vmem:[%s6974_s15 + $0x70] sm:$0xff]  }
 0x262   : > { %v5749_v38 = vpop.eup %5748  ;;  %v4555_v22 = vpack.c.bf16 %v3844_v59, %v3843_v51  ;;  %v3689_v46 = vadd.f32 1.0, %v5747_v3  ;;  %v3847_v63 = vadd.f32 %v4489_v42, %v3751_v25 }
 0x263   : > { %v5751_v55 = vpop.eup %5750  ;;  %v4550_v13 = vpack.c.bf16 %v3842_v1, %v3841_v27  ;;  %v3692_v49 = vadd.f32 1.0, %v5749_v38  ;;  %v3845_v17 = vadd.f32 %v4485_v9, %v3749_v40  ;;  %v4505_v27 = vunpack.c.l.bf16 %v4601_v54 }
 0x264   : > { %v5753_v52 = vpop.eup %5752  ;;  %4610 = vst [vmem:[%s7093_s12 + $0x48] sm:$0xff] %v4555_v22   ;;  %5766 = vrcp.f32 %v3689_v46  ;;  %v3690_v20 = vadd.f32 1.0, %v5751_v55  ;;  %v4506_v1 = vunpack.c.h.bf16 %v4601_v54  ;;  %v4501_v38 = vunpack.c.l.bf16 %v4600_v23 }
 0x265   : > { %v5755_v26 = vpop.eup %5754  ;;  %4609 = vst [vmem:[%s7093_s12 + $0x40] sm:$0xff] %v4550_v13   ;;  %v3752_v58 = vmul.f32 %v5753_v52, %v7133_v2  ;;  %5768 = vrcp.f32 %v3692_v49  ;;  %v4502_v22 = vunpack.c.h.bf16 %v4600_v23 }
 0x266   : > { %v5757_v48 = vpop.eup %5756  ;;  %v3750_v43 = vmul.f32 %v5755_v26, %v7139_v35  ;;  %5770 = vrcp.f32 %v3690_v20  ;;  %v4599_v35 = vld [vmem:[%s6974_s15 + $0x68] sm:$0xff]  }
 0x267   : > { %v3848_v8 = vadd.f32 %v4490_v16, %v3752_v58  ;;  %v3695_v53 = vadd.f32 1.0, %v5757_v48  ;;  %v5759_v41 = vpop.eup %5758  ;;  %v4497_v44 = vunpack.c.l.bf16 %v4599_v35  ;;  %v4498_v37 = vunpack.c.h.bf16 %v4599_v35 }
 0x268   : > { %v3846_v4 = vadd.f32 %v4486_v50, %v3750_v43  ;;  %v5761_v36 = vpop.eup %5760  ;;  %v3693_v12 = vadd.f32 1.0, %v5759_v41 }
 0x269   : > { %v4565_v60 = vpack.c.bf16 %v3848_v8, %v3847_v63  ;;  %5772 = vrcp.f32 %v3695_v53  ;;  %v5763_v2 = vpop.eup %5762  ;;  %v3696_v34 = vadd.f32 1.0, %v5761_v36 }
 0x26a   : > { %v4560_v11 = vpack.c.bf16 %v3846_v4, %v3845_v17  ;;  %v5765_v29 = vpop.eup %5764  ;;  %5774 = vrcp.f32 %v3693_v12  ;;  %v3694_v28 = vadd.f32 1.0, %v5763_v2 }
 0x26b   : > { %4612 = vst [vmem:[%s7093_s12 + $0x58] sm:$0xff] %v4565_v60   ;;  %5776 = vrcp.f32 %v3696_v34  ;;  %v3755_v32 = vmul.f32 %v5765_v29, %v7151_v57 }
 0x26c   : > { %4611 = vst [vmem:[%s7093_s12 + $0x50] sm:$0xff] %v4560_v11   ;;  %5778 = vrcp.f32 %v3694_v28 }
 0x26d   : > { %v3851_v21 = vadd.f32 %v4497_v44, %v3755_v32 }
 0x26e   : > { %v5767_v56 = vpop.eup %5766 }
 0x26f   : > { %v5769_v5 = vpop.eup %5768  ;;  %v3753_v62 = vmul.f32 %v5767_v56, %v7157_v33 }
 0x270   : > { %v5771_v19 = vpop.eup %5770  ;;  %v3756_v10 = vmul.f32 %v5769_v5, %v7162_v31 }
 0x271   : > { %v3754_v15 = vmul.f32 %v5771_v19, %v7169_v24  ;;  %v3849_v57 = vadd.f32 %v4493_v30, %v3753_v62 }
 0x272   : > { %v3852_v47 = vadd.f32 %v4498_v37, %v3756_v10 }
 0x273   : > { %v5773_v39 = vpop.eup %5772  ;;  %v3850_v18 = vadd.f32 %v4494_v61, %v3754_v15 }
 0x274   : > { %v4575_v51 = vpack.c.bf16 %v3852_v47, %v3851_v21  ;;  %v5775_v59 = vpop.eup %5774  ;;  %v3759_v33 = vmul.f32 %v5773_v39, %v7181_v7 }
 0x275   : > { %v4570_v3 = vpack.c.bf16 %v3850_v18, %v3849_v57  ;;  %v5777_v31 = vpop.eup %5776  ;;  %v3757_v24 = vmul.f32 %v5775_v59, %v7187_v0 }
 0x276   : > { %4614 = vst [vmem:[%s7093_s12 + $0x68] sm:$0xff] %v4575_v51   ;;  %v5779_v42 = vpop.eup %5778  ;;  %v3760_v9 = vmul.f32 %v5777_v31, %v7190_v45  ;;  %v3855_v55 = vadd.f32 %v4505_v27, %v3759_v33 }
 0x277   : > { %4613 = vst [vmem:[%s7093_s12 + $0x60] sm:$0xff] %v4570_v3   ;;  %v3758_v46 = vmul.f32 %v5779_v42, %v7197_v14  ;;  %v3853_v25 = vadd.f32 %v4501_v38, %v3757_v24 }
 0x278   : > { %v3856_v13 = vadd.f32 %v4506_v1, %v3760_v9 }
 0x279   : > { %v3854_v7 = vadd.f32 %v4502_v22, %v3758_v46 }
 0x27a   : > { %v4585_v16 = vpack.c.bf16 %v3856_v13, %v3855_v55 }
 0x27b   : > { %v4580_v49 = vpack.c.bf16 %v3854_v7, %v3853_v25 }
 0x27c   : > { %4616 = vst [vmem:[%s7093_s12 + $0x78] sm:$0xff] %v4585_v16  }
 0x27d   : > { %4615 = vst [vmem:[%s7093_s12 + $0x70] sm:$0xff] %v4580_v49  }
 0x27e PF: > { %p11_p9 = scmp.ge.s32.totalorder %s5863_s19, 4   ;;  %s7288_s15 = smov %s5815_s16 }
 0x27f   : > { %s7289_s16 = smov %s5872_s22  ;;  %s7290_s17 = smov %s5863_s19 }
 0x280   :  { %13 = sbr.rel (!%p11_p9) target bundleno = 2 (0x2), region = 123 }

// kernel: _lambda_.9
= control target key start
LH: loop header
LB: loop body
LE: loop exit
PB: predicated region body
PF: predicated region fallthrough
CT: control target
= control target key end

     0   :  { %s5917_s18 = smov 0   ;;  %s5919_s19 = smov 0   ;;  %s7445_s0 = inlined_call_operand.vmem [shape: bf16[2,18,18,128], index: 0, kind: input, shape index: {}]   ;;  %s7446_s1 = inlined_call_operand.vmem [shape: bf16[9,128,128], index: 1, kind: input, shape index: {}]   ;;  %s7447_s2 = inlined_call_operand.vmem [shape: f32[1,128], index: 2, kind: input, shape index: {}]   ;;  %s7448_s3 = inlined_call_operand.vmem [shape: bf16[2,16,16,128], index: 3, kind: input, shape index: {}]   ;;  %s7449_s4 = inlined_call_operand.vmem [shape: bf16[2,16,16,256], index: 4, kind: input, shape index: {}]   ;;  %s7450_s5 = inlined_call_operand.vmem [shape: bf16[2,16,16,256], index: 5, kind: output, shape index: {}]  }
   0x1   :  { %s5921_s20 = smov 0  }
   0x2 LB: > { %s4216_s21 = sadd.s32 4294967295, %s5885_s20   ;;  %s5934_s22 = sadd.s32 1, %s5885_s20   ;;  %s5885_s20 = sphi %s5921_s20, %s7500_s20   ;;  %s5881_s19 = sphi %s5919_s19, %s7499_s19   ;;  %s5877_s18 = sphi %s5917_s18, %s7498_s18  }
   0x3   : > { %s113_s23 = ssub.s32 %s5885_s20, %s5934_s22  ;;  %s116_s24 = sadd.s32 1, %s5881_s19 }
   0x4   : > { %p114_p0 = scmp.eq.s32.totalorder %s113_s23, 0  ;;  %p123_p1 = scmp.ne.s32.totalorder %s5881_s19, %s5877_s18 }
   0x5   : > { %p124_p2 = scmp.eq.s32.totalorder %s5885_s20, 0  ;;  %p4219_p4 = scmp.ge.s32.totalorder %s5885_s20, 2 }
   0x6   : > { %s5943_s25 = scalar_select %p114_p0, %s5881_s19, %s116_s24  }
   0x7   : > { %p125_p3 = por %p124_p2, %p123_p1  ;;  %181 = sbr.rel (%p4219_p4) target bundleno = 39 (0x27), region = 24 }
   0xe   : > { %200 = sbr.rel (!%p125_p3) target bundleno = 39 (0x27), region = 36  ;;  %s202_s26 = sand.u32 (%p125_p3), 1, %s5881_s19  }
   0xf   : > { %s4569_s27 = sshll.u32 (%p125_p3), %s5885_s20, 8  ;;  %s4220_s28 = sshll.u32 (%p125_p3), %s202_s26, 7 }
  0x10   : > { %s5951_s6 = scalar_lea.vmem (%p125_p3), %s7449_s4, %s4569_s27  ;;  %s5955_s7 = scalar_lea.vmem (%p125_p3), [#allocation2], %s4220_s28 }
  0x11   : > { %v4223_v0 = vld [vmem:[%s5951_s6 + $0x4] sm:$0xf] (%p125_p3)  ;;  %v4224_v1 = vld [vmem:[%s5951_s6 + $0xc] sm:$0xf] (%p125_p3)  ;;  %v4225_v2 = vld [vmem:[%s5951_s6 + $0x14] sm:$0xf] (%p125_p3) }
  0x12   : > { %225 = vst [vmem:[%s5955_s7] sm:$0xf] (%p125_p3), %v4223_v0  ;;  %227 = vst [vmem:[%s5955_s7 + $0x4] sm:$0xf] (%p125_p3), %v4224_v1  ;;  %v4226_v3 = vld [vmem:[%s5951_s6 + $0x1c] sm:$0xf] (%p125_p3) }
  0x13   : > { %v4227_v4 = vld [vmem:[%s5951_s6 + $0x24] sm:$0xf] (%p125_p3)  ;;  %229 = vst [vmem:[%s5955_s7 + $0x8] sm:$0xf] (%p125_p3), %v4225_v2  ;;  %231 = vst [vmem:[%s5955_s7 + $0xc] sm:$0xf] (%p125_p3), %v4226_v3 }
  0x14   : > { %233 = vst [vmem:[%s5955_s7 + $0x10] sm:$0xf] (%p125_p3), %v4227_v4  ;;  %v4228_v5 = vld [vmem:[%s5951_s6 + $0x2c] sm:$0xf] (%p125_p3)  ;;  %v4229_v6 = vld [vmem:[%s5951_s6 + $0x34] sm:$0xf] (%p125_p3) }
  0x15   : > { %v4230_v7 = vld [vmem:[%s5951_s6 + $0x3c] sm:$0xf]  ;;  %235 = vst [vmem:[%s5955_s7 + $0x14] sm:$0xf] %v4228_v5  ;;  %237 = vst [vmem:[%s5955_s7 + $0x18] sm:$0xf] %v4229_v6 }
  0x16   : > { %239 = vst [vmem:[%s5955_s7 + $0x1c] sm:$0xf] %v4230_v7  ;;  %v4231_v8 = vld [vmem:[%s5951_s6 + $0x44] sm:$0xf]  ;;  %v4232_v9 = vld [vmem:[%s5951_s6 + $0x4c] sm:$0xf] }
  0x17   : > { %v4233_v10 = vld [vmem:[%s5951_s6 + $0x54] sm:$0xf]  ;;  %241 = vst [vmem:[%s5955_s7 + $0x20] sm:$0xf] %v4231_v8  ;;  %243 = vst [vmem:[%s5955_s7 + $0x24] sm:$0xf] %v4232_v9 }
  0x18   : > { %245 = vst [vmem:[%s5955_s7 + $0x28] sm:$0xf] %v4233_v10  ;;  %v4234_v11 = vld [vmem:[%s5951_s6 + $0x5c] sm:$0xf]  ;;  %v4235_v12 = vld [vmem:[%s5951_s6 + $0x64] sm:$0xf] }
  0x19   : > { %v4236_v13 = vld [vmem:[%s5951_s6 + $0x6c] sm:$0xf]  ;;  %247 = vst [vmem:[%s5955_s7 + $0x2c] sm:$0xf] %v4234_v11  ;;  %249 = vst [vmem:[%s5955_s7 + $0x30] sm:$0xf] %v4235_v12 }
  0x1a   : > { %251 = vst [vmem:[%s5955_s7 + $0x34] sm:$0xf] %v4236_v13  ;;  %v4237_v14 = vld [vmem:[%s5951_s6 + $0x74] sm:$0xf]  ;;  %v4238_v15 = vld [vmem:[%s5951_s6 + $0x7c] sm:$0xf] }
  0x1b   : > { %v4239_v16 = vld [vmem:[%s5951_s6 + $0x84] sm:$0xf]  ;;  %253 = vst [vmem:[%s5955_s7 + $0x38] sm:$0xf] %v4237_v14  ;;  %255 = vst [vmem:[%s5955_s7 + $0x3c] sm:$0xf] %v4238_v15 }
  0x1c   : > { %257 = vst [vmem:[%s5955_s7 + $0x40] sm:$0xf] %v4239_v16  ;;  %v4240_v17 = vld [vmem:[%s5951_s6 + $0x8c] sm:$0xf]  ;;  %v4241_v18 = vld [vmem:[%s5951_s6 + $0x94] sm:$0xf] }
  0x1d   : > { %v4242_v19 = vld [vmem:[%s5951_s6 + $0x9c] sm:$0xf]  ;;  %259 = vst [vmem:[%s5955_s7 + $0x44] sm:$0xf] %v4240_v17  ;;  %261 = vst [vmem:[%s5955_s7 + $0x48] sm:$0xf] %v4241_v18 }
  0x1e   : > { %263 = vst [vmem:[%s5955_s7 + $0x4c] sm:$0xf] %v4242_v19  ;;  %v4243_v20 = vld [vmem:[%s5951_s6 + $0xa4] sm:$0xf]  ;;  %v4244_v21 = vld [vmem:[%s5951_s6 + $0xac] sm:$0xf] }
  0x1f   : > { %v4245_v22 = vld [vmem:[%s5951_s6 + $0xb4] sm:$0xf]  ;;  %265 = vst [vmem:[%s5955_s7 + $0x50] sm:$0xf] %v4243_v20  ;;  %267 = vst [vmem:[%s5955_s7 + $0x54] sm:$0xf] %v4244_v21 }
  0x20   : > { %269 = vst [vmem:[%s5955_s7 + $0x58] sm:$0xf] %v4245_v22  ;;  %v4246_v23 = vld [vmem:[%s5951_s6 + $0xbc] sm:$0xf]  ;;  %v4247_v24 = vld [vmem:[%s5951_s6 + $0xc4] sm:$0xf] }
  0x21   : > { %v4248_v25 = vld [vmem:[%s5951_s6 + $0xcc] sm:$0xf]  ;;  %271 = vst [vmem:[%s5955_s7 + $0x5c] sm:$0xf] %v4246_v23  ;;  %273 = vst [vmem:[%s5955_s7 + $0x60] sm:$0xf] %v4247_v24 }
  0x22   : > { %275 = vst [vmem:[%s5955_s7 + $0x64] sm:$0xf] %v4248_v25  ;;  %v4249_v26 = vld [vmem:[%s5951_s6 + $0xd4] sm:$0xf]  ;;  %v4250_v27 = vld [vmem:[%s5951_s6 + $0xdc] sm:$0xf] }
  0x23   : > { %v4251_v28 = vld [vmem:[%s5951_s6 + $0xe4] sm:$0xf]  ;;  %277 = vst [vmem:[%s5955_s7 + $0x68] sm:$0xf] %v4249_v26  ;;  %279 = vst [vmem:[%s5955_s7 + $0x6c] sm:$0xf] %v4250_v27 }
  0x24   : > { %281 = vst [vmem:[%s5955_s7 + $0x70] sm:$0xf] %v4251_v28  ;;  %v4252_v29 = vld [vmem:[%s5951_s6 + $0xec] sm:$0xf]  ;;  %v4253_v30 = vld [vmem:[%s5951_s6 + $0xf4] sm:$0xf] }
  0x25   : > { %v4254_v31 = vld [vmem:[%s5951_s6 + $0xfc] sm:$0xf]  ;;  %283 = vst [vmem:[%s5955_s7 + $0x74] sm:$0xf] %v4252_v29  ;;  %285 = vst [vmem:[%s5955_s7 + $0x78] sm:$0xf] %v4253_v30 }
  0x26   : > { %287 = vst [vmem:[%s5955_s7 + $0x7c] sm:$0xf] %v4254_v31 }
  0x27 PF: > { %p4255_p5 = scmp.ge.s32.totalorder %s5885_s20, 1  ;;  %p373_p6 = scmp.lt.s32.totalorder %s5885_s20, 3 }
  0x29   : > { %p374_p7 = pnand %p4255_p5, %p373_p6 }
  0x2b   : > { %377 = sbr.rel (%p374_p7) target bundleno = 643 (0x283), region = 77 }
  0x32   : > { %v5628_v32 = vld [vmem:[%s7446_s1 + $0x40] sm:$0xff]   ;;  %v5630_v34 = vld [vmem:[%s7446_s1 + $0x48] sm:$0xff]   ;;  %p417_p8 = scmp.lt.s32.totalorder %s4216_s21, 1  ;;  %v5632_v36 = vld [vmem:[%s7446_s1 + $0x50] sm:$0xff]   ;;  %vm503_vm0 = vsmask.f32 3328 }
  0x33   : > { %v5629_v33 = vld [vmem:[%s7446_s1 + $0x100] sm:$0xff]   ;;  %4899 = vmatprep.subr.bf16.mxu1 %v5628_v32  ;;  %v5631_v35 = vld [vmem:[%s7446_s1 + $0x108] sm:$0xff]   ;;  %v5633_v37 = vld [vmem:[%s7446_s1 + $0x110] sm:$0xff]   ;;  %vm504_vm1 = vsmask.f32 7440  ;;  %vm1501_vm3 = vcmask 1042432  }
  0x34   : > { %5091 = vmatprep.subr.bf16.mxu0 %v5629_v33  ;;  %4900 = vmatpush3.bf16.msra.mxu1 %v5628_v32  ;;  %s7502_s21 = smov (!%p417_p8, %s4216_s21), 1  ;;  %v5634_v38 = vld [vmem:[%s7446_s1 + $0x58] sm:$0xff]   ;;  %v5636_v40 = vld [vmem:[%s7446_s1 + $0x60] sm:$0xff]   ;;  %v5638_v42 = vld [vmem:[%s7446_s1 + $0x68] sm:$0xff]   ;;  %vm1502_vm4 = vcmask 1046532   ;;  %s380_s23 = sand.u32 1, %s5877_s18  }
  0x35   : > { %5092 = vmatpush3.bf16.msra.mxu0 %v5629_v33  ;;  %4901 = vmatprep.subr.bf16.mxu1 %v5630_v34  ;;  %v5635_v39 = vld [vmem:[%s7446_s1 + $0x118] sm:$0xff]   ;;  %s5603_s30 = smul.u32 216, %s7502_s21  ;;  %v5637_v41 = vld [vmem:[%s7446_s1 + $0x120] sm:$0xff]   ;;  %v5639_v43 = vld [vmem:[%s7446_s1 + $0x128] sm:$0xff]   ;;  %s4256_s24 = sshll.u32 %s380_s23, 7 }
  0x36   : > { %5093 = vmatprep.subr.bf16.mxu0 %v5631_v35  ;;  %v5640_v49 = vld [vmem:[%s7446_s1 + $0x70] sm:$0xff]   ;;  %v5642_v4 = vld [vmem:[%s7446_s1 + $0x78] sm:$0xff]   ;;  %vm6106_vm2 = vmor %vm503_vm0, %vm504_vm1  ;;  %s4571_s26 = sshll.u32 %s7502_s21, 8  ;;  %s7030_s18 = scalar_lea.vmem [#allocation2], %s4256_s24 }
  0x37   : > { %s6061_s11 = scalar_lea.vmem %s7445_s0, %s5603_s30  ;;  %v5641_v63 = vld [vmem:[%s7446_s1 + $0x130] sm:$0xff]   ;;  %v5643_v21 = vld [vmem:[%s7446_s1 + $0x138] sm:$0xff]   ;;  %v5644_v33 = vld [vmem:[%s7446_s1] sm:$0xff]   ;;  %s7028_s29 = scalar_lea.vmem %s7450_s5, %s4571_s26 }
  0x38   : > { %4902 = vmatpush3.bf16.msra.mxu1 %v5630_v34  ;;  %v6070_v44 = vld [vmem:[%s6061_s11] sm:$0xf]  ;;  %v6073_v45 = vld [vmem:[%s6061_s11 + $0x4] sm:$0xf]  ;;  %v435_v46 = vld [vmem:[%s6061_s11 + $0x8] sm:$0x1] }
  0x39   : > { %5094 = vmatpush3.bf16.msra.mxu0 %v5631_v35  ;;  %4903 = vmatprep.subr.bf16.mxu1 %v5632_v36  ;;  %v507_v47 = vshrl.u32 %v6070_v44, 16  ;;  %v510_v48 = vshll.u32 %v6070_v44, 16  ;;  %v516_v50 = vshll.u32 %v6073_v45, 16  ;;  %v520_v51 = vshrl.u32 %v6073_v45, 16  ;;  %v6084_v53 = vld [vmem:[%s6061_s11 + $0xc] sm:$0xf]  ;;  %vm6313_vm5 = vmor %vm1501_vm3, %vm1502_vm4 }
  0x3a   : > { %5095 = vmatprep.subr.bf16.mxu0 %v5633_v37  ;;  %v526_v52 = vshll.u32 %v435_v46, 16  ;;  %v6087_v56 = vld [vmem:[%s6061_s11 + $0x10] sm:$0xf]  ;;  %v6090_v57 = vld [vmem:[%s6061_s11 + $0x14] sm:$0x1]  ;;  %v531_v62 = vshrl.u32 %v6084_v53, 16 }
  0x3b   : > { %v509_v54 = vrot.slane %v507_v47, 4  ;;  %v512_v55 = vrot.slane %v510_v48, 5  ;;  %v518_v59 = vrot.slane %v516_v50, 5  ;;  %v522_v60 = vrot.slane %v520_v51, 4  ;;  %v6112_v9 = vld [vmem:[%s6061_s11 + $0x18] sm:$0xf] }
  0x3c   : > { %4904 = vmatpush3.bf16.msra.mxu1 %v5632_v36  ;;  %v528_v61 = vrot.slane %v526_v52, 5  ;;  %v534_v1 = vshll.u32 %v6084_v53, 16  ;;  %v540_v2 = vshll.u32 %v6087_v56, 16  ;;  %v544_v3 = vshrl.u32 %v6087_v56, 16  ;;  %v6115_v10 = vld [vmem:[%s6061_s11 + $0x1c] sm:$0xf] }
  0x3d   : > { %5096 = vmatpush3.bf16.msra.mxu0 %v5633_v37  ;;  %4905 = vmatprep.subr.bf16.mxu1 %v5634_v38  ;;  %v513_v0 = vor.u32 %v512_v55, %v509_v54  ;;  %v523_v6 = vor.u32 %v522_v60, %v518_v59  ;;  %v533_v7 = vrot.slane %v531_v62, 4  ;;  %v550_v8 = vshll.u32 %v6090_v57, 16  ;;  %v6122_v16 = vld [vmem:[%s6061_s11 + $0x20] sm:$0x1]  ;;  %v6139_v35 = vld [vmem:[%s6061_s11 + $0x24] sm:$0xf] }
  0x3e   : > { %5097 = vmatprep.subr.bf16.mxu0 %v5635_v39  ;;  %v6119_v11 = vcombine.low %v6084_v53, %v6087_v56  ;;  %v536_v13 = vrot.slane %v534_v1, 5  ;;  %v542_v14 = vrot.slane %v540_v2, 5  ;;  %v546_v15 = vrot.slane %v544_v3, 4  ;;  %v6154_v46 = vld [vmem:[%s6061_s11 + $0x2c] sm:$0x1]  ;;  %v5862_v5 = vld [vmem:[%s7446_s1 + $0x138] sm:$0xff]  }
  0x3f   : > { %v514_v12 = vrot.slane %v513_v0, 4  ;;  %v524_v17 = vrot.slane %v523_v6, 4  ;;  %v552_v18 = vrot.slane %v550_v8, 5  ;;  %v555_v19 = vshrl.u32 %v6112_v9, 16  ;;  %v6159_v54 = vld [vmem:[%s6061_s11 + $0x30] sm:$0xf] }
  0x40   : > { %4906 = vmatpush3.bf16.msra.mxu1 %v5634_v38  ;;  %v558_v20 = vshll.u32 %v6112_v9, 16  ;;  %v537_v23 = vor.u32 %v536_v13, %v533_v7  ;;  %v547_v24 = vor.u32 %v546_v15, %v542_v14  ;;  %v564_v25 = vshll.u32 %v6115_v10, 16  ;;  %v6164_v62 = vld [vmem:[%s6061_s11 + $0x34] sm:$0xf]  ;;  %v5647_v2 = vld [vmem:[%s7446_s1 + $0x8] sm:$0xff]   ;;  %s4570_s6 = sshll.u32 %s7502_s21, 7 }
  0x41   : > { %5098 = vmatpush3.bf16.msra.mxu0 %v5635_v39  ;;  %4907 = vmatprep.subr.bf16.mxu1 %v5636_v40  ;;  %v519_v22 = vsel %vm6106_vm2, %v514_v12, %v518_v59  ;;  %v529_v26 = vsel %vm6106_vm2, %v524_v17, %v528_v61  ;;  %v557_v27 = vrot.slane %v555_v19, 4  ;;  %v568_v29 = vshrl.u32 %v6115_v10, 16  ;;  %v6173_v3 = vld [vmem:[%s6061_s11 + $0x38] sm:$0x1]  ;;  %s7135_s21 = scalar_lea.vmem %s7448_s3, %s4570_s6 }
  0x42   : > { %5099 = vmatprep.subr.bf16.mxu0 %v5637_v41  ;;  %v560_v28 = vrot.slane %v558_v20, 5  ;;  %v4278_v30 = vcombine.low %v519_v22, %v529_v26  ;;  %v538_v31 = vrot.slane %v537_v23, 4  ;;  %v548_v32 = vrot.slane %v547_v24, 4  ;;  %v6188_v26 = vld [vmem:[%s6061_s11 + $0x3c] sm:$0xf] }
  0x43   : > { %v566_v34 = vrot.slane %v564_v25, 5  ;;  %v570_v37 = vrot.slane %v568_v29, 4  ;;  %v574_v38 = vshll.u32 %v6122_v16, 16  ;;  %v1523_v39 = vrot.slane %v6122_v16, 5 }
  0x44   : > { %4908 = vmatpush3.bf16.msra.mxu1 %v5636_v40  ;;  %v561_v36 = vor.u32 %v560_v28, %v557_v27  ;;  %v5645_v40 = vld [vmem:[%s7446_s1 + $0x140] sm:$0xff]   ;;  %4915 = vmatprep.mubr.bf16.mxu1 %v4278_v30  ;;  %v579_v47 = vshrl.u32 %v6139_v35, 16  ;;  %v582_v48 = vshll.u32 %v6139_v35, 16  ;;  %v598_v1 = vshll.u32 %v6154_v46, 16  ;;  %v5650_v27 = vld [vmem:[%s7446_s1 + $0x10] sm:$0xff]  }
  0x45   : > { %5100 = vmatpush3.bf16.msra.mxu0 %v5637_v41  ;;  %4909 = vmatprep.subr.bf16.mxu1 %v5638_v42  ;;  %v6147_v41 = vld [vmem:[%s6061_s11 + $0x28] sm:$0xf]  ;;  %v571_v51 = vor.u32 %v570_v37, %v566_v34  ;;  %v576_v52 = vrot.slane %v574_v38, 5  ;;  %v606_v12 = vshll.u32 %v6159_v54, 16  ;;  %v616_v24 = vshrl.u32 %v6164_v62, 16 }
  0x46   : > { %5101 = vmatprep.subr.bf16.mxu0 %v5639_v43  ;;  %v562_v50 = vrot.slane %v561_v36, 4  ;;  %v581_v55 = vrot.slane %v579_v47, 4  ;;  %v584_v59 = vrot.slane %v582_v48, 5  ;;  %v588_v60 = vshll.u32 %v6147_v41, 16  ;;  %v5648_v48 = vld [vmem:[%s7446_s1 + $0x150] sm:$0xff]  }
  0x47   : > { %v592_v61 = vshrl.u32 %v6147_v41, 16  ;;  %v572_v0 = vrot.slane %v571_v51, 4  ;;  %v600_v15 = vrot.slane %v598_v1, 5  ;;  %v608_v22 = vrot.slane %v606_v12, 5  ;;  %v6228_v1 = vld [vmem:[%s6061_s11 + $0x50] sm:$0x1] }
  0x48   : > { %4910 = vmatpush3.bf16.msra.mxu1 %v5638_v42  ;;  %v543_v42 = vsel %vm6106_vm2, %v538_v31, %v542_v14  ;;  %v585_v6 = vor.u32 %v584_v59, %v581_v55  ;;  %v590_v7 = vrot.slane %v588_v60, 5  ;;  %v5646_v14 = vld [vmem:[%s7446_s1 + $0x148] sm:$0xff]   ;;  %v622_v25 = vshll.u32 %v6173_v3, 16 }
  0x49   : > { %5102 = vmatpush3.bf16.msra.mxu0 %v5639_v43  ;;  %4911 = vmatprep.subr.bf16.mxu1 %v5640_v49  ;;  %v553_v43 = vsel %vm6106_vm2, %v548_v32, %v552_v18  ;;  %v594_v8 = vrot.slane %v592_v61, 4  ;;  %v577_v13 = vsel %vm6106_vm2, %v572_v0, %v576_v52  ;;  %v612_v18 = vshll.u32 %v6164_v62, 16  ;;  %v6202_v32 = vld [vmem:[%s6061_s11 + $0x40] sm:$0xf]  ;;  %v6219_v59 = vld [vmem:[%s6061_s11 + $0x48] sm:$0xf] }
  0x4a   : > { %5103 = vmatprep.subr.bf16.mxu0 %v5641_v63  ;;  %v586_v20 = vrot.slane %v585_v6, 4  ;;  %v6195_v28 = vcombine.low %v6112_v9, %v6115_v10  ;;  %v618_v36 = vrot.slane %v616_v24, 4  ;;  %v624_v37 = vrot.slane %v622_v25, 5  ;;  %v6222_v60 = vld [vmem:[%s6061_s11 + $0x4c] sm:$0xf] }
  0x4b   : > { %v614_v23 = vrot.slane %v612_v18, 5  ;;  %v630_v38 = vshll.u32 %v6188_v26, 16  ;;  %v660_v12 = vshll.u32 %v6222_v60, 16  ;;  %v664_v18 = vshrl.u32 %v6222_v60, 16 }
  0x4c   : > { %4912 = vmatpush3.bf16.msra.mxu1 %v5640_v49  ;;  %v4279_v49 = vcombine.low %v543_v42, %v553_v43  ;;  %v591_v29 = vsel %vm6106_vm2, %v586_v20, %v590_v7  ;;  %v636_v42 = vshll.u32 %v6202_v32, 16 }
  0x4d   : > { %5104 = vmatpush3.bf16.msra.mxu0 %v5641_v63  ;;  %4913 = vmatprep.subr.bf16.mxu1 %v5642_v4  ;;  %v567_v63 = vsel %vm6106_vm2, %v562_v50, %v566_v34  ;;  %v627_v34 = vshrl.u32 %v6188_v26, 16  ;;  %v619_v51 = vor.u32 %v618_v36, %v614_v23  ;;  %v632_v52 = vrot.slane %v630_v38, 5  ;;  %v6259_v38 = vld [vmem:[%s6061_s11 + $0x58] sm:$0xf] }
  0x4e   : > { %5105 = vmatprep.subr.bf16.mxu0 %v5643_v21  ;;  %5107 = vmatprep.mubr.bf16.mxu0 %v4279_v49  ;;  %v6183_v19 = vcombine.low %v567_v63, %v577_v13  ;;  %v638_v55 = vrot.slane %v636_v42, 5  ;;  %v5649_v13 = vld [vmem:[%s7446_s1 + $0x158] sm:$0xff]  }
  0x4f   : > { %v620_v6 = vrot.slane %v619_v51, 4  ;;  %v6262_v42 = vld [vmem:[%s6061_s11 + $0x5c] sm:$0x1] }
  0x50   : > { %4914 = vmatpush3.bf16.msra.mxu1 %v5642_v4  ;;  %v603_v4 = vshrl.u32 %v6159_v54, 16 }
  0x51   : > { %5106 = vmatpush3.bf16.msra.mxu0 %v5643_v21  ;;  %4947 = vmatprep.subr.bf16.mxu1 %v5644_v33  ;;  %v595_v21 = vor.u32 %v594_v8, %v590_v7  ;;  %v654_v8 = vshll.u32 %v6219_v59, 16  ;;  %v625_v20 = vsel %vm6106_vm2, %v620_v6, %v624_v37  ;;  %v6256_v37 = vld [vmem:[%s6061_s11 + $0x54] sm:$0xf] }
  0x52   : > { %5139 = vmatprep.subr.bf16.mxu0 %v5645_v40  ;;  %v605_v17 = vrot.slane %v603_v4, 4  ;;  %v5653_v4 = vld [vmem:[%s7446_s1 + $0x18] sm:$0xff]   ;;  %v675_v51 = vshrl.u32 %v6256_v37, 16 }
  0x53   : > { %4916 = vmatmul.mubr.bf16.vlgmr.msra.gmra.mrb[0].mxu1 %v4279_v49  ;;  %v596_v30 = vrot.slane %v595_v21, 4  ;;  %v640_v49 = vshrl.u32 %v6202_v32, 16 }
  0x54   : > { %4948 = vmatpush3.bf16.msra.mxu1 %v5644_v33  ;;  %5108 = vmatmul.mubr.bf16.vlgmr.msra.gmra.mrb[0].mxu0 %v6183_v19  ;;  %v609_v31 = vor.u32 %v608_v22, %v605_v17  ;;  %v6205_v33 = vld [vmem:[%s6061_s11 + $0x44] sm:$0x1]  ;;  %v656_v22 = vrot.slane %v654_v8, 5  ;;  %v688_v8 = vshrl.u32 %v6259_v38, 16 }
  0x55   : > { %4949 = vmatprep.subr.bf16.mxu1 %v5647_v2  ;;  %4919 = vmatprep.mubr.bf16.mxu1 %v6183_v19  ;;  %v601_v43 = vsel %vm6106_vm2, %v596_v30, %v600_v15  ;;  %v642_v63 = vrot.slane %v640_v49, 4  ;;  %v646_v0 = vshll.u32 %v6205_v33, 16  ;;  %v670_v30 = vshll.u32 %v6228_v1, 16 }
  0x56   : > { %5140 = vmatpush3.bf16.msra.mxu0 %v5645_v40  ;;  %v610_v47 = vrot.slane %v609_v31, 4  ;;  %v629_v40 = vrot.slane %v627_v34, 4  ;;  %v6216_v50 = vcombine.low %v591_v29, %v601_v43  ;;  %v666_v29 = vrot.slane %v664_v18, 4  ;;  %v5651_v31 = vld [vmem:[%s7446_s1 + $0x160] sm:$0xff]   ;;  %v6296_v18 = vld [vmem:[%s6061_s11 + $0x68] sm:$0x1] }
  0x57   : > { %5141 = vmatprep.subr.bf16.mxu0 %v5646_v14  ;;  %v643_v15 = vor.u32 %v642_v63, %v638_v55  ;;  %v648_v17 = vrot.slane %v646_v0, 5  ;;  %v5656_v34 = vld [vmem:[%s7446_s1 + $0x20] sm:$0xff]   ;;  %v6266_v43 = vcombine.low %v6139_v35, %v6147_v41  ;;  %v672_v49 = vrot.slane %v670_v30, 5 }
  0x58   : > { %4950 = vmatpush3.bf16.msra.mxu1 %v5647_v2  ;;  %7469 = vst [vmem:[#allocation3_spill] sm:$0xff] %v6216_v50  ;;  %v615_v61 = vsel %vm6106_vm2, %v610_v47, %v614_v23  ;;  %v651_v2 = vshrl.u32 %v6219_v59, 16  ;;  %5111 = vmatprep.mubr.bf16.mxu0 %v6216_v50  ;;  %v633_v7 = vor.u32 %v632_v52, %v629_v40  ;;  %v662_v23 = vrot.slane %v660_v12, 5  ;;  %v6282_v0 = vld [vmem:[%s6061_s11 + $0x60] sm:$0xf] }
  0x59   : > { %4951 = vmatprep.subr.bf16.mxu1 %v5650_v27  ;;  %v6244_v24 = vcombine.low %v615_v61, %v625_v20  ;;  %v644_v25 = vrot.slane %v643_v15, 4  ;;  %v6270_v47 = vcombine.low %v6159_v54, %v6164_v62  ;;  %v678_v61 = vshll.u32 %v6256_v37, 16  ;;  %v6290_v15 = vld [vmem:[%s6061_s11 + $0x64] sm:$0xf] }
  0x5a   : > { %5142 = vmatpush3.bf16.msra.mxu0 %v5646_v14  ;;  %v653_v14 = vrot.slane %v651_v2, 4  ;;  %v634_v21 = vrot.slane %v633_v7, 4  ;;  %v667_v40 = vor.u32 %v666_v29, %v662_v23  ;;  %v684_v63 = vshll.u32 %v6259_v38, 16  ;;  %v5658_v2 = vld [vmem:[%s7446_s1 + $0x28] sm:$0xff]  }
  0x5b   : > { %4920 = vmatmul.mubr.bf16.gmra.mrb[4].mxu1 %v6216_v50  ;;  %5143 = vmatprep.subr.bf16.mxu0 %v5648_v48  ;;  %7470 = vst [vmem:[#allocation4_spill] sm:$0xff] %v6244_v24  ;;  %v677_v7 = vrot.slane %v675_v51, 4  ;;  %v694_v12 = vshll.u32 %v6262_v42, 16  ;;  %v699_v20 = vshrl.u32 %v6282_v0, 16  ;;  %v718_v51 = vshll.u32 %v6296_v18, 16 }
  0x5c   : > { %4952 = vmatpush3.bf16.msra.mxu1 %v5650_v27  ;;  %v639_v36 = vsel %vm6106_vm2, %v634_v21, %v638_v55  ;;  %v657_v27 = vor.u32 %v656_v22, %v653_v14  ;;  %5112 = vmatmul.mubr.bf16.gmra.mrb[4].mxu0 %v6244_v24  ;;  %v668_v6 = vrot.slane %v667_v40, 4  ;;  %v686_v14 = vrot.slane %v684_v63, 5 }
  0x5d   : > { %4953 = vmatprep.subr.bf16.mxu1 %v5653_v4  ;;  %4923 = vmatprep.mubr.bf16.mxu1 %v6244_v24  ;;  %v690_v22 = vrot.slane %v688_v8, 4  ;;  %v6324_v8 = vld [vmem:[%s6061_s11 + $0x6c] sm:$0xf] }
  0x5e   : > { %5144 = vmatpush3.bf16.msra.mxu0 %v5648_v48  ;;  %v649_v48 = vsel %vm6106_vm2, %v644_v25, %v648_v17  ;;  %v658_v55 = vrot.slane %v657_v27, 4  ;;  %v673_v21 = vsel %vm6106_vm2, %v668_v6, %v672_v49  ;;  %v696_v25 = vrot.slane %v694_v12, 5 }
  0x5f   : > { %5145 = vmatprep.subr.bf16.mxu0 %v5649_v13  ;;  %v6277_v52 = vcombine.low %v639_v36, %v649_v48  ;;  %v701_v36 = vrot.slane %v699_v20, 4  ;;  %v708_v27 = vshll.u32 %v6290_v15, 16  ;;  %v691_v48 = vor.u32 %v690_v22, %v686_v14 }
  0x60   : > { %4954 = vmatpush3.bf16.msra.mxu1 %v5653_v4  ;;  %v663_v17 = vsel %vm6106_vm2, %v658_v55, %v662_v23  ;;  %v680_v4 = vrot.slane %v678_v61, 5  ;;  %v702_v23 = vshll.u32 %v6282_v0, 16  ;;  %v712_v49 = vshrl.u32 %v6290_v15, 16  ;;  %v5660_v61 = vld [vmem:[%s7446_s1 + $0x30] sm:$0xff]  }
  0x61   : > { %7471 = vst [vmem:[#allocation5_spill] sm:$0xff] %v6277_v52  ;;  %4955 = vmatprep.subr.bf16.mxu1 %v5656_v34  ;;  %5115 = vmatprep.mubr.bf16.mxu0 %v6277_v52  ;;  %v6306_v29 = vcombine.low %v663_v17, %v673_v21  ;;  %v710_v63 = vrot.slane %v708_v27, 5  ;;  %v4327_v6 = vrot.slane %v6084_v53, 9  ;;  %v692_v12 = vrot.slane %v691_v48, 4  ;;  %v6331_v21 = vld [vmem:[%s6061_s11 + $0x70] sm:$0xf] }
  0x62   : > { %5146 = vmatpush3.bf16.msra.mxu0 %v5649_v13  ;;  %v5652_v13 = vld [vmem:[%s7446_s1 + $0x168] sm:$0xff]   ;;  %v681_v30 = vor.u32 %v680_v4, %v677_v7  ;;  %v704_v40 = vrot.slane %v702_v23, 5  ;;  %v1513_v7 = vrot.slane %v6087_v56, 5  ;;  %v714_v4 = vrot.slane %v712_v49, 4 }
  0x63   : > { %4924 = vmatmul.mubr.bf16.gmra.mrb[8].mxu1 %v6277_v52  ;;  %5147 = vmatprep.subr.bf16.mxu0 %v5651_v31  ;;  %7472 = vst [vmem:[#allocation6_spill] sm:$0xff] %v6306_v29  ;;  %v720_v20 = vrot.slane %v718_v51, 5  ;;  %v1516_v23 = vrot.slane %v6090_v57, 5  ;;  %v697_v27 = vsel %vm6106_vm2, %v692_v12, %v696_v25  ;;  %v732_v51 = vshll.u32 %v6331_v21, 16 }
  0x64   : > { %4956 = vmatpush3.bf16.msra.mxu1 %v5656_v34  ;;  %4927 = vmatprep.mubr.bf16.mxu1 %v6306_v29  ;;  %v682_v34 = vrot.slane %v681_v30, 4  ;;  %v705_v17 = vor.u32 %v704_v40, %v701_v36  ;;  %v1514_v56 = vsel %vm6313_vm5, %v4327_v6, %v1513_v7  ;;  %v1515_v22 = vrot.slane %v1513_v7, 4  ;;  %v6339_v30 = vld [vmem:[%s6061_s11 + $0x74] sm:$0x1]  ;;  %v5662_v36 = vld [vmem:[%s7446_s1 + $0x38] sm:$0xff]  }
  0x65   : > { %4957 = vmatprep.subr.bf16.mxu1 %v5658_v2  ;;  %5116 = vmatmul.mubr.bf16.gmra.mrb[8].mxu0 %v6306_v29  ;;  %v715_v40 = vor.u32 %v714_v4, %v710_v63  ;;  %v734_v4 = vrot.slane %v732_v51, 5  ;;  %v1534_v52 = vrot.slane %v6164_v62, 5 }
  0x66   : > { %5148 = vmatpush3.bf16.msra.mxu0 %v5651_v31  ;;  %v5654_v31 = vld [vmem:[%s7446_s1 + $0x170] sm:$0xff]   ;;  %v687_v53 = vsel %vm6106_vm2, %v682_v34, %v686_v14  ;;  %v706_v48 = vrot.slane %v705_v17, 4  ;;  %v723_v14 = vshrl.u32 %v6324_v8, 16  ;;  %v1517_v57 = vsel %vm6313_vm5, %v1515_v22, %v1516_v23  ;;  %v6354_v34 = vld [vmem:[%s6061_s11 + $0x78] sm:$0xf] }
  0x67   : > { %5149 = vmatprep.subr.bf16.mxu0 %v5652_v13  ;;  %v6347_v49 = vcombine.low %v687_v53, %v697_v27  ;;  %v716_v6 = vrot.slane %v715_v40, 4  ;;  %v6361_v7 = vcombine.low %v1514_v56, %v1517_v57  ;;  %v736_v53 = vshrl.u32 %v6331_v21, 16  ;;  %v6368_v22 = vld [vmem:[%s6061_s11 + $0x7c] sm:$0xf] }
  0x68   : > { %4958 = vmatpush3.bf16.msra.mxu1 %v5658_v2  ;;  %v726_v2 = vshll.u32 %v6324_v8, 16  ;;  %v711_v25 = vsel %vm6106_vm2, %v706_v48, %v710_v63  ;;  %v725_v12 = vrot.slane %v723_v14, 4  ;;  %v742_v63 = vshll.u32 %v6339_v30, 16  ;;  %v6375_v48 = vld [vmem:[%s6061_s11 + $0x80] sm:$0x1] }
  0x69   : > { %4959 = vmatprep.subr.bf16.mxu1 %v5660_v61  ;;  %7475 = vst [vmem:[#allocation7_spill] sm:$0xff] %v6347_v49  ;;  %5119 = vmatprep.mubr.bf16.mxu0 %v6347_v49  ;;  %v721_v23 = vsel %vm6106_vm2, %v716_v6, %v720_v20  ;;  %v4328_v27 = vrot.slane %v6112_v9, 9  ;;  %v1520_v56 = vrot.slane %v6115_v10, 5  ;;  %v747_v40 = vshrl.u32 %v6354_v34, 16  ;;  %v6383_v20 = vld [vmem:[%s7446_s1 + $0x80] sm:$0xff]  }
  0x6a   : > { %5150 = vmatpush3.bf16.msra.mxu0 %v5652_v13  ;;  %v5655_v13 = vld [vmem:[%s7446_s1 + $0x178] sm:$0xff]   ;;  %v728_v17 = vrot.slane %v726_v2, 5  ;;  %v6378_v14 = vcombine.low %v711_v25, %v721_v23  ;;  %v738_v2 = vrot.slane %v736_v53, 4  ;;  %v744_v51 = vrot.slane %v742_v63, 5  ;;  %v6392_v6 = vld [vmem:[%s6061_s11 + $0x84] sm:$0xf] }
  0x6b   : > { %5151 = vmatprep.subr.bf16.mxu0 %v5654_v31  ;;  %4928 = vmatmul.mubr.bf16.gmra.mrb[12].mxu1 %v6347_v49  ;;  %v1521_v9 = vsel %vm6313_vm5, %v4328_v27, %v1520_v56  ;;  %v1522_v10 = vrot.slane %v1520_v56, 4  ;;  %v749_v25 = vrot.slane %v747_v40, 4  ;;  %v756_v53 = vshll.u32 %v6368_v22, 16 }
  0x6c   : > { %4960 = vmatpush3.bf16.msra.mxu1 %v5660_v61  ;;  %7476 = vst [vmem:[#allocation8_spill] sm:$0xff] %v6378_v14  ;;  %v729_v57 = vor.u32 %v728_v17, %v725_v12  ;;  %v5657_v61 = vld [vmem:[%s7446_s1 + $0x180] sm:$0xff]   ;;  %4931 = vmatprep.mubr.bf16.mxu1 %v6378_v14  ;;  %v739_v17 = vor.u32 %v738_v2, %v734_v4  ;;  %v760_v63 = vshrl.u32 %v6368_v22, 16  ;;  %v766_v56 = vshll.u32 %v6375_v48, 16 }
  0x6d   : > { %4961 = vmatprep.subr.bf16.mxu1 %v5662_v36  ;;  %5120 = vmatmul.mubr.bf16.gmra.mrb[12].mxu0 %v6378_v14  ;;  %v1524_v23 = vsel %vm6313_vm5, %v1522_v10, %v1523_v39  ;;  %v4329_v40 = vrot.slane %v6139_v35, 9  ;;  %v758_v14 = vrot.slane %v756_v53, 5  ;;  %v6412_v35 = vld [vmem:[%s6061_s11 + $0x88] sm:$0xf] }
  0x6e   : > { %5152 = vmatpush3.bf16.msra.mxu0 %v5654_v31  ;;  %v750_v31 = vshll.u32 %v6354_v34, 16  ;;  %v730_v12 = vrot.slane %v729_v57, 4  ;;  %5155 = vmatprep.mubr.bf16.mxu0 %v6361_v7  ;;  %v740_v2 = vrot.slane %v739_v17, 4  ;;  %v6407_v58 = vcombine.low %v1521_v9, %v1524_v23 }
  0x6f   : > { %5153 = vmatprep.subr.bf16.mxu0 %v5655_v13  ;;  %v762_v39 = vrot.slane %v760_v63, 4  ;;  %v768_v10 = vrot.slane %v766_v56, 5  ;;  %v771_v9 = vshrl.u32 %v6392_v6, 16  ;;  %v5659_v63 = vld [vmem:[%s7446_s1 + $0x188] sm:$0xff]   ;;  %v6431_v56 = vld [vmem:[%s6061_s11 + $0x90] sm:$0xf] }
  0x70   : > { %v752_v27 = vrot.slane %v750_v31, 5  ;;  %4962 = vmatpush3.bf16.msra.mxu1 %v5662_v36  ;;  %v735_v57 = vsel %vm6106_vm2, %v730_v12, %v734_v4  ;;  %v1527_v31 = vrot.slane %v6147_v41, 5  ;;  %v745_v36 = vsel %vm6106_vm2, %v740_v2, %v744_v51  ;;  %v6418_v4 = vld [vmem:[%s6061_s11 + $0x8c] sm:$0x1]  ;;  %v6434_v2 = vld [vmem:[%s6061_s11 + $0x94] sm:$0xf] }
  0x71   : > { %4995 = vmatprep.subr.bf16.mxu1 %v6383_v20  ;;  %v774_v12 = vshll.u32 %v6392_v6, 16  ;;  %v763_v53 = vor.u32 %v762_v39, %v758_v14  ;;  %v773_v23 = vrot.slane %v771_v9, 4  ;;  %v790_v39 = vshll.u32 %v6418_v4, 16 }
  0x72   : > { %5154 = vmatpush3.bf16.msra.mxu0 %v5655_v13  ;;  %v753_v16 = vor.u32 %v752_v27, %v749_v25  ;;  %v1530_v13 = vrot.slane %v6154_v46, 5  ;;  %v6422_v25 = vcombine.low %v735_v57, %v745_v36  ;;  %v1528_v41 = vsel %vm6313_vm5, %v4329_v40, %v1527_v31 }
  0x73   : > { %5187 = vmatprep.subr.bf16.mxu0 %v5657_v61  ;;  %v1529_v51 = vrot.slane %v1527_v31, 4  ;;  %v776_v46 = vrot.slane %v774_v12, 5  ;;  %v780_v27 = vshll.u32 %v6412_v35, 16  ;;  %v784_v40 = vshrl.u32 %v6412_v35, 16 }
  0x74   : > { %7477 = vst [vmem:[#allocation9_spill] sm:$0xff] %v6422_v25  ;;  %v754_v17 = vrot.slane %v753_v16, 4  ;;  %4932 = vmatmul.mubr.bf16.gmra.mrb[16].mxu1 %v6422_v25  ;;  %v764_v16 = vrot.slane %v763_v53, 4  ;;  %v4330_v12 = vrot.slane %v6159_v54, 9  ;;  %v792_v53 = vrot.slane %v790_v39, 5  ;;  %v5661_v54 = vld [vmem:[%s7446_s1 + $0x190] sm:$0xff]  }
  0x75   : > { %5156 = vmatmul.mubr.bf16.vlgmr.msra.gmra.mrb[0].mxu0 %v6407_v58  ;;  %v1531_v31 = vsel %vm6313_vm5, %v1529_v51, %v1530_v13  ;;  %v777_v36 = vor.u32 %v776_v46, %v773_v23  ;;  %v782_v9 = vrot.slane %v780_v27, 5  ;;  %v1537_v13 = vrot.slane %v6173_v3, 5  ;;  %v6470_v27 = vld [vmem:[%s6061_s11 + $0x9c] sm:$0xf] }
  0x76   : > { %v759_v57 = vsel %vm6106_vm2, %v754_v17, %v758_v14  ;;  %5188 = vmatpush3.bf16.msra.mxu0 %v5657_v61  ;;  %v769_v25 = vsel %vm6106_vm2, %v764_v16, %v768_v10  ;;  %v6447_v14 = vcombine.low %v1528_v41, %v1531_v31  ;;  %v786_v17 = vrot.slane %v784_v40, 4  ;;  %v6458_v10 = vld [vmem:[%s6061_s11 + $0x98] sm:$0x1]  ;;  %v6473_v31 = vld [vmem:[%s6061_s11 + $0xa0] sm:$0xf] }
  0x77   : > { %v6449_v49 = vcombine.low %v759_v57, %v769_v25  ;;  %v778_v29 = vrot.slane %v777_v36, 4  ;;  %5189 = vmatprep.subr.bf16.mxu0 %v5659_v63  ;;  %v795_v25 = vshrl.u32 %v6431_v56, 16  ;;  %v798_v41 = vshll.u32 %v6431_v56, 16 }
  0x78   : > { %5159 = vmatprep.mubr.bf16.mxu0 %v6447_v14  ;;  %v787_v61 = vor.u32 %v786_v17, %v782_v9  ;;  %v804_v51 = vshll.u32 %v6434_v2, 16  ;;  %v1535_v3 = vsel %vm6313_vm5, %v4330_v12, %v1534_v52  ;;  %v1536_v23 = vrot.slane %v1534_v52, 4  ;;  %v6480_v52 = vld [vmem:[%s6061_s11 + $0xa4] sm:$0x1] }
  0x79   : > { %7478 = vst [vmem:[#allocation10_spill] sm:$0xff] %v6449_v49  ;;  %4935 = vmatprep.mubr.bf16.mxu1 %v6449_v49  ;;  %v783_v62 = vsel %vm6106_vm2, %v778_v29, %v782_v9  ;;  %v808_v46 = vshrl.u32 %v6434_v2, 16  ;;  %v797_v16 = vrot.slane %v795_v25, 4  ;;  %v800_v40 = vrot.slane %v798_v41, 5 }
  0x7a   : > { %v788_v57 = vrot.slane %v787_v61, 4  ;;  %5190 = vmatpush3.bf16.msra.mxu0 %v5659_v63  ;;  %v806_v39 = vrot.slane %v804_v51, 5  ;;  %v1538_v36 = vsel %vm6313_vm5, %v1536_v23, %v1537_v13  ;;  %v814_v29 = vshll.u32 %v6458_v10, 16  ;;  %v5663_v13 = vld [vmem:[%s7446_s1 + $0x198] sm:$0xff]  }
  0x7b   : > { %v810_v17 = vrot.slane %v808_v46, 4  ;;  %v4331_v9 = vrot.slane %v6188_v26, 9  ;;  %5191 = vmatprep.subr.bf16.mxu0 %v5661_v54  ;;  %v6484_v12 = vcombine.low %v1535_v3, %v1538_v36  ;;  %v801_v61 = vor.u32 %v800_v40, %v797_v16 }
  0x7c   : > { %v793_v63 = vsel %vm6106_vm2, %v788_v57, %v792_v53  ;;  %v1541_v25 = vrot.slane %v6202_v32, 5  ;;  %v816_v26 = vrot.slane %v814_v29, 5  ;;  %v1544_v23 = vrot.slane %v6205_v33, 5  ;;  %v6498_v57 = vld [vmem:[%s6061_s11 + $0xa8] sm:$0xf] }
  0x7d   : > { %v6490_v41 = vcombine.low %v783_v62, %v793_v63  ;;  %v811_v51 = vor.u32 %v810_v17, %v806_v39  ;;  %5160 = vmatmul.mubr.bf16.gmra.mrb[4].mxu0 %v6484_v12  ;;  %v802_v46 = vrot.slane %v801_v61, 4  ;;  %v819_v32 = vshrl.u32 %v6470_v27, 16  ;;  %v5667_v62 = vld [vmem:[%s7446_s1 + $0x1a0] sm:$0xff]   ;;  %v6508_v17 = vld [vmem:[%s6061_s11 + $0xac] sm:$0xf] }
  0x7e   : > { %v1542_v53 = vsel %vm6313_vm5, %v4331_v9, %v1541_v25  ;;  %v1543_v3 = vrot.slane %v1541_v25, 4  ;;  %v822_v33 = vshll.u32 %v6470_v27, 16  ;;  %v828_v40 = vshll.u32 %v6473_v31, 16  ;;  %5192 = vmatpush3.bf16.msra.mxu0 %v5661_v54 }
  0x7f   : > { %7479 = vst [vmem:[#allocation11_spill] sm:$0xff] %v6490_v41  ;;  %4936 = vmatmul.mubr.bf16.gmra.mrb[20].mxu1 %v6490_v41  ;;  %v812_v16 = vrot.slane %v811_v51, 4  ;;  %v832_v36 = vshrl.u32 %v6473_v31, 16  ;;  %v807_v29 = vsel %vm6106_vm2, %v802_v46, %v806_v39  ;;  %v821_v63 = vrot.slane %v819_v32, 4  ;;  %5193 = vmatprep.subr.bf16.mxu0 %v5663_v13  ;;  %v6523_v46 = vld [vmem:[%s6061_s11 + $0xb0] sm:$0x1] }
  0x80   : > { %v1545_v9 = vsel %vm6313_vm5, %v1543_v3, %v1544_v23  ;;  %v838_v61 = vshll.u32 %v6480_v52, 16  ;;  %v824_v41 = vrot.slane %v822_v33, 5  ;;  %v830_v49 = vrot.slane %v828_v40, 5 }
  0x81   : > { %v817_v25 = vsel %vm6106_vm2, %v812_v16, %v816_v26  ;;  %v6517_v51 = vcombine.low %v1542_v53, %v1545_v9  ;;  %v834_v24 = vrot.slane %v832_v36, 4  ;;  %v4332_v39 = vrot.slane %v6219_v59, 9 }
  0x82   : > { %v6519_v54 = vcombine.low %v807_v29, %v817_v25  ;;  %v840_v50 = vrot.slane %v838_v61, 5  ;;  %v825_v23 = vor.u32 %v824_v41, %v821_v63  ;;  %v1548_v3 = vrot.slane %v6222_v60, 5  ;;  %5194 = vmatpush3.bf16.msra.mxu0 %v5663_v13  ;;  %v5671_v60 = vld [vmem:[%s7446_s1 + $0x1a8] sm:$0xff]  }
  0x83   : > { %5163 = vmatprep.mubr.bf16.mxu0 %v6517_v51  ;;  %v1551_v32 = vrot.slane %v6228_v1, 5  ;;  %v843_v26 = vshrl.u32 %v6498_v57, 16  ;;  %v835_v53 = vor.u32 %v834_v24, %v830_v49  ;;  %v846_v16 = vshll.u32 %v6498_v57, 16  ;;  %5195 = vmatprep.subr.bf16.mxu0 %v5667_v62 }
  0x84   : > { %7480 = vst [vmem:[#allocation12_spill] sm:$0xff] %v6519_v54  ;;  %4939 = vmatprep.mubr.bf16.mxu1 %v6519_v54  ;;  %v852_v33 = vshll.u32 %v6508_v17, 16  ;;  %v856_v59 = vshrl.u32 %v6508_v17, 16  ;;  %v826_v41 = vrot.slane %v825_v23, 4  ;;  %v1549_v1 = vsel %vm6313_vm5, %v4332_v39, %v1548_v3  ;;  %v6545_v54 = vld [vmem:[%s6061_s11 + $0xb4] sm:$0xf] }
  0x85   : > { %v1550_v13 = vrot.slane %v1548_v3, 4  ;;  %v845_v40 = vrot.slane %v843_v26, 4  ;;  %v836_v24 = vrot.slane %v835_v53, 4  ;;  %v848_v36 = vrot.slane %v846_v16, 5  ;;  %v6552_v16 = vld [vmem:[%s6061_s11 + $0xb8] sm:$0xf] }
  0x86   : > { %v854_v29 = vrot.slane %v852_v33, 5  ;;  %v858_v9 = vrot.slane %v856_v59, 4  ;;  %v831_v63 = vsel %vm6106_vm2, %v826_v41, %v830_v49  ;;  %v862_v25 = vshll.u32 %v6523_v46, 16  ;;  %5196 = vmatpush3.bf16.msra.mxu0 %v5667_v62  ;;  %v5675_v49 = vld [vmem:[%s7446_s1 + $0x1b0] sm:$0xff]   ;;  %v6562_v59 = vld [vmem:[%s6061_s11 + $0xbc] sm:$0x1] }
  0x87   : > { %v1552_v61 = vsel %vm6313_vm5, %v1550_v13, %v1551_v32  ;;  %v4333_v23 = vrot.slane %v6256_v37, 9  ;;  %v841_v39 = vsel %vm6106_vm2, %v836_v24, %v840_v50  ;;  %v849_v26 = vor.u32 %v848_v36, %v845_v40  ;;  %5197 = vmatprep.subr.bf16.mxu0 %v5671_v60  ;;  %v5679_v36 = vld [vmem:[%s7446_s1 + $0x1b8] sm:$0xff]  }
  0x88   : > { %v6549_v3 = vcombine.low %v1549_v1, %v1552_v61  ;;  %v859_v53 = vor.u32 %v858_v9, %v854_v29  ;;  %v6557_v32 = vcombine.low %v831_v63, %v841_v39  ;;  %v864_v37 = vrot.slane %v862_v25, 5 }
  0x89   : > { %v1555_v33 = vrot.slane %v6259_v38, 5  ;;  %v1558_v62 = vrot.slane %v6262_v42, 5  ;;  %v850_v50 = vrot.slane %v849_v26, 4  ;;  %v867_v1 = vshrl.u32 %v6545_v54, 16 }
  0x8a   : > { %7481 = vst [vmem:[#allocation13_spill] sm:$0xff] %v6557_v32  ;;  %5164 = vmatmul.mubr.bf16.gmra.mrb[8].mxu0 %v6549_v3  ;;  %v860_v41 = vrot.slane %v859_v53, 4  ;;  %v870_v13 = vshll.u32 %v6545_v54, 16  ;;  %4940 = vmatmul.mubr.bf16.gmra.mrb[24].mxu1 %v6557_v32  ;;  %v876_v38 = vshll.u32 %v6552_v16, 16  ;;  %v880_v42 = vshrl.u32 %v6552_v16, 16 }
  0x8b   : > { %v1556_v40 = vsel %vm6313_vm5, %v4333_v23, %v1555_v33  ;;  %v1557_v24 = vrot.slane %v1555_v33, 4  ;;  %5198 = vmatpush3.bf16.msra.mxu0 %v5671_v60  ;;  %v855_v9 = vsel %vm6106_vm2, %v850_v50, %v854_v29  ;;  %v869_v61 = vrot.slane %v867_v1, 4 }
  0x8c   : > { %v865_v63 = vsel %vm6106_vm2, %v860_v41, %v864_v37  ;;  %v872_v25 = vrot.slane %v870_v13, 5  ;;  %5199 = vmatprep.subr.bf16.mxu0 %v5675_v49  ;;  %v878_v26 = vrot.slane %v876_v38, 5  ;;  %v882_v60 = vrot.slane %v880_v42, 4 }
  0x8d   : > { %v6579_v23 = vcombine.low %v855_v9, %v865_v63  ;;  %v1559_v39 = vsel %vm6313_vm5, %v1557_v24, %v1558_v62  ;;  %v886_v32 = vshll.u32 %v6562_v59, 16  ;;  %v4334_v29 = vrot.slane %v6282_v0, 9  ;;  %v6594_v62 = vld [vmem:[%s7446_s1 + $0x1c0] sm:$0xff]  }
  0x8e   : > { %v6583_v53 = vcombine.low %v1556_v40, %v1559_v39  ;;  %v873_v33 = vor.u32 %v872_v25, %v869_v61  ;;  %v883_v37 = vor.u32 %v882_v60, %v878_v26  ;;  %v1562_v50 = vrot.slane %v6290_v15, 5 }
  0x8f   : > { %4943 = vmatprep.mubr.bf16.mxu1 %v6579_v23  ;;  %v1565_v41 = vrot.slane %v6296_v18, 5  ;;  %v4335_v1 = vrot.slane %v6324_v8, 9  ;;  %5200 = vmatpush3.bf16.msra.mxu0 %v5675_v49  ;;  %v888_v40 = vrot.slane %v886_v32, 5  ;;  %v1569_v24 = vrot.slane %v6331_v21, 5 }
  0x90   : > { %5167 = vmatprep.mubr.bf16.mxu0 %v6583_v53  ;;  %v874_v13 = vrot.slane %v873_v33, 4  ;;  %v1572_v38 = vrot.slane %v6339_v30, 5  ;;  %5201 = vmatprep.subr.bf16.mxu0 %v5679_v36  ;;  %v884_v42 = vrot.slane %v883_v37, 4  ;;  %v1563_v18 = vsel %vm6313_vm5, %v4334_v29, %v1562_v50 }
  0x91   : > { %v1564_v9 = vrot.slane %v1562_v50, 4  ;;  %v4336_v49 = vrot.slane %v6354_v34, 9  ;;  %v1570_v61 = vsel %vm6313_vm5, %v4335_v1, %v1569_v24  ;;  %v1571_v25 = vrot.slane %v1569_v24, 4 }
  0x92   : > { %v879_v63 = vsel %vm6106_vm2, %v874_v13, %v878_v26  ;;  %v1576_v32 = vrot.slane %v6368_v22, 5  ;;  %v889_v30 = vsel %vm6106_vm2, %v884_v42, %v888_v40  ;;  %v1579_v60 = vrot.slane %v6375_v48, 5 }
  0x93   : > { %v1566_v39 = vsel %vm6313_vm5, %v1564_v9, %v1565_v41  ;;  %v4337_v33 = vrot.slane %v6392_v6, 9  ;;  %5202 = vmatpush3.bf16.msra.mxu0 %v5679_v36  ;;  %v6613_v29 = vcombine.low %v879_v63, %v889_v30  ;;  %v1573_v37 = vsel %vm6313_vm5, %v1571_v25, %v1572_v38  ;;  %v5670_v25 = vld [vmem:[%s7446_s1 + $0x88] sm:$0xff]  }
  0x94   : > { %v6615_v26 = vcombine.low %v1563_v18, %v1566_v39  ;;  %5235 = vmatprep.subr.bf16.mxu0 %v6594_v62  ;;  %v6620_v50 = vcombine.low %v1570_v61, %v1573_v37  ;;  %v1578_v1 = vrot.slane %v1576_v32, 4  ;;  %v1583_v13 = vrot.slane %v6412_v35, 5 }
  0x95   : > { %v1586_v41 = vrot.slane %v6418_v4, 5  ;;  %4944 = vmatmul.mubr.bf16.gmra.mrb[28].mxu1 %v6613_v29  ;;  %v7482_v48 = vcombine.low %v6070_v44, %v6073_v45  ;;  %v1577_v36 = vsel %vm6313_vm5, %v4336_v49, %v1576_v32  ;;  %v1590_v38 = vrot.slane %v6434_v2, 5 }
  0x96   : > { %5168 = vmatmul.mubr.bf16.gmra.mrb[12].mxu0 %v6615_v26  ;;  %v1580_v40 = vsel %vm6313_vm5, %v1578_v1, %v1579_v60  ;;  %v1585_v24 = vrot.slane %v1583_v13, 4  ;;  %v1597_v4 = vrot.slane %v6473_v31, 5  ;;  %v1584_v42 = vsel %vm6313_vm5, %v4337_v33, %v1583_v13 }
  0x97   : > { %4963 = vmatprep.mubr.bf16.mxu1 %v7482_v48  ;;  %5171 = vmatprep.mubr.bf16.mxu0 %v6620_v50  ;;  %v6640_v45 = vcombine.low %v1577_v36, %v1580_v40  ;;  %v4338_v18 = vrot.slane %v6431_v56, 9  ;;  %v1593_v9 = vrot.slane %v6458_v10, 5  ;;  %v1592_v49 = vrot.slane %v1590_v38, 4 }
  0x98   : > { %v1587_v44 = vsel %vm6313_vm5, %v1585_v24, %v1586_v41  ;;  %v4339_v63 = vrot.slane %v6470_v27, 9  ;;  %v1599_v32 = vrot.slane %v1597_v4, 4  ;;  %v1600_v30 = vrot.slane %v6480_v52, 5 }
  0x99   : > { %v6645_v61 = vcombine.low %v1584_v42, %v1587_v44  ;;  %v1591_v39 = vsel %vm6313_vm5, %v4338_v18, %v1590_v38  ;;  %v1604_v10 = vrot.slane %v6508_v17, 5  ;;  %v6658_v60 = vcombine.low %v6282_v0, %v6290_v15  ;;  %v5674_v15 = vld [vmem:[%s7446_s1 + $0x90] sm:$0xff]   ;;  %v483_v38 = vld [vmem:[%s6061_s11 + $0xc8] sm:$0x1]  ;;  %v5847_v42 = vld [vmem:[%s6061_s11 + $0x40] sm:$0xf] }
  0x9a   : > { %v1594_v52 = vsel %vm6313_vm5, %v1592_v49, %v1593_v9  ;;  %v1598_v33 = vsel %vm6313_vm5, %v4339_v63, %v1597_v4  ;;  %v4340_v37 = vrot.slane %v6498_v57, 9  ;;  %v6669_v1 = vcombine.low %v6324_v8, %v6331_v21  ;;  %v5846_v4 = vld [vmem:[%s6061_s11 + $0x3c] sm:$0xf]  ;;  %v5848_v9 = vld [vmem:[%s6061_s11 + $0x48] sm:$0xf] }
  0x9b   : > { %v1601_v0 = vsel %vm6313_vm5, %v1599_v32, %v1600_v30  ;;  %v6680_v13 = vcombine.low %v6354_v34, %v6368_v22  ;;  %v6684_v8 = vcombine.low %v6392_v6, %v6412_v35  ;;  %v6688_v21 = vcombine.low %v6431_v56, %v6434_v2  ;;  %v6708_v56 = vld [vmem:[%s6061_s11 + $0xc4] sm:$0xf]  ;;  %v5849_v49 = vld [vmem:[%s6061_s11 + $0x4c] sm:$0xf] }
  0x9c   : > { %v6692_v41 = vcombine.low %v6470_v27, %v6473_v31  ;;  %v6696_v48 = vcombine.low %v6498_v57, %v6508_v17  ;;  %v6698_v36 = vcombine.low %v1591_v39, %v1594_v52  ;;  %v1606_v34 = vrot.slane %v1604_v10, 4  ;;  %v5678_v57 = vld [vmem:[%s7446_s1 + $0x98] sm:$0xff]  }
  0x9d   : > { %4964 = vmatmul.mubr.bf16.vlgmr.msra.gmra.mrb[0].mxu1 %v6119_v11  ;;  %v1607_v22 = vrot.slane %v6523_v46, 5  ;;  %v6703_v6 = vcombine.low %v6545_v54, %v6552_v16  ;;  %v6705_v35 = vcombine.low %v1598_v33, %v1601_v0  ;;  %v4341_v2 = vrot.slane %v6545_v54, 9  ;;  %v6722_v46 = vld [vmem:[%s6061_s11 + $0xc0] sm:$0xf] }
  0x9e   : > { %5172 = vmatmul.mubr.bf16.gmra.mrb[16].mxu0 %v6640_v45  ;;  %4996 = vmatpush3.bf16.msra.mxu1 %v6383_v20  ;;  %v1611_v20 = vrot.slane %v6552_v16, 5  ;;  %v1614_v31 = vrot.slane %v6562_v59, 5  ;;  %v1605_v17 = vsel %vm6313_vm5, %v4340_v37, %v1604_v10  ;;  %v2491_v16 = vrot.slane %v6708_v56, 5  ;;  %v5682_v59 = vld [vmem:[%s7446_s1 + $0xa0] sm:$0xff]  }
  0x9f   : > { %4967 = vmatprep.mubr.bf16.mxu1 %v6195_v28  ;;  %5175 = vmatprep.mubr.bf16.mxu0 %v6645_v61  ;;  %v1608_v54 = vsel %vm6313_vm5, %v1606_v34, %v1607_v22  ;;  %v6737_v44 = vcombine.low %v5846_v4, %v5847_v42  ;;  %v6743_v63 = vcombine.low %v5848_v9, %v5849_v49  ;;  %v2206_v32 = vshll.u32 %v6722_v46, 16  ;;  %v5686_v22 = vld [vmem:[%s7446_s1 + $0xa8] sm:$0xff]   ;;  %v5690_v4 = vld [vmem:[%s7446_s1 + $0xb0] sm:$0xff]   ;;  %v5851_v42 = vld [vmem:[%s6061_s11 + $0x58] sm:$0xf] }
  0xa0   : > { %4997 = vmatprep.subr.bf16.mxu1 %v5670_v25  ;;  %v1613_v27 = vrot.slane %v1611_v20, 4  ;;  %v1612_v40 = vsel %vm6313_vm5, %v4341_v2, %v1611_v20  ;;  %v6739_v18 = vcombine.low %v1605_v17, %v1608_v54  ;;  %v2212_v30 = vshll.u32 %v6708_v56, 16 }
  0xa1   : > { %v2216_v39 = vshrl.u32 %v6708_v56, 16  ;;  %v4432_v52 = vrot.slane %v6722_v46, 9  ;;  %v2493_v33 = vrot.slane %v2491_v16, 4  ;;  %v2494_v37 = vrot.slane %v483_v38, 5 }
  0xa2   : > { %4998 = vmatpush3.bf16.msra.mxu1 %v5670_v25  ;;  %v1615_v24 = vsel %vm6313_vm5, %v1613_v27, %v1614_v31  ;;  %v2203_v25 = vshrl.u32 %v6722_v46, 16  ;;  %v2214_v20 = vrot.slane %v2212_v30, 5  ;;  %v2222_v31 = vshll.u32 %v483_v38, 16  ;;  %v5850_v38 = vld [vmem:[%s6061_s11 + $0x54] sm:$0xf]  ;;  %v5696_v30 = vld [vmem:[%s7446_s1 + $0xc0] sm:$0xff]  }
  0xa3   : > { %4999 = vmatprep.subr.bf16.mxu1 %v5674_v15  ;;  %v6749_v10 = vcombine.low %v1612_v40, %v1615_v24  ;;  %v2218_v34 = vrot.slane %v2216_v39, 4  ;;  %v2495_v17 = vsel %vm6313_vm5, %v2493_v33, %v2494_v37  ;;  %v6768_v9 = vcombine.low %v5850_v38, %v5851_v42  ;;  %v5687_v39 = vld [vmem:[%s7446_s1 + $0x1c8] sm:$0xff]   ;;  %v5695_v33 = vld [vmem:[%s7446_s1 + $0x1d8] sm:$0xff]   ;;  %v5700_v38 = vld [vmem:[%s7446_s1 + $0xd0] sm:$0xff]  }
  0xa4   : > { %v2205_v0 = vrot.slane %v2203_v25, 4  ;;  %v2224_v24 = vrot.slane %v2222_v31, 5  ;;  %v5703_v42 = vld [vmem:[%s7446_s1 + $0xd8] sm:$0xff]  }
  0xa5   : > { %4968 = vmatmul.mubr.bf16.gmra.mrb[4].mxu1 %v6266_v43  ;;  %v2219_v27 = vor.u32 %v2218_v34, %v2214_v20  ;;  %v5854_v34 = vld [vmem:[%s6061_s11] sm:$0xf] }
  0xa6   : > { %5176 = vmatmul.mubr.bf16.gmra.mrb[20].mxu0 %v6698_v36  ;;  %4971 = vmatprep.mubr.bf16.mxu1 %v6270_v47 }
  0xa7   : > { %5179 = vmatprep.mubr.bf16.mxu0 %v6705_v35  ;;  %5000 = vmatpush3.bf16.msra.mxu1 %v5674_v15  ;;  %v2208_v15 = vrot.slane %v2206_v32, 5  ;;  %v2220_v40 = vrot.slane %v2219_v27, 4  ;;  %v5694_v32 = vld [vmem:[%s7446_s1 + $0xb8] sm:$0xff]   ;;  %v5699_v27 = vld [vmem:[%s7446_s1 + $0x1e8] sm:$0xff]  }
  0xa8   : > { %5001 = vmatprep.subr.bf16.mxu1 %v5678_v57 }
  0xa9   : > { %v2209_v2 = vor.u32 %v2208_v15, %v2205_v0  ;;  %v5697_v0 = vld [vmem:[%s7446_s1 + $0x1e0] sm:$0xff]   ;;  %v5853_v15 = vld [vmem:[%s6061_s11 + $0x8] sm:$0x1] }
  0xab   : > { %5002 = vmatpush3.bf16.msra.mxu1 %v5678_v57  ;;  %v2492_v57 = vsel %vm6313_vm5, %v4432_v52, %v2491_v16  ;;  %v2210_v54 = vrot.slane %v2209_v2, 4  ;;  %v5691_v52 = vld [vmem:[%s7446_s1 + $0x1d0] sm:$0xff]  }
  0xac   : > { %5003 = vmatprep.subr.bf16.mxu1 %v5682_v59  ;;  %v6770_v49 = vcombine.low %v2492_v57, %v2495_v17  ;;  %v5701_v17 = vld [vmem:[%s7446_s1 + $0x1f0] sm:$0xff]  }
  0xad   : > { %4972 = vmatmul.mubr.bf16.gmra.mrb[8].mxu1 %v6737_v44  ;;  %v2215_v16 = vsel %vm6106_vm2, %v2210_v54, %v2214_v20  ;;  %v1509_v20 = vrot.slane %v5853_v15, 5  ;;  %v7485_v15 = vld [vmem:[#allocation5_spill] sm:$0xff] }
  0xae   : > { %5180 = vmatmul.mubr.bf16.gmra.mrb[24].mxu0 %v6739_v18  ;;  %4975 = vmatprep.mubr.bf16.mxu1 %v6743_v63 }
  0xaf   : > { %5183 = vmatprep.mubr.bf16.mxu0 %v6749_v10  ;;  %5004 = vmatpush3.bf16.msra.mxu1 %v5682_v59  ;;  %v2225_v59 = vsel %vm6106_vm2, %v2220_v40, %v2224_v24  ;;  %v5705_v40 = vld [vmem:[%s7446_s1 + $0x1f8] sm:$0xff]   ;;  %v5707_v24 = vld [vmem:[%s7446_s1 + $0x200] sm:$0xff]  }
  0xb0   : > { %5005 = vmatprep.subr.bf16.mxu1 %v5686_v22  ;;  %v6776_v25 = vcombine.low %v2215_v16, %v2225_v59  ;;  %v6857_v16 = vcombine.low %v6722_v46, %v6708_v56  ;;  %v5708_v59 = vld [vmem:[%s7446_s1 + $0xe8] sm:$0xff]   ;;  %v5710_v56 = vld [vmem:[%s7446_s1 + $0xf0] sm:$0xff]  }
  0xb3   : > { %5006 = vmatpush3.bf16.msra.mxu1 %v5686_v22  ;;  %v4326_v22 = vrot.slane %v5854_v34, 9  ;;  %v5714_v34 = vld [vmem:[%s7446_s1 + $0x220] sm:$0xff]  }
  0xb4   : > { %5007 = vmatprep.subr.bf16.mxu1 %v5690_v4 }
  0xb5   : > { %4976 = vmatmul.mubr.bf16.gmra.mrb[12].mxu1 %v6768_v9 }
  0xb6   : > { %5184 = vmatmul.mubr.bf16.gmra.mrb[28].mxu0 %v6770_v49  ;;  %4979 = vmatprep.mubr.bf16.mxu1 %v6658_v60 }
  0xb7   : > { %5203 = vmatprep.mubr.bf16.mxu0 %v6195_v28  ;;  %5008 = vmatpush3.bf16.msra.mxu1 %v5690_v4  ;;  %v5698_v4 = vld [vmem:[%s7446_s1 + $0xc8] sm:$0xff]  }
  0xb8   : > { %5009 = vmatprep.subr.bf16.mxu1 %v5694_v32 }
  0xbb   : > { %5010 = vmatpush3.bf16.msra.mxu1 %v5694_v32  ;;  %v6867_v32 = vld [vmem:[%s6061_s11 + $0xcc] sm:$0xf] }
  0xbc   : > { %5043 = vmatprep.subr.bf16.mxu1 %v5696_v30 }
  0xbd   : > { %4980 = vmatmul.mubr.bf16.gmra.mrb[16].mxu1 %v6669_v1 }
  0xbe   : > { %5204 = vmatmul.mubr.bf16.vlgmr.msra.gmra.mrb[0].mxu0 %v6266_v43  ;;  %4983 = vmatprep.mubr.bf16.mxu1 %v6680_v13 }
  0xbf   : > { %5236 = vmatpush3.bf16.msra.mxu0 %v6594_v62  ;;  %5207 = vmatprep.mubr.bf16.mxu0 %v6270_v47  ;;  %v5852_v62 = vld [vmem:[%s6061_s11 + $0x4] sm:$0xf] }
  0xc0   : > { %5237 = vmatprep.subr.bf16.mxu0 %v5687_v39  ;;  %v1506_v37 = vrot.slane %v5852_v62, 5  ;;  %v7483_v62 = vld [vmem:[#allocation3_spill] sm:$0xff] }
  0xc2   : > { %v1508_v2 = vrot.slane %v1506_v37, 4  ;;  %v1507_v31 = vsel %vm6313_vm5, %v4326_v22, %v1506_v37  ;;  %v5711_v37 = vld [vmem:[%s7446_s1 + $0x210] sm:$0xff]   ;;  %v5715_v22 = vld [vmem:[%s7446_s1 + $0x228] sm:$0xff]  }
  0xc3   : > { %5238 = vmatpush3.bf16.msra.mxu0 %v5687_v39  ;;  %v5712_v39 = vld [vmem:[%s7446_s1 + $0xf8] sm:$0xff]  }
  0xc4   : > { %5239 = vmatprep.subr.bf16.mxu0 %v5691_v52  ;;  %v1510_v57 = vsel %vm6313_vm5, %v1508_v2, %v1509_v20  ;;  %v7486_v20 = vld [vmem:[#allocation6_spill] sm:$0xff]  ;;  %v7487_v2 = vld [vmem:[#allocation7_spill] sm:$0xff] }
  0xc5   : > { %4984 = vmatmul.mubr.bf16.gmra.mrb[20].mxu1 %v6684_v8  ;;  %v4358_v54 = vcombine.low %v1507_v31, %v1510_v57  ;;  %v5716_v31 = vld [vmem:[%s7446_s1 + $0x230] sm:$0xff]   ;;  %v5717_v57 = vld [vmem:[%s7446_s1 + $0x238] sm:$0xff]  }
  0xc6   : > { %5208 = vmatmul.mubr.bf16.gmra.mrb[4].mxu0 %v6737_v44  ;;  %4987 = vmatprep.mubr.bf16.mxu1 %v6688_v21 }
  0xc7   : > { %5211 = vmatprep.mubr.bf16.mxu0 %v6743_v63  ;;  %5240 = vmatpush3.bf16.msra.mxu0 %v5691_v52  ;;  %v5709_v52 = vld [vmem:[%s7446_s1 + $0x208] sm:$0xff]  }
  0xc8   : > { %5241 = vmatprep.subr.bf16.mxu0 %v5695_v33 }
  0xcb   : > { %5242 = vmatpush3.bf16.msra.mxu0 %v5695_v33  ;;  %v5855_v33 = vld [vmem:[%s7446_s1 + $0x100] sm:$0xff]  }
  0xcc   : > { %5243 = vmatprep.subr.bf16.mxu0 %v5697_v0 }
  0xcd   : > { %4988 = vmatmul.mubr.bf16.gmra.mrb[24].mxu1 %v6692_v41 }
  0xce   : > { %5212 = vmatmul.mubr.bf16.gmra.mrb[8].mxu0 %v6768_v9  ;;  %4991 = vmatprep.mubr.bf16.mxu1 %v6696_v48 }
  0xcf   : > { %5215 = vmatprep.mubr.bf16.mxu0 %v6658_v60  ;;  %5244 = vmatpush3.bf16.msra.mxu0 %v5697_v0  ;;  %v5713_v0 = vld [vmem:[%s7446_s1 + $0x218] sm:$0xff]  }
  0xd0   : > { %5245 = vmatprep.subr.bf16.mxu0 %v5699_v27 }
  0xd3   : > { %5246 = vmatpush3.bf16.msra.mxu0 %v5699_v27  ;;  %v7488_v27 = vld [vmem:[#allocation8_spill] sm:$0xff] }
  0xd4   : > { %5247 = vmatprep.subr.bf16.mxu0 %v5701_v17 }
  0xd5   : > { %4992 = vmatmul.mubr.bf16.gmra.mrb[28].mxu1 %v6703_v6 }
  0xd6   : > { %5216 = vmatmul.mubr.bf16.gmra.mrb[12].mxu0 %v6669_v1  ;;  %5011 = vmatprep.mubr.bf16.mxu1 %v4358_v54  ;;  %v7490_v54 = vld [vmem:[#allocation10_spill] sm:$0xff] }
  0xd7   : > { %5219 = vmatprep.mubr.bf16.mxu0 %v6680_v13  ;;  %5248 = vmatpush3.bf16.msra.mxu0 %v5701_v17  ;;  %v7489_v17 = vld [vmem:[#allocation9_spill] sm:$0xff] }
  0xd8   : > { %5249 = vmatprep.subr.bf16.mxu0 %v5705_v40 }
  0xdb   : > { %5250 = vmatpush3.bf16.msra.mxu0 %v5705_v40  ;;  %v7491_v40 = vld [vmem:[#allocation11_spill] sm:$0xff] }
  0xdc   : > { %5283 = vmatprep.subr.bf16.mxu0 %v5707_v24 }
  0xdd   : > { %5012 = vmatmul.mubr.bf16.vlgmr.msra.gmra.mrb[0].mxu1 %v6361_v7  ;;  %v5706_v7 = vld [vmem:[%s7446_s1 + $0xe0] sm:$0xff]  }
  0xde   : > { %5220 = vmatmul.mubr.bf16.gmra.mrb[16].mxu0 %v6684_v8  ;;  %5044 = vmatpush3.bf16.msra.mxu1 %v5696_v30  ;;  %v6870_v30 = vld [vmem:[%s6061_s11 + $0xd0] sm:$0xf] }
  0xdf   : > { %5015 = vmatprep.mubr.bf16.mxu1 %v6407_v58  ;;  %5223 = vmatprep.mubr.bf16.mxu0 %v6688_v21  ;;  %v4474_v46 = vcombine.low %v6867_v32, %v6870_v30 }
  0xe0   : > { %5045 = vmatprep.subr.bf16.mxu1 %v5698_v4 }
  0xe2   : > { %5046 = vmatpush3.bf16.msra.mxu1 %v5698_v4  ;;  %v3026_v4 = vshll.u32 %v6867_v32, 16 }
  0xe3   : > { %5047 = vmatprep.subr.bf16.mxu1 %v5700_v38 }
  0xe5   : > { %5016 = vmatmul.mubr.bf16.gmra.mrb[4].mxu1 %v6447_v14 }
  0xe6   : > { %5224 = vmatmul.mubr.bf16.gmra.mrb[20].mxu0 %v6692_v41  ;;  %5019 = vmatprep.mubr.bf16.mxu1 %v6484_v12 }
  0xe7   : > { %5227 = vmatprep.mubr.bf16.mxu0 %v6696_v48  ;;  %5048 = vmatpush3.bf16.msra.mxu1 %v5700_v38  ;;  %v3036_v38 = vshrl.u32 %v6870_v30, 16 }
  0xe8   : > { %5049 = vmatprep.subr.bf16.mxu1 %v5703_v42 }
  0xeb   : > { %5050 = vmatpush3.bf16.msra.mxu1 %v5703_v42  ;;  %v7492_v42 = vld [vmem:[#allocation12_spill] sm:$0xff] }
  0xec   : > { %5051 = vmatprep.subr.bf16.mxu1 %v5706_v7 }
  0xed   : > { %5020 = vmatmul.mubr.bf16.gmra.mrb[8].mxu1 %v6517_v51 }
  0xee   : > { %5228 = vmatmul.mubr.bf16.gmra.mrb[24].mxu0 %v6703_v6  ;;  %5023 = vmatprep.mubr.bf16.mxu1 %v6549_v3 }
  0xef   : > { %5231 = vmatprep.mubr.bf16.mxu0 %v6857_v16  ;;  %5052 = vmatpush3.bf16.msra.mxu1 %v5706_v7 }
  0xf0   : > { %5053 = vmatprep.subr.bf16.mxu1 %v5708_v59 }
  0xf3   : > { %5054 = vmatpush3.bf16.msra.mxu1 %v5708_v59  ;;  %v3028_v59 = vrot.slane %v3026_v4, 5  ;;  %v4084_v4 = vld [vmem:[%s7030_s18 + $0x4c] sm:$0xf] }
  0xf4   : > { %5055 = vmatprep.subr.bf16.mxu1 %v5710_v56  ;;  %4116 = vst [vmem:[%s7028_s29 + $0x9c] sm:$0xf] %v4084_v4 }
  0xf5   : > { %5024 = vmatmul.mubr.bf16.gmra.mrb[12].mxu1 %v6583_v53 }
  0xf6   : > { %5232 = vmatmul.mubr.bf16.gmra.mrb[28].mxu0 %v4474_v46  ;;  %5027 = vmatprep.mubr.bf16.mxu1 %v6615_v26  ;;  %v3038_v46 = vrot.slane %v3036_v38, 4  ;;  %v4085_v38 = vld [vmem:[%s7030_s18 + $0x50] sm:$0xf] }
  0xf7   : > { %5251 = vmatprep.mubr.bf16.mxu0 %v6183_v19  ;;  %5056 = vmatpush3.bf16.msra.mxu1 %v5710_v56  ;;  %v7484_v19 = vld [vmem:[#allocation4_spill] sm:$0xff]  ;;  %4117 = vst [vmem:[%s7028_s29 + $0xa4] sm:$0xf] %v4085_v38 }
  0xf8   : > { %5057 = vmatprep.subr.bf16.mxu1 %v5712_v39 }
  0xfb   : > { %5058 = vmatpush3.bf16.msra.mxu1 %v5712_v39  ;;  %v5857_v39 = vld [vmem:[%s7446_s1 + $0x110] sm:$0xff]  }
  0xfc   : > { %5331 = vmatprep.subr.bf16.mxu1 %v5855_v33 }
  0xfd   : > { %5028 = vmatmul.mubr.bf16.gmra.mrb[16].mxu1 %v6620_v50 }
  0xfe   : > { %5252 = vmatmul.mubr.bf16.vlgmr.msra.gmra.mrb[0].mxu0 %v7483_v62  ;;  %5031 = vmatprep.mubr.bf16.mxu1 %v6640_v45 }
  0xff   : > { %5284 = vmatpush3.bf16.msra.mxu0 %v5707_v24  ;;  %5255 = vmatprep.mubr.bf16.mxu0 %v7484_v19  ;;  %v3023_v24 = vshrl.u32 %v6867_v32, 16 }
 0x100   : > { %5285 = vmatprep.subr.bf16.mxu0 %v5709_v52 }
 0x101   : > { %v3025_v7 = vrot.slane %v3023_v24, 4  ;;  %v4083_v24 = vld [vmem:[%s7030_s18 + $0x48] sm:$0xf] }
 0x102   : > { %4115 = vst [vmem:[%s7028_s29 + $0x94] sm:$0xf] %v4083_v24 }
 0x103   : > { %5286 = vmatpush3.bf16.msra.mxu0 %v5709_v52  ;;  %v7493_v52 = vld [vmem:[#allocation13_spill] sm:$0xff] }
 0x104   : > { %5287 = vmatprep.subr.bf16.mxu0 %v5711_v37 }
 0x105   : > { %5032 = vmatmul.mubr.bf16.gmra.mrb[20].mxu1 %v6645_v61 }
 0x106   : > { %5256 = vmatmul.mubr.bf16.gmra.mrb[4].mxu0 %v7485_v15  ;;  %5035 = vmatprep.mubr.bf16.mxu1 %v6698_v36 }
 0x107   : > { %5259 = vmatprep.mubr.bf16.mxu0 %v7486_v20  ;;  %5288 = vmatpush3.bf16.msra.mxu0 %v5711_v37  ;;  %v5858_v37 = vld [vmem:[%s7446_s1 + $0x118] sm:$0xff]  }
 0x108   : > { %5289 = vmatprep.subr.bf16.mxu0 %v5713_v0 }
 0x10b   : > { %5290 = vmatpush3.bf16.msra.mxu0 %v5713_v0 }
 0x10c   : > { %5291 = vmatprep.subr.bf16.mxu0 %v5714_v34 }
 0x10d   : > { %5036 = vmatmul.mubr.bf16.gmra.mrb[24].mxu1 %v6705_v35 }
 0x10e   : > { %5260 = vmatmul.mubr.bf16.gmra.mrb[8].mxu0 %v7487_v2  ;;  %5039 = vmatprep.mubr.bf16.mxu1 %v6739_v18 }
 0x10f   : > { %5263 = vmatprep.mubr.bf16.mxu0 %v7488_v27  ;;  %5292 = vmatpush3.bf16.msra.mxu0 %v5714_v34  ;;  %v4077_v27 = vld [vmem:[%s7030_s18 + $0x30] sm:$0xf] }
 0x110   : > { %5293 = vmatprep.subr.bf16.mxu0 %v5715_v22  ;;  %4109 = vst [vmem:[%s7028_s29 + $0x64] sm:$0xf] %v4077_v27 }
 0x113   : > { %5294 = vmatpush3.bf16.msra.mxu0 %v5715_v22  ;;  %v5860_v22 = vld [vmem:[%s7446_s1 + $0x128] sm:$0xff]  }
 0x114   : > { %5295 = vmatprep.subr.bf16.mxu0 %v5716_v31 }
 0x115   : > { %5040 = vmatmul.mubr.bf16.gmra.mrb[28].mxu1 %v6749_v10 }
 0x116   : > { %5264 = vmatmul.mubr.bf16.gmra.mrb[12].mxu0 %v7489_v17  ;;  %5059 = vmatprep.mubr.bf16.mxu1 %v6119_v11  ;;  %v3032_v11 = vshll.u32 %v6870_v30, 16 }
 0x117   : > { %5267 = vmatprep.mubr.bf16.mxu0 %v7490_v54  ;;  %5296 = vmatpush3.bf16.msra.mxu0 %v5716_v31  ;;  %v4078_v31 = vld [vmem:[%s7030_s18 + $0x34] sm:$0xf] }
 0x118   : > { %5297 = vmatprep.subr.bf16.mxu0 %v5717_v57  ;;  %v3034_v56 = vrot.slane %v3032_v11, 5  ;;  %4110 = vst [vmem:[%s7028_s29 + $0x6c] sm:$0xf] %v4078_v31  ;;  %v4086_v11 = vld [vmem:[%s7030_s18 + $0x54] sm:$0xf] }
 0x119   : > { %4118 = vst [vmem:[%s7028_s29 + $0xac] sm:$0xf] %v4086_v11  ;;  %v7163_v31 = vld [vmem:[%s7135_s21 + $0x10] sm:$0xff]  }
 0x11a   : > { %v3039_v62 = vor.u32 %v3038_v46, %v3034_v56  ;;  %v4091_v46 = vld [vmem:[%s7030_s18 + $0x68] sm:$0xf] }
 0x11b   : > { %5298 = vmatpush3.bf16.msra.mxu0 %v5717_v57  ;;  %v4079_v57 = vld [vmem:[%s7030_s18 + $0x38] sm:$0xf]  ;;  %4123 = vst [vmem:[%s7028_s29 + $0xd4] sm:$0xf] %v4091_v46 }
 0x11c   : > { %v3040_v15 = vrot.slane %v3039_v62, 4  ;;  %4111 = vst [vmem:[%s7028_s29 + $0x74] sm:$0xf] %v4079_v57 }
 0x11d   : > { %5060 = vmatmul.mubr.bf16.vlgmr.msra.gmra.mrb[0].mxu1 %v6195_v28  ;;  %v5856_v28 = vld [vmem:[%s7446_s1 + $0x108] sm:$0xff]  }
 0x11e   : > { %5268 = vmatmul.mubr.bf16.gmra.mrb[16].mxu0 %v7491_v40  ;;  %5339 = vmatpush3.bf16.msra.mxu1 %v5855_v33  ;;  %v3029_v33 = vor.u32 %v3028_v59, %v3025_v7  ;;  %v4089_v7 = vld [vmem:[%s7030_s18 + $0x60] sm:$0xf]  ;;  %v4090_v59 = vld [vmem:[%s7030_s18 + $0x64] sm:$0xf] }
 0x11f   : > { %5063 = vmatprep.mubr.bf16.mxu1 %v6266_v43  ;;  %5271 = vmatprep.mubr.bf16.mxu0 %v7492_v42  ;;  %v6938_v43 = vld [vmem:[%s6061_s11 + $0xd4] sm:$0x1]  ;;  %4121 = vst [vmem:[%s7028_s29 + $0xc4] sm:$0xf] %v4089_v7  ;;  %4122 = vst [vmem:[%s7028_s29 + $0xcc] sm:$0xf] %v4090_v59 }
 0x120   : > { %5332 = vmatprep.subr.bf16.mxu1 %v5856_v28  ;;  %v3042_v19 = vshll.u32 %v6938_v43, 16  ;;  %v3030_v0 = vrot.slane %v3029_v33, 4  ;;  %v4094_v33 = vld [vmem:[%s7030_s18 + $0x74] sm:$0xf] }
 0x121   : > { %4126 = vst [vmem:[%s7028_s29 + $0xec] sm:$0xf] %v4094_v33 }
 0x122   : > { %5340 = vmatpush3.bf16.msra.mxu1 %v5856_v28  ;;  %v3044_v20 = vrot.slane %v3042_v19, 5  ;;  %v4088_v28 = vld [vmem:[%s7030_s18 + $0x5c] sm:$0xf]  ;;  %v4095_v19 = vld [vmem:[%s7030_s18 + $0x78] sm:$0xf] }
 0x123   : > { %5333 = vmatprep.subr.bf16.mxu1 %v5857_v39  ;;  %4120 = vst [vmem:[%s7028_s29 + $0xbc] sm:$0xf] %v4088_v28  ;;  %4127 = vst [vmem:[%s7028_s29 + $0xf4] sm:$0xf] %v4095_v19  ;;  %v4614_v28 = vunpack.c.l.bf16 %v7163_v31 }
 0x124   : > { %v3045_v34 = vsel %vm6106_vm2, %v3040_v15, %v3044_v20  ;;  %v7115_v20 = vld [vmem:[%s7447_s2] ss:$0 sm:$0xff] }
 0x125   : > { %5064 = vmatmul.mubr.bf16.gmra.mrb[4].mxu1 %v6270_v47  ;;  %v5859_v47 = vld [vmem:[%s7446_s1 + $0x120] sm:$0xff]  }
 0x126   : > { %5272 = vmatmul.mubr.bf16.gmra.mrb[20].mxu0 %v7493_v52  ;;  %5067 = vmatprep.mubr.bf16.mxu1 %v6737_v44  ;;  %v3035_v44 = vsel %vm6106_vm2, %v3030_v0, %v3034_v56 }
 0x127   : > { %5275 = vmatprep.mubr.bf16.mxu0 %v6579_v23  ;;  %5341 = vmatpush3.bf16.msra.mxu1 %v5857_v39  ;;  %v4499_v2 = vcombine.low %v3035_v44, %v3045_v34  ;;  %v4092_v39 = vld [vmem:[%s7030_s18 + $0x6c] sm:$0xf] }
 0x128   : > { %5334 = vmatprep.subr.bf16.mxu1 %v5858_v37  ;;  %4124 = vst [vmem:[%s7028_s29 + $0xdc] sm:$0xf] %v4092_v39 }
 0x12b   : > { %5342 = vmatpush3.bf16.msra.mxu1 %v5858_v37  ;;  %v4096_v37 = vld [vmem:[%s7030_s18 + $0x7c] sm:$0xf] }
 0x12c   : > { %5335 = vmatprep.subr.bf16.mxu1 %v5859_v47  ;;  %4128 = vst [vmem:[%s7028_s29 + $0xfc] sm:$0xf] %v4096_v37 }
 0x12d   : > { %5068 = vmatmul.mubr.bf16.gmra.mrb[8].mxu1 %v6743_v63  ;;  %v5861_v63 = vld [vmem:[%s7446_s1 + $0x130] sm:$0xff]  }
 0x12e   : > { %5276 = vmatmul.mubr.bf16.gmra.mrb[24].mxu0 %v6613_v29  ;;  %5071 = vmatprep.mubr.bf16.mxu1 %v6768_v9  ;;  %v4073_v9 = vld [vmem:[%s7030_s18 + $0x20] sm:$0xf] }
 0x12f   : > { %5279 = vmatprep.mubr.bf16.mxu0 %v6776_v25  ;;  %5343 = vmatpush3.bf16.msra.mxu1 %v5859_v47  ;;  %4105 = vst [vmem:[%s7028_s29 + $0x44] sm:$0xf] %v4073_v9 }
 0x130   : > { %5336 = vmatprep.subr.bf16.mxu1 %v5860_v22 }
 0x133   : > { %5344 = vmatpush3.bf16.msra.mxu1 %v5860_v22 }
 0x134   : > { %5337 = vmatprep.subr.bf16.mxu1 %v5861_v63 }
 0x135   : > { %5072 = vmatmul.mubr.bf16.gmra.mrb[12].mxu1 %v6658_v60 }
 0x136   : > { %5280 = vmatmul.mubr.bf16.gmra.mrb[28].mxu0 %v4499_v2  ;;  %5075 = vmatprep.mubr.bf16.mxu1 %v6669_v1 }
 0x137   : > { %5299 = vmatprep.mubr.bf16.mxu0 %v6407_v58  ;;  %5345 = vmatpush3.bf16.msra.mxu1 %v5861_v63  ;;  %v3311_v58 = vrot.slane %v6870_v30, 5 }
 0x138   : > { %5338 = vmatprep.subr.bf16.mxu1 %v5862_v5 }
 0x13b   : > { %5346 = vmatpush3.bf16.msra.mxu1 %v5862_v5 }
 0x13d   : > { %5076 = vmatmul.mubr.bf16.gmra.mrb[16].mxu1 %v6680_v13  ;;  %v4065_v13 = vld [vmem:[%s7030_s18] sm:$0xf] }
 0x13e   : > { %5300 = vmatmul.mubr.bf16.vlgmr.msra.gmra.mrb[0].mxu0 %v6447_v14  ;;  %5079 = vmatprep.mubr.bf16.mxu1 %v6684_v8  ;;  %v4508_v14 = vrot.slane %v6867_v32, 9  ;;  %v4066_v8 = vld [vmem:[%s7030_s18 + $0x4] sm:$0xf]  ;;  %4097 = vst [vmem:[%s7028_s29 + $0x4] sm:$0xf] %v4065_v13  ;;  %v7144_v13 = vld [vmem:[%s7135_s21 + $0x8] sm:$0xff]  }
 0x13f   : > { %5303 = vmatprep.mubr.bf16.mxu0 %v6484_v12  ;;  %v3313_v12 = vrot.slane %v3311_v58, 4  ;;  %4098 = vst [vmem:[%s7028_s29 + $0xc] sm:$0xf] %v4066_v8  ;;  %v4076_v32 = vld [vmem:[%s7030_s18 + $0x2c] sm:$0xf] }
 0x140   : > { %4108 = vst [vmem:[%s7028_s29 + $0x5c] sm:$0xf] %v4076_v32 }
 0x145   : > { %5080 = vmatmul.mubr.bf16.gmra.mrb[20].mxu1 %v6688_v21  ;;  %v4067_v21 = vld [vmem:[%s7030_s18 + $0x8] sm:$0xf] }
 0x146   : > { %5304 = vmatmul.mubr.bf16.gmra.mrb[4].mxu0 %v6517_v51  ;;  %5083 = vmatprep.mubr.bf16.mxu1 %v6692_v41  ;;  %v3314_v51 = vrot.slane %v6938_v43, 5  ;;  %v4068_v41 = vld [vmem:[%s7030_s18 + $0xc] sm:$0xf]  ;;  %4099 = vst [vmem:[%s7028_s29 + $0x14] sm:$0xf] %v4067_v21 }
 0x147   : > { %5307 = vmatprep.mubr.bf16.mxu0 %v6549_v3  ;;  %v3312_v3 = vsel %vm6313_vm5, %v4508_v14, %v3311_v58  ;;  %4100 = vst [vmem:[%s7028_s29 + $0x1c] sm:$0xf] %v4068_v41 }
 0x14d   : > { %5084 = vmatmul.mubr.bf16.gmra.mrb[24].mxu1 %v6696_v48  ;;  %v4069_v48 = vld [vmem:[%s7030_s18 + $0x10] sm:$0xf] }
 0x14e   : > { %5308 = vmatmul.mubr.bf16.gmra.mrb[8].mxu0 %v6583_v53  ;;  %5087 = vmatprep.mubr.bf16.mxu1 %v6703_v6  ;;  %v3315_v53 = vsel %vm6313_vm5, %v3313_v12, %v3314_v51  ;;  %4101 = vst [vmem:[%s7028_s29 + $0x24] sm:$0xf] %v4069_v48  ;;  %v7148_v48 = vld [vmem:[%s7135_s21] sm:$0xff]  }
 0x14f   : > { %5311 = vmatprep.mubr.bf16.mxu0 %v6615_v26  ;;  %v4525_v26 = vcombine.low %v3312_v3, %v3315_v53  ;;  %v4606_v57 = vunpack.c.l.bf16 %v7148_v48  ;;  %v4607_v24 = vunpack.c.h.bf16 %v7148_v48 }
 0x155   : > { %5088 = vmatmul.mubr.bf16.gmra.mrb[28].mxu1 %v6857_v16  ;;  %v4075_v16 = vld [vmem:[%s7030_s18 + $0x28] sm:$0xf] }
 0x156   : > { %5312 = vmatmul.mubr.bf16.gmra.mrb[12].mxu0 %v6620_v50  ;;  %5123 = vmatprep.mubr.bf16.mxu1 %v7489_v17  ;;  %4107 = vst [vmem:[%s7028_s29 + $0x54] sm:$0xf] %v4075_v16  ;;  %v4080_v17 = vld [vmem:[%s7030_s18 + $0x3c] sm:$0xf] }
 0x157   : > { %5315 = vmatprep.mubr.bf16.mxu0 %v6640_v45  ;;  %4112 = vst [vmem:[%s7028_s29 + $0x7c] sm:$0xf] %v4080_v17  ;;  %v4611_v17 = vunpack.c.h.bf16 %v7144_v13 }
 0x15d   : > { %5124 = vmatmul.mubr.bf16.vlgmr.msra.gmra.mrb[16].mxu1 %v7490_v54  ;;  %v4081_v54 = vld [vmem:[%s7030_s18 + $0x40] sm:$0xf] }
 0x15e   : > { %5316 = vmatmul.mubr.bf16.gmra.mrb[16].mxu0 %v6645_v61  ;;  %5127 = vmatprep.mubr.bf16.mxu1 %v7491_v40  ;;  %v4082_v40 = vld [vmem:[%s7030_s18 + $0x44] sm:$0xf]  ;;  %4113 = vst [vmem:[%s7028_s29 + $0x84] sm:$0xf] %v4081_v54 }
 0x15f   : > { %5319 = vmatprep.mubr.bf16.mxu0 %v6698_v36  ;;  %v4070_v36 = vld [vmem:[%s7030_s18 + $0x14] sm:$0xf]  ;;  %4114 = vst [vmem:[%s7028_s29 + $0x8c] sm:$0xf] %v4082_v40  ;;  %v7173_v40 = vld [vmem:[%s7135_s21 + $0x28] sm:$0xff]  }
 0x160   : > { %4102 = vst [vmem:[%s7028_s29 + $0x2c] sm:$0xf] %v4070_v36  ;;  %v4626_v19 = vunpack.c.l.bf16 %v7173_v40 }
 0x165   : > { %5128 = vmatmul.mubr.bf16.gmra.mrb[20].mxu1 %v7492_v42  ;;  %v4087_v42 = vld [vmem:[%s7030_s18 + $0x58] sm:$0xf] }
 0x166   : > { %5320 = vmatmul.mubr.bf16.gmra.mrb[20].mxu0 %v6705_v35  ;;  %5131 = vmatprep.mubr.bf16.mxu1 %v7493_v52  ;;  %v4071_v35 = vld [vmem:[%s7030_s18 + $0x18] sm:$0xf]  ;;  %4119 = vst [vmem:[%s7028_s29 + $0xb4] sm:$0xf] %v4087_v42  ;;  %v4093_v52 = vld [vmem:[%s7030_s18 + $0x70] sm:$0xf] }
 0x167   : > { %5323 = vmatprep.mubr.bf16.mxu0 %v6739_v18  ;;  %v4072_v18 = vld [vmem:[%s7030_s18 + $0x1c] sm:$0xf]  ;;  %4103 = vst [vmem:[%s7028_s29 + $0x34] sm:$0xf] %v4071_v35  ;;  %4125 = vst [vmem:[%s7028_s29 + $0xe4] sm:$0xf] %v4093_v52  ;;  %v4615_v52 = vunpack.c.h.bf16 %v7163_v31 }
 0x168   : > { %4104 = vst [vmem:[%s7028_s29 + $0x3c] sm:$0xf] %v4072_v18 }
 0x16d   : > { %5132 = vmatmul.mubr.bf16.gmra.mrb[24].mxu1 %v6579_v23 }
 0x16e   : > { %5324 = vmatmul.mubr.bf16.gmra.mrb[24].mxu0 %v6749_v10  ;;  %5135 = vmatprep.mubr.bf16.mxu1 %v6613_v29 }
 0x16f   : > { %5327 = vmatprep.mubr.bf16.mxu0 %v6770_v49  ;;  %v4074_v49 = vld [vmem:[%s7030_s18 + $0x24] sm:$0xf] }
 0x170   : > { %4106 = vst [vmem:[%s7028_s29 + $0x4c] sm:$0xf] %v4074_v49  ;;  %v7155_v49 = vld [vmem:[%s7135_s21 + $0x18] sm:$0xff]  }
 0x171   : > { %v4618_v4 = vunpack.c.l.bf16 %v7155_v49  ;;  %v4619_v59 = vunpack.c.h.bf16 %v7155_v49 }
 0x175   : > { %5136 = vmatmul.mubr.bf16.gmra.mrb[28].mxu1 %v6776_v25 }
 0x176   : > { %5328 = vmatmul.mubr.bf16.gmra.mrb[28].mxu0 %v4525_v26 }
 0x1f0   : > { %v7007_v50 = vpop.f32.mrb[0].mxu1 }
 0x1f1   : > { %v7009_v23 = vpop.f32.mrb[1].mxu1 }
 0x1f2   : > { %v7011_v45 = vpop.f32.mrb[2].mxu1 }
 0x1f3   : > { %v7013_v29 = vpop.f32.mrb[3].mxu1 }
 0x1f8   : > { %v7016_v61 = vpop.f32.mrb[4].mxu1 }
 0x1f9   : > { %v7018_v60 = vpop.f32.mrb[5].mxu1 }
 0x1fa   : > { %v7020_v55 = vpop.f32.mrb[6].mxu1 }
 0x1fb   : > { %v7022_v1 = vpop.f32.mrb[7].mxu1 }
 0x200   : > { %v7041_v6 = vpop.f32.mrb[8].mxu1 }
 0x201   : > { %v7048_v10 = vpop.f32.mrb[9].mxu1 }
 0x202   : > { %v7054_v25 = vpop.f32.mrb[10].mxu1 }
 0x203   : > { %v7060_v30 = vpop.f32.mrb[11].mxu1 }
 0x208   : > { %v7089_v56 = vpop.f32.mrb[12].mxu1 }
 0x209   : > { %v7096_v43 = vpop.f32.mrb[13].mxu1 }
 0x20a   : > { %v7102_v62 = vpop.f32.mrb[14].mxu1 }
 0x20b   : > { %v7108_v0 = vpop.f32.mrb[15].mxu1 }
 0x211   : > { %v5301_v15 = vpop.f32.mrb[0].mxu0 }
 0x212   : > { %v5347_v47 = vadd.f32 %v5301_v15, %v7007_v50  ;;  %v3419_v44 = vpop.f32.mrb[1].mxu0 }
 0x213   : > { %v5348_v34 = vadd.f32 %v3419_v44, %v7009_v23  ;;  %v5302_v22 = vpop.f32.mrb[2].mxu0 }
 0x214   : > { %v7121_v2 = vadd.f32 %v5347_v47, %v7115_v20  ;;  %v5349_v63 = vadd.f32 %v5302_v22, %v7011_v45  ;;  %v3422_v5 = vpop.f32.mrb[3].mxu0 }
 0x215   : > { %v7125_v58 = vadd.f32 %v5348_v34, %v7115_v20  ;;  %v5350_v14 = vadd.f32 %v3422_v5, %v7013_v29  ;;  %v4627_v5 = vunpack.c.h.bf16 %v7173_v40 }
 0x216   : > { %v3619_v12 = vsub.f32 0.0, %v7121_v2  ;;  %v7130_v51 = vadd.f32 %v5349_v63, %v7115_v20 }
 0x217   : > { %v3617_v3 = vsub.f32 0.0, %v7125_v58  ;;  %v7139_v53 = vadd.f32 %v5350_v14, %v7115_v20  ;;  %v7195_v14 = vld [vmem:[%s7135_s21 + $0x38] sm:$0xff]  }
 0x218   : > { %v3653_v26 = vmul.f32 1.442695, %v3619_v12  ;;  %v3620_v50 = vsub.f32 0.0, %v7130_v51 }
 0x219   : > { %v3649_v23 = vmul.f32 1.442695, %v3617_v3  ;;  %v3618_v45 = vsub.f32 0.0, %v7139_v53  ;;  %v5305_v29 = vpop.f32.mrb[4].mxu0 }
 0x21a   : > { %5718 = vpow2.f32 %v3653_v26  ;;  %v3655_v8 = vmul.f32 1.442695, %v3620_v50  ;;  %v5351_v21 = vadd.f32 %v5305_v29, %v7016_v61  ;;  %v3435_v41 = vpop.f32.mrb[5].mxu0  ;;  %v4610_v61 = vunpack.c.l.bf16 %v7144_v13 }
 0x21b   : > { %5720 = vpow2.f32 %v3649_v23  ;;  %v3651_v36 = vmul.f32 1.442695, %v3618_v45  ;;  %v5352_v35 = vadd.f32 %v3435_v41, %v7018_v60  ;;  %v5306_v18 = vpop.f32.mrb[6].mxu0 }
 0x21c   : > { %5722 = vpow2.f32 %v3655_v8  ;;  %v7152_v9 = vadd.f32 %v5351_v21, %v7115_v20  ;;  %v5353_v16 = vadd.f32 %v5306_v18, %v7020_v55  ;;  %v3438_v32 = vpop.f32.mrb[7].mxu0 }
 0x21d   : > { %5724 = vpow2.f32 %v3651_v36  ;;  %v7160_v27 = vadd.f32 %v5352_v35, %v7115_v20  ;;  %v5354_v60 = vadd.f32 %v3438_v32, %v7022_v1  ;;  %v7182_v1 = vld [vmem:[%s7135_s21 + $0x20] sm:$0xff]   ;;  %v7212_v35 = vld [vmem:[%s7135_s21 + $0x30] sm:$0xff]  }
 0x21e   : > { %v3623_v54 = vsub.f32 0.0, %v7152_v9  ;;  %v7170_v55 = vadd.f32 %v5353_v16, %v7115_v20  ;;  %v4622_v44 = vunpack.c.l.bf16 %v7182_v1  ;;  %v4623_v50 = vunpack.c.h.bf16 %v7182_v1 }
 0x21f   : > { %v3621_v38 = vsub.f32 0.0, %v7160_v27  ;;  %v7179_v11 = vadd.f32 %v5354_v60, %v7115_v20 }
 0x220   : > { %v3661_v42 = vmul.f32 1.442695, %v3623_v54  ;;  %v3624_v7 = vsub.f32 0.0, %v7170_v55 }
 0x221   : > { %v3657_v46 = vmul.f32 1.442695, %v3621_v38  ;;  %v3622_v39 = vsub.f32 0.0, %v7179_v11  ;;  %v5309_v33 = vpop.f32.mrb[8].mxu0 }
 0x222   : > { %5726 = vpow2.f32 %v3661_v42  ;;  %v3663_v37 = vmul.f32 1.442695, %v3624_v7  ;;  %v5355_v15 = vadd.f32 %v5309_v33, %v7041_v6  ;;  %v3451_v47 = vpop.f32.mrb[9].mxu0  ;;  %v7222_v33 = vld [vmem:[%s7135_s21 + $0x48] sm:$0xff]  }
 0x223   : > { %5728 = vpow2.f32 %v3657_v46  ;;  %v3659_v34 = vmul.f32 1.442695, %v3622_v39  ;;  %v5356_v22 = vadd.f32 %v3451_v47, %v7048_v10  ;;  %v5310_v63 = vpop.f32.mrb[10].mxu0  ;;  %v4630_v39 = vunpack.c.l.bf16 %v7212_v35 }
 0x224   : > { %v5719_v12 = vpop.eup %5718  ;;  %5730 = vpow2.f32 %v3663_v37  ;;  %v7198_v3 = vadd.f32 %v5355_v15, %v7115_v20  ;;  %v5357_v6 = vadd.f32 %v5310_v63, %v7054_v25  ;;  %v3454_v26 = vpop.f32.mrb[11].mxu0  ;;  %v4634_v25 = vunpack.c.l.bf16 %v7195_v14 }
 0x225   : > { %v5721_v23 = vpop.eup %5720  ;;  %v3715_v45 = vadd.f32 1.0, %v5719_v12  ;;  %5732 = vpow2.f32 %v3659_v34  ;;  %v7203_v10 = vadd.f32 %v5356_v22, %v7115_v20  ;;  %v5358_v29 = vadd.f32 %v3454_v26, %v7060_v30 }
 0x226   : > { %v5723_v8 = vpop.eup %5722  ;;  %v3713_v21 = vadd.f32 1.0, %v5721_v23  ;;  %v3627_v41 = vsub.f32 0.0, %v7198_v3  ;;  %v7208_v36 = vadd.f32 %v5357_v6, %v7115_v20 }
 0x227   : > { %v5725_v18 = vpop.eup %5724  ;;  %5734 = vrcp.f32 %v3715_v45  ;;  %v3716_v16 = vadd.f32 1.0, %v5723_v8  ;;  %v3625_v32 = vsub.f32 0.0, %v7203_v10  ;;  %v7216_v60 = vadd.f32 %v5358_v29, %v7115_v20 }
 0x228   : > { %5736 = vrcp.f32 %v3713_v21  ;;  %v3714_v30 = vadd.f32 1.0, %v5725_v18  ;;  %v3669_v54 = vmul.f32 1.442695, %v3627_v41  ;;  %v3628_v38 = vsub.f32 0.0, %v7208_v36 }
 0x229   : > { %5738 = vrcp.f32 %v3716_v16  ;;  %v3665_v42 = vmul.f32 1.442695, %v3625_v32  ;;  %v3626_v7 = vsub.f32 0.0, %v7216_v60  ;;  %v5313_v46 = vpop.f32.mrb[12].mxu0 }
 0x22a   : > { %5740 = vrcp.f32 %v3714_v30  ;;  %v3671_v37 = vmul.f32 1.442695, %v3628_v38  ;;  %v5359_v15 = vadd.f32 %v5313_v46, %v7089_v56  ;;  %v3467_v47 = vpop.f32.mrb[13].mxu0 }
 0x22b   : > { %5742 = vpow2.f32 %v3669_v54  ;;  %v3667_v22 = vmul.f32 1.442695, %v3626_v7  ;;  %v5360_v63 = vadd.f32 %v3467_v47, %v7096_v43  ;;  %v5314_v12 = vpop.f32.mrb[14].mxu0 }
 0x22c   : > { %v5727_v26 = vpop.eup %5726  ;;  %5744 = vpow2.f32 %v3665_v42  ;;  %v7229_v23 = vadd.f32 %v5359_v15, %v7115_v20  ;;  %v5361_v45 = vadd.f32 %v5314_v12, %v7102_v62  ;;  %v3470_v29 = vpop.f32.mrb[15].mxu0  ;;  %v7242_v62 = vld [vmem:[%s7135_s21 + $0x40] sm:$0xff]  }
 0x22d   : > { %v5729_v8 = vpop.eup %5728  ;;  %v3719_v21 = vadd.f32 1.0, %v5727_v26  ;;  %5746 = vpow2.f32 %v3671_v37  ;;  %v7234_v41 = vadd.f32 %v5360_v63, %v7115_v20  ;;  %v5362_v43 = vadd.f32 %v3470_v29, %v7108_v0 }
 0x22e   : > { %v5731_v18 = vpop.eup %5730  ;;  %v3717_v16 = vadd.f32 1.0, %v5729_v8  ;;  %5748 = vpow2.f32 %v3667_v22  ;;  %v3631_v32 = vsub.f32 0.0, %v7229_v23  ;;  %v7239_v30 = vadd.f32 %v5361_v45, %v7115_v20 }
 0x22f   : > { %v5733_v54 = vpop.eup %5732  ;;  %5750 = vrcp.f32 %v3719_v21  ;;  %v3720_v38 = vadd.f32 1.0, %v5731_v18  ;;  %v3629_v42 = vsub.f32 0.0, %v7234_v41  ;;  %v7246_v7 = vadd.f32 %v5362_v43, %v7115_v20 }
 0x230   : > { %5752 = vrcp.f32 %v3717_v16  ;;  %v3718_v0 = vadd.f32 1.0, %v5733_v54  ;;  %v3677_v46 = vmul.f32 1.442695, %v3631_v32  ;;  %v3632_v37 = vsub.f32 0.0, %v7239_v30  ;;  %v5125_v63 = vpop.f32.mrb[16].mxu1 }
 0x231   : > { %v5735_v15 = vpop.eup %5734  ;;  %5754 = vrcp.f32 %v3720_v38  ;;  %v3673_v47 = vmul.f32 1.442695, %v3629_v42  ;;  %v3630_v22 = vsub.f32 0.0, %v7246_v7  ;;  %v5317_v12 = vpop.f32.mrb[16].mxu0 }
 0x232   : > { %v5737_v45 = vpop.eup %5736  ;;  %v3779_v29 = vmul.f32 %v5735_v15, %v7121_v2  ;;  %5756 = vrcp.f32 %v3718_v0  ;;  %v3679_v8 = vmul.f32 1.442695, %v3632_v37  ;;  %v5363_v21 = vadd.f32 %v5317_v12, %v5125_v63  ;;  %v2393_v43 = vpop.f32.mrb[17].mxu1 }
 0x233   : > { %v3483_v18 = vpop.f32.mrb[17].mxu0  ;;  %v5739_v16 = vpop.eup %5738  ;;  %v3777_v32 = vmul.f32 %v5737_v45, %v7125_v58  ;;  %5758 = vpow2.f32 %v3677_v46  ;;  %v3675_v54 = vmul.f32 1.442695, %v3630_v22 }
 0x234   : > { %v5364_v38 = vadd.f32 %v3483_v18, %v2393_v43  ;;  %v5126_v42 = vpop.f32.mrb[18].mxu1  ;;  %v5318_v56 = vpop.f32.mrb[18].mxu0  ;;  %v3875_v26 = vadd.f32 %v4610_v61, %v3779_v29  ;;  %v3780_v34 = vmul.f32 %v5739_v16, %v7130_v51  ;;  %5760 = vpow2.f32 %v3673_v47 }
 0x235   : > { %v5741_v6 = vpop.eup %5740  ;;  %v7257_v2 = vadd.f32 %v5363_v21, %v7115_v20  ;;  %v2396_v0 = vpop.f32.mrb[19].mxu1  ;;  %v3873_v58 = vadd.f32 %v4606_v57, %v3777_v32  ;;  %5762 = vpow2.f32 %v3679_v8 }
 0x236   : > { %v3486_v37 = vpop.f32.mrb[19].mxu0  ;;  %v5743_v15 = vpop.eup %5742  ;;  %v3778_v46 = vmul.f32 %v5741_v6, %v7139_v53  ;;  %v7263_v22 = vadd.f32 %v5364_v38, %v7115_v20  ;;  %v4574_v63 = vpack.c.bf16 %v3875_v26, %v3875_v26  ;;  %v3876_v51 = vadd.f32 %v4611_v17, %v3780_v34 }
 0x237   : > { %v5745_v61 = vpop.eup %5744  ;;  %v3723_v47 = vadd.f32 1.0, %v5743_v15  ;;  %5764 = vpow2.f32 %v3675_v54  ;;  %v4572_v45 = vpack.c.bf16 %v3873_v58, %v3873_v58  ;;  %v3635_v53 = vsub.f32 0.0, %v7257_v2 }
 0x238   : > { %v5747_v12 = vpop.eup %5746  ;;  %v3874_v29 = vadd.f32 %v4607_v24, %v3778_v46  ;;  %v3721_v57 = vadd.f32 1.0, %v5745_v61  ;;  %4035 = vst [vmem:[%s7028_s29 + $0x10] sm:$0xf] %v4574_v63  ;;  %v4575_v8 = vpack.c.bf16 %v3876_v51, %v3876_v51  ;;  %v3633_v13 = vsub.f32 0.0, %v7263_v22  ;;  %v5129_v48 = vpop.f32.mrb[20].mxu1 }
 0x239   : > { %v5749_v6 = vpop.eup %5748  ;;  %5766 = vrcp.f32 %v3723_v47  ;;  %v3724_v26 = vadd.f32 1.0, %v5747_v12  ;;  %4033 = vst [vmem:[%s7028_s29] sm:$0xf] %v4572_v45  ;;  %v3685_v43 = vmul.f32 1.442695, %v3635_v53  ;;  %v5321_v24 = vpop.f32.mrb[20].mxu0  ;;  %v5365_v54 = vadd.f32 %v5318_v56, %v5126_v42 }
 0x23a   : > { %v5751_v21 = vpop.eup %5750  ;;  %v4573_v17 = vpack.c.bf16 %v3874_v29, %v3874_v29  ;;  %5768 = vrcp.f32 %v3721_v57  ;;  %v3722_v34 = vadd.f32 1.0, %v5749_v6  ;;  %4036 = vst [vmem:[%s7028_s29 + $0x18] sm:$0xf] %v4575_v8  ;;  %v3681_v32 = vmul.f32 1.442695, %v3633_v13  ;;  %v2409_v38 = vpop.f32.mrb[21].mxu1 }
 0x23b   : > { %v5753_v18 = vpop.eup %5752  ;;  %v3783_v16 = vmul.f32 %v5751_v21, %v7152_v9  ;;  %5770 = vrcp.f32 %v3724_v26  ;;  %v3499_v15 = vpop.f32.mrb[21].mxu0  ;;  %v5366_v61 = vadd.f32 %v3486_v37, %v2396_v0  ;;  %v5367_v63 = vadd.f32 %v5321_v24, %v5129_v48 }
 0x23c   : > { %v5755_v58 = vpop.eup %5754  ;;  %4034 = vst [vmem:[%s7028_s29 + $0x8] sm:$0xf] %v4573_v17  ;;  %v3781_v46 = vmul.f32 %v5753_v18, %v7160_v27  ;;  %5772 = vrcp.f32 %v3722_v34  ;;  %v5130_v51 = vpop.f32.mrb[22].mxu1  ;;  %v7281_v56 = vadd.f32 %v5365_v54, %v7115_v20 }
 0x23d   : > { %v5322_v47 = vpop.f32.mrb[22].mxu0  ;;  %v5757_v12 = vpop.eup %5756  ;;  %v3879_v45 = vadd.f32 %v4618_v4, %v3783_v16  ;;  %v3784_v9 = vmul.f32 %v5755_v58, %v7170_v55  ;;  %5774 = vpow2.f32 %v3685_v43  ;;  %v7287_v37 = vadd.f32 %v5366_v61, %v7115_v20 }
 0x23e   : > { %v2412_v42 = vpop.f32.mrb[23].mxu1  ;;  %v3502_v29 = vpop.f32.mrb[23].mxu0  ;;  %v3877_v27 = vadd.f32 %v4614_v28, %v3781_v46  ;;  %v3782_v0 = vmul.f32 %v5757_v12, %v7179_v11  ;;  %5776 = vpow2.f32 %v3681_v32  ;;  %v3636_v8 = vsub.f32 0.0, %v7281_v56 }
 0x23f   : > { %v5759_v57 = vpop.eup %5758  ;;  %v4578_v55 = vpack.c.bf16 %v3879_v45, %v3879_v45  ;;  %v3880_v53 = vadd.f32 %v4619_v59, %v3784_v9  ;;  %v3634_v11 = vsub.f32 0.0, %v7287_v37  ;;  %v5368_v32 = vadd.f32 %v3499_v15, %v2409_v38 }
 0x240   : > { %v5761_v4 = vpop.eup %5760  ;;  %v3727_v6 = vadd.f32 1.0, %v5759_v57  ;;  %v4576_v13 = vpack.c.bf16 %v3877_v27, %v3877_v27  ;;  %v3878_v28 = vadd.f32 %v4615_v52, %v3782_v0  ;;  %v3687_v48 = vmul.f32 1.442695, %v3636_v8  ;;  %v5133_v18 = vpop.f32.mrb[24].mxu1 }
 0x241   : > { %v5763_v26 = vpop.eup %5762  ;;  %v3725_v21 = vadd.f32 1.0, %v5761_v4  ;;  %4039 = vst [vmem:[%s7028_s29 + $0x30] sm:$0xf] %v4578_v55  ;;  %v4579_v34 = vpack.c.bf16 %v3880_v53, %v3880_v53  ;;  %v3683_v24 = vmul.f32 1.442695, %v3634_v11  ;;  %v5325_v16 = vpop.f32.mrb[24].mxu0  ;;  %v7299_v52 = vadd.f32 %v5367_v63, %v7115_v20 }
 0x242   : > { %v5765_v17 = vpop.eup %5764  ;;  %5778 = vrcp.f32 %v3727_v6  ;;  %v3728_v43 = vadd.f32 1.0, %v5763_v26  ;;  %4037 = vst [vmem:[%s7028_s29 + $0x20] sm:$0xf] %v4576_v13  ;;  %v4577_v49 = vpack.c.bf16 %v3878_v28, %v3878_v28  ;;  %v5369_v54 = vadd.f32 %v5322_v47, %v5130_v51  ;;  %v2425_v58 = vpop.f32.mrb[25].mxu1 }
 0x243   : > { %5780 = vrcp.f32 %v3725_v21  ;;  %v3726_v59 = vadd.f32 1.0, %v5765_v17  ;;  %v5767_v31 = vpop.eup %5766  ;;  %4040 = vst [vmem:[%s7028_s29 + $0x38] sm:$0xf] %v4579_v34  ;;  %v3515_v46 = vpop.f32.mrb[25].mxu0  ;;  %v5370_v45 = vadd.f32 %v3502_v29, %v2412_v42  ;;  %v5371_v9 = vadd.f32 %v5325_v16, %v5133_v18 }
 0x244   : > { %5782 = vrcp.f32 %v3728_v43  ;;  %v5769_v61 = vpop.eup %5768  ;;  %4038 = vst [vmem:[%s7028_s29 + $0x28] sm:$0xf] %v4577_v49  ;;  %v3787_v12 = vmul.f32 %v5767_v31, %v7198_v3  ;;  %v5134_v57 = vpop.f32.mrb[26].mxu1  ;;  %v3639_v63 = vsub.f32 0.0, %v7299_v52  ;;  %v7306_v38 = vadd.f32 %v5368_v32, %v7115_v20 }
 0x245   : > { %5784 = vrcp.f32 %v3726_v59  ;;  %v5326_v27 = vpop.f32.mrb[26].mxu0  ;;  %v5771_v0 = vpop.eup %5770  ;;  %v3785_v4 = vmul.f32 %v5769_v61, %v7203_v10  ;;  %v7316_v10 = vadd.f32 %v5369_v54, %v7115_v20  ;;  %v7330_v49 = vadd.f32 %v5370_v45, %v7115_v20 }
 0x246   : > { %5786 = vpow2.f32 %v3687_v48  ;;  %v7308_v15 = vpop.f32.mrb[27].mxu1  ;;  %v7310_v51 = vpop.f32.mrb[27].mxu0  ;;  %v3883_v3 = vadd.f32 %v4626_v19, %v3787_v12  ;;  %v3788_v42 = vmul.f32 %v5771_v0, %v7208_v36  ;;  %v3693_v6 = vmul.f32 1.442695, %v3639_v63 }
 0x247   : > { %v5773_v47 = vpop.eup %5772  ;;  %5788 = vpow2.f32 %v3683_v24  ;;  %v3881_v55 = vadd.f32 %v4622_v44, %v3785_v4  ;;  %v3637_v8 = vsub.f32 0.0, %v7306_v38  ;;  %v3640_v28 = vsub.f32 0.0, %v7316_v10 }
 0x248   : > { %v5775_v29 = vpop.eup %5774  ;;  %v3786_v53 = vmul.f32 %v5773_v47, %v7216_v60  ;;  %v4582_v13 = vpack.c.bf16 %v3883_v3, %v3883_v3  ;;  %v3884_v19 = vadd.f32 %v4627_v5, %v3788_v42  ;;  %5790 = vpow2.f32 %v3693_v6  ;;  %v5137_v43 = vpop.f32.mrb[28].mxu1 }
 0x249   : > { %v5777_v26 = vpop.eup %5776  ;;  %v3731_v36 = vadd.f32 1.0, %v5775_v29  ;;  %v4580_v21 = vpack.c.bf16 %v3881_v55, %v3881_v55  ;;  %v3689_v60 = vmul.f32 1.442695, %v3637_v8  ;;  %v3695_v34 = vmul.f32 1.442695, %v3640_v28  ;;  %v5329_v48 = vpop.f32.mrb[28].mxu0 }
 0x24a   : > { %v3882_v11 = vadd.f32 %v4623_v50, %v3786_v53  ;;  %v3729_v17 = vadd.f32 1.0, %v5777_v26  ;;  %4043 = vst [vmem:[%s7028_s29 + $0x50] sm:$0xf] %v4582_v13  ;;  %v4583_v44 = vpack.c.bf16 %v3884_v19, %v3884_v19  ;;  %v7333_v1 = vadd.f32 %v5371_v9, %v7115_v20  ;;  %v2441_v50 = vpop.f32.mrb[29].mxu1  ;;  %v3531_v59 = vpop.f32.mrb[29].mxu0 }
 0x24b   : > { %5792 = vrcp.f32 %v3731_v36  ;;  %4041 = vst [vmem:[%s7028_s29 + $0x40] sm:$0xf] %v4580_v21  ;;  %v5372_v16 = vadd.f32 %v3515_v46, %v2425_v58  ;;  %v5373_v31 = vadd.f32 %v5326_v27, %v5134_v57  ;;  %v5138_v32 = vpop.f32.mrb[30].mxu1  ;;  %v5330_v54 = vpop.f32.mrb[30].mxu0  ;;  %v3638_v45 = vsub.f32 0.0, %v7330_v49 }
 0x24c   : > { %v5779_v40 = vpop.eup %5778  ;;  %v4581_v5 = vpack.c.bf16 %v3882_v11, %v3882_v11  ;;  %5794 = vrcp.f32 %v3729_v17  ;;  %4044 = vst [vmem:[%s7028_s29 + $0x58] sm:$0xf] %v4583_v44  ;;  %v3643_v9 = vsub.f32 0.0, %v7333_v1  ;;  %v7341_v0 = vpop.f32.mrb[31].mxu1  ;;  %v7495_v26 = vunpack.c.h.bf16 %v7212_v35 }
 0x24d   : > { %v5781_v24 = vpop.eup %5780  ;;  %v3791_v18 = vmul.f32 %v5779_v40, %v7229_v23  ;;  %5796 = vpow2.f32 %v3689_v60  ;;  %v7343_v4 = vpop.f32.mrb[31].mxu0  ;;  %v7349_v46 = vadd.f32 %v5372_v16, %v7115_v20  ;;  %v3691_v3 = vmul.f32 1.442695, %v3638_v45 }
 0x24e   : > { %v5783_v61 = vpop.eup %5782  ;;  %4042 = vst [vmem:[%s7028_s29 + $0x48] sm:$0xf] %v4581_v5  ;;  %v3789_v12 = vmul.f32 %v5781_v24, %v7234_v41  ;;  %5798 = vpow2.f32 %v3695_v34  ;;  %v7352_v41 = vadd.f32 %v5373_v31, %v7115_v20  ;;  %v3701_v42 = vmul.f32 1.442695, %v3643_v9 }
 0x24f   : > { %v5785_v63 = vpop.eup %5784  ;;  %v3887_v23 = vadd.f32 %v4634_v25, %v3791_v18  ;;  %v3792_v58 = vmul.f32 %v5783_v61, %v7239_v30  ;;  %v7494_v30 = vunpack.c.h.bf16 %v7195_v14  ;;  %v3641_v6 = vsub.f32 0.0, %v7349_v46 }
 0x250   : > { %v5787_v57 = vpop.eup %5786  ;;  %v3885_v27 = vadd.f32 %v4630_v39, %v3789_v12  ;;  %v3790_v47 = vmul.f32 %v5785_v63, %v7246_v7  ;;  %5800 = vpow2.f32 %v3691_v3  ;;  %v3644_v36 = vsub.f32 0.0, %v7352_v41 }
 0x251   : > { %v5789_v29 = vpop.eup %5788  ;;  %v4586_v25 = vpack.c.bf16 %v3887_v23, %v3887_v23  ;;  %v3888_v55 = vadd.f32 %v7494_v30, %v3792_v58  ;;  %v3732_v53 = vadd.f32 1.0, %v5787_v57  ;;  %v3697_v7 = vmul.f32 1.442695, %v3641_v6 }
 0x252   : > { %v4584_v8 = vpack.c.bf16 %v3885_v27, %v3885_v27  ;;  %v3886_v13 = vadd.f32 %v7495_v26, %v3790_v47  ;;  %v3730_v19 = vadd.f32 1.0, %v5789_v29  ;;  %v5791_v28 = vpop.eup %5790  ;;  %v5374_v21 = vadd.f32 %v7310_v51, %v7308_v15  ;;  %v4678_v47 = vld [vmem:[%s7135_s21 + $0x58] sm:$0xff]  }
 0x253   : > { %4047 = vst [vmem:[%s7028_s29 + $0x70] sm:$0xf] %v4586_v25  ;;  %v4587_v39 = vpack.c.bf16 %v3888_v55, %v3888_v55  ;;  %5802 = vrcp.f32 %v3732_v53  ;;  %v5375_v11 = vadd.f32 %v5329_v48, %v5137_v43  ;;  %v3735_v17 = vadd.f32 1.0, %v5791_v28 }
 0x254   : > { %4045 = vst [vmem:[%s7028_s29 + $0x60] sm:$0xf] %v4584_v8  ;;  %v4585_v14 = vpack.c.bf16 %v3886_v13, %v3886_v13  ;;  %5804 = vrcp.f32 %v3730_v19  ;;  %v3703_v44 = vmul.f32 1.442695, %v3644_v36  ;;  %v5376_v60 = vadd.f32 %v3531_v59, %v2441_v50  ;;  %v4677_v19 = vld [vmem:[%s7135_s21 + $0x50] sm:$0xff]  }
 0x255   : > { %v5793_v35 = vpop.eup %5792  ;;  %4048 = vst [vmem:[%s7028_s29 + $0x78] sm:$0xf] %v4587_v39  ;;  %5806 = vpow2.f32 %v3701_v42  ;;  %v7371_v5 = vadd.f32 %v5374_v21, %v7115_v20  ;;  %v7374_v24 = vadd.f32 %v5375_v11, %v7115_v20  ;;  %v5377_v43 = vadd.f32 %v5330_v54, %v5138_v32 }
 0x256   : > { %v5795_v34 = vpop.eup %5794  ;;  %4046 = vst [vmem:[%s7028_s29 + $0x68] sm:$0xf] %v4585_v14  ;;  %v3795_v40 = vmul.f32 %v5793_v35, %v7257_v2  ;;  %5808 = vpow2.f32 %v3697_v7  ;;  %v7378_v51 = vadd.f32 %v5376_v60, %v7115_v20  ;;  %v7496_v50 = vunpack.c.l.bf16 %v7222_v33 }
 0x257   : > { %v5797_v18 = vpop.eup %5796  ;;  %v3793_v15 = vmul.f32 %v5795_v34, %v7263_v22  ;;  %5810 = vrcp.f32 %v3735_v17  ;;  %v3642_v16 = vsub.f32 0.0, %v7371_v5  ;;  %v7497_v31 = vunpack.c.l.bf16 %v7242_v62 }
 0x258   : > { %v5799_v48 = vpop.eup %5798  ;;  %v3891_v59 = vadd.f32 %v7496_v50, %v3795_v40  ;;  %v3733_v2 = vadd.f32 1.0, %v5797_v18  ;;  %5812 = vpow2.f32 %v3703_v44  ;;  %v3647_v22 = vsub.f32 0.0, %v7374_v24 }
 0x259   : > { %v3889_v61 = vadd.f32 %v7497_v31, %v3793_v15  ;;  %v3736_v12 = vadd.f32 1.0, %v5799_v48  ;;  %v3645_v45 = vsub.f32 0.0, %v7378_v51  ;;  %v3699_v32 = vmul.f32 1.442695, %v3642_v16  ;;  %v4680_v31 = vld [vmem:[%s7135_s21 + $0x68] sm:$0xff]  }
 0x25a   : > { %v4590_v9 = vpack.c.bf16 %v3891_v59, %v3891_v59  ;;  %5814 = vrcp.f32 %v3733_v2  ;;  %v7388_v54 = vadd.f32 %v5377_v43, %v7115_v20  ;;  %v3709_v23 = vmul.f32 1.442695, %v3647_v22  ;;  %v5801_v57 = vpop.eup %5800 }
 0x25b   : > { %v4588_v63 = vpack.c.bf16 %v3889_v61, %v3889_v61  ;;  %5816 = vrcp.f32 %v3736_v12  ;;  %v3705_v58 = vmul.f32 1.442695, %v3645_v45  ;;  %v4643_v27 = vunpack.c.h.bf16 %v7222_v33 }
 0x25c   : > { %4051 = vst [vmem:[%s7028_s29 + $0x90] sm:$0xf] %v4590_v9  ;;  %5818 = vpow2.f32 %v3699_v32  ;;  %v3648_v3 = vsub.f32 0.0, %v7388_v54  ;;  %v5378_v42 = vadd.f32 %v7343_v4, %v7341_v0  ;;  %v4639_v25 = vunpack.c.h.bf16 %v7242_v62 }
 0x25d   : > { %v5803_v29 = vpop.eup %5802  ;;  %4049 = vst [vmem:[%s7028_s29 + $0x80] sm:$0xf] %v4588_v63  ;;  %v3734_v30 = vadd.f32 1.0, %v5801_v57  ;;  %5820 = vpow2.f32 %v3709_v23  ;;  %v4650_v13 = vunpack.c.l.bf16 %v4678_v47  ;;  %v4646_v11 = vunpack.c.l.bf16 %v4677_v19 }
 0x25e   : > { %v5805_v55 = vpop.eup %5804  ;;  %v3796_v53 = vmul.f32 %v5803_v29, %v7281_v56  ;;  %5822 = vpow2.f32 %v3705_v58  ;;  %v3711_v6 = vmul.f32 1.442695, %v3648_v3  ;;  %v7400_v33 = vadd.f32 %v5378_v42, %v7115_v20 }
 0x25f   : > { %v5807_v8 = vpop.eup %5806  ;;  %v3794_v26 = vmul.f32 %v5805_v55, %v7287_v37  ;;  %5824 = vrcp.f32 %v3734_v30  ;;  %v4651_v60 = vunpack.c.h.bf16 %v4678_v47  ;;  %v4647_v16 = vunpack.c.h.bf16 %v4677_v19 }
 0x260   : > { %v5809_v0 = vpop.eup %5808  ;;  %v3892_v4 = vadd.f32 %v4643_v27, %v3796_v53  ;;  %v3739_v39 = vadd.f32 1.0, %v5807_v8  ;;  %5826 = vpow2.f32 %v3711_v6  ;;  %v3646_v62 = vsub.f32 0.0, %v7400_v33 }
 0x261   : > { %v5811_v7 = vpop.eup %5810  ;;  %v3890_v56 = vadd.f32 %v4639_v25, %v3794_v26  ;;  %v3737_v36 = vadd.f32 1.0, %v5809_v0  ;;  %v4658_v63 = vunpack.c.l.bf16 %v4680_v31  ;;  %v4659_v25 = vunpack.c.h.bf16 %v4680_v31  ;;  %v4682_v26 = vld [vmem:[%s7135_s21 + $0x78] sm:$0xff]   ;;  %v4681_v0 = vld [vmem:[%s7135_s21 + $0x70] sm:$0xff]  }
 0x262   : > { %v5813_v28 = vpop.eup %5812  ;;  %v4591_v20 = vpack.c.bf16 %v3892_v4, %v3892_v4  ;;  %v3799_v14 = vmul.f32 %v5811_v7, %v7299_v52  ;;  %5828 = vrcp.f32 %v3739_v39  ;;  %v3707_v37 = vmul.f32 1.442695, %v3646_v62 }
 0x263   : > { %v4589_v21 = vpack.c.bf16 %v3890_v56, %v3890_v56  ;;  %5830 = vrcp.f32 %v3737_v36  ;;  %v3740_v35 = vadd.f32 1.0, %v5813_v28  ;;  %v4662_v36 = vunpack.c.l.bf16 %v4681_v0 }
 0x264   : > { %v5815_v17 = vpop.eup %5814  ;;  %4052 = vst [vmem:[%s7028_s29 + $0x98] sm:$0xf] %v4591_v20  ;;  %v3895_v44 = vadd.f32 %v4650_v13, %v3799_v14  ;;  %5832 = vpow2.f32 %v3707_v37  ;;  %v4667_v37 = vunpack.c.h.bf16 %v4682_v26 }
 0x265   : > { %v5817_v34 = vpop.eup %5816  ;;  %4050 = vst [vmem:[%s7028_s29 + $0x88] sm:$0xf] %v4589_v21  ;;  %v3797_v40 = vmul.f32 %v5815_v17, %v7306_v38  ;;  %5834 = vrcp.f32 %v3740_v35  ;;  %v4679_v38 = vld [vmem:[%s7135_s21 + $0x60] sm:$0xff]  }
 0x266   : > { %v5819_v52 = vpop.eup %5818  ;;  %v4594_v18 = vpack.c.bf16 %v3895_v44, %v3895_v44  ;;  %v3800_v15 = vmul.f32 %v5817_v34, %v7316_v10  ;;  %v4654_v27 = vunpack.c.l.bf16 %v4679_v38  ;;  %v4655_v19 = vunpack.c.h.bf16 %v4679_v38 }
 0x267   : > { %v5821_v43 = vpop.eup %5820  ;;  %v3893_v48 = vadd.f32 %v4646_v11, %v3797_v40  ;;  %v3738_v50 = vadd.f32 1.0, %v5819_v52 }
 0x268   : > { %v5823_v59 = vpop.eup %5822  ;;  %4055 = vst [vmem:[%s7028_s29 + $0xb0] sm:$0xf] %v4594_v18  ;;  %v3896_v2 = vadd.f32 %v4651_v60, %v3800_v15  ;;  %v3743_v61 = vadd.f32 1.0, %v5821_v43 }
 0x269   : > { %v5825_v12 = vpop.eup %5824  ;;  %v4592_v22 = vpack.c.bf16 %v3893_v48, %v3893_v48  ;;  %5836 = vrcp.f32 %v3738_v50  ;;  %v3741_v45 = vadd.f32 1.0, %v5823_v59 }
 0x26a   : > { %v5827_v9 = vpop.eup %5826  ;;  %v4595_v32 = vpack.c.bf16 %v3896_v2, %v3896_v2  ;;  %v3798_v10 = vmul.f32 %v5825_v12, %v7330_v49  ;;  %5838 = vrcp.f32 %v3743_v61 }
 0x26b   : > { %4053 = vst [vmem:[%s7028_s29 + $0xa0] sm:$0xf] %v4592_v22  ;;  %5840 = vrcp.f32 %v3741_v45  ;;  %v3744_v23 = vadd.f32 1.0, %v5827_v9 }
 0x26c   : > { %v5829_v58 = vpop.eup %5828  ;;  %4056 = vst [vmem:[%s7028_s29 + $0xb8] sm:$0xf] %v4595_v32  ;;  %v3894_v57 = vadd.f32 %v4647_v16, %v3798_v10 }
 0x26d   : > { %v5831_v47 = vpop.eup %5830  ;;  %v3803_v3 = vmul.f32 %v5829_v58, %v7333_v1  ;;  %5842 = vrcp.f32 %v3744_v23 }
 0x26e   : > { %v5833_v42 = vpop.eup %5832  ;;  %v4593_v29 = vpack.c.bf16 %v3894_v57, %v3894_v57  ;;  %v3801_v49 = vmul.f32 %v5831_v47, %v7349_v46  ;;  %v4666_v46 = vunpack.c.l.bf16 %v4682_v26 }
 0x26f   : > { %v5835_v30 = vpop.eup %5834  ;;  %v3899_v55 = vadd.f32 %v4658_v63, %v3803_v3  ;;  %v3742_v53 = vadd.f32 1.0, %v5833_v42 }
 0x270   : > { %4054 = vst [vmem:[%s7028_s29 + $0xa8] sm:$0xf] %v4593_v29  ;;  %v3897_v6 = vadd.f32 %v4654_v27, %v3801_v49  ;;  %v3804_v8 = vmul.f32 %v5835_v30, %v7352_v41 }
 0x271   : > { %v4598_v13 = vpack.c.bf16 %v3899_v55, %v3899_v55  ;;  %5844 = vrcp.f32 %v3742_v53 }
 0x272   : > { %v4596_v1 = vpack.c.bf16 %v3897_v6, %v3897_v6  ;;  %v3900_v4 = vadd.f32 %v4659_v25, %v3804_v8 }
 0x273   : > { %v5837_v39 = vpop.eup %5836  ;;  %4059 = vst [vmem:[%s7028_s29 + $0xd0] sm:$0xf] %v4598_v13 }
 0x274   : > { %v5839_v62 = vpop.eup %5838  ;;  %4057 = vst [vmem:[%s7028_s29 + $0xc0] sm:$0xf] %v4596_v1  ;;  %v4599_v7 = vpack.c.bf16 %v3900_v4, %v3900_v4  ;;  %v3802_v56 = vmul.f32 %v5837_v39, %v7371_v5 }
 0x275   : > { %v5841_v28 = vpop.eup %5840  ;;  %v3807_v41 = vmul.f32 %v5839_v62, %v7374_v24  ;;  %v4663_v24 = vunpack.c.h.bf16 %v4681_v0 }
 0x276   : > { %4060 = vst [vmem:[%s7028_s29 + $0xd8] sm:$0xf] %v4599_v7  ;;  %v3898_v20 = vadd.f32 %v4655_v19, %v3802_v56  ;;  %v3805_v14 = vmul.f32 %v5841_v28, %v7378_v51 }
 0x277   : > { %v5843_v21 = vpop.eup %5842  ;;  %v3903_v11 = vadd.f32 %v4666_v46, %v3807_v41 }
 0x278   : > { %v4597_v35 = vpack.c.bf16 %v3898_v20, %v3898_v20  ;;  %v3901_v17 = vadd.f32 %v4662_v36, %v3805_v14  ;;  %v3808_v44 = vmul.f32 %v5843_v21, %v7388_v54 }
 0x279   : > { %v4602_v5 = vpack.c.bf16 %v3903_v11, %v3903_v11 }
 0x27a   : > { %4058 = vst [vmem:[%s7028_s29 + $0xc8] sm:$0xf] %v4597_v35  ;;  %v4600_v60 = vpack.c.bf16 %v3901_v17, %v3901_v17  ;;  %v3904_v34 = vadd.f32 %v4667_v37, %v3808_v44 }
 0x27b   : > { %v5845_v40 = vpop.eup %5844  ;;  %4063 = vst [vmem:[%s7028_s29 + $0xf0] sm:$0xf] %v4602_v5 }
 0x27c   : > { %4061 = vst [vmem:[%s7028_s29 + $0xe0] sm:$0xf] %v4600_v60  ;;  %v4603_v52 = vpack.c.bf16 %v3904_v34, %v3904_v34  ;;  %v3806_v51 = vmul.f32 %v5845_v40, %v7400_v33 }
 0x27e   : > { %4064 = vst [vmem:[%s7028_s29 + $0xf8] sm:$0xf] %v4603_v52  ;;  %v3902_v18 = vadd.f32 %v4663_v24, %v3806_v51 }
 0x280   : > { %v4601_v15 = vpack.c.bf16 %v3902_v18, %v3902_v18 }
 0x282   : > { %4062 = vst [vmem:[%s7028_s29 + $0xe8] sm:$0xf] %v4601_v15 }
 0x283 PF: > { %p12_p9 = scmp.ge.s32.totalorder %s5934_s22, 4   ;;  %s7498_s18 = smov %s5881_s19 }
 0x284   : > { %s7499_s19 = smov %s5943_s25  ;;  %s7500_s20 = smov %s5934_s22 }
 0x285   :  { %14 = sbr.rel (!%p12_p9) target bundleno = 2 (0x2), region = 130 }

</bundles_post_ra>
